<compile_context>
chip_gen: v7x
topology: tpu7x:2x2x1
jax: 0.10.0
libtpu: 0.0.40
codegen_flags: <defaults>
</compile_context>

<pallas_src>
import math
import jax
import jax.numpy as jnp
from jax.experimental import pallas as pl
from jax.experimental.pallas import tpu as pltpu


def _round_up(v, m):
    return ((v + m - 1) // m) * m


# -----------------------------------------------------------------------------
# Kernel
# -----------------------------------------------------------------------------
def dnerf_kernel(xt_ref, *refs):
    """refs = 29 parameter refs (order defined by pack_params) followed by the
    fused output ref (TM, 4): column 0 = relu(sigma), columns 1:4 = sigmoid(rgb).
    Processes one tile of TM points."""
    out_ref = refs[-1]
    p = refs[:-1]
    f32 = jnp.float32
    bf16 = jnp.bfloat16

    def matmul(h_bf, w_ref):
        # bf16 operands on the MXU, f32 accumulation.
        return jnp.dot(h_bf, w_ref[...], preferred_element_type=f32)

    def layer(h_bf, w_ref, b_ref):
        return matmul(h_bf, w_ref) + b_ref[...]

    def relu(v):
        return jnp.maximum(v, 0.0)

    xt = xt_ref[...]             # (TM, 4) f32 = cat([x, t], -1)
    x = xt[:, :3]                # free lane slice within one vreg tile
    xt_bf = xt.astype(bf16)      # hoisted: feeds layer 0 and the skip concat

    # ---- warp MLP: depth=4, width=64, skip-concat of the input after layer 2.
    h = relu(layer(xt_bf, p[0], p[1]))                   # layer 0: (TM,4)@(4,64)
    h = relu(layer(h.astype(bf16), p[2], p[3]))          # layer 1
    h = relu(layer(h.astype(bf16), p[4], p[5]))          # layer 2
    # cat([h, xt], -1) @ W3  ==  h @ W3[:64] + xt @ W3[64:]   (skip connection);
    # W3 is pre-split into p[6]=(64,64) and p[7]=(4,64) in the wrapper.
    h = relu(matmul(h.astype(bf16), p[6]) + matmul(xt_bf, p[7]) + p[8][...])
    warp_out = layer(h.astype(bf16), p[9], p[10])        # output layer (TM, 3)

    # ---- deformed positions (kept in f32; warp_out is O(1e-4))
    xw = x + warp_out                                    # (TM, 3)

    # ---- nerf base MLP: depth=8, width=256, no skip, ReLU, no output layer
    h = xw
    for i in range(8):
        h = relu(layer(h.astype(bf16), p[11 + 2 * i], p[12 + 2 * i]))

    # ---- fused heads: [sigma | rgb] in a single (256, 4) projection.
    raw = layer(h.astype(bf16), p[27], p[28])            # (TM, 4)
    col = jax.lax.broadcasted_iota(jnp.int32, raw.shape, 1)
    out_ref[...] = jnp.where(col == 0, relu(raw), jax.nn.sigmoid(raw))


# -----------------------------------------------------------------------------
# Parameter repacking (module layout -> kernel layout)
# -----------------------------------------------------------------------------
def pack_params(params):
    """Repack the module-shaped f32 params (see build_params) for the kernel:
    bf16 weights (f32 biases), warp skip weight split into h/xt parts, and the
    sigma/rgb heads fused into one (256, 4) [sigma | rgb] projection."""
    bf16 = jnp.bfloat16
    p = params
    kp = []
    # warp hidden layers 0..2
    for i in range(3):
        kp.append(p[2 * i].astype(bf16))
        kp.append(p[2 * i + 1])
    # warp hidden layer 3 (skip): split (68,64) -> h-part (64,64) + xt-part (4,64)
    kp.append(p[6][:64, :].astype(bf16))
    kp.append(p[6][64:, :].astype(bf16))
    kp.append(p[7])
    # warp output layer
    kp.append(p[8].astype(bf16))
    kp.append(p[9])
    # nerf base MLP (8 layers)
    for i in range(8):
        kp.append(p[10 + 2 * i].astype(bf16))
        kp.append(p[11 + 2 * i])
    # fused heads: [sigma (256,1) | rgb (256,3)] -> (256,4); biases -> (1,4)
    kp.append(jnp.concatenate([p[26], p[28]], axis=1).astype(bf16))
    kp.append(jnp.concatenate([p[27], p[29]], axis=1))
    return kp


# -----------------------------------------------------------------------------
# Wrapper
# -----------------------------------------------------------------------------
def dnerf_forward(x, t, params, *, tm=2048, vmem_limit_bytes=None):
    """x: (N, 3) float32, t: (N, 1) float32. Returns (rgb (N,3), sigma (N,1)).

    tm: points per grid step. Compute-bound kernel -> prefer 1024-4096.
    On v7x keep tm <= N/8 (two TensorCores share the parallel grid axis);
    raise vmem_limit_bytes (e.g. 48-64 MiB) if pushing tm past 2048 on v5e."""
    n = x.shape[0]
    tm = max(8, min(_round_up(tm, 8), _round_up(n, 8)))   # shrink tile for small N
    n_pad = _round_up(n, tm)
    pad = n_pad - n

    xt = jnp.concatenate([x.astype(jnp.float32), t.astype(jnp.float32)], axis=-1)
    xt = jnp.pad(xt, ((0, pad), (0, 0)))                  # (Np, 4) — glue only

    kp = pack_params(params)

    in_specs = [pl.BlockSpec((tm, 4), lambda i: (i, 0))] + [
        pl.BlockSpec(w.shape, lambda i: (0, 0))           # resident weight/bias
        for w in kp
    ]
    out_specs = pl.BlockSpec((tm, 4), lambda i: (i, 0))   # fused [sigma | rgb]

    # Advisory cost: ~0.95 MFLOP/point, one sigmoid per output lane, weights+I/O.
    macs_per_point = (4 * 64 + 64 * 64 + 64 * 64 + 68 * 64 + 64 * 3
                      + 3 * 256 + 7 * 256 * 256 + 256 * 4)
    weight_bytes = sum(int(w.size) * int(w.dtype.itemsize) for w in kp)
    cost = pl.CostEstimate(
        flops=2 * macs_per_point * n_pad,
        transcendentals=4 * n_pad,
        bytes_accessed=weight_bytes + 32 * n_pad,
    )

    out = pl.pallas_call(
        dnerf_kernel,
        out_shape=jax.ShapeDtypeStruct((n_pad, 4), jnp.float32),
        grid_spec=pltpu.PrefetchScalarGridSpec(
            num_scalar_prefetch=0,
            grid=(n_pad // tm,),
            in_specs=in_specs,
            out_specs=out_specs,
        ),
        compiler_params=pltpu.CompilerParams(
            dimension_semantics=("parallel",),
            vmem_limit_bytes=vmem_limit_bytes),
        cost_estimate=cost,
    )(xt, *kp)

    sigma = out[:n, 0:1]
    rgb = out[:n, 1:4]
    return rgb, sigma


# -----------------------------------------------------------------------------
# Deterministic parameter construction (matches module __init__ shapes, f32)
# -----------------------------------------------------------------------------
def _xavier_uniform(key, fan_in, fan_out):
    bound = math.sqrt(6.0 / (fan_in + fan_out))
    return jax.random.uniform(key, (fan_in, fan_out), jnp.float32, -bound, bound)


def build_params(key):
    keys = iter(jax.random.split(key, 32))
    params = []

    # warp MLP hidden layers: 4 -> 64 -> 64 -> 64 -> (skip 68) -> 64
    warp_in = [4, 64, 64, 68]
    for fin in warp_in:
        params.append(_xavier_uniform(next(keys), fin, 64))
        params.append(jnp.zeros((1, 64), jnp.float32))
    # warp output layer: 64 -> 3, init uniform_(a=0, b=1e-4), zero bias
    params.append(jax.random.uniform(next(keys), (64, 3), jnp.float32, 0.0, 1e-4))
    params.append(jnp.zeros((1, 3), jnp.float32))

    # nerf base MLP: 3 -> 256, then 7 x (256 -> 256)
    base_in = [3] + [256] * 7
    for fin in base_in:
        params.append(_xavier_uniform(next(keys), fin, 256))
        params.append(jnp.zeros((1, 256), jnp.float32))

    # sigma head: 256 -> 1 ; rgb head: 256 -> 3
    params.append(_xavier_uniform(next(keys), 256, 1))
    params.append(jnp.zeros((1, 1), jnp.float32))
    params.append(_xavier_uniform(next(keys), 256, 3))
    params.append(jnp.zeros((1, 3), jnp.float32))
    return params


# -----------------------------------------------------------------------------
# Pure-JAX f32 reference (same math, module layout, for validation)
# -----------------------------------------------------------------------------
def dnerf_reference(x, t, p):
    relu = jax.nn.relu
    xt = jnp.concatenate([x, t], -1)
    h = relu(xt @ p[0] + p[1])
    h = relu(h @ p[2] + p[3])
    h = relu(h @ p[4] + p[5])
    h = jnp.concatenate([h, xt], -1)
    h = relu(h @ p[6] + p[7])
    warp = h @ p[8] + p[9]
    xw = x + warp
    h = xw
    for i in range(8):
        h = relu(h @ p[10 + 2 * i] + p[11 + 2 * i])
    sigma = h @ p[26] + p[27]
    rgb = h @ p[28] + p[29]
    return jax.nn.sigmoid(rgb), relu(sigma)


# -----------------------------------------------------------------------------
if __name__ == "__main__":
    key = jax.random.PRNGKey(0)
    kx, kt, kp = jax.random.split(key, 3)

    N = 1003                      # small; exercises padding + a multi-step grid
    x = jax.random.normal(kx, (N, 3), jnp.float32)
    t = jax.random.uniform(kt, (N, 1), jnp.float32)
    params = build_params(kp)

    rgb, sigma = dnerf_forward(x, t, params, tm=256)
    jax.block_until_ready((rgb, sigma))

    rgb_ref, sigma_ref = dnerf_reference(x, t, params)
    assert rgb.shape == (N, 3) and sigma.shape == (N, 1)
    # bf16 matmuls with f32 accumulation: loosened tolerance vs the f32 reference.
    assert jnp.allclose(rgb, rgb_ref, atol=2e-2, rtol=2e-2)
    assert jnp.allclose(sigma, sigma_ref, atol=2e-2, rtol=2e-2)

    print("KERNEL_OK")
</pallas_src>

<mosaic_0001>
module attributes {stable_mosaic.version = 11 : i64} {
  func.func @dnerf_kernel(%arg0: i32, %arg1: memref<256x4xf32, #tpu.memory_space<vmem>>, %arg2: memref<4x64xbf16, #tpu.memory_space<vmem>>, %arg3: memref<1x64xf32, #tpu.memory_space<vmem>>, %arg4: memref<64x64xbf16, #tpu.memory_space<vmem>>, %arg5: memref<1x64xf32, #tpu.memory_space<vmem>>, %arg6: memref<64x64xbf16, #tpu.memory_space<vmem>>, %arg7: memref<1x64xf32, #tpu.memory_space<vmem>>, %arg8: memref<64x64xbf16, #tpu.memory_space<vmem>>, %arg9: memref<4x64xbf16, #tpu.memory_space<vmem>>, %arg10: memref<1x64xf32, #tpu.memory_space<vmem>>, %arg11: memref<64x3xbf16, #tpu.memory_space<vmem>>, %arg12: memref<1x3xf32, #tpu.memory_space<vmem>>, %arg13: memref<3x256xbf16, #tpu.memory_space<vmem>>, %arg14: memref<1x256xf32, #tpu.memory_space<vmem>>, %arg15: memref<256x256xbf16, #tpu.memory_space<vmem>>, %arg16: memref<1x256xf32, #tpu.memory_space<vmem>>, %arg17: memref<256x256xbf16, #tpu.memory_space<vmem>>, %arg18: memref<1x256xf32, #tpu.memory_space<vmem>>, %arg19: memref<256x256xbf16, #tpu.memory_space<vmem>>, %arg20: memref<1x256xf32, #tpu.memory_space<vmem>>, %arg21: memref<256x256xbf16, #tpu.memory_space<vmem>>, %arg22: memref<1x256xf32, #tpu.memory_space<vmem>>, %arg23: memref<256x256xbf16, #tpu.memory_space<vmem>>, %arg24: memref<1x256xf32, #tpu.memory_space<vmem>>, %arg25: memref<256x256xbf16, #tpu.memory_space<vmem>>, %arg26: memref<1x256xf32, #tpu.memory_space<vmem>>, %arg27: memref<256x256xbf16, #tpu.memory_space<vmem>>, %arg28: memref<1x256xf32, #tpu.memory_space<vmem>>, %arg29: memref<256x4xbf16, #tpu.memory_space<vmem>>, %arg30: memref<1x4xf32, #tpu.memory_space<vmem>>, %arg31: memref<256x4xf32, #tpu.memory_space<vmem>>) attributes {dimension_semantics = [#tpu.dimension_semantics<parallel>], iteration_bounds = array<i64: 4>, scalar_prefetch = 0 : i64, scratch_operands = 0 : i64, tpu.core_type = #tpu.core_type<tc>, window_params = [{transform_indices = @transform_0, window_bounds = array<i64: 256, 4>}, {pipeline_mode = #tpu.pipeline_mode<synchronous>, transform_indices = @transform_1, window_bounds = array<i64: 4, 64>}, {pipeline_mode = #tpu.pipeline_mode<synchronous>, transform_indices = @transform_2, window_bounds = array<i64: 1, 64>}, {pipeline_mode = #tpu.pipeline_mode<synchronous>, transform_indices = @transform_3, window_bounds = array<i64: 64, 64>}, {pipeline_mode = #tpu.pipeline_mode<synchronous>, transform_indices = @transform_4, window_bounds = array<i64: 1, 64>}, {pipeline_mode = #tpu.pipeline_mode<synchronous>, transform_indices = @transform_5, window_bounds = array<i64: 64, 64>}, {pipeline_mode = #tpu.pipeline_mode<synchronous>, transform_indices = @transform_6, window_bounds = array<i64: 1, 64>}, {pipeline_mode = #tpu.pipeline_mode<synchronous>, transform_indices = @transform_7, window_bounds = array<i64: 64, 64>}, {pipeline_mode = #tpu.pipeline_mode<synchronous>, transform_indices = @transform_8, window_bounds = array<i64: 4, 64>}, {pipeline_mode = #tpu.pipeline_mode<synchronous>, transform_indices = @transform_9, window_bounds = array<i64: 1, 64>}, {pipeline_mode = #tpu.pipeline_mode<synchronous>, transform_indices = @transform_10, window_bounds = array<i64: 64, 3>}, {pipeline_mode = #tpu.pipeline_mode<synchronous>, transform_indices = @transform_11, window_bounds = array<i64: 1, 3>}, {pipeline_mode = #tpu.pipeline_mode<synchronous>, transform_indices = @transform_12, window_bounds = array<i64: 3, 256>}, {pipeline_mode = #tpu.pipeline_mode<synchronous>, transform_indices = @transform_13, window_bounds = array<i64: 1, 256>}, {pipeline_mode = #tpu.pipeline_mode<synchronous>, transform_indices = @transform_14, window_bounds = array<i64: 256, 256>}, {pipeline_mode = #tpu.pipeline_mode<synchronous>, transform_indices = @transform_15, window_bounds = array<i64: 1, 256>}, {pipeline_mode = #tpu.pipeline_mode<synchronous>, transform_indices = @transform_16, window_bounds = array<i64: 256, 256>}, {pipeline_mode = #tpu.pipeline_mode<synchronous>, transform_indices = @transform_17, window_bounds = array<i64: 1, 256>}, {pipeline_mode = #tpu.pipeline_mode<synchronous>, transform_indices = @transform_18, window_bounds = array<i64: 256, 256>}, {pipeline_mode = #tpu.pipeline_mode<synchronous>, transform_indices = @transform_19, window_bounds = array<i64: 1, 256>}, {pipeline_mode = #tpu.pipeline_mode<synchronous>, transform_indices = @transform_20, window_bounds = array<i64: 256, 256>}, {pipeline_mode = #tpu.pipeline_mode<synchronous>, transform_indices = @transform_21, window_bounds = array<i64: 1, 256>}, {pipeline_mode = #tpu.pipeline_mode<synchronous>, transform_indices = @transform_22, window_bounds = array<i64: 256, 256>}, {pipeline_mode = #tpu.pipeline_mode<synchronous>, transform_indices = @transform_23, window_bounds = array<i64: 1, 256>}, {pipeline_mode = #tpu.pipeline_mode<synchronous>, transform_indices = @transform_24, window_bounds = array<i64: 256, 256>}, {pipeline_mode = #tpu.pipeline_mode<synchronous>, transform_indices = @transform_25, window_bounds = array<i64: 1, 256>}, {pipeline_mode = #tpu.pipeline_mode<synchronous>, transform_indices = @transform_26, window_bounds = array<i64: 256, 256>}, {pipeline_mode = #tpu.pipeline_mode<synchronous>, transform_indices = @transform_27, window_bounds = array<i64: 1, 256>}, {pipeline_mode = #tpu.pipeline_mode<synchronous>, transform_indices = @transform_28, window_bounds = array<i64: 256, 4>}, {pipeline_mode = #tpu.pipeline_mode<synchronous>, transform_indices = @transform_29, window_bounds = array<i64: 1, 4>}, {transform_indices = @transform_30, window_bounds = array<i64: 256, 4>}]} {
    %c0 = arith.constant 0 : index
    %c0_0 = arith.constant 0 : index
    %0 = vector.load %arg1[%c0, %c0_0] : memref<256x4xf32, #tpu.memory_space<vmem>>, vector<256x4xf32>
    %1 = vector.extract_strided_slice %0 {offsets = [0, 0], sizes = [256, 3], strides = [1, 1]} : vector<256x4xf32> to vector<256x3xf32>
    %2 = arith.truncf %0 : vector<256x4xf32> to vector<256x4xbf16>
    %c0_1 = arith.constant 0 : index
    %c0_2 = arith.constant 0 : index
    %3 = vector.load %arg2[%c0_1, %c0_2] : memref<4x64xbf16, #tpu.memory_space<vmem>>, vector<4x64xbf16>
    %cst = arith.constant dense<0.000000e+00> : vector<256x64xf32>
    %4 = tpu.matmul %2, %3, %cst {dimension_numbers = #tpu.dot_dimension_numbers<[1], [0], [0], [1], [0, 0, 1, 1], [], []>} : vector<256x4xbf16>, vector<4x64xbf16>, vector<256x64xf32> -> vector<256x64xf32>
    %c0_3 = arith.constant 0 : index
    %c0_4 = arith.constant 0 : index
    %5 = vector.load %arg3[%c0_3, %c0_4] : memref<1x64xf32, #tpu.memory_space<vmem>>, vector<1x64xf32>
    %6 = vector.broadcast %5 : vector<1x64xf32> to vector<256x64xf32>
    %7 = arith.addf %4, %6 : vector<256x64xf32>
    %cst_5 = arith.constant 0.000000e+00 : f32
    %8 = vector.broadcast %cst_5 : f32 to vector<256x64xf32>
    %9 = arith.maximumf %7, %8 : vector<256x64xf32>
    %10 = arith.truncf %9 : vector<256x64xf32> to vector<256x64xbf16>
    %c0_6 = arith.constant 0 : index
    %c0_7 = arith.constant 0 : index
    %11 = vector.load %arg4[%c0_6, %c0_7] : memref<64x64xbf16, #tpu.memory_space<vmem>>, vector<64x64xbf16>
    %cst_8 = arith.constant dense<0.000000e+00> : vector<256x64xf32>
    %12 = tpu.matmul %10, %11, %cst_8 {dimension_numbers = #tpu.dot_dimension_numbers<[1], [0], [0], [1], [0, 0, 1, 1], [], []>} : vector<256x64xbf16>, vector<64x64xbf16>, vector<256x64xf32> -> vector<256x64xf32>
    %c0_9 = arith.constant 0 : index
    %c0_10 = arith.constant 0 : index
    %13 = vector.load %arg5[%c0_9, %c0_10] : memref<1x64xf32, #tpu.memory_space<vmem>>, vector<1x64xf32>
    %14 = vector.broadcast %13 : vector<1x64xf32> to vector<256x64xf32>
    %15 = arith.addf %12, %14 : vector<256x64xf32>
    %cst_11 = arith.constant 0.000000e+00 : f32
    %16 = vector.broadcast %cst_11 : f32 to vector<256x64xf32>
    %17 = arith.maximumf %15, %16 : vector<256x64xf32>
    %18 = arith.truncf %17 : vector<256x64xf32> to vector<256x64xbf16>
    %c0_12 = arith.constant 0 : index
    %c0_13 = arith.constant 0 : index
    %19 = vector.load %arg6[%c0_12, %c0_13] : memref<64x64xbf16, #tpu.memory_space<vmem>>, vector<64x64xbf16>
    %cst_14 = arith.constant dense<0.000000e+00> : vector<256x64xf32>
    %20 = tpu.matmul %18, %19, %cst_14 {dimension_numbers = #tpu.dot_dimension_numbers<[1], [0], [0], [1], [0, 0, 1, 1], [], []>} : vector<256x64xbf16>, vector<64x64xbf16>, vector<256x64xf32> -> vector<256x64xf32>
    %c0_15 = arith.constant 0 : index
    %c0_16 = arith.constant 0 : index
    %21 = vector.load %arg7[%c0_15, %c0_16] : memref<1x64xf32, #tpu.memory_space<vmem>>, vector<1x64xf32>
    %22 = vector.broadcast %21 : vector<1x64xf32> to vector<256x64xf32>
    %23 = arith.addf %20, %22 : vector<256x64xf32>
    %cst_17 = arith.constant 0.000000e+00 : f32
    %24 = vector.broadcast %cst_17 : f32 to vector<256x64xf32>
    %25 = arith.maximumf %23, %24 : vector<256x64xf32>
    %26 = arith.truncf %25 : vector<256x64xf32> to vector<256x64xbf16>
    %c0_18 = arith.constant 0 : index
    %c0_19 = arith.constant 0 : index
    %27 = vector.load %arg8[%c0_18, %c0_19] : memref<64x64xbf16, #tpu.memory_space<vmem>>, vector<64x64xbf16>
    %cst_20 = arith.constant dense<0.000000e+00> : vector<256x64xf32>
    %28 = tpu.matmul %26, %27, %cst_20 {dimension_numbers = #tpu.dot_dimension_numbers<[1], [0], [0], [1], [0, 0, 1, 1], [], []>} : vector<256x64xbf16>, vector<64x64xbf16>, vector<256x64xf32> -> vector<256x64xf32>
    %c0_21 = arith.constant 0 : index
    %c0_22 = arith.constant 0 : index
    %29 = vector.load %arg9[%c0_21, %c0_22] : memref<4x64xbf16, #tpu.memory_space<vmem>>, vector<4x64xbf16>
    %cst_23 = arith.constant dense<0.000000e+00> : vector<256x64xf32>
    %30 = tpu.matmul %2, %29, %cst_23 {dimension_numbers = #tpu.dot_dimension_numbers<[1], [0], [0], [1], [0, 0, 1, 1], [], []>} : vector<256x4xbf16>, vector<4x64xbf16>, vector<256x64xf32> -> vector<256x64xf32>
    %31 = arith.addf %28, %30 : vector<256x64xf32>
    %c0_24 = arith.constant 0 : index
    %c0_25 = arith.constant 0 : index
    %32 = vector.load %arg10[%c0_24, %c0_25] : memref<1x64xf32, #tpu.memory_space<vmem>>, vector<1x64xf32>
    %33 = vector.broadcast %32 : vector<1x64xf32> to vector<256x64xf32>
    %34 = arith.addf %31, %33 : vector<256x64xf32>
    %cst_26 = arith.constant 0.000000e+00 : f32
    %35 = vector.broadcast %cst_26 : f32 to vector<256x64xf32>
    %36 = arith.maximumf %34, %35 : vector<256x64xf32>
    %37 = arith.truncf %36 : vector<256x64xf32> to vector<256x64xbf16>
    %c0_27 = arith.constant 0 : index
    %c0_28 = arith.constant 0 : index
    %38 = vector.load %arg11[%c0_27, %c0_28] : memref<64x3xbf16, #tpu.memory_space<vmem>>, vector<64x3xbf16>
    %cst_29 = arith.constant dense<0.000000e+00> : vector<256x3xf32>
    %39 = tpu.matmul %37, %38, %cst_29 {dimension_numbers = #tpu.dot_dimension_numbers<[1], [0], [0], [1], [0, 0, 1, 1], [], []>} : vector<256x64xbf16>, vector<64x3xbf16>, vector<256x3xf32> -> vector<256x3xf32>
    %c0_30 = arith.constant 0 : index
    %c0_31 = arith.constant 0 : index
    %40 = vector.load %arg12[%c0_30, %c0_31] : memref<1x3xf32, #tpu.memory_space<vmem>>, vector<1x3xf32>
    %41 = vector.broadcast %40 : vector<1x3xf32> to vector<256x3xf32>
    %42 = arith.addf %39, %41 : vector<256x3xf32>
    %43 = arith.addf %1, %42 : vector<256x3xf32>
    %44 = arith.truncf %43 : vector<256x3xf32> to vector<256x3xbf16>
    %c0_32 = arith.constant 0 : index
    %c0_33 = arith.constant 0 : index
    %45 = vector.load %arg13[%c0_32, %c0_33] : memref<3x256xbf16, #tpu.memory_space<vmem>>, vector<3x256xbf16>
    %cst_34 = arith.constant dense<0.000000e+00> : vector<256x256xf32>
    %46 = tpu.matmul %44, %45, %cst_34 {dimension_numbers = #tpu.dot_dimension_numbers<[1], [0], [0], [1], [0, 0, 1, 1], [], []>} : vector<256x3xbf16>, vector<3x256xbf16>, vector<256x256xf32> -> vector<256x256xf32>
    %c0_35 = arith.constant 0 : index
    %c0_36 = arith.constant 0 : index
    %47 = vector.load %arg14[%c0_35, %c0_36] : memref<1x256xf32, #tpu.memory_space<vmem>>, vector<1x256xf32>
    %48 = vector.broadcast %47 : vector<1x256xf32> to vector<256x256xf32>
    %49 = arith.addf %46, %48 : vector<256x256xf32>
    %cst_37 = arith.constant 0.000000e+00 : f32
    %50 = vector.broadcast %cst_37 : f32 to vector<256x256xf32>
    %51 = arith.maximumf %49, %50 : vector<256x256xf32>
    %52 = arith.truncf %51 : vector<256x256xf32> to vector<256x256xbf16>
    %c0_38 = arith.constant 0 : index
    %c0_39 = arith.constant 0 : index
    %53 = vector.load %arg15[%c0_38, %c0_39] : memref<256x256xbf16, #tpu.memory_space<vmem>>, vector<256x256xbf16>
    %cst_40 = arith.constant dense<0.000000e+00> : vector<256x256xf32>
    %54 = tpu.matmul %52, %53, %cst_40 {dimension_numbers = #tpu.dot_dimension_numbers<[1], [0], [0], [1], [0, 0, 1, 1], [], []>} : vector<256x256xbf16>, vector<256x256xbf16>, vector<256x256xf32> -> vector<256x256xf32>
    %c0_41 = arith.constant 0 : index
    %c0_42 = arith.constant 0 : index
    %55 = vector.load %arg16[%c0_41, %c0_42] : memref<1x256xf32, #tpu.memory_space<vmem>>, vector<1x256xf32>
    %56 = vector.broadcast %55 : vector<1x256xf32> to vector<256x256xf32>
    %57 = arith.addf %54, %56 : vector<256x256xf32>
    %cst_43 = arith.constant 0.000000e+00 : f32
    %58 = vector.broadcast %cst_43 : f32 to vector<256x256xf32>
    %59 = arith.maximumf %57, %58 : vector<256x256xf32>
    %60 = arith.truncf %59 : vector<256x256xf32> to vector<256x256xbf16>
    %c0_44 = arith.constant 0 : index
    %c0_45 = arith.constant 0 : index
    %61 = vector.load %arg17[%c0_44, %c0_45] : memref<256x256xbf16, #tpu.memory_space<vmem>>, vector<256x256xbf16>
    %cst_46 = arith.constant dense<0.000000e+00> : vector<256x256xf32>
    %62 = tpu.matmul %60, %61, %cst_46 {dimension_numbers = #tpu.dot_dimension_numbers<[1], [0], [0], [1], [0, 0, 1, 1], [], []>} : vector<256x256xbf16>, vector<256x256xbf16>, vector<256x256xf32> -> vector<256x256xf32>
    %c0_47 = arith.constant 0 : index
    %c0_48 = arith.constant 0 : index
    %63 = vector.load %arg18[%c0_47, %c0_48] : memref<1x256xf32, #tpu.memory_space<vmem>>, vector<1x256xf32>
    %64 = vector.broadcast %63 : vector<1x256xf32> to vector<256x256xf32>
    %65 = arith.addf %62, %64 : vector<256x256xf32>
    %cst_49 = arith.constant 0.000000e+00 : f32
    %66 = vector.broadcast %cst_49 : f32 to vector<256x256xf32>
    %67 = arith.maximumf %65, %66 : vector<256x256xf32>
    %68 = arith.truncf %67 : vector<256x256xf32> to vector<256x256xbf16>
    %c0_50 = arith.constant 0 : index
    %c0_51 = arith.constant 0 : index
    %69 = vector.load %arg19[%c0_50, %c0_51] : memref<256x256xbf16, #tpu.memory_space<vmem>>, vector<256x256xbf16>
    %cst_52 = arith.constant dense<0.000000e+00> : vector<256x256xf32>
    %70 = tpu.matmul %68, %69, %cst_52 {dimension_numbers = #tpu.dot_dimension_numbers<[1], [0], [0], [1], [0, 0, 1, 1], [], []>} : vector<256x256xbf16>, vector<256x256xbf16>, vector<256x256xf32> -> vector<256x256xf32>
    %c0_53 = arith.constant 0 : index
    %c0_54 = arith.constant 0 : index
    %71 = vector.load %arg20[%c0_53, %c0_54] : memref<1x256xf32, #tpu.memory_space<vmem>>, vector<1x256xf32>
    %72 = vector.broadcast %71 : vector<1x256xf32> to vector<256x256xf32>
    %73 = arith.addf %70, %72 : vector<256x256xf32>
    %cst_55 = arith.constant 0.000000e+00 : f32
    %74 = vector.broadcast %cst_55 : f32 to vector<256x256xf32>
    %75 = arith.maximumf %73, %74 : vector<256x256xf32>
    %76 = arith.truncf %75 : vector<256x256xf32> to vector<256x256xbf16>
    %c0_56 = arith.constant 0 : index
    %c0_57 = arith.constant 0 : index
    %77 = vector.load %arg21[%c0_56, %c0_57] : memref<256x256xbf16, #tpu.memory_space<vmem>>, vector<256x256xbf16>
    %cst_58 = arith.constant dense<0.000000e+00> : vector<256x256xf32>
    %78 = tpu.matmul %76, %77, %cst_58 {dimension_numbers = #tpu.dot_dimension_numbers<[1], [0], [0], [1], [0, 0, 1, 1], [], []>} : vector<256x256xbf16>, vector<256x256xbf16>, vector<256x256xf32> -> vector<256x256xf32>
    %c0_59 = arith.constant 0 : index
    %c0_60 = arith.constant 0 : index
    %79 = vector.load %arg22[%c0_59, %c0_60] : memref<1x256xf32, #tpu.memory_space<vmem>>, vector<1x256xf32>
    %80 = vector.broadcast %79 : vector<1x256xf32> to vector<256x256xf32>
    %81 = arith.addf %78, %80 : vector<256x256xf32>
    %cst_61 = arith.constant 0.000000e+00 : f32
    %82 = vector.broadcast %cst_61 : f32 to vector<256x256xf32>
    %83 = arith.maximumf %81, %82 : vector<256x256xf32>
    %84 = arith.truncf %83 : vector<256x256xf32> to vector<256x256xbf16>
    %c0_62 = arith.constant 0 : index
    %c0_63 = arith.constant 0 : index
    %85 = vector.load %arg23[%c0_62, %c0_63] : memref<256x256xbf16, #tpu.memory_space<vmem>>, vector<256x256xbf16>
    %cst_64 = arith.constant dense<0.000000e+00> : vector<256x256xf32>
    %86 = tpu.matmul %84, %85, %cst_64 {dimension_numbers = #tpu.dot_dimension_numbers<[1], [0], [0], [1], [0, 0, 1, 1], [], []>} : vector<256x256xbf16>, vector<256x256xbf16>, vector<256x256xf32> -> vector<256x256xf32>
    %c0_65 = arith.constant 0 : index
    %c0_66 = arith.constant 0 : index
    %87 = vector.load %arg24[%c0_65, %c0_66] : memref<1x256xf32, #tpu.memory_space<vmem>>, vector<1x256xf32>
    %88 = vector.broadcast %87 : vector<1x256xf32> to vector<256x256xf32>
    %89 = arith.addf %86, %88 : vector<256x256xf32>
    %cst_67 = arith.constant 0.000000e+00 : f32
    %90 = vector.broadcast %cst_67 : f32 to vector<256x256xf32>
    %91 = arith.maximumf %89, %90 : vector<256x256xf32>
    %92 = arith.truncf %91 : vector<256x256xf32> to vector<256x256xbf16>
    %c0_68 = arith.constant 0 : index
    %c0_69 = arith.constant 0 : index
    %93 = vector.load %arg25[%c0_68, %c0_69] : memref<256x256xbf16, #tpu.memory_space<vmem>>, vector<256x256xbf16>
    %cst_70 = arith.constant dense<0.000000e+00> : vector<256x256xf32>
    %94 = tpu.matmul %92, %93, %cst_70 {dimension_numbers = #tpu.dot_dimension_numbers<[1], [0], [0], [1], [0, 0, 1, 1], [], []>} : vector<256x256xbf16>, vector<256x256xbf16>, vector<256x256xf32> -> vector<256x256xf32>
    %c0_71 = arith.constant 0 : index
    %c0_72 = arith.constant 0 : index
    %95 = vector.load %arg26[%c0_71, %c0_72] : memref<1x256xf32, #tpu.memory_space<vmem>>, vector<1x256xf32>
    %96 = vector.broadcast %95 : vector<1x256xf32> to vector<256x256xf32>
    %97 = arith.addf %94, %96 : vector<256x256xf32>
    %cst_73 = arith.constant 0.000000e+00 : f32
    %98 = vector.broadcast %cst_73 : f32 to vector<256x256xf32>
    %99 = arith.maximumf %97, %98 : vector<256x256xf32>
    %100 = arith.truncf %99 : vector<256x256xf32> to vector<256x256xbf16>
    %c0_74 = arith.constant 0 : index
    %c0_75 = arith.constant 0 : index
    %101 = vector.load %arg27[%c0_74, %c0_75] : memref<256x256xbf16, #tpu.memory_space<vmem>>, vector<256x256xbf16>
    %cst_76 = arith.constant dense<0.000000e+00> : vector<256x256xf32>
    %102 = tpu.matmul %100, %101, %cst_76 {dimension_numbers = #tpu.dot_dimension_numbers<[1], [0], [0], [1], [0, 0, 1, 1], [], []>} : vector<256x256xbf16>, vector<256x256xbf16>, vector<256x256xf32> -> vector<256x256xf32>
    %c0_77 = arith.constant 0 : index
    %c0_78 = arith.constant 0 : index
    %103 = vector.load %arg28[%c0_77, %c0_78] : memref<1x256xf32, #tpu.memory_space<vmem>>, vector<1x256xf32>
    %104 = vector.broadcast %103 : vector<1x256xf32> to vector<256x256xf32>
    %105 = arith.addf %102, %104 : vector<256x256xf32>
    %cst_79 = arith.constant 0.000000e+00 : f32
    %106 = vector.broadcast %cst_79 : f32 to vector<256x256xf32>
    %107 = arith.maximumf %105, %106 : vector<256x256xf32>
    %108 = arith.truncf %107 : vector<256x256xf32> to vector<256x256xbf16>
    %c0_80 = arith.constant 0 : index
    %c0_81 = arith.constant 0 : index
    %109 = vector.load %arg29[%c0_80, %c0_81] : memref<256x4xbf16, #tpu.memory_space<vmem>>, vector<256x4xbf16>
    %cst_82 = arith.constant dense<0.000000e+00> : vector<256x4xf32>
    %110 = tpu.matmul %108, %109, %cst_82 {dimension_numbers = #tpu.dot_dimension_numbers<[1], [0], [0], [1], [0, 0, 1, 1], [], []>} : vector<256x256xbf16>, vector<256x4xbf16>, vector<256x4xf32> -> vector<256x4xf32>
    %c0_83 = arith.constant 0 : index
    %c0_84 = arith.constant 0 : index
    %111 = vector.load %arg30[%c0_83, %c0_84] : memref<1x4xf32, #tpu.memory_space<vmem>>, vector<1x4xf32>
    %112 = vector.broadcast %111 : vector<1x4xf32> to vector<256x4xf32>
    %113 = arith.addf %110, %112 : vector<256x4xf32>
    %114 = tpu.iota {dimensions = array<i32: 1>} : vector<256x4xi32>
    %c0_i32 = arith.constant 0 : i32
    %115 = vector.broadcast %c0_i32 : i32 to vector<256x4xi32>
    %116 = arith.cmpi eq, %114, %115 : vector<256x4xi32>
    %cst_85 = arith.constant 0.000000e+00 : f32
    %117 = vector.broadcast %cst_85 : f32 to vector<256x4xf32>
    %118 = arith.maximumf %113, %117 : vector<256x4xf32>
    %119 = arith.negf %113 : vector<256x4xf32>
    %120 = math.exp %119 : vector<256x4xf32>
    %cst_86 = arith.constant 1.000000e+00 : f32
    %121 = vector.broadcast %cst_86 : f32 to vector<256x4xf32>
    %122 = arith.addf %121, %120 : vector<256x4xf32>
    %123 = arith.divf %121, %122 : vector<256x4xf32>
    %124 = arith.select %116, %118, %123 : vector<256x4xi1>, vector<256x4xf32>
    %c0_87 = arith.constant 0 : index
    %c0_88 = arith.constant 0 : index
    %125 = vector.load %arg31[%c0_87, %c0_88] : memref<256x4xf32, #tpu.memory_space<vmem>>, vector<256x4xf32>
    tpu.vector_store %arg31[%c0_87, %c0_88], %124 {strides = array<i32>} : memref<256x4xf32, #tpu.memory_space<vmem>>, vector<256x4xf32>,
    return
  }
  func.func @transform_0(%arg0: i32) -> (i32, i32) {
    %c0_i32 = arith.constant 0 : i32
    %c0_i32_0 = arith.constant 0 : i32
    return %arg0, %c0_i32 : i32, i32
  }
  func.func @transform_1(%arg0: i32) -> (i32, i32) {
    %c0_i32 = arith.constant 0 : i32
    %c0_i32_0 = arith.constant 0 : i32
    %c0_i32_1 = arith.constant 0 : i32
    return %c0_i32, %c0_i32_0 : i32, i32
  }
  func.func @transform_2(%arg0: i32) -> (i32, i32) {
    %c0_i32 = arith.constant 0 : i32
    %c0_i32_0 = arith.constant 0 : i32
    %c0_i32_1 = arith.constant 0 : i32
    return %c0_i32, %c0_i32_0 : i32, i32
  }
  func.func @transform_3(%arg0: i32) -> (i32, i32) {
    %c0_i32 = arith.constant 0 : i32
    %c0_i32_0 = arith.constant 0 : i32
    %c0_i32_1 = arith.constant 0 : i32
    return %c0_i32, %c0_i32_0 : i32, i32
  }
  func.func @transform_4(%arg0: i32) -> (i32, i32) {
    %c0_i32 = arith.constant 0 : i32
    %c0_i32_0 = arith.constant 0 : i32
    %c0_i32_1 = arith.constant 0 : i32
    return %c0_i32, %c0_i32_0 : i32, i32
  }
  func.func @transform_5(%arg0: i32) -> (i32, i32) {
    %c0_i32 = arith.constant 0 : i32
    %c0_i32_0 = arith.constant 0 : i32
    %c0_i32_1 = arith.constant 0 : i32
    return %c0_i32, %c0_i32_0 : i32, i32
  }
  func.func @transform_6(%arg0: i32) -> (i32, i32) {
    %c0_i32 = arith.constant 0 : i32
    %c0_i32_0 = arith.constant 0 : i32
    %c0_i32_1 = arith.constant 0 : i32
    return %c0_i32, %c0_i32_0 : i32, i32
  }
  func.func @transform_7(%arg0: i32) -> (i32, i32) {
    %c0_i32 = arith.constant 0 : i32
    %c0_i32_0 = arith.constant 0 : i32
    %c0_i32_1 = arith.constant 0 : i32
    return %c0_i32, %c0_i32_0 : i32, i32
  }
  func.func @transform_8(%arg0: i32) -> (i32, i32) {
    %c0_i32 = arith.constant 0 : i32
    %c0_i32_0 = arith.constant 0 : i32
    %c0_i32_1 = arith.constant 0 : i32
    return %c0_i32, %c0_i32_0 : i32, i32
  }
  func.func @transform_9(%arg0: i32) -> (i32, i32) {
    %c0_i32 = arith.constant 0 : i32
    %c0_i32_0 = arith.constant 0 : i32
    %c0_i32_1 = arith.constant 0 : i32
    return %c0_i32, %c0_i32_0 : i32, i32
  }
  func.func @transform_10(%arg0: i32) -> (i32, i32) {
    %c0_i32 = arith.constant 0 : i32
    %c0_i32_0 = arith.constant 0 : i32
    %c0_i32_1 = arith.constant 0 : i32
    return %c0_i32, %c0_i32_0 : i32, i32
  }
  func.func @transform_11(%arg0: i32) -> (i32, i32) {
    %c0_i32 = arith.constant 0 : i32
    %c0_i32_0 = arith.constant 0 : i32
    %c0_i32_1 = arith.constant 0 : i32
    return %c0_i32, %c0_i32_0 : i32, i32
  }
  func.func @transform_12(%arg0: i32) -> (i32, i32) {
    %c0_i32 = arith.constant 0 : i32
    %c0_i32_0 = arith.constant 0 : i32
    %c0_i32_1 = arith.constant 0 : i32
    return %c0_i32, %c0_i32_0 : i32, i32
  }
  func.func @transform_13(%arg0: i32) -> (i32, i32) {
    %c0_i32 = arith.constant 0 : i32
    %c0_i32_0 = arith.constant 0 : i32
    %c0_i32_1 = arith.constant 0 : i32
    return %c0_i32, %c0_i32_0 : i32, i32
  }
  func.func @transform_14(%arg0: i32) -> (i32, i32) {
    %c0_i32 = arith.constant 0 : i32
    %c0_i32_0 = arith.constant 0 : i32
    %c0_i32_1 = arith.constant 0 : i32
    return %c0_i32, %c0_i32_0 : i32, i32
  }
  func.func @transform_15(%arg0: i32) -> (i32, i32) {
    %c0_i32 = arith.constant 0 : i32
    %c0_i32_0 = arith.constant 0 : i32
    %c0_i32_1 = arith.constant 0 : i32
    return %c0_i32, %c0_i32_0 : i32, i32
  }
  func.func @transform_16(%arg0: i32) -> (i32, i32) {
    %c0_i32 = arith.constant 0 : i32
    %c0_i32_0 = arith.constant 0 : i32
    %c0_i32_1 = arith.constant 0 : i32
    return %c0_i32, %c0_i32_0 : i32, i32
  }
  func.func @transform_17(%arg0: i32) -> (i32, i32) {
    %c0_i32 = arith.constant 0 : i32
    %c0_i32_0 = arith.constant 0 : i32
    %c0_i32_1 = arith.constant 0 : i32
    return %c0_i32, %c0_i32_0 : i32, i32
  }
  func.func @transform_18(%arg0: i32) -> (i32, i32) {
    %c0_i32 = arith.constant 0 : i32
    %c0_i32_0 = arith.constant 0 : i32
    %c0_i32_1 = arith.constant 0 : i32
    return %c0_i32, %c0_i32_0 : i32, i32
  }
  func.func @transform_19(%arg0: i32) -> (i32, i32) {
    %c0_i32 = arith.constant 0 : i32
    %c0_i32_0 = arith.constant 0 : i32
    %c0_i32_1 = arith.constant 0 : i32
    return %c0_i32, %c0_i32_0 : i32, i32
  }
  func.func @transform_20(%arg0: i32) -> (i32, i32) {
    %c0_i32 = arith.constant 0 : i32
    %c0_i32_0 = arith.constant 0 : i32
    %c0_i32_1 = arith.constant 0 : i32
    return %c0_i32, %c0_i32_0 : i32, i32
  }
  func.func @transform_21(%arg0: i32) -> (i32, i32) {
    %c0_i32 = arith.constant 0 : i32
    %c0_i32_0 = arith.constant 0 : i32
    %c0_i32_1 = arith.constant 0 : i32
    return %c0_i32, %c0_i32_0 : i32, i32
  }
  func.func @transform_22(%arg0: i32) -> (i32, i32) {
    %c0_i32 = arith.constant 0 : i32
    %c0_i32_0 = arith.constant 0 : i32
    %c0_i32_1 = arith.constant 0 : i32
    return %c0_i32, %c0_i32_0 : i32, i32
  }
  func.func @transform_23(%arg0: i32) -> (i32, i32) {
    %c0_i32 = arith.constant 0 : i32
    %c0_i32_0 = arith.constant 0 : i32
    %c0_i32_1 = arith.constant 0 : i32
    return %c0_i32, %c0_i32_0 : i32, i32
  }
  func.func @transform_24(%arg0: i32) -> (i32, i32) {
    %c0_i32 = arith.constant 0 : i32
    %c0_i32_0 = arith.constant 0 : i32
    %c0_i32_1 = arith.constant 0 : i32
    return %c0_i32, %c0_i32_0 : i32, i32
  }
  func.func @transform_25(%arg0: i32) -> (i32, i32) {
    %c0_i32 = arith.constant 0 : i32
    %c0_i32_0 = arith.constant 0 : i32
    %c0_i32_1 = arith.constant 0 : i32
    return %c0_i32, %c0_i32_0 : i32, i32
  }
  func.func @transform_26(%arg0: i32) -> (i32, i32) {
    %c0_i32 = arith.constant 0 : i32
    %c0_i32_0 = arith.constant 0 : i32
    %c0_i32_1 = arith.constant 0 : i32
    return %c0_i32, %c0_i32_0 : i32, i32
  }
  func.func @transform_27(%arg0: i32) -> (i32, i32) {
    %c0_i32 = arith.constant 0 : i32
    %c0_i32_0 = arith.constant 0 : i32
    %c0_i32_1 = arith.constant 0 : i32
    return %c0_i32, %c0_i32_0 : i32, i32
  }
  func.func @transform_28(%arg0: i32) -> (i32, i32) {
    %c0_i32 = arith.constant 0 : i32
    %c0_i32_0 = arith.constant 0 : i32
    %c0_i32_1 = arith.constant 0 : i32
    return %c0_i32, %c0_i32_0 : i32, i32
  }
  func.func @transform_29(%arg0: i32) -> (i32, i32) {
    %c0_i32 = arith.constant 0 : i32
    %c0_i32_0 = arith.constant 0 : i32
    %c0_i32_1 = arith.constant 0 : i32
    return %c0_i32, %c0_i32_0 : i32, i32
  }
  func.func @transform_30(%arg0: i32) -> (i32, i32) {
    %c0_i32 = arith.constant 0 : i32
    %c0_i32_0 = arith.constant 0 : i32
    return %arg0, %c0_i32 : i32, i32
  }
}

</mosaic_0001>

<bundles_post_ra>
// kernel: tpu_custom_call.1
= control target key start
LH: loop header
LB: loop body
LE: loop exit
PB: predicated region body
PF: predicated region fallthrough
CT: control target
= control target key end

     0   :  { %s8832_s6 = smov 1   ;;  %s8833_s10 = smov 2   ;;  %s10666_s0 = inlined_call_operand.smem [shape: u32[31], index: -1, kind: input, shape index: {}] }
   0x1   :  { %s8877_s5 = sld [smem:[%s10666_s0]]   ;;  %s8834_s14 = smov 3  }
   0x2   :  { %s8882_s9 = sld [smem:[%s10666_s0 + %s8832_s6]]   ;;  %s8835_s18 = smov 4  }
   0x3   :  { %s8887_s13 = sld [smem:[%s10666_s0 + %s8833_s10]]   ;;  %s8836_s22 = smov 5  }
   0x4   :  { %s8892_s17 = sld [smem:[%s10666_s0 + %s8834_s14]]   ;;  %s8837_s26 = smov 6  }
   0x5   :  { %s8897_s21 = sld [smem:[%s10666_s0 + %s8835_s18]]   ;;  %s8838_s30 = smov 7  }
   0x6   :  { %s8902_s25 = sld [smem:[%s10666_s0 + %s8836_s22]]   ;;  %s8839_s4 = smov 8  }
   0x7   :  { %s8907_s29 = sld [smem:[%s10666_s0 + %s8837_s26]]   ;;  %s8840_s10 = smov 9  }
   0x8   :  { %s8912_s3 = sld [smem:[%s10666_s0 + %s8838_s30]]   ;;  %s8841_s15 = smov 10  }
   0x9   :  { %s8917_s8 = sld [smem:[%s10666_s0 + %s8839_s4]]   ;;  %s8842_s20 = smov 11  }
   0xa   :  { %s8922_s14 = sld [smem:[%s10666_s0 + %s8840_s10]]   ;;  %s8843_s26 = smov 12  }
   0xb   :  { %s8927_s19 = sld [smem:[%s10666_s0 + %s8841_s15]]   ;;  %s8844_s1 = smov 13  }
   0xc   :  { %s8932_s24 = sld [smem:[%s10666_s0 + %s8842_s20]]   ;;  %s8845_s7 = smov 14  }
   0xd   :  { %s8937_s30 = sld [smem:[%s10666_s0 + %s8843_s26]]   ;;  %s8846_s15 = smov 15  }
   0xe   :  { %s8942_s6 = sld [smem:[%s10666_s0 + %s8844_s1]]   ;;  %s8847_s22 = smov 16  }
   0xf   :  { %s8947_s12 = sld [smem:[%s10666_s0 + %s8845_s7]]   ;;  %s8848_s28 = smov 17  }
  0x10   :  { %10674 = sst [smem:[#allocation9_spill]] %s8922_s14  ;;  %s8849_s7 = smov 18  }
  0x11   :  { %s8952_s20 = sld [smem:[%s10666_s0 + %s8846_s15]]   ;;  %s8850_s15 = smov 19  }
  0x12   :  { %10675 = sst [smem:[#allocation10_spill]] %s8932_s24 }
  0x13   :  { %s8957_s27 = sld [smem:[%s10666_s0 + %s8847_s22]]   ;;  %s8851_s22 = smov 20  }
  0x14   :  { %10676 = sst [smem:[#allocation11_spill]] %s8942_s6 }
  0x15   :  { %10677 = sst [smem:[#allocation12_spill]] %s8947_s12 }
  0x16   :  { %s8962_s4 = sld [smem:[%s10666_s0 + %s8848_s28]]   ;;  %s8852_s28 = smov 21  }
  0x17   :  { %10678 = sst [smem:[#allocation13_spill]] %s8952_s20 }
  0x18   :  { %s8967_s6 = sld [smem:[%s10666_s0 + %s8849_s7]]   ;;  %s8853_s7 = smov 22  }
  0x19   :  { %10679 = sst [smem:[#allocation14_spill]] %s8957_s27 }
  0x1a   :  { %s8972_s20 = sld [smem:[%s10666_s0 + %s8850_s15]]   ;;  %s8854_s15 = smov 23  }
  0x1b   :  { %s8977_s27 = sld [smem:[%s10666_s0 + %s8851_s22]]   ;;  %s8855_s22 = smov 24  }
  0x1c   :  { %10680 = sst [smem:[#allocation15_spill]] %s8962_s4 }
  0x1d   :  { %s8982_s4 = sld [smem:[%s10666_s0 + %s8852_s28]]   ;;  %s8856_s28 = smov 25  }
  0x1e   :  { %10681 = sst [smem:[#allocation16_spill]] %s8967_s6 }
  0x1f   :  { %s8987_s6 = sld [smem:[%s10666_s0 + %s8853_s7]]   ;;  %s8857_s7 = smov 26  }
  0x20   :  { %10682 = sst [smem:[#allocation17_spill]] %s8972_s20 }
  0x21   :  { %10683 = sst [smem:[#allocation18_spill]] %s8977_s27 }
  0x22   :  { %s8992_s20 = sld [smem:[%s10666_s0 + %s8854_s15]]   ;;  %s8858_s15 = smov 27  }
  0x23   :  { %10684 = sst [smem:[#allocation19_spill]] %s8982_s4 }
  0x24   :  { %s8997_s27 = sld [smem:[%s10666_s0 + %s8855_s22]]   ;;  %s8859_s22 = smov 28  }
  0x25   :  { %s9002_s4 = sld [smem:[%s10666_s0 + %s8856_s28]]   ;;  %s8860_s28 = smov 29  }
  0x26   :  { %s9007_s12 = sld [smem:[%s10666_s0 + %s8857_s7]]   ;;  %s8861_s7 = smov 30  }
  0x27   :  { %s9017_s24 = sld [smem:[%s10666_s0 + %s8859_s22]]  }
  0x28   :  { %10685 = sst [smem:[#allocation20_spill]] %s8992_s20 }
  0x29   :  { %s9012_s20 = sld [smem:[%s10666_s0 + %s8858_s15]]  }
  0x2a   :  { %s9027_s14 = sld [smem:[%s10666_s0 + %s8861_s7]]  }
  0x2b   :  { %10686 = sst [smem:[#allocation21_spill]] %s9002_s4 }
  0x2c   :  { %s9022_s4 = sld [smem:[%s10666_s0 + %s8860_s28]]  }
  0x2d   :  { %66 = vsyncpa [#allocation3], 0 }
  0x2e   :  { %67 = vsyncpa [#allocation5], 0  ;;  %s9029_s15 = smov 0  }
  0x2f LB: > { %s7203_s16 = sadd.s32 4294967295, %s8830_s15   ;;  %p7205_p0 = scmp.ge.s32.totalorder %s8830_s15, 1  ;;  %s8830_s15 = sphi %s9029_s15, %s73_s15  }
  0x30   : > { %p739_p1 = scmp.lt.s32.totalorder %s8830_s15, 5  ;;  %p9039_p2 = scmp.eq.s32.totalorder %s7203_s16, 0 }
  0x31   : > { %s8862_s22 = smov [#allocation4]   ;;  %s8863_s26 = smov [#allocation2]  }
  0x32   : > { %s10687_s0 = scalar_select %p9039_p2, 1, 0 }
  0x33   : > { %p9043_p3 = pnand %p7205_p0, %p739_p1  ;;  %s830_s23 = sshll.u32 %s8862_s22, 4  ;;  %s831_s23 = int_to_ptr.vmem [resolvable:$true] %s830_s23 }
  0x34   : > { %s814_s28 = sshll.u32 %s8863_s26, 4  ;;  %s8864_s2 = smov [#allocation6]   ;;  %s9055_s28 = int_to_ptr.vmem [resolvable:$true] %s814_s28 }
  0x35   : > { %s10688_s18 = scalar_select %p9043_p3, 1, 0 }
  0x36   : > { %p8143_p4 = pneg %p9043_p3  ;;  %s846_s7 = sshll.u32 %s8864_s2, 4  ;;  %s9057_s7 = int_to_ptr.vmem [resolvable:$true] %s846_s7 }
  0x37   : > { %s8732_s10 = scalar_lea.hbm %s8997_s27, 4096 }
  0x38   : > { %p9051_p5 = pnand %p9039_p2, %p8143_p4  ;;  %p8733_p6 = scmp.ne.s32.totalorder %s8997_s27, %s8732_s10 }
  0x39   : > { %p8739_p10 = scmp.lt.u32.totalorder %s8732_s10, %s8997_s27 }
  0x3a   : > { %p9063_p7 = pneg %p9051_p5 }
  0x3c   : > { %p8735_p8 = pnand %p9063_p7, %p8733_p6 }
  0x3e   : > { %p8736_p9 = pneg %p8735_p8 }
  0x40   : > { %p8741_p11 = pnand %p8739_p10, %p8736_p9 }
  0x42   : > { %8744 = shalt.err (!%p8741_p11)
}
  0x43   : > { %s8745_s22 = scalar_lea.vmem %s831_s23, 4096  ;;  %p8753_p1 = scmp.lt.s32.totalorder %s831_s23, %s831_s23 }
  0x44   : > { %p8746_p12 = scmp.ne.s32.totalorder %s831_s23, %s8745_s22  ;;  %p8754_p4 = scmp.lt.s32.totalorder %s8745_s22, %s8745_s22 }
  0x46   : > { %p8748_p13 = pnand %p8746_p12, %p9063_p7  ;;  %p8755_p2 = por %p8754_p4, %p8753_p1 }
  0x48   : > { %p8749_p0 = pneg %p8748_p13 }
  0x4a   : > { %p8756_p3 = pnand %p8755_p2, %p8749_p0 }
  0x4c   : > { %8759 = shalt.err (!%p8756_p3)
}
  0x4d   : > { %s8865_s26 = smov 128   ;;  %s8866_s2 = smov 8  }
  0x4e   : > { %8149 = dma.hbm_to_vmem [thread:$0]  (!%p9051_p5), %s8997_s27, 4096, %s831_s23, [#allocation5], %s8865_s26, %s8865_s26, %s8866_s2  }
  0x4f   : > { %s8760_s10 = scalar_lea.hbm %s8987_s6, 4096 }
  0x50   : > { %p8761_p6 = scmp.ne.s32.totalorder %s8987_s6, %s8760_s10  ;;  %p8767_p2 = scmp.lt.u32.totalorder %s8760_s10, %s8987_s6 }
  0x52   : > { %p8763_p8 = pnand %p8761_p6, %p9063_p7 }
  0x54   : > { %p8764_p9 = pneg %p8763_p8 }
  0x56   : > { %p8769_p3 = pnand %p8767_p2, %p8764_p9 }
  0x58   : > { %8772 = shalt.err (!%p8769_p3)
}
  0x59   : > { %s8773_s22 = scalar_lea.vmem %s9055_s28, 4096  ;;  %p8781_p13 = scmp.lt.s32.totalorder %s9055_s28, %s9055_s28 }
  0x5a   : > { %p8774_p10 = scmp.ne.s32.totalorder %s9055_s28, %s8773_s22  ;;  %p8782_p0 = scmp.lt.s32.totalorder %s8773_s22, %s8773_s22 }
  0x5c   : > { %p8776_p11 = pnand %p8774_p10, %p9063_p7  ;;  %p8783_p1 = por %p8782_p0, %p8781_p13 }
  0x5e   : > { %p8777_p12 = pneg %p8776_p11 }
  0x60   : > { %p8784_p4 = pnand %p8783_p1, %p8777_p12 }
  0x62   : > { %8787 = shalt.err (!%p8784_p4)
}
  0x63   : > { %8146 = dma.hbm_to_vmem [thread:$0]  (!%p9051_p5), %s8987_s6, 4096, %s9055_s28, [#allocation3], %s8865_s26, %s8865_s26, %s8866_s2  }
  0x64   : > { %s8788_s23 = scalar_lea.hbm %s9007_s12, 4096 }
  0x65   : > { %p8789_p6 = scmp.ne.s32.totalorder %s9007_s12, %s8788_s23  ;;  %p8795_p2 = scmp.lt.u32.totalorder %s8788_s23, %s9007_s12 }
  0x67   : > { %p8791_p8 = pnand %p8789_p6, %p9063_p7 }
  0x69   : > { %p8792_p9 = pneg %p8791_p8 }
  0x6b   : > { %p8797_p3 = pnand %p8795_p2, %p8792_p9 }
  0x6d   : > { %8800 = shalt.err (!%p8797_p3)
}
  0x6e   : > { %s8801_s10 = scalar_lea.vmem %s9057_s7, 4096  ;;  %p8809_p13 = scmp.lt.s32.totalorder %s9057_s7, %s9057_s7 }
  0x6f   : > { %p8802_p10 = scmp.ne.s32.totalorder %s9057_s7, %s8801_s10  ;;  %p8810_p0 = scmp.lt.s32.totalorder %s8801_s10, %s8801_s10 }
  0x71   : > { %p8804_p11 = pnand %p8802_p10, %p9063_p7  ;;  %p8811_p1 = por %p8810_p0, %p8809_p13 }
  0x73   : > { %p8805_p12 = pneg %p8804_p11 }
  0x75   : > { %p8812_p4 = pnand %p8811_p1, %p8805_p12 }
  0x77   : > { %8815 = shalt.err (!%p8812_p4)
}
  0x78   : > { %8152 = dma.hbm_to_vmem [thread:$0]  (!%p9051_p5), %s9007_s12, 4096, %s9057_s7, [#allocation5], %s8865_s26, %s8865_s26, %s8866_s2  }
  0x79   : > { %p10691_p6 = scmp.ne.s32.totalorder %s10688_s18, 0 }
  0x7a   : > { %p10692_p7 = scmp.ne.s32.totalorder (!%p10691_p6), %s10687_s0, 0 }
  0x7b   : > { %880 = sbr.rel (%p10691_p6) target bundleno = 3395 (0xd43), region = 140 }
  0x82   : > { %8821 = dma.done.wait (%p10692_p7), [#allocation3], 4096  }
  0x83   : > { %8823 = vsyncadd (%p10692_p7), [#allocation3], 4294963200 }
  0x84   : > { %8825 = dma.done.wait (%p10692_p7), [#allocation5], 8192  }
  0x85   : > { %8827 = vsyncadd (%p10692_p7), [#allocation5], 4294959104  ;;  %s7214_s28 = sshll.u32 %s7203_s16, 5  ;;  %vm1084_vm0 = vcmask 1041408   ;;  %v1027_v0 = vld [vmem:[%s8882_s9] sm:$0x3] }
  0x86   : > { %p967_p5 = scmp.lt.s32.totalorder %s7214_s28, 127  ;;  %vm1035_vm1 = vcmask 31744   ;;  %8129 = vmatprep.subr.msk.bf16.mxu0 %vm1084_vm0, %v1027_v0  ;;  %v1086_v3 = vsel %vm1084_vm0, %v1027_v0, 0  ;;  %v8204_v17 = vld [vmem:[%s8892_s17] sm:$0xff]   ;;  %v8205_v20 = vld [vmem:[%s8892_s17 + $0x8] sm:$0xff]   ;;  %v8206_v52 = vld [vmem:[%s8892_s17 + $0x10] sm:$0xff]  }
  0x87   : > { %7854 = vmatpush3.bf16.msra.mxu0 %v1086_v3  ;;  %7887 = vmatprep.subr.bf16.mxu1 %v8204_v17  ;;  %v8207_v53 = vld [vmem:[%s8892_s17 + $0x18] sm:$0xff]   ;;  %v8208_v54 = vld [vmem:[%s8902_s25] sm:$0xff]   ;;  %v8209_v55 = vld [vmem:[%s8902_s25 + $0x8] sm:$0xff]   ;;  %vm1336_vm2 = vcmask 523264   ;;  %s10693_s16 = sld [smem:[#allocation9_spill]]  ;;  %vm2750_vm3 = vcmask 1040384  }
  0x88   : > { %s10707_s28 = smov (!%p967_p5, %s7214_s28), 127  ;;  %7888 = vmatpush3.bf16.msra.mxu1 %v8204_v17  ;;  %7927 = vmatprep.subr.bf16.mxu0 %v8208_v54  ;;  %v8210_v56 = vld [vmem:[%s8902_s25 + $0x10] sm:$0xff]   ;;  %v8211_v57 = vld [vmem:[%s8902_s25 + $0x18] sm:$0xff]   ;;  %v9242_v58 = vld [vmem:[%s8887_s13] ss:$0 sm:$0xff]  ;;  %s10694_s0 = sld [smem:[#allocation10_spill]] }
  0x89   : > { %s7215_s18 = sshll.u32 %s10707_s28, 3  ;;  %7889 = vmatprep.subr.bf16.mxu1 %v8205_v20  ;;  %s10695_s7 = sld [smem:[#allocation12_spill]]  ;;  %vm2701_vm4 = vcmask 23552  }
  0x8a   : > { %s9132_s1 = scalar_lea.vmem %s8877_s5, %s7215_s18  ;;  %s10696_s11 = sld [smem:[#allocation14_spill]] }
  0x8b   : > { %v979_v1 = vld [vmem:[%s9132_s1] sm:$0xff]  ;;  %v980_v2 = vld [vmem:[%s9132_s1 + $0x8] sm:$0xff]  ;;  %v981_v5 = vld [vmem:[%s9132_s1 + $0x10] sm:$0xff]  ;;  %s10697_s26 = sld [smem:[#allocation11_spill]]  ;;  %s10698_s2 = sld [smem:[#allocation16_spill]] }
  0x8c   : > { %v9139_v4 = vpack.c.bf16 %v980_v2, %v979_v1  ;;  %v982_v6 = vld [vmem:[%s9132_s1 + $0x18] sm:$0xff]  ;;  %v983_v7 = vld [vmem:[%s9132_s1 + $0x20] sm:$0xff]  ;;  %v984_v9 = vld [vmem:[%s9132_s1 + $0x28] sm:$0xff]  ;;  %7890 = vmatpush3.bf16.msra.mxu1 %v8205_v20  ;;  %s10699_s22 = sld [smem:[#allocation13_spill]]  ;;  %s10700_s23 = sld [smem:[#allocation18_spill]] }
  0x8d   : > { %v9144_v8 = vpack.c.bf16 %v982_v6, %v981_v5  ;;  %v9149_v10 = vpack.c.bf16 %v984_v9, %v983_v7  ;;  %v985_v11 = vld [vmem:[%s9132_s1 + $0x30] sm:$0xff]  ;;  %v986_v12 = vld [vmem:[%s9132_s1 + $0x38] sm:$0xff]  ;;  %v987_v13 = vld [vmem:[%s9132_s1 + $0x40] sm:$0xff]  ;;  %7891 = vmatprep.subr.bf16.mxu1 %v8206_v52  ;;  %s10701_s10 = sld [smem:[#allocation15_spill]] }
  0x8e   : > { %7855 = vmatprep.mubr.msk.bf16.mxu0 %vm1035_vm1, %v9139_v4  ;;  %v988_v14 = vld [vmem:[%s9132_s1 + $0x48] sm:$0xff]  ;;  %v9159_v15 = vpack.c.bf16 %v986_v12, %v985_v11  ;;  %v989_v18 = vld [vmem:[%s9132_s1 + $0x50] sm:$0xff]  ;;  %v990_v19 = vld [vmem:[%s9132_s1 + $0x58] sm:$0xff] }
  0x8f   : > { %7856 = vmatmul.mubr.msk.bf16.vlgmr.msra.gmra.mrb[0].mxu0 %vm1035_vm1, %v9144_v8  ;;  %v9161_v16 = vpack.c.bf16 %v988_v14, %v987_v13  ;;  %v991_v21 = vld [vmem:[%s9132_s1 + $0x60] sm:$0xff]  ;;  %v992_v22 = vld [vmem:[%s9132_s1 + $0x68] sm:$0xff]  ;;  %v9173_v23 = vpack.c.bf16 %v990_v19, %v989_v18  ;;  %v993_v25 = vld [vmem:[%s9132_s1 + $0x70] sm:$0xff] }
  0x90   : > { %7859 = vmatprep.mubr.msk.bf16.mxu0 %vm1035_vm1, %v9149_v10  ;;  %v9175_v24 = vpack.c.bf16 %v992_v22, %v991_v21  ;;  %v994_v26 = vld [vmem:[%s9132_s1 + $0x78] sm:$0xff]  ;;  %v995_v27 = vld [vmem:[%s9132_s1 + $0x80] sm:$0xff]  ;;  %v996_v28 = vld [vmem:[%s9132_s1 + $0x88] sm:$0xff]  ;;  %7892 = vmatpush3.bf16.msra.mxu1 %v8206_v52 }
  0x91   : > { %v9185_v29 = vpack.c.bf16 %v994_v26, %v993_v25  ;;  %v9187_v30 = vpack.c.bf16 %v996_v28, %v995_v27  ;;  %v997_v31 = vld [vmem:[%s9132_s1 + $0x90] sm:$0xff]  ;;  %v998_v32 = vld [vmem:[%s9132_s1 + $0x98] sm:$0xff]  ;;  %v999_v33 = vld [vmem:[%s9132_s1 + $0xa0] sm:$0xff]  ;;  %7893 = vmatprep.subr.bf16.mxu1 %v8207_v53  ;;  %7928 = vmatpush3.bf16.msra.mxu0 %v8208_v54 }
  0x92   : > { %v1000_v34 = vld [vmem:[%s9132_s1 + $0xa8] sm:$0xff]  ;;  %v9197_v35 = vpack.c.bf16 %v998_v32, %v997_v31  ;;  %v1001_v37 = vld [vmem:[%s9132_s1 + $0xb0] sm:$0xff]  ;;  %v1002_v38 = vld [vmem:[%s9132_s1 + $0xb8] sm:$0xff]  ;;  %7929 = vmatprep.subr.bf16.mxu0 %v8209_v55 }
  0x93   : > { %v9199_v36 = vpack.c.bf16 %v1000_v34, %v999_v33  ;;  %v1003_v39 = vld [vmem:[%s9132_s1 + $0xc0] sm:$0xff]  ;;  %v1004_v40 = vld [vmem:[%s9132_s1 + $0xc8] sm:$0xff]  ;;  %v9209_v41 = vpack.c.bf16 %v1002_v38, %v1001_v37  ;;  %v1005_v43 = vld [vmem:[%s9132_s1 + $0xd0] sm:$0xff] }
  0x94   : > { %v9211_v42 = vpack.c.bf16 %v1004_v40, %v1003_v39  ;;  %v1006_v44 = vld [vmem:[%s9132_s1 + $0xd8] sm:$0xff]  ;;  %v1007_v45 = vld [vmem:[%s9132_s1 + $0xe0] sm:$0xff]  ;;  %v1008_v46 = vld [vmem:[%s9132_s1 + $0xe8] sm:$0xff]  ;;  %7894 = vmatpush3.bf16.msra.mxu1 %v8207_v53 }
  0x95   : > { %v9221_v47 = vpack.c.bf16 %v1006_v44, %v1005_v43  ;;  %v9223_v48 = vpack.c.bf16 %v1008_v46, %v1007_v45  ;;  %v1009_v49 = vld [vmem:[%s9132_s1 + $0xf0] sm:$0xff]  ;;  %v1010_v50 = vld [vmem:[%s9132_s1 + $0xf8] sm:$0xff]  ;;  %7930 = vmatpush3.bf16.msra.mxu0 %v8209_v55 }
  0x96   : > { %v9231_v51 = vpack.c.bf16 %v1010_v50, %v1009_v49  ;;  %7931 = vmatprep.subr.bf16.mxu0 %v8210_v56 }
  0x97   : > { %7860 = vmatmul.mubr.msk.bf16.gmra.mrb[4].mxu0 %vm1035_vm1, %v9159_v15 }
  0x98   : > { %7863 = vmatprep.mubr.msk.bf16.mxu0 %vm1035_vm1, %v9161_v16 }
  0x99   : > { %7932 = vmatpush3.bf16.msra.mxu0 %v8210_v56 }
  0x9a   : > { %7933 = vmatprep.subr.bf16.mxu0 %v8211_v57 }
  0x9d   : > { %7934 = vmatpush3.bf16.msra.mxu0 %v8211_v57 }
  0x9f   : > { %7864 = vmatmul.mubr.msk.bf16.gmra.mrb[8].mxu0 %vm1035_vm1, %v9173_v23 }
  0xa0   : > { %7867 = vmatprep.mubr.msk.bf16.mxu0 %vm1035_vm1, %v9175_v24 }
  0xa7   : > { %7868 = vmatmul.mubr.msk.bf16.gmra.mrb[12].mxu0 %vm1035_vm1, %v9185_v29 }
  0xa8   : > { %7871 = vmatprep.mubr.msk.bf16.mxu0 %vm1035_vm1, %v9187_v30 }
  0xaf   : > { %7872 = vmatmul.mubr.msk.bf16.gmra.mrb[16].mxu0 %vm1035_vm1, %v9197_v35 }
  0xb0   : > { %7875 = vmatprep.mubr.msk.bf16.mxu0 %vm1035_vm1, %v9199_v36 }
  0xb7   : > { %7876 = vmatmul.mubr.msk.bf16.gmra.mrb[20].mxu0 %vm1035_vm1, %v9209_v41 }
  0xb8   : > { %7879 = vmatprep.mubr.msk.bf16.mxu0 %vm1035_vm1, %v9211_v42 }
  0xbf   : > { %7880 = vmatmul.mubr.msk.bf16.gmra.mrb[24].mxu0 %vm1035_vm1, %v9221_v47 }
  0xc0   : > { %7883 = vmatprep.mubr.msk.bf16.mxu0 %vm1035_vm1, %v9223_v48 }
  0xc7   : > { %7884 = vmatmul.mubr.msk.bf16.gmra.mrb[28].mxu0 %vm1035_vm1, %v9231_v51 }
 0x162   : > { %v7857_v59 = vpop.f32.mrb[0].mxu0 }
 0x163   : > { %v1131_v60 = vadd.f32 %v7857_v59, %v9242_v58  ;;  %v1122_v61 = vpop.f32.mrb[1].mxu0 }
 0x164   : > { %v1123_v62 = vadd.f32 %v9242_v58, %v1122_v61  ;;  %v7858_v63 = vpop.f32.mrb[2].mxu0 }
 0x165   : > { %v1134_v0 = vadd.f32 %v7858_v63, %v9242_v58  ;;  %v1125_v1 = vpop.f32.mrb[3].mxu0  ;;  %v1251_v3 = vmax.f32 %v1131_v60, 0.0 }
 0x166   : > { %v1126_v2 = vadd.f32 %v9242_v58, %v1125_v1  ;;  %v1249_v6 = vmax.f32 %v1123_v62, 0.0 }
 0x167   : > { %v1252_v5 = vmax.f32 %v1134_v0, 0.0 }
 0x168   : > { %v1250_v7 = vmax.f32 %v1126_v2, 0.0 }
 0x169   : > { %v1282_v9 = vpack.c.bf16 %v1252_v5, %v1251_v3 }
 0x16a   : > { %v7861_v11 = vpop.f32.mrb[4].mxu0  ;;  %v1281_v12 = vpack.c.bf16 %v1250_v7, %v1249_v6 }
 0x16b   : > { %v1147_v13 = vadd.f32 %v7861_v11, %v9242_v58  ;;  %v1138_v14 = vpop.f32.mrb[5].mxu0 }
 0x16c   : > { %v1139_v17 = vadd.f32 %v9242_v58, %v1138_v14  ;;  %v7862_v18 = vpop.f32.mrb[6].mxu0  ;;  %7895 = vmatprep.mubr.msk.bf16.mxu1 %vm1336_vm2, %v1281_v12 }
 0x16d   : > { %v1255_v19 = vmax.f32 %v1147_v13, 0.0  ;;  %v1150_v20 = vadd.f32 %v7862_v18, %v9242_v58  ;;  %v1141_v21 = vpop.f32.mrb[7].mxu0  ;;  %7896 = vmatmul.mubr.msk.bf16.vlgmr.msra.gmra.mrb[0].mxu1 %vm1336_vm2, %v1282_v9 }
 0x16e   : > { %v1253_v22 = vmax.f32 %v1139_v17, 0.0  ;;  %v1142_v25 = vadd.f32 %v9242_v58, %v1141_v21 }
 0x16f   : > { %v1256_v26 = vmax.f32 %v1150_v20, 0.0 }
 0x170   : > { %v1254_v27 = vmax.f32 %v1142_v25, 0.0 }
 0x171   : > { %v1284_v28 = vpack.c.bf16 %v1256_v26, %v1255_v19 }
 0x172   : > { %v1283_v31 = vpack.c.bf16 %v1254_v27, %v1253_v22  ;;  %v7865_v32 = vpop.f32.mrb[8].mxu0 }
 0x173   : > { %v1163_v33 = vadd.f32 %v7865_v32, %v9242_v58  ;;  %v1154_v34 = vpop.f32.mrb[9].mxu0 }
 0x174   : > { %v1155_v37 = vadd.f32 %v9242_v58, %v1154_v34  ;;  %v7866_v38 = vpop.f32.mrb[10].mxu0  ;;  %7899 = vmatprep.mubr.msk.bf16.mxu1 %vm1336_vm2, %v1283_v31 }
 0x175   : > { %v1259_v39 = vmax.f32 %v1163_v33, 0.0  ;;  %v1166_v40 = vadd.f32 %v7866_v38, %v9242_v58  ;;  %v1157_v43 = vpop.f32.mrb[11].mxu0  ;;  %7900 = vmatmul.mubr.msk.bf16.gmra.mrb[4].mxu1 %vm1336_vm2, %v1284_v28 }
 0x176   : > { %v1257_v44 = vmax.f32 %v1155_v37, 0.0  ;;  %v1158_v45 = vadd.f32 %v9242_v58, %v1157_v43 }
 0x177   : > { %v1260_v46 = vmax.f32 %v1166_v40, 0.0 }
 0x178   : > { %v1258_v49 = vmax.f32 %v1158_v45, 0.0 }
 0x179   : > { %v1286_v50 = vpack.c.bf16 %v1260_v46, %v1259_v39 }
 0x17a   : > { %v1285_v52 = vpack.c.bf16 %v1258_v49, %v1257_v44  ;;  %v7869_v53 = vpop.f32.mrb[12].mxu0 }
 0x17b   : > { %v1179_v54 = vadd.f32 %v7869_v53, %v9242_v58  ;;  %v1170_v55 = vpop.f32.mrb[13].mxu0 }
 0x17c   : > { %v1171_v56 = vadd.f32 %v9242_v58, %v1170_v55  ;;  %v7870_v57 = vpop.f32.mrb[14].mxu0  ;;  %7903 = vmatprep.mubr.msk.bf16.mxu1 %vm1336_vm2, %v1285_v52 }
 0x17d   : > { %v1263_v59 = vmax.f32 %v1179_v54, 0.0  ;;  %v1182_v60 = vadd.f32 %v7870_v57, %v9242_v58  ;;  %v1173_v61 = vpop.f32.mrb[15].mxu0  ;;  %7904 = vmatmul.mubr.msk.bf16.gmra.mrb[8].mxu1 %vm1336_vm2, %v1286_v50 }
 0x17e   : > { %v1261_v62 = vmax.f32 %v1171_v56, 0.0  ;;  %v1174_v63 = vadd.f32 %v9242_v58, %v1173_v61 }
 0x17f   : > { %v1264_v0 = vmax.f32 %v1182_v60, 0.0 }
 0x180   : > { %v1262_v1 = vmax.f32 %v1174_v63, 0.0 }
 0x181   : > { %v1288_v2 = vpack.c.bf16 %v1264_v0, %v1263_v59 }
 0x182   : > { %v1287_v3 = vpack.c.bf16 %v1262_v1, %v1261_v62  ;;  %v7873_v5 = vpop.f32.mrb[16].mxu0 }
 0x183   : > { %v1195_v6 = vadd.f32 %v7873_v5, %v9242_v58  ;;  %v1186_v7 = vpop.f32.mrb[17].mxu0 }
 0x184   : > { %v1187_v9 = vadd.f32 %v9242_v58, %v1186_v7  ;;  %v7874_v11 = vpop.f32.mrb[18].mxu0  ;;  %7907 = vmatprep.mubr.msk.bf16.mxu1 %vm1336_vm2, %v1287_v3 }
 0x185   : > { %v1267_v12 = vmax.f32 %v1195_v6, 0.0  ;;  %v1198_v13 = vadd.f32 %v7874_v11, %v9242_v58  ;;  %v1189_v14 = vpop.f32.mrb[19].mxu0  ;;  %7908 = vmatmul.mubr.msk.bf16.gmra.mrb[12].mxu1 %vm1336_vm2, %v1288_v2 }
 0x186   : > { %v1265_v17 = vmax.f32 %v1187_v9, 0.0  ;;  %v1190_v18 = vadd.f32 %v9242_v58, %v1189_v14 }
 0x187   : > { %v1268_v19 = vmax.f32 %v1198_v13, 0.0 }
 0x188   : > { %v1266_v20 = vmax.f32 %v1190_v18, 0.0  ;;  %v1898_v18 = vld [vmem:[%s8917_s8] sm:$0x3] }
 0x189   : > { %v1290_v21 = vpack.c.bf16 %v1268_v19, %v1267_v12  ;;  %v8212_v19 = vld [vmem:[%s8912_s3] sm:$0xff]   ;;  %8130 = vmatprep.subr.msk.bf16.mxu1 %vm1084_vm0, %v1898_v18 }
 0x18a   : > { %v1289_v22 = vpack.c.bf16 %v1266_v20, %v1265_v17  ;;  %v7877_v25 = vpop.f32.mrb[20].mxu0  ;;  %v1900_v20 = vsel %vm1084_vm0, %v1898_v18, 0 }
 0x18b   : > { %v1211_v26 = vadd.f32 %v7877_v25, %v9242_v58  ;;  %v1202_v27 = vpop.f32.mrb[21].mxu0  ;;  %7968 = vmatpush3.bf16.msra.mxu1 %v1900_v20 }
 0x18c   : > { %v1203_v28 = vadd.f32 %v9242_v58, %v1202_v27  ;;  %v7878_v31 = vpop.f32.mrb[22].mxu0  ;;  %7911 = vmatprep.mubr.msk.bf16.mxu1 %vm1336_vm2, %v1289_v22  ;;  %8001 = vmatprep.subr.bf16.mxu1 %v8212_v19 }
 0x18d   : > { %v1271_v32 = vmax.f32 %v1211_v26, 0.0  ;;  %v1214_v33 = vadd.f32 %v7878_v31, %v9242_v58  ;;  %v1205_v34 = vpop.f32.mrb[23].mxu0  ;;  %7912 = vmatmul.mubr.msk.bf16.gmra.mrb[16].mxu1 %vm1336_vm2, %v1290_v21  ;;  %v8214_v21 = vld [vmem:[%s8912_s3 + $0x10] sm:$0xff]  }
 0x18e   : > { %v1269_v37 = vmax.f32 %v1203_v28, 0.0  ;;  %v1206_v38 = vadd.f32 %v9242_v58, %v1205_v34 }
 0x18f   : > { %v1272_v39 = vmax.f32 %v1214_v33, 0.0 }
 0x190   : > { %v1270_v40 = vmax.f32 %v1206_v38, 0.0 }
 0x191   : > { %v1292_v43 = vpack.c.bf16 %v1272_v39, %v1271_v32 }
 0x192   : > { %v1291_v44 = vpack.c.bf16 %v1270_v40, %v1269_v37  ;;  %v7881_v45 = vpop.f32.mrb[24].mxu0 }
 0x193   : > { %v1227_v46 = vadd.f32 %v7881_v45, %v9242_v58  ;;  %v1218_v49 = vpop.f32.mrb[25].mxu0 }
 0x194   : > { %v1219_v50 = vadd.f32 %v9242_v58, %v1218_v49  ;;  %v7882_v52 = vpop.f32.mrb[26].mxu0  ;;  %7915 = vmatprep.mubr.msk.bf16.mxu1 %vm1336_vm2, %v1291_v44 }
 0x195   : > { %v1275_v53 = vmax.f32 %v1227_v46, 0.0  ;;  %v1230_v54 = vadd.f32 %v7882_v52, %v9242_v58  ;;  %v1221_v55 = vpop.f32.mrb[27].mxu0  ;;  %7916 = vmatmul.mubr.msk.bf16.gmra.mrb[20].mxu1 %vm1336_vm2, %v1292_v43 }
 0x196   : > { %v1273_v56 = vmax.f32 %v1219_v50, 0.0  ;;  %v1222_v57 = vadd.f32 %v9242_v58, %v1221_v55 }
 0x197   : > { %v1276_v59 = vmax.f32 %v1230_v54, 0.0 }
 0x198   : > { %v1274_v60 = vmax.f32 %v1222_v57, 0.0 }
 0x199   : > { %v1294_v61 = vpack.c.bf16 %v1276_v59, %v1275_v53 }
 0x19a   : > { %v1293_v62 = vpack.c.bf16 %v1274_v60, %v1273_v56  ;;  %v7885_v63 = vpop.f32.mrb[28].mxu0 }
 0x19b   : > { %v1243_v0 = vadd.f32 %v7885_v63, %v9242_v58  ;;  %v1234_v1 = vpop.f32.mrb[29].mxu0 }
 0x19c   : > { %v1235_v2 = vadd.f32 %v9242_v58, %v1234_v1  ;;  %v7886_v3 = vpop.f32.mrb[30].mxu0  ;;  %7919 = vmatprep.mubr.msk.bf16.mxu1 %vm1336_vm2, %v1293_v62 }
 0x19d   : > { %v1279_v5 = vmax.f32 %v1243_v0, 0.0  ;;  %v1246_v6 = vadd.f32 %v7886_v3, %v9242_v58  ;;  %v1237_v7 = vpop.f32.mrb[31].mxu0  ;;  %7920 = vmatmul.mubr.msk.bf16.gmra.mrb[24].mxu1 %vm1336_vm2, %v1294_v61 }
 0x19e   : > { %v1277_v9 = vmax.f32 %v1235_v2, 0.0  ;;  %v1238_v11 = vadd.f32 %v9242_v58, %v1237_v7  ;;  %v8213_v58 = vld [vmem:[%s8912_s3 + $0x8] sm:$0xff]  }
 0x19f   : > { %v1280_v12 = vmax.f32 %v1246_v6, 0.0 }
 0x1a0   : > { %v1278_v13 = vmax.f32 %v1238_v11, 0.0 }
 0x1a1   : > { %v1296_v14 = vpack.c.bf16 %v1280_v12, %v1279_v5 }
 0x1a2   : > { %v1295_v17 = vpack.c.bf16 %v1278_v13, %v1277_v9 }
 0x1a4   : > { %7923 = vmatprep.mubr.msk.bf16.mxu1 %vm1336_vm2, %v1295_v17 }
 0x1a5   : > { %7924 = vmatmul.mubr.msk.bf16.gmra.mrb[28].mxu1 %vm1336_vm2, %v1296_v14 }
 0x1a6   : > { %7969 = vmatprep.mubr.msk.bf16.mxu1 %vm1035_vm1, %v9139_v4  ;;  %v8215_v4 = vld [vmem:[%s8912_s3 + $0x18] sm:$0xff]  }
 0x1ad   : > { %7970 = vmatmul.mubr.msk.bf16.vlgmr.msra.gmra.mrb[32].mxu1 %vm1035_vm1, %v9144_v8  ;;  %v9330_v8 = vld [vmem:[%s8897_s21] ss:$0 sm:$0xff] }
 0x1ae   : > { %8002 = vmatpush3.bf16.msra.mxu1 %v8212_v19  ;;  %7973 = vmatprep.mubr.msk.bf16.mxu1 %vm1035_vm1, %v9149_v10 }
 0x1af   : > { %8003 = vmatprep.subr.bf16.mxu1 %v8213_v58 }
 0x1b2   : > { %8004 = vmatpush3.bf16.msra.mxu1 %v8213_v58 }
 0x1b3   : > { %8005 = vmatprep.subr.bf16.mxu1 %v8214_v21 }
 0x1b5   : > { %7974 = vmatmul.mubr.msk.bf16.gmra.mrb[36].mxu1 %vm1035_vm1, %v9159_v15 }
 0x1b6   : > { %7977 = vmatprep.mubr.msk.bf16.mxu1 %vm1035_vm1, %v9161_v16  ;;  %8006 = vmatpush3.bf16.msra.mxu1 %v8214_v21 }
 0x1b7   : > { %8007 = vmatprep.subr.bf16.mxu1 %v8215_v4 }
 0x1ba   : > { %8008 = vmatpush3.bf16.msra.mxu1 %v8215_v4 }
 0x1bd   : > { %7978 = vmatmul.mubr.msk.bf16.gmra.mrb[40].mxu1 %vm1035_vm1, %v9173_v23 }
 0x1be   : > { %7981 = vmatprep.mubr.msk.bf16.mxu1 %vm1035_vm1, %v9175_v24 }
 0x1c5   : > { %7982 = vmatmul.mubr.msk.bf16.gmra.mrb[44].mxu1 %vm1035_vm1, %v9185_v29 }
 0x1c6   : > { %7985 = vmatprep.mubr.msk.bf16.mxu1 %vm1035_vm1, %v9187_v30 }
 0x1cd   : > { %7986 = vmatmul.mubr.msk.bf16.gmra.mrb[48].mxu1 %vm1035_vm1, %v9197_v35 }
 0x1ce   : > { %7989 = vmatprep.mubr.msk.bf16.mxu1 %vm1035_vm1, %v9199_v36 }
 0x1d5   : > { %7990 = vmatmul.mubr.msk.bf16.gmra.mrb[52].mxu1 %vm1035_vm1, %v9209_v41 }
 0x1d6   : > { %7993 = vmatprep.mubr.msk.bf16.mxu1 %vm1035_vm1, %v9211_v42 }
 0x1dd   : > { %7994 = vmatmul.mubr.msk.bf16.gmra.mrb[56].mxu1 %vm1035_vm1, %v9221_v47 }
 0x1de   : > { %7997 = vmatprep.mubr.msk.bf16.mxu1 %vm1035_vm1, %v9223_v48 }
 0x1e5   : > { %7998 = vmatmul.mubr.msk.bf16.gmra.mrb[60].mxu1 %vm1035_vm1, %v9231_v51 }
 0x240   : > { %v7897_v10 = vpop.f32.mrb[0].mxu1 }
 0x241   : > { %v1428_v15 = vadd.f32 %v7897_v10, %v9330_v8  ;;  %v1419_v16 = vpop.f32.mrb[1].mxu1 }
 0x242   : > { %v1420_v23 = vadd.f32 %v9330_v8, %v1419_v16  ;;  %v7898_v24 = vpop.f32.mrb[2].mxu1 }
 0x243   : > { %v1431_v29 = vadd.f32 %v7898_v24, %v9330_v8  ;;  %v1422_v30 = vpop.f32.mrb[3].mxu1  ;;  %v1548_v36 = vmax.f32 %v1428_v15, 0.0 }
 0x244   : > { %v1423_v35 = vadd.f32 %v9330_v8, %v1422_v30  ;;  %v1546_v42 = vmax.f32 %v1420_v23, 0.0 }
 0x245   : > { %v1549_v41 = vmax.f32 %v1431_v29, 0.0 }
 0x246   : > { %v1547_v47 = vmax.f32 %v1423_v35, 0.0 }
 0x247   : > { %v1579_v48 = vpack.c.bf16 %v1549_v41, %v1548_v36 }
 0x248   : > { %v1578_v22 = vpack.c.bf16 %v1547_v47, %v1546_v42  ;;  %v7901_v25 = vpop.f32.mrb[4].mxu1 }
 0x249   : > { %v1444_v51 = vadd.f32 %v7901_v25, %v9330_v8  ;;  %v1435_v26 = vpop.f32.mrb[5].mxu1 }
 0x24a   : > { %v1436_v27 = vadd.f32 %v9330_v8, %v1435_v26  ;;  %v7902_v28 = vpop.f32.mrb[6].mxu1  ;;  %7935 = vmatprep.mubr.msk.bf16.mxu0 %vm1336_vm2, %v1578_v22 }
 0x24b   : > { %v1552_v31 = vmax.f32 %v1444_v51, 0.0  ;;  %v1447_v32 = vadd.f32 %v7902_v28, %v9330_v8  ;;  %v1438_v33 = vpop.f32.mrb[7].mxu1  ;;  %7936 = vmatmul.mubr.msk.bf16.vlgmr.msra.gmra.mrb[32].mxu0 %vm1336_vm2, %v1579_v48 }
 0x24c   : > { %v1550_v34 = vmax.f32 %v1436_v27, 0.0  ;;  %v1439_v37 = vadd.f32 %v9330_v8, %v1438_v33 }
 0x24d   : > { %v1553_v38 = vmax.f32 %v1447_v32, 0.0 }
 0x24e   : > { %v1551_v39 = vmax.f32 %v1439_v37, 0.0 }
 0x24f   : > { %v1581_v40 = vpack.c.bf16 %v1553_v38, %v1552_v31 }
 0x250   : > { %v1580_v43 = vpack.c.bf16 %v1551_v39, %v1550_v34  ;;  %v7905_v44 = vpop.f32.mrb[8].mxu1 }
 0x251   : > { %v1460_v45 = vadd.f32 %v7905_v44, %v9330_v8  ;;  %v1451_v46 = vpop.f32.mrb[9].mxu1 }
 0x252   : > { %v1452_v49 = vadd.f32 %v9330_v8, %v1451_v46  ;;  %v7906_v50 = vpop.f32.mrb[10].mxu1  ;;  %7939 = vmatprep.mubr.msk.bf16.mxu0 %vm1336_vm2, %v1580_v43 }
 0x253   : > { %v1556_v52 = vmax.f32 %v1460_v45, 0.0  ;;  %v1463_v53 = vadd.f32 %v7906_v50, %v9330_v8  ;;  %v1454_v54 = vpop.f32.mrb[11].mxu1  ;;  %7940 = vmatmul.mubr.msk.bf16.gmra.mrb[36].mxu0 %vm1336_vm2, %v1581_v40 }
 0x254   : > { %v1554_v55 = vmax.f32 %v1452_v49, 0.0  ;;  %v1455_v56 = vadd.f32 %v9330_v8, %v1454_v54 }
 0x255   : > { %v1557_v57 = vmax.f32 %v1463_v53, 0.0 }
 0x256   : > { %v1555_v59 = vmax.f32 %v1455_v56, 0.0 }
 0x257   : > { %v1583_v60 = vpack.c.bf16 %v1557_v57, %v1556_v52 }
 0x258   : > { %v1582_v61 = vpack.c.bf16 %v1555_v59, %v1554_v55  ;;  %v7909_v62 = vpop.f32.mrb[12].mxu1 }
 0x259   : > { %v1476_v63 = vadd.f32 %v7909_v62, %v9330_v8  ;;  %v1467_v0 = vpop.f32.mrb[13].mxu1 }
 0x25a   : > { %v1468_v1 = vadd.f32 %v9330_v8, %v1467_v0  ;;  %v7910_v2 = vpop.f32.mrb[14].mxu1  ;;  %7943 = vmatprep.mubr.msk.bf16.mxu0 %vm1336_vm2, %v1582_v61 }
 0x25b   : > { %v1560_v3 = vmax.f32 %v1476_v63, 0.0  ;;  %v1479_v5 = vadd.f32 %v7910_v2, %v9330_v8  ;;  %v1470_v6 = vpop.f32.mrb[15].mxu1  ;;  %7944 = vmatmul.mubr.msk.bf16.gmra.mrb[40].mxu0 %vm1336_vm2, %v1583_v60 }
 0x25c   : > { %v1558_v7 = vmax.f32 %v1468_v1, 0.0  ;;  %v1471_v9 = vadd.f32 %v9330_v8, %v1470_v6  ;;  %v8216_v6 = vld [vmem:[%s8927_s19] sm:$0xff]  }
 0x25d   : > { %v1561_v11 = vmax.f32 %v1479_v5, 0.0  ;;  %8041 = vmatprep.subr.bf16.mxu0 %v8216_v6 }
 0x25e   : > { %v1559_v12 = vmax.f32 %v1471_v9, 0.0  ;;  %8042 = vmatpush3.bf16.msra.mxu0 %v8216_v6  ;;  %v8218_v9 = vld [vmem:[%s8927_s19 + $0x10] sm:$0xff]  }
 0x25f   : > { %v1585_v13 = vpack.c.bf16 %v1561_v11, %v1560_v3  ;;  %v8219_v11 = vld [vmem:[%s8927_s19 + $0x18] sm:$0xff]  }
 0x260   : > { %v1584_v14 = vpack.c.bf16 %v1559_v12, %v1558_v7  ;;  %v7913_v17 = vpop.f32.mrb[16].mxu1  ;;  %v8217_v7 = vld [vmem:[%s8927_s19 + $0x8] sm:$0xff]  }
 0x261   : > { %v1492_v18 = vadd.f32 %v7913_v17, %v9330_v8  ;;  %v1483_v19 = vpop.f32.mrb[17].mxu1  ;;  %8043 = vmatprep.subr.bf16.mxu0 %v8217_v7 }
 0x262   : > { %v1484_v20 = vadd.f32 %v9330_v8, %v1483_v19  ;;  %v7914_v58 = vpop.f32.mrb[18].mxu1  ;;  %7947 = vmatprep.mubr.msk.bf16.mxu0 %vm1336_vm2, %v1584_v14  ;;  %8044 = vmatpush3.bf16.msra.mxu0 %v8217_v7 }
 0x263   : > { %v1564_v21 = vmax.f32 %v1492_v18, 0.0  ;;  %v1495_v4 = vadd.f32 %v7914_v58, %v9330_v8  ;;  %v1486_v10 = vpop.f32.mrb[19].mxu1  ;;  %7948 = vmatmul.mubr.msk.bf16.gmra.mrb[44].mxu0 %vm1336_vm2, %v1585_v13  ;;  %8045 = vmatprep.subr.bf16.mxu0 %v8218_v9 }
 0x264   : > { %v1562_v15 = vmax.f32 %v1484_v20, 0.0  ;;  %v1487_v16 = vadd.f32 %v9330_v8, %v1486_v10 }
 0x265   : > { %v1565_v23 = vmax.f32 %v1495_v4, 0.0 }
 0x266   : > { %v1563_v24 = vmax.f32 %v1487_v16, 0.0  ;;  %8046 = vmatpush3.bf16.msra.mxu0 %v8218_v9 }
 0x267   : > { %v1587_v29 = vpack.c.bf16 %v1565_v23, %v1564_v21  ;;  %8047 = vmatprep.subr.bf16.mxu0 %v8219_v11 }
 0x268   : > { %v1586_v30 = vpack.c.bf16 %v1563_v24, %v1562_v15  ;;  %v7917_v35 = vpop.f32.mrb[20].mxu1 }
 0x269   : > { %v1508_v36 = vadd.f32 %v7917_v35, %v9330_v8  ;;  %v1499_v41 = vpop.f32.mrb[21].mxu1 }
 0x26a   : > { %v1500_v42 = vadd.f32 %v9330_v8, %v1499_v41  ;;  %v7918_v47 = vpop.f32.mrb[22].mxu1  ;;  %7951 = vmatprep.mubr.msk.bf16.mxu0 %vm1336_vm2, %v1586_v30  ;;  %8048 = vmatpush3.bf16.msra.mxu0 %v8219_v11 }
 0x26b   : > { %v1568_v48 = vmax.f32 %v1508_v36, 0.0  ;;  %v1511_v22 = vadd.f32 %v7918_v47, %v9330_v8  ;;  %v1502_v25 = vpop.f32.mrb[23].mxu1  ;;  %7952 = vmatmul.mubr.msk.bf16.gmra.mrb[48].mxu0 %vm1336_vm2, %v1587_v29 }
 0x26c   : > { %v1566_v51 = vmax.f32 %v1500_v42, 0.0  ;;  %v1503_v26 = vadd.f32 %v9330_v8, %v1502_v25 }
 0x26d   : > { %v1569_v27 = vmax.f32 %v1511_v22, 0.0 }
 0x26e   : > { %v1567_v28 = vmax.f32 %v1503_v26, 0.0 }
 0x26f   : > { %v1589_v31 = vpack.c.bf16 %v1569_v27, %v1568_v48 }
 0x270   : > { %v1588_v32 = vpack.c.bf16 %v1567_v28, %v1566_v51  ;;  %v7921_v33 = vpop.f32.mrb[24].mxu1 }
 0x271   : > { %v1524_v34 = vadd.f32 %v7921_v33, %v9330_v8  ;;  %v1515_v37 = vpop.f32.mrb[25].mxu1 }
 0x272   : > { %v1516_v38 = vadd.f32 %v9330_v8, %v1515_v37  ;;  %v7922_v39 = vpop.f32.mrb[26].mxu1  ;;  %7955 = vmatprep.mubr.msk.bf16.mxu0 %vm1336_vm2, %v1588_v32 }
 0x273   : > { %v1572_v40 = vmax.f32 %v1524_v34, 0.0  ;;  %v1527_v43 = vadd.f32 %v7922_v39, %v9330_v8  ;;  %v1518_v44 = vpop.f32.mrb[27].mxu1  ;;  %7956 = vmatmul.mubr.msk.bf16.gmra.mrb[52].mxu0 %vm1336_vm2, %v1589_v31 }
 0x274   : > { %v1570_v45 = vmax.f32 %v1516_v38, 0.0  ;;  %v1519_v46 = vadd.f32 %v9330_v8, %v1518_v44 }
 0x275   : > { %v1573_v49 = vmax.f32 %v1527_v43, 0.0 }
 0x276   : > { %v1571_v50 = vmax.f32 %v1519_v46, 0.0 }
 0x277   : > { %v1591_v52 = vpack.c.bf16 %v1573_v49, %v1572_v40 }
 0x278   : > { %v1590_v53 = vpack.c.bf16 %v1571_v50, %v1570_v45  ;;  %v7925_v54 = vpop.f32.mrb[28].mxu1 }
 0x279   : > { %v1540_v55 = vadd.f32 %v7925_v54, %v9330_v8  ;;  %v1531_v56 = vpop.f32.mrb[29].mxu1 }
 0x27a   : > { %v1532_v57 = vadd.f32 %v9330_v8, %v1531_v56  ;;  %v7926_v59 = vpop.f32.mrb[30].mxu1  ;;  %7959 = vmatprep.mubr.msk.bf16.mxu0 %vm1336_vm2, %v1590_v53 }
 0x27b   : > { %v1576_v60 = vmax.f32 %v1540_v55, 0.0  ;;  %v1543_v61 = vadd.f32 %v7926_v59, %v9330_v8  ;;  %v1534_v62 = vpop.f32.mrb[31].mxu1  ;;  %7960 = vmatmul.mubr.msk.bf16.gmra.mrb[56].mxu0 %vm1336_vm2, %v1591_v52 }
 0x27c   : > { %v1574_v63 = vmax.f32 %v1532_v57, 0.0  ;;  %v1535_v0 = vadd.f32 %v9330_v8, %v1534_v62  ;;  %v9387_v8 = vld [vmem:[%s8907_s29] ss:$0 sm:$0xff] }
 0x27d   : > { %v1577_v1 = vmax.f32 %v1543_v61, 0.0 }
 0x27e   : > { %v1575_v2 = vmax.f32 %v1535_v0, 0.0 }
 0x27f   : > { %v1593_v3 = vpack.c.bf16 %v1577_v1, %v1576_v60 }
 0x280   : > { %v1592_v5 = vpack.c.bf16 %v1575_v2, %v1574_v63 }
 0x282   : > { %7963 = vmatprep.mubr.msk.bf16.mxu0 %vm1336_vm2, %v1592_v5 }
 0x283   : > { %7964 = vmatmul.mubr.msk.bf16.gmra.mrb[60].mxu0 %vm1336_vm2, %v1593_v3 }
 0x31e   : > { %v7937_v12 = vpop.f32.mrb[32].mxu0 }
 0x31f   : > { %v1724_v13 = vadd.f32 %v7937_v12, %v9387_v8  ;;  %v1715_v14 = vpop.f32.mrb[33].mxu0 }
 0x320   : > { %v1716_v17 = vadd.f32 %v9387_v8, %v1715_v14  ;;  %v7938_v18 = vpop.f32.mrb[34].mxu0 }
 0x321   : > { %v1727_v19 = vadd.f32 %v7938_v18, %v9387_v8  ;;  %v1718_v20 = vpop.f32.mrb[35].mxu0  ;;  %v1844_v21 = vmax.f32 %v1724_v13, 0.0 }
 0x322   : > { %v1719_v58 = vadd.f32 %v9387_v8, %v1718_v20  ;;  %v1842_v10 = vmax.f32 %v1716_v17, 0.0 }
 0x323   : > { %v1845_v4 = vmax.f32 %v1727_v19, 0.0 }
 0x324   : > { %v1843_v15 = vmax.f32 %v1719_v58, 0.0 }
 0x325   : > { %v1875_v16 = vpack.c.bf16 %v1845_v4, %v1844_v21 }
 0x326   : > { %v1874_v23 = vpack.c.bf16 %v1843_v15, %v1842_v10  ;;  %v7941_v24 = vpop.f32.mrb[36].mxu0 }
 0x327   : > { %v1740_v29 = vadd.f32 %v7941_v24, %v9387_v8  ;;  %v1731_v30 = vpop.f32.mrb[37].mxu0 }
 0x328   : > { %v1732_v35 = vadd.f32 %v9387_v8, %v1731_v30  ;;  %v7942_v36 = vpop.f32.mrb[38].mxu0  ;;  %8009 = vmatprep.mubr.msk.bf16.mxu1 %vm1336_vm2, %v1874_v23 }
 0x329   : > { %v1743_v41 = vadd.f32 %v7942_v36, %v9387_v8  ;;  %v1734_v42 = vpop.f32.mrb[39].mxu0  ;;  %8010 = vmatmul.mubr.msk.bf16.vlgmr.msra.gmra.mrb[32].mxu1 %vm1336_vm2, %v1875_v16  ;;  %v1848_v48 = vmax.f32 %v1740_v29, 0.0 }
 0x32a   : > { %v1735_v47 = vadd.f32 %v9387_v8, %v1734_v42  ;;  %v1846_v25 = vmax.f32 %v1732_v35, 0.0 }
 0x32b   : > { %v1849_v22 = vmax.f32 %v1743_v41, 0.0 }
 0x32c   : > { %v1847_v51 = vmax.f32 %v1735_v47, 0.0 }
 0x32d   : > { %v1877_v26 = vpack.c.bf16 %v1849_v22, %v1848_v48 }
 0x32e   : > { %v1876_v27 = vpack.c.bf16 %v1847_v51, %v1846_v25  ;;  %v7945_v28 = vpop.f32.mrb[40].mxu0 }
 0x32f   : > { %v1756_v31 = vadd.f32 %v7945_v28, %v9387_v8  ;;  %v1747_v32 = vpop.f32.mrb[41].mxu0 }
 0x330   : > { %v1748_v33 = vadd.f32 %v9387_v8, %v1747_v32  ;;  %v7946_v34 = vpop.f32.mrb[42].mxu0  ;;  %8013 = vmatprep.mubr.msk.bf16.mxu1 %vm1336_vm2, %v1876_v27 }
 0x331   : > { %v1852_v37 = vmax.f32 %v1756_v31, 0.0  ;;  %v1759_v38 = vadd.f32 %v7946_v34, %v9387_v8  ;;  %v1750_v39 = vpop.f32.mrb[43].mxu0  ;;  %8014 = vmatmul.mubr.msk.bf16.gmra.mrb[36].mxu1 %vm1336_vm2, %v1877_v26 }
 0x332   : > { %v1850_v40 = vmax.f32 %v1748_v33, 0.0  ;;  %v1751_v43 = vadd.f32 %v9387_v8, %v1750_v39 }
 0x333   : > { %v1853_v44 = vmax.f32 %v1759_v38, 0.0 }
 0x334   : > { %v1851_v45 = vmax.f32 %v1751_v43, 0.0 }
 0x335   : > { %v1879_v46 = vpack.c.bf16 %v1853_v44, %v1852_v37 }
 0x336   : > { %v1878_v49 = vpack.c.bf16 %v1851_v45, %v1850_v40  ;;  %v7949_v50 = vpop.f32.mrb[44].mxu0 }
 0x337   : > { %v1772_v52 = vadd.f32 %v7949_v50, %v9387_v8  ;;  %v1763_v53 = vpop.f32.mrb[45].mxu0 }
 0x338   : > { %v1764_v54 = vadd.f32 %v9387_v8, %v1763_v53  ;;  %v7950_v55 = vpop.f32.mrb[46].mxu0  ;;  %8017 = vmatprep.mubr.msk.bf16.mxu1 %vm1336_vm2, %v1878_v49 }
 0x339   : > { %v1856_v56 = vmax.f32 %v1772_v52, 0.0  ;;  %v1775_v57 = vadd.f32 %v7950_v55, %v9387_v8  ;;  %v1766_v59 = vpop.f32.mrb[47].mxu0  ;;  %8018 = vmatmul.mubr.msk.bf16.gmra.mrb[40].mxu1 %vm1336_vm2, %v1879_v46 }
 0x33a   : > { %v1854_v60 = vmax.f32 %v1764_v54, 0.0  ;;  %v1767_v61 = vadd.f32 %v9387_v8, %v1766_v59  ;;  %v7335_v59 = vld.sshfl [vmem:[%s8937_s30] sm:$0x33 pattern:$0x76325410] }
 0x33b   : > { %v1857_v62 = vmax.f32 %v1775_v57, 0.0 }
 0x33c   : > { %v1855_v63 = vmax.f32 %v1767_v61, 0.0  ;;  %v8867_v61 = vmov 65535  }
 0x33d   : > { %v1881_v0 = vpack.c.bf16 %v1857_v62, %v1856_v56  ;;  %v2751_v62 = vsel %vm2750_vm3, 4294967295, %v8867_v61 }
 0x33e   : > { %v1880_v1 = vpack.c.bf16 %v1855_v63, %v1854_v60  ;;  %v7953_v2 = vpop.f32.mrb[48].mxu0  ;;  %v2700_v60 = vcombine.high %v7335_v59, %v7335_v59  ;;  %v2752_v63 = vsel %vm1084_vm0, %v2751_v62, 0 }
 0x33f   : > { %v1788_v3 = vadd.f32 %v7953_v2, %v9387_v8  ;;  %v1779_v5 = vpop.f32.mrb[49].mxu0 }
 0x340   : > { %v1780_v6 = vadd.f32 %v9387_v8, %v1779_v5  ;;  %v7954_v7 = vpop.f32.mrb[50].mxu0  ;;  %8021 = vmatprep.mubr.msk.bf16.mxu1 %vm1336_vm2, %v1880_v1  ;;  %v2757_v1 = vand.u32 %v2752_v63, %v2700_v60 }
 0x341   : > { %v1860_v9 = vmax.f32 %v1788_v3, 0.0  ;;  %v1791_v11 = vadd.f32 %v7954_v7, %v9387_v8  ;;  %v1782_v12 = vpop.f32.mrb[51].mxu0  ;;  %8022 = vmatmul.mubr.msk.bf16.gmra.mrb[44].mxu1 %vm1336_vm2, %v1881_v0  ;;  %v2754_v0 = vand.u32 %v7335_v59, %v2752_v63 }
 0x342   : > { %v1858_v13 = vmax.f32 %v1780_v6, 0.0  ;;  %v1783_v14 = vadd.f32 %v9387_v8, %v1782_v12  ;;  %2759 = vmatprep.subr.bf16.mxu0 %v2757_v1 }
 0x343   : > { %v1861_v17 = vmax.f32 %v1791_v11, 0.0 }
 0x344   : > { %v1859_v18 = vmax.f32 %v1783_v14, 0.0 }
 0x345   : > { %v1883_v19 = vpack.c.bf16 %v1861_v17, %v1860_v9 }
 0x346   : > { %v1882_v20 = vpack.c.bf16 %v1859_v18, %v1858_v13  ;;  %v7957_v58 = vpop.f32.mrb[52].mxu0 }
 0x347   : > { %v1804_v21 = vadd.f32 %v7957_v58, %v9387_v8  ;;  %v1795_v4 = vpop.f32.mrb[53].mxu0 }
 0x348   : > { %v1796_v10 = vadd.f32 %v9387_v8, %v1795_v4  ;;  %v7958_v15 = vpop.f32.mrb[54].mxu0  ;;  %8025 = vmatprep.mubr.msk.bf16.mxu1 %vm1336_vm2, %v1882_v20 }
 0x349   : > { %v1864_v16 = vmax.f32 %v1804_v21, 0.0  ;;  %v1807_v23 = vadd.f32 %v7958_v15, %v9387_v8  ;;  %v1798_v24 = vpop.f32.mrb[55].mxu0  ;;  %8026 = vmatmul.mubr.msk.bf16.gmra.mrb[48].mxu1 %vm1336_vm2, %v1883_v19 }
 0x34a   : > { %v1862_v29 = vmax.f32 %v1796_v10, 0.0  ;;  %v1799_v30 = vadd.f32 %v9387_v8, %v1798_v24 }
 0x34b   : > { %v1865_v35 = vmax.f32 %v1807_v23, 0.0 }
 0x34c   : > { %v1863_v36 = vmax.f32 %v1799_v30, 0.0 }
 0x34d   : > { %v1885_v41 = vpack.c.bf16 %v1865_v35, %v1864_v16 }
 0x34e   : > { %v1884_v42 = vpack.c.bf16 %v1863_v36, %v1862_v29  ;;  %v7961_v47 = vpop.f32.mrb[56].mxu0 }
 0x34f   : > { %v1820_v48 = vadd.f32 %v7961_v47, %v9387_v8  ;;  %v1811_v22 = vpop.f32.mrb[57].mxu0 }
 0x350   : > { %v1812_v25 = vadd.f32 %v9387_v8, %v1811_v22  ;;  %v7962_v51 = vpop.f32.mrb[58].mxu0  ;;  %8029 = vmatprep.mubr.msk.bf16.mxu1 %vm1336_vm2, %v1884_v42 }
 0x351   : > { %v1868_v26 = vmax.f32 %v1820_v48, 0.0  ;;  %v1823_v27 = vadd.f32 %v7962_v51, %v9387_v8  ;;  %v1814_v28 = vpop.f32.mrb[59].mxu0  ;;  %8030 = vmatmul.mubr.msk.bf16.gmra.mrb[52].mxu1 %vm1336_vm2, %v1885_v41 }
 0x352   : > { %v1866_v31 = vmax.f32 %v1812_v25, 0.0  ;;  %v1815_v32 = vadd.f32 %v9387_v8, %v1814_v28 }
 0x353   : > { %v1869_v33 = vmax.f32 %v1823_v27, 0.0 }
 0x354   : > { %v1867_v34 = vmax.f32 %v1815_v32, 0.0 }
 0x355   : > { %v1887_v37 = vpack.c.bf16 %v1869_v33, %v1868_v26 }
 0x356   : > { %v1886_v38 = vpack.c.bf16 %v1867_v34, %v1866_v31  ;;  %v7965_v39 = vpop.f32.mrb[60].mxu0 }
 0x357   : > { %v1836_v40 = vadd.f32 %v7965_v39, %v9387_v8  ;;  %v1827_v43 = vpop.f32.mrb[61].mxu0 }
 0x358   : > { %v1828_v44 = vadd.f32 %v9387_v8, %v1827_v43  ;;  %v7966_v45 = vpop.f32.mrb[62].mxu0  ;;  %8033 = vmatprep.mubr.msk.bf16.mxu1 %vm1336_vm2, %v1886_v38 }
 0x359   : > { %v1872_v46 = vmax.f32 %v1836_v40, 0.0  ;;  %v1839_v49 = vadd.f32 %v7966_v45, %v9387_v8  ;;  %v1830_v50 = vpop.f32.mrb[63].mxu0  ;;  %8034 = vmatmul.mubr.msk.bf16.gmra.mrb[56].mxu1 %vm1336_vm2, %v1887_v37 }
 0x35a   : > { %v1870_v52 = vmax.f32 %v1828_v44, 0.0  ;;  %v1831_v53 = vadd.f32 %v9387_v8, %v1830_v50  ;;  %v9440_v8 = vld [vmem:[%s10693_s16] ss:$0 sm:$0xff]  ;;  %s10703_s16 = sld [smem:[#allocation19_spill]] }
 0x35b   : > { %v1873_v54 = vmax.f32 %v1839_v49, 0.0 }
 0x35c   : > { %v1871_v55 = vmax.f32 %v1831_v53, 0.0 }
 0x35d   : > { %v1889_v56 = vpack.c.bf16 %v1873_v54, %v1872_v46 }
 0x35e   : > { %v1888_v57 = vpack.c.bf16 %v1871_v55, %v1870_v52 }
 0x360   : > { %8037 = vmatprep.mubr.msk.bf16.mxu1 %vm1336_vm2, %v1888_v57 }
 0x361   : > { %8038 = vmatmul.mubr.msk.bf16.gmra.mrb[60].mxu1 %vm1336_vm2, %v1889_v56 }
 0x3fc   : > { %v8011_v2 = vpop.f32.mrb[32].mxu1 }
 0x3fd   : > { %v2305_v3 = vadd.f32 %v8011_v2, %v9440_v8  ;;  %v2169_v5 = vpop.f32.mrb[33].mxu1 }
 0x3fe   : > { %v2303_v6 = vadd.f32 %v9440_v8, %v2169_v5  ;;  %v8012_v7 = vpop.f32.mrb[34].mxu1 }
 0x3ff   : > { %v2306_v9 = vadd.f32 %v8012_v7, %v9440_v8  ;;  %v2172_v11 = vpop.f32.mrb[35].mxu1  ;;  %v2337_v13 = vmax.f32 %v2305_v3, 0.0 }
 0x400   : > { %v2304_v12 = vadd.f32 %v9440_v8, %v2172_v11  ;;  %v2335_v17 = vmax.f32 %v2303_v6, 0.0 }
 0x401   : > { %v2338_v14 = vmax.f32 %v2306_v9, 0.0 }
 0x402   : > { %v2336_v18 = vmax.f32 %v2304_v12, 0.0 }
 0x403   : > { %v2368_v19 = vpack.c.bf16 %v2338_v14, %v2337_v13 }
 0x404   : > { %v2367_v20 = vpack.c.bf16 %v2336_v18, %v2335_v17  ;;  %v8015_v58 = vpop.f32.mrb[36].mxu1 }
 0x405   : > { %v2309_v21 = vadd.f32 %v8015_v58, %v9440_v8  ;;  %v2185_v4 = vpop.f32.mrb[37].mxu1 }
 0x406   : > { %v2307_v10 = vadd.f32 %v9440_v8, %v2185_v4  ;;  %v8016_v15 = vpop.f32.mrb[38].mxu1  ;;  %8049 = vmatprep.mubr.msk.bf16.mxu0 %vm1336_vm2, %v2367_v20 }
 0x407   : > { %v2310_v16 = vadd.f32 %v8016_v15, %v9440_v8  ;;  %v2188_v23 = vpop.f32.mrb[39].mxu1  ;;  %8050 = vmatmul.mubr.msk.bf16.vlgmr.msra.gmra.mrb[64].mxu0 %vm1336_vm2, %v2368_v19  ;;  %v2341_v29 = vmax.f32 %v2309_v21, 0.0 }
 0x408   : > { %v2308_v24 = vadd.f32 %v9440_v8, %v2188_v23  ;;  %2760 = vmatpush1.bf16.msra.mxu0 %v2754_v0  ;;  %v2339_v35 = vmax.f32 %v2307_v10, 0.0 }
 0x409   : > { %v2342_v30 = vmax.f32 %v2310_v16, 0.0 }
 0x40a   : > { %v2340_v36 = vmax.f32 %v2308_v24, 0.0 }
 0x40b   : > { %v2370_v41 = vpack.c.bf16 %v2342_v30, %v2341_v29 }
 0x40c   : > { %v2369_v42 = vpack.c.bf16 %v2340_v36, %v2339_v35  ;;  %v8019_v47 = vpop.f32.mrb[40].mxu1 }
 0x40d   : > { %v2313_v48 = vadd.f32 %v8019_v47, %v9440_v8  ;;  %v2201_v22 = vpop.f32.mrb[41].mxu1 }
 0x40e   : > { %v2311_v25 = vadd.f32 %v9440_v8, %v2201_v22  ;;  %v8020_v51 = vpop.f32.mrb[42].mxu1  ;;  %8053 = vmatprep.mubr.msk.bf16.mxu0 %vm1336_vm2, %v2369_v42 }
 0x40f   : > { %v2314_v26 = vadd.f32 %v8020_v51, %v9440_v8  ;;  %v2204_v27 = vpop.f32.mrb[43].mxu1  ;;  %8054 = vmatmul.mubr.msk.bf16.gmra.mrb[68].mxu0 %vm1336_vm2, %v2370_v41  ;;  %v2345_v31 = vmax.f32 %v2313_v48, 0.0 }
 0x410   : > { %v2312_v28 = vadd.f32 %v9440_v8, %v2204_v27  ;;  %v2343_v33 = vmax.f32 %v2311_v25, 0.0 }
 0x411   : > { %v2346_v32 = vmax.f32 %v2314_v26, 0.0 }
 0x412   : > { %v2344_v34 = vmax.f32 %v2312_v28, 0.0 }
 0x413   : > { %v2372_v37 = vpack.c.bf16 %v2346_v32, %v2345_v31 }
 0x414   : > { %v2371_v38 = vpack.c.bf16 %v2344_v34, %v2343_v33  ;;  %v8023_v39 = vpop.f32.mrb[44].mxu1 }
 0x415   : > { %v2317_v40 = vadd.f32 %v8023_v39, %v9440_v8  ;;  %v2217_v43 = vpop.f32.mrb[45].mxu1 }
 0x416   : > { %v2315_v44 = vadd.f32 %v9440_v8, %v2217_v43  ;;  %v8024_v45 = vpop.f32.mrb[46].mxu1  ;;  %8057 = vmatprep.mubr.msk.bf16.mxu0 %vm1336_vm2, %v2371_v38 }
 0x417   : > { %v2318_v46 = vadd.f32 %v8024_v45, %v9440_v8  ;;  %v2220_v49 = vpop.f32.mrb[47].mxu1  ;;  %8058 = vmatmul.mubr.msk.bf16.gmra.mrb[72].mxu0 %vm1336_vm2, %v2372_v37  ;;  %v2349_v52 = vmax.f32 %v2317_v40, 0.0 }
 0x418   : > { %v2316_v50 = vadd.f32 %v9440_v8, %v2220_v49  ;;  %v2347_v54 = vmax.f32 %v2315_v44, 0.0 }
 0x419   : > { %v2350_v53 = vmax.f32 %v2318_v46, 0.0 }
 0x41a   : > { %v2348_v55 = vmax.f32 %v2316_v50, 0.0  ;;  %v8868_v50 = vmov 0  }
 0x41b   : > { %v2374_v56 = vpack.c.bf16 %v2350_v53, %v2349_v52  ;;  %v9492_v52 = vld [vmem:[%s10694_s0] ss:$0 sm:$0xff]  ;;  %s10704_s0 = sld [smem:[#allocation20_spill]] }
 0x41c   : > { %v2373_v57 = vpack.c.bf16 %v2348_v55, %v2347_v54  ;;  %v8027_v59 = vpop.f32.mrb[48].mxu1 }
 0x41d   : > { %v2321_v60 = vadd.f32 %v8027_v59, %v9440_v8  ;;  %v2233_v61 = vpop.f32.mrb[49].mxu1  ;;  %v8222_v59 = vld [vmem:[%s10695_s7 + $0x4] ss:$8 sps:$4 sm:$0xff]  }
 0x41e   : > { %v2319_v62 = vadd.f32 %v9440_v8, %v2233_v61  ;;  %v8028_v63 = vpop.f32.mrb[50].mxu1  ;;  %8061 = vmatprep.mubr.msk.bf16.mxu0 %vm1336_vm2, %v2373_v57  ;;  %v8220_v57 = vld [vmem:[%s10695_s7] ss:$8 sps:$4 sm:$0xff]   ;;  %3252 = vmatprep.subr.bf16.mxu1 %v8222_v59 }
 0x41f   : > { %v2322_v0 = vadd.f32 %v8028_v63, %v9440_v8  ;;  %v2236_v1 = vpop.f32.mrb[51].mxu1  ;;  %8062 = vmatmul.mubr.msk.bf16.gmra.mrb[76].mxu0 %vm1336_vm2, %v2374_v56  ;;  %v2353_v3 = vmax.f32 %v2321_v60, 0.0  ;;  %3253 = vmatpush1.bf16.msra.mxu1 %v8220_v57 }
 0x420   : > { %v2320_v2 = vadd.f32 %v9440_v8, %v2236_v1  ;;  %v2351_v6 = vmax.f32 %v2319_v62, 0.0  ;;  %v8225_v62 = vld [vmem:[%s10695_s7 + $0x14] ss:$8 sps:$4 sm:$0xff]  }
 0x421   : > { %v2354_v5 = vmax.f32 %v2322_v0, 0.0  ;;  %v8700_v0 = vld [vmem:[%s9132_s1 + $0x10] sm:$0xff]  ;;  %3254 = vmatprep.subr.bf16.mxu1 %v8225_v62 }
 0x422   : > { %v2352_v7 = vmax.f32 %v2320_v2, 0.0  ;;  %v8701_v2 = vld [vmem:[%s9132_s1 + $0x18] sm:$0xff] }
 0x423   : > { %v2376_v9 = vpack.c.bf16 %v2354_v5, %v2353_v3  ;;  %v8223_v5 = vld [vmem:[%s10695_s7 + $0x10] ss:$8 sps:$4 sm:$0xff]  }
 0x424   : > { %v2375_v11 = vpack.c.bf16 %v2352_v7, %v2351_v6  ;;  %v8031_v12 = vpop.f32.mrb[52].mxu1  ;;  %v8702_v6 = vld [vmem:[%s9132_s1] sm:$0xff]  ;;  %3255 = vmatpush1.bf16.msra.mxu1 %v8223_v5  ;;  %v8712_v5 = vld [vmem:[%s9132_s1 + $0x70] sm:$0xff] }
 0x425   : > { %v2325_v13 = vadd.f32 %v8031_v12, %v9440_v8  ;;  %v2249_v14 = vpop.f32.mrb[53].mxu1  ;;  %v8228_v12 = vld [vmem:[%s10695_s7 + $0x24] ss:$8 sps:$4 sm:$0xff]  }
 0x426   : > { %v2323_v17 = vadd.f32 %v9440_v8, %v2249_v14  ;;  %v8032_v18 = vpop.f32.mrb[54].mxu1  ;;  %8065 = vmatprep.mubr.msk.bf16.mxu0 %vm1336_vm2, %v2375_v11  ;;  %3256 = vmatprep.subr.bf16.mxu1 %v8228_v12  ;;  %v8714_v12 = vld [vmem:[%s9132_s1 + $0x60] sm:$0xff] }
 0x427   : > { %v2326_v19 = vadd.f32 %v8032_v18, %v9440_v8  ;;  %v2252_v20 = vpop.f32.mrb[55].mxu1  ;;  %8066 = vmatmul.mubr.msk.bf16.gmra.mrb[80].mxu0 %vm1336_vm2, %v2376_v9  ;;  %v2357_v21 = vmax.f32 %v2325_v13, 0.0  ;;  %v8703_v9 = vld [vmem:[%s9132_s1 + $0x8] sm:$0xff] }
 0x428   : > { %v2324_v58 = vadd.f32 %v9440_v8, %v2252_v20  ;;  %v2355_v10 = vmax.f32 %v2323_v17, 0.0  ;;  %v8226_v20 = vld [vmem:[%s10695_s7 + $0x20] ss:$8 sps:$4 sm:$0xff]  }
 0x429   : > { %v2358_v4 = vmax.f32 %v2326_v19, 0.0  ;;  %3257 = vmatpush1.bf16.msra.mxu1 %v8226_v20 }
 0x42a   : > { %v2356_v15 = vmax.f32 %v2324_v58, 0.0 }
 0x42b   : > { %v2378_v16 = vpack.c.bf16 %v2358_v4, %v2357_v21  ;;  %v8231_v4 = vld [vmem:[%s10695_s7 + $0x34] ss:$8 sps:$4 sm:$0xff]  }
 0x42c   : > { %v2377_v23 = vpack.c.bf16 %v2356_v15, %v2355_v10  ;;  %v8035_v24 = vpop.f32.mrb[56].mxu1  ;;  %3258 = vmatprep.subr.bf16.mxu1 %v8231_v4 }
 0x42d   : > { %v2329_v29 = vadd.f32 %v8035_v24, %v9440_v8  ;;  %v2265_v30 = vpop.f32.mrb[57].mxu1 }
 0x42e   : > { %v2327_v35 = vadd.f32 %v9440_v8, %v2265_v30  ;;  %v8036_v36 = vpop.f32.mrb[58].mxu1  ;;  %8069 = vmatprep.mubr.msk.bf16.mxu0 %vm1336_vm2, %v2377_v23  ;;  %v8704_v23 = vld [vmem:[%s9132_s1 + $0x30] sm:$0xff] }
 0x42f   : > { %v2330_v41 = vadd.f32 %v8036_v36, %v9440_v8  ;;  %v2268_v42 = vpop.f32.mrb[59].mxu1  ;;  %8070 = vmatmul.mubr.msk.bf16.gmra.mrb[84].mxu0 %vm1336_vm2, %v2378_v16  ;;  %v2361_v48 = vmax.f32 %v2329_v29, 0.0  ;;  %v8705_v29 = vld [vmem:[%s9132_s1 + $0x38] sm:$0xff]  ;;  %v8706_v36 = vld [vmem:[%s9132_s1 + $0x20] sm:$0xff] }
 0x430   : > { %v2328_v47 = vadd.f32 %v9440_v8, %v2268_v42  ;;  %v2359_v25 = vmax.f32 %v2327_v35, 0.0  ;;  %v8229_v35 = vld [vmem:[%s10695_s7 + $0x30] ss:$8 sps:$4 sm:$0xff]   ;;  %v8707_v42 = vld [vmem:[%s9132_s1 + $0x28] sm:$0xff] }
 0x431   : > { %v2362_v22 = vmax.f32 %v2330_v41, 0.0  ;;  %3259 = vmatpush1.bf16.msra.mxu1 %v8229_v35 }
 0x432   : > { %v2360_v51 = vmax.f32 %v2328_v47, 0.0 }
 0x433   : > { %v2380_v26 = vpack.c.bf16 %v2362_v22, %v2361_v48  ;;  %v8234_v48 = vld [vmem:[%s10695_s7 + $0x44] ss:$8 sps:$4 sm:$0xff]  }
 0x434   : > { %v2379_v27 = vpack.c.bf16 %v2360_v51, %v2359_v25  ;;  %v8039_v28 = vpop.f32.mrb[60].mxu1  ;;  %3260 = vmatprep.subr.bf16.mxu1 %v8234_v48 }
 0x435   : > { %v2333_v31 = vadd.f32 %v8039_v28, %v9440_v8  ;;  %v2281_v32 = vpop.f32.mrb[61].mxu1  ;;  %v8232_v28 = vld [vmem:[%s10695_s7 + $0x40] ss:$8 sps:$4 sm:$0xff]  }
 0x436   : > { %v2331_v33 = vadd.f32 %v9440_v8, %v2281_v32  ;;  %v8040_v34 = vpop.f32.mrb[62].mxu1  ;;  %8073 = vmatprep.mubr.msk.bf16.mxu0 %vm1336_vm2, %v2379_v27  ;;  %3261 = vmatpush1.bf16.msra.mxu1 %v8232_v28 }
 0x437   : > { %v2334_v37 = vadd.f32 %v8040_v34, %v9440_v8  ;;  %v2284_v38 = vpop.f32.mrb[63].mxu1  ;;  %8074 = vmatmul.mubr.msk.bf16.gmra.mrb[88].mxu0 %vm1336_vm2, %v2380_v26  ;;  %v2365_v40 = vmax.f32 %v2333_v31, 0.0 }
 0x438   : > { %v2332_v39 = vadd.f32 %v9440_v8, %v2284_v38  ;;  %v2363_v44 = vmax.f32 %v2331_v33, 0.0  ;;  %v8237_v33 = vld [vmem:[%s10695_s7 + $0x54] ss:$8 sps:$4 sm:$0xff]  }
 0x439   : > { %v2366_v43 = vmax.f32 %v2334_v37, 0.0  ;;  %3262 = vmatprep.subr.bf16.mxu1 %v8237_v33 }
 0x43a   : > { %v2364_v45 = vmax.f32 %v2332_v39, 0.0  ;;  %v8708_v39 = vld [vmem:[%s9132_s1 + $0x50] sm:$0xff] }
 0x43b   : > { %v2382_v46 = vpack.c.bf16 %v2366_v43, %v2365_v40  ;;  %v8709_v43 = vld [vmem:[%s9132_s1 + $0x58] sm:$0xff] }
 0x43c   : > { %v2381_v49 = vpack.c.bf16 %v2364_v45, %v2363_v44  ;;  %v8235_v45 = vld [vmem:[%s10695_s7 + $0x50] ss:$8 sps:$4 sm:$0xff]  }
 0x43d   : > { %3263 = vmatpush1.bf16.msra.mxu1 %v8235_v45 }
 0x43e   : > { %8077 = vmatprep.mubr.msk.bf16.mxu0 %vm1336_vm2, %v2381_v49 }
 0x43f   : > { %8078 = vmatmul.mubr.msk.bf16.gmra.mrb[92].mxu0 %vm1336_vm2, %v2382_v46  ;;  %v8710_v46 = vld [vmem:[%s9132_s1 + $0x40] sm:$0xff] }
 0x440   : > { %2791 = vmatprep.mubr.bf16.mxu0 %v8868_v50 }
 0x4da   : > { %v8051_v8 = vpop.f32.mrb[64].mxu0 }
 0x4db   : > { %v2513_v53 = vadd.f32 %v8051_v8, %v9492_v52  ;;  %v2504_v54 = vpop.f32.mrb[65].mxu0  ;;  %v8711_v8 = vld [vmem:[%s9132_s1 + $0x48] sm:$0xff] }
 0x4dc   : > { %v2505_v55 = vadd.f32 %v9492_v52, %v2504_v54  ;;  %v8052_v56 = vpop.f32.mrb[66].mxu0  ;;  %v8240_v54 = vld [vmem:[%s10695_s7 + $0x64] ss:$8 sps:$4 sm:$0xff]  }
 0x4dd   : > { %v2516_v60 = vadd.f32 %v8052_v56, %v9492_v52  ;;  %v2507_v61 = vpop.f32.mrb[67].mxu0  ;;  %v2633_v1 = vadd.f32 %v8700_v0, %v2513_v53  ;;  %3264 = vmatprep.subr.bf16.mxu1 %v8240_v54  ;;  %v8243_v0 = vld [vmem:[%s10695_s7 + $0x74] ss:$8 sps:$4 sm:$0xff]  }
 0x4de   : > { %v2508_v63 = vadd.f32 %v9492_v52, %v2507_v61  ;;  %v2631_v7 = vadd.f32 %v8702_v6, %v2505_v55  ;;  %v8238_v61 = vld [vmem:[%s10695_s7 + $0x60] ss:$8 sps:$4 sm:$0xff]  }
 0x4df   : > { %v2634_v3 = vadd.f32 %v8701_v2, %v2516_v60  ;;  %3265 = vmatpush1.bf16.msra.mxu1 %v8238_v61 }
 0x4e0   : > { %v2632_v11 = vadd.f32 %v8703_v9, %v2508_v63  ;;  %3266 = vmatprep.subr.bf16.mxu1 %v8243_v0 }
 0x4e1   : > { %v2664_v13 = vpack.c.bf16 %v2634_v3, %v2633_v1 }
 0x4e2   : > { %v2663_v14 = vpack.c.bf16 %v2632_v11, %v2631_v7  ;;  %v8055_v17 = vpop.f32.mrb[68].mxu0  ;;  %v8713_v7 = vld [vmem:[%s9132_s1 + $0x78] sm:$0xff] }
 0x4e3   : > { %v2529_v18 = vadd.f32 %v8055_v17, %v9492_v52  ;;  %v2520_v19 = vpop.f32.mrb[69].mxu0  ;;  %v8241_v11 = vld [vmem:[%s10695_s7 + $0x70] ss:$8 sps:$4 sm:$0xff]  }
 0x4e4   : > { %v2521_v58 = vadd.f32 %v9492_v52, %v2520_v19  ;;  %v8056_v21 = vpop.f32.mrb[70].mxu0  ;;  %7336 = vmatmul.mubr.msk.bf16.vlgmr.msra.gmra.mrb[96].mxu0 %vm2701_vm4, %v2663_v14  ;;  %v8715_v14 = vld [vmem:[%s9132_s1 + $0x68] sm:$0xff]  ;;  %3267 = vmatpush1.bf16.msra.mxu1 %v8241_v11 }
 0x4e5   : > { %v2532_v10 = vadd.f32 %v8056_v21, %v9492_v52  ;;  %v2523_v15 = vpop.f32.mrb[71].mxu0  ;;  %2801 = vmatprep.mubr.bf16.mxu0 %v8868_v50  ;;  %v9516_v24 = vadd.f32 %v8704_v23, %v2529_v18  ;;  %v8246_v18 = vld [vmem:[%s10695_s7 + $0x84] ss:$8 sps:$4 sm:$0xff]   ;;  %v8249_v23 = vld [vmem:[%s10695_s7 + $0x94] ss:$8 sps:$4 sm:$0xff]  }
 0x4e6   : > { %v2524_v16 = vadd.f32 %v9492_v52, %v2523_v15  ;;  %v2635_v41 = vadd.f32 %v8706_v36, %v2521_v58  ;;  %3268 = vmatprep.subr.bf16.mxu1 %v8246_v18 }
 0x4e7   : > { %v9519_v30 = vadd.f32 %v8705_v29, %v2532_v10  ;;  %v8244_v10 = vld [vmem:[%s10695_s7 + $0x80] ss:$8 sps:$4 sm:$0xff]  }
 0x4e8   : > { %v2636_v47 = vadd.f32 %v8707_v42, %v2524_v16  ;;  %3269 = vmatpush1.bf16.msra.mxu1 %v8244_v10  ;;  %v8725_v10 = vld [vmem:[%s9132_s1 + $0xd8] sm:$0xff] }
 0x4e9   : > { %v2666_v22 = vpack.c.bf16 %v9519_v30, %v9516_v24  ;;  %v8247_v24 = vld [vmem:[%s10695_s7 + $0x90] ss:$8 sps:$4 sm:$0xff]   ;;  %v8718_v30 = vld [vmem:[%s9132_s1 + $0x80] sm:$0xff]  ;;  %3270 = vmatprep.subr.bf16.mxu1 %v8249_v23 }
 0x4ea   : > { %v8059_v25 = vpop.f32.mrb[72].mxu0  ;;  %v2665_v51 = vpack.c.bf16 %v2636_v47, %v2635_v41  ;;  %v8716_v41 = vld [vmem:[%s9132_s1 + $0x90] sm:$0xff]  ;;  %v8717_v47 = vld [vmem:[%s9132_s1 + $0x98] sm:$0xff]  ;;  %v8726_v23 = vld [vmem:[%s9132_s1 + $0xc0] sm:$0xff] }
 0x4eb   : > { %v2545_v26 = vadd.f32 %v8059_v25, %v9492_v52  ;;  %v2536_v27 = vpop.f32.mrb[73].mxu0  ;;  %v8719_v25 = vld [vmem:[%s9132_s1 + $0x88] sm:$0xff] }
 0x4ec   : > { %v2537_v31 = vadd.f32 %v9492_v52, %v2536_v27  ;;  %v8060_v32 = vpop.f32.mrb[74].mxu0  ;;  %7337 = vmatmul.mubr.msk.bf16.gmra.mrb[100].mxu0 %vm2701_vm4, %v2664_v13  ;;  %3271 = vmatpush1.bf16.msra.mxu1 %v8247_v24 }
 0x4ed   : > { %v2548_v34 = vadd.f32 %v8060_v32, %v9492_v52  ;;  %v2539_v37 = vpop.f32.mrb[75].mxu0  ;;  %2811 = vmatprep.mubr.bf16.mxu0 %v8868_v50  ;;  %v9536_v40 = vadd.f32 %v8708_v39, %v2545_v26  ;;  %v8252_v26 = vld [vmem:[%s10695_s7 + $0xa4] ss:$8 sps:$4 sm:$0xff]   ;;  %v8255_v39 = vld [vmem:[%s10695_s7 + $0xb4] ss:$8 sps:$4 sm:$0xff]  }
 0x4ee   : > { %v2540_v38 = vadd.f32 %v9492_v52, %v2539_v37  ;;  %v9543_v49 = vadd.f32 %v8710_v46, %v2537_v31  ;;  %3272 = vmatprep.subr.bf16.mxu1 %v8252_v26 }
 0x4ef   : > { %v9539_v44 = vadd.f32 %v8709_v43, %v2548_v34  ;;  %v8250_v34 = vld [vmem:[%s10695_s7 + $0xa0] ss:$8 sps:$4 sm:$0xff]  }
 0x4f0   : > { %v9546_v53 = vadd.f32 %v8711_v8, %v2540_v38  ;;  %v8720_v8 = vld [vmem:[%s9132_s1 + $0xb0] sm:$0xff]  ;;  %3273 = vmatpush1.bf16.msra.mxu1 %v8250_v34  ;;  %v8729_v34 = vld [vmem:[%s9132_s1 + $0xf8] sm:$0xff] }
 0x4f1   : > { %v2668_v55 = vpack.c.bf16 %v9539_v44, %v9536_v40  ;;  %3274 = vmatprep.subr.bf16.mxu1 %v8255_v39  ;;  %v8727_v44 = vld [vmem:[%s9132_s1 + $0xc8] sm:$0xff] }
 0x4f2   : > { %v8063_v56 = vpop.f32.mrb[76].mxu0  ;;  %v2667_v57 = vpack.c.bf16 %v9546_v53, %v9543_v49  ;;  %v8253_v49 = vld [vmem:[%s10695_s7 + $0xb0] ss:$8 sps:$4 sm:$0xff]   ;;  %v8722_v53 = vld [vmem:[%s9132_s1 + $0xa0] sm:$0xff] }
 0x4f3   : > { %v2561_v59 = vadd.f32 %v8063_v56, %v9492_v52  ;;  %v2552_v60 = vpop.f32.mrb[77].mxu0  ;;  %v8721_v56 = vld [vmem:[%s9132_s1 + $0xb8] sm:$0xff] }
 0x4f4   : > { %v2553_v62 = vadd.f32 %v9492_v52, %v2552_v60  ;;  %v8064_v63 = vpop.f32.mrb[78].mxu0  ;;  %7338 = vmatmul.mubr.msk.bf16.gmra.mrb[104].mxu0 %vm2701_vm4, %v2665_v51  ;;  %v8723_v60 = vld [vmem:[%s9132_s1 + $0xa8] sm:$0xff]  ;;  %3275 = vmatpush1.bf16.msra.mxu1 %v8253_v49 }
 0x4f5   : > { %v2564_v1 = vadd.f32 %v8064_v63, %v9492_v52  ;;  %v2555_v2 = vpop.f32.mrb[79].mxu0  ;;  %2821 = vmatprep.mubr.bf16.mxu0 %v8868_v50  ;;  %v9562_v6 = vadd.f32 %v8712_v5, %v2561_v59  ;;  %v8256_v5 = vld [vmem:[%s10695_s7 + $0xc0] ss:$8 sps:$4 sm:$0xff]  }
 0x4f6   : > { %v2556_v3 = vadd.f32 %v9492_v52, %v2555_v2  ;;  %v9569_v13 = vadd.f32 %v8714_v12, %v2553_v62  ;;  %v8258_v62 = vld [vmem:[%s10695_s7 + $0xc4] ss:$8 sps:$4 sm:$0xff]   ;;  %v8261_v12 = vld [vmem:[%s10695_s7 + $0xd4] ss:$8 sps:$4 sm:$0xff]  }
 0x4f7   : > { %v9565_v9 = vadd.f32 %v8713_v7, %v2564_v1  ;;  %3276 = vmatprep.subr.bf16.mxu1 %v8258_v62 }
 0x4f8   : > { %v9572_v17 = vadd.f32 %v8715_v14, %v2556_v3  ;;  %3277 = vmatpush1.bf16.msra.mxu1 %v8256_v5 }
 0x4f9   : > { %v2670_v19 = vpack.c.bf16 %v9565_v9, %v9562_v6  ;;  %3278 = vmatprep.subr.bf16.mxu1 %v8261_v12  ;;  %v8262_v6 = vld [vmem:[%s10695_s7 + $0xe0] ss:$8 sps:$4 sm:$0xff]   ;;  %v8267_v9 = vld [vmem:[%s10695_s7 + $0xf4] ss:$8 sps:$4 sm:$0xff]  }
 0x4fa   : > { %v8067_v20 = vpop.f32.mrb[80].mxu0  ;;  %v2669_v58 = vpack.c.bf16 %v9572_v17, %v9569_v13 }
 0x4fb   : > { %v2577_v21 = vadd.f32 %v8067_v20, %v9492_v52  ;;  %v2568_v4 = vpop.f32.mrb[81].mxu0 }
 0x4fc   : > { %v2569_v15 = vadd.f32 %v9492_v52, %v2568_v4  ;;  %v8068_v16 = vpop.f32.mrb[82].mxu0  ;;  %7339 = vmatmul.mubr.msk.bf16.gmra.mrb[108].mxu0 %vm2701_vm4, %v2666_v22 }
 0x4fd   : > { %v2580_v29 = vadd.f32 %v8068_v16, %v9492_v52  ;;  %v2571_v35 = vpop.f32.mrb[83].mxu0  ;;  %2831 = vmatprep.mubr.bf16.mxu0 %v8868_v50  ;;  %v9591_v42 = vadd.f32 %v8716_v41, %v2577_v21  ;;  %v8724_v21 = vld [vmem:[%s9132_s1 + $0xd0] sm:$0xff] }
 0x4fe   : > { %v2572_v36 = vadd.f32 %v9492_v52, %v2571_v35  ;;  %v9598_v22 = vadd.f32 %v8718_v30, %v2569_v15  ;;  %v8259_v16 = vld [vmem:[%s10695_s7 + $0xd0] ss:$8 sps:$4 sm:$0xff]  }
 0x4ff   : > { %v9594_v48 = vadd.f32 %v8717_v47, %v2580_v29  ;;  %3279 = vmatpush1.bf16.msra.mxu1 %v8259_v16 }
 0x500   : > { %v9601_v51 = vadd.f32 %v8719_v25, %v2572_v36 }
 0x501   : > { %v2672_v27 = vpack.c.bf16 %v9594_v48, %v9591_v42  ;;  %v8270_v42 = vld [vmem:[%s10696_s11 + $0x4] ss:$8 sps:$4 sm:$0xff]   ;;  %v2682_v48 = vlaneseq }
 0x502   : > { %v8071_v28 = vpop.f32.mrb[84].mxu0  ;;  %v2671_v31 = vpack.c.bf16 %v9601_v51, %v9598_v22  ;;  %3745 = vmatprep.subr.bf16.mxu0 %v8270_v42  ;;  %v8271_v22 = vld [vmem:[%s10696_s11 + $0x10] ss:$8 sps:$4 sm:$0xff]   ;;  %v8273_v51 = vld [vmem:[%s10696_s11 + $0x14] ss:$8 sps:$4 sm:$0xff]  }
 0x503   : > { %v2593_v32 = vadd.f32 %v8071_v28, %v9492_v52  ;;  %v2584_v33 = vpop.f32.mrb[85].mxu0 }
 0x504   : > { %v2585_v37 = vadd.f32 %v9492_v52, %v2584_v33  ;;  %v8072_v38 = vpop.f32.mrb[86].mxu0  ;;  %7340 = vmatmul.mubr.msk.bf16.gmra.mrb[112].mxu0 %vm2701_vm4, %v2667_v57 }
 0x505   : > { %v2596_v43 = vadd.f32 %v8072_v38, %v9492_v52  ;;  %v2587_v45 = vpop.f32.mrb[87].mxu0  ;;  %2841 = vmatprep.mubr.bf16.mxu0 %v8868_v50  ;;  %v9620_v54 = vadd.f32 %v8720_v8, %v2593_v32  ;;  %v8728_v32 = vld [vmem:[%s9132_s1 + $0xf0] sm:$0xff]  ;;  %v8730_v38 = vld [vmem:[%s9132_s1 + $0xe0] sm:$0xff] }
 0x506   : > { %v2588_v46 = vadd.f32 %v9492_v52, %v2587_v45  ;;  %v2651_v57 = vadd.f32 %v8722_v53, %v2585_v37  ;;  %v8274_v8 = vld [vmem:[%s10696_s11 + $0x20] ss:$8 sps:$4 sm:$0xff]   ;;  %v8277_v53 = vld [vmem:[%s10696_s11 + $0x30] ss:$8 sps:$4 sm:$0xff]  }
 0x507   : > { %v9623_v59 = vadd.f32 %v8721_v56, %v2596_v43  ;;  %v8731_v43 = vld [vmem:[%s9132_s1 + $0xe8] sm:$0xff]  ;;  %s10702_s1 = sld [smem:[#allocation17_spill]] }
 0x508   : > { %v2652_v61 = vadd.f32 %v8723_v60, %v2588_v46  ;;  %v2680_v46 = vld [vmem:[%s10697_s26] sm:$0x3]  ;;  %s10705_s26 = sld [smem:[#allocation21_spill]] }
 0x509   : > { %v2674_v63 = vpack.c.bf16 %v9623_v59, %v9620_v54  ;;  %v8276_v54 = vld [vmem:[%s10696_s11 + $0x24] ss:$8 sps:$4 sm:$0xff]  }
 0x50a   : > { %v8075_v0 = vpop.f32.mrb[88].mxu0  ;;  %v2673_v1 = vpack.c.bf16 %v2652_v61, %v2651_v57  ;;  %v8279_v57 = vld [vmem:[%s10696_s11 + $0x34] ss:$8 sps:$4 sm:$0xff]  }
 0x50b   : > { %v2609_v2 = vadd.f32 %v8075_v0, %v9492_v52  ;;  %v2600_v3 = vpop.f32.mrb[89].mxu0 }
 0x50c   : > { %v2601_v7 = vadd.f32 %v9492_v52, %v2600_v3  ;;  %v8076_v11 = vpop.f32.mrb[90].mxu0  ;;  %7341 = vmatmul.mubr.msk.bf16.gmra.mrb[116].mxu0 %vm2701_vm4, %v2668_v55  ;;  %v8282_v3 = vld [vmem:[%s10696_s11 + $0x44] ss:$8 sps:$4 sm:$0xff]  }
 0x50d   : > { %v2612_v14 = vadd.f32 %v8076_v11, %v9492_v52  ;;  %v2603_v18 = vpop.f32.mrb[91].mxu0  ;;  %2851 = vmatprep.mubr.bf16.mxu0 %v8868_v50  ;;  %v2657_v4 = vadd.f32 %v8724_v21, %v2609_v2  ;;  %v8280_v2 = vld [vmem:[%s10696_s11 + $0x40] ss:$8 sps:$4 sm:$0xff]   ;;  %v8283_v21 = vld [vmem:[%s10696_s11 + $0x50] ss:$8 sps:$4 sm:$0xff]  }
 0x50e   : > { %v2604_v20 = vadd.f32 %v9492_v52, %v2603_v18  ;;  %v2655_v40 = vadd.f32 %v8726_v23, %v2601_v7  ;;  %v8285_v7 = vld [vmem:[%s10696_s11 + $0x54] ss:$8 sps:$4 sm:$0xff]  }
 0x50f   : > { %v2658_v15 = vadd.f32 %v8725_v10, %v2612_v14 }
 0x510   : > { %v2656_v55 = vadd.f32 %v8727_v44, %v2604_v20 }
 0x511   : > { %v2676_v29 = vpack.c.bf16 %v2658_v15, %v2657_v4  ;;  %v8288_v15 = vld [vmem:[%s10696_s11 + $0x64] ss:$8 sps:$4 sm:$0xff]  }
 0x512   : > { %v8079_v35 = vpop.f32.mrb[92].mxu0  ;;  %v2675_v36 = vpack.c.bf16 %v2656_v55, %v2655_v40 }
 0x513   : > { %v2625_v41 = vadd.f32 %v8079_v35, %v9492_v52  ;;  %v2616_v47 = vpop.f32.mrb[93].mxu0  ;;  %v8286_v35 = vld [vmem:[%s10696_s11 + $0x60] ss:$8 sps:$4 sm:$0xff]  }
 0x514   : > { %v2617_v24 = vadd.f32 %v9492_v52, %v2616_v47  ;;  %v8080_v30 = vpop.f32.mrb[94].mxu0  ;;  %7342 = vmatmul.mubr.msk.bf16.gmra.mrb[120].mxu0 %vm2701_vm4, %v2669_v58  ;;  %v8268_v58 = vld [vmem:[%s10696_s11] ss:$8 sps:$4 sm:$0xff]  }
 0x515   : > { %v2628_v25 = vadd.f32 %v8080_v30, %v9492_v52  ;;  %v2619_v26 = vpop.f32.mrb[95].mxu0  ;;  %2861 = vmatprep.mubr.bf16.mxu0 %v8868_v50  ;;  %v2661_v33 = vadd.f32 %v8728_v32, %v2625_v41  ;;  %3746 = vmatpush1.bf16.msra.mxu0 %v8268_v58  ;;  %v8291_v41 = vld [vmem:[%s10696_s11 + $0x74] ss:$8 sps:$4 sm:$0xff]  }
 0x516   : > { %v2620_v28 = vadd.f32 %v9492_v52, %v2619_v26  ;;  %v2659_v39 = vadd.f32 %v8730_v38, %v2617_v24  ;;  %v8264_v52 = vld [vmem:[%s10695_s7 + $0xe4] ss:$8 sps:$4 sm:$0xff]   ;;  %3747 = vmatprep.subr.bf16.mxu0 %v8273_v51  ;;  %v8295_v51 = vld [vmem:[%s10696_s11 + $0x90] ss:$8 sps:$4 sm:$0xff]  }
 0x517   : > { %v2662_v37 = vadd.f32 %v8729_v34, %v2628_v25  ;;  %3280 = vmatprep.subr.bf16.mxu1 %v8264_v52  ;;  %v8294_v34 = vld [vmem:[%s10696_s11 + $0x84] ss:$8 sps:$4 sm:$0xff]  }
 0x518   : > { %v2660_v45 = vadd.f32 %v8731_v43, %v2620_v28  ;;  %3281 = vmatpush1.bf16.msra.mxu1 %v8262_v6  ;;  %v8289_v28 = vld [vmem:[%s10696_s11 + $0x70] ss:$8 sps:$4 sm:$0xff]   ;;  %v8297_v6 = vld [vmem:[%s10696_s11 + $0x94] ss:$8 sps:$4 sm:$0xff]  }
 0x519   : > { %v2678_v13 = vpack.c.bf16 %v2662_v37, %v2661_v33  ;;  %3282 = vmatprep.subr.bf16.mxu1 %v8267_v9  ;;  %3748 = vmatpush1.bf16.msra.mxu0 %v8271_v22 }
 0x51a   : > { %v2677_v17 = vpack.c.bf16 %v2660_v45, %v2659_v39  ;;  %3749 = vmatprep.subr.bf16.mxu0 %v8276_v54 }
 0x51c   : > { %7343 = vmatmul.mubr.msk.bf16.gmra.mrb[124].mxu0 %vm2701_vm4, %v2670_v19  ;;  %v8265_v19 = vld [vmem:[%s10695_s7 + $0xf0] ss:$8 sps:$4 sm:$0xff]  }
 0x51d   : > { %2871 = vmatprep.mubr.bf16.mxu0 %v8868_v50  ;;  %3283 = vmatpush1.bf16.msra.mxu1 %v8265_v19 }
 0x51e   : > { %3750 = vmatpush1.bf16.msra.mxu0 %v8274_v8  ;;  %v8300_v8 = vld [vmem:[%s10696_s11 + $0xa4] ss:$8 sps:$4 sm:$0xff]  }
 0x51f   : > { %3751 = vmatprep.subr.bf16.mxu0 %v8279_v57 }
 0x522   : > { %3752 = vmatpush1.bf16.msra.mxu0 %v8277_v53 }
 0x523   : > { %3753 = vmatprep.subr.bf16.mxu0 %v8282_v3 }
 0x524   : > { %7344 = vmatmul.mubr.msk.bf16.gmra.mrb[128].mxu0 %vm2701_vm4, %v2671_v31 }
 0x525   : > { %2881 = vmatprep.mubr.bf16.mxu0 %v8868_v50 }
 0x526   : > { %3754 = vmatpush1.bf16.msra.mxu0 %v8280_v2 }
 0x527   : > { %3755 = vmatprep.subr.bf16.mxu0 %v8285_v7 }
 0x52a   : > { %3756 = vmatpush1.bf16.msra.mxu0 %v8283_v21 }
 0x52b   : > { %3757 = vmatprep.subr.bf16.mxu0 %v8288_v15 }
 0x52c   : > { %7345 = vmatmul.mubr.msk.bf16.gmra.mrb[132].mxu0 %vm2701_vm4, %v2672_v27  ;;  %v2683_v27 = vshrl.u32 %v2682_v48, 7 }
 0x52d   : > { %2891 = vmatprep.mubr.bf16.mxu0 %v8868_v50 }
 0x52e   : > { %v9695_v31 = vsub.s32 0, %v2683_v27  ;;  %3758 = vmatpush1.bf16.msra.mxu0 %v8286_v35 }
 0x52f   : > { %3759 = vmatprep.subr.bf16.mxu0 %v8291_v41 }
 0x530   : > { %v9703_v56 = vrot.slane %v2680_v46, %v9695_v31 }
 0x532   : > { %3760 = vmatpush1.bf16.msra.mxu0 %v8289_v28 }
 0x533   : > { %3761 = vmatprep.subr.bf16.mxu0 %v8294_v34 }
 0x534   : > { %7346 = vmatmul.mubr.msk.bf16.gmra.mrb[136].mxu0 %vm2701_vm4, %v2673_v1 }
 0x535   : > { %2901 = vmatprep.mubr.bf16.mxu0 %v8868_v50 }
 0x53c   : > { %7347 = vmatmul.mubr.msk.bf16.gmra.mrb[140].mxu0 %vm2701_vm4, %v2674_v63 }
 0x53d   : > { %2911 = vmatprep.mubr.bf16.mxu0 %v8868_v50 }
 0x544   : > { %7348 = vmatmul.mubr.msk.bf16.gmra.mrb[144].mxu0 %vm2701_vm4, %v2675_v36 }
 0x545   : > { %2921 = vmatprep.mubr.bf16.mxu0 %v8868_v50 }
 0x54c   : > { %7349 = vmatmul.mubr.msk.bf16.gmra.mrb[148].mxu0 %vm2701_vm4, %v2676_v29 }
 0x54d   : > { %2931 = vmatprep.mubr.bf16.mxu0 %v8868_v50 }
 0x554   : > { %7350 = vmatmul.mubr.msk.bf16.gmra.mrb[152].mxu0 %vm2701_vm4, %v2677_v17  ;;  %v8292_v17 = vld [vmem:[%s10696_s11 + $0x80] ss:$8 sps:$4 sm:$0xff]  }
 0x555   : > { %2941 = vmatprep.mubr.bf16.mxu0 %v8868_v50  ;;  %v9698_v50 = vsub.s32 1, %v2683_v27  ;;  %3762 = vmatpush1.bf16.msra.mxu0 %v8292_v17 }
 0x556   : > { %3763 = vmatprep.subr.bf16.mxu0 %v8297_v6 }
 0x557   : > { %v9706_v59 = vrot.slane %v2680_v46, %v9698_v50 }
 0x559   : > { %3764 = vmatpush1.bf16.msra.mxu0 %v8295_v51 }
 0x55a   : > { %3765 = vmatprep.subr.bf16.mxu0 %v8300_v8 }
 0x55c   : > { %7351 = vmatmul.mubr.msk.bf16.gmra.mrb[156].mxu0 %vm2701_vm4, %v2678_v13 }
 0x5b7   : > { %v2793_v49 = vpop.f32.mrb[96].mxu0 }
 0x5b8   : > { %v2794_v60 = vadd.f32 %v2793_v49, %v9703_v56  ;;  %v2795_v61 = vpop.f32.mrb[97].mxu0 }
 0x5b9   : > { %v2796_v62 = vadd.f32 %v2795_v61, %v9706_v59  ;;  %v2797_v63 = vpop.f32.mrb[98].mxu0 }
 0x5ba   : > { %v2798_v0 = vadd.f32 %v2797_v63, %v9703_v56  ;;  %v2799_v1 = vpop.f32.mrb[99].mxu0  ;;  %v2952_v11 = vmax.f32 %v2794_v60, 0.0 }
 0x5bb   : > { %v2800_v5 = vadd.f32 %v2799_v1, %v9706_v59  ;;  %v2953_v14 = vmax.f32 %v2796_v62, 0.0  ;;  %v8298_v62 = vld [vmem:[%s10696_s11 + $0xa0] ss:$8 sps:$4 sm:$0xff]  }
 0x5bc   : > { %v2954_v12 = vmax.f32 %v2798_v0, 0.0  ;;  %v8303_v0 = vld [vmem:[%s10696_s11 + $0xb4] ss:$8 sps:$4 sm:$0xff]   ;;  %3766 = vmatpush1.bf16.msra.mxu0 %v8298_v62 }
 0x5bd   : > { %v2955_v18 = vmax.f32 %v2800_v5, 0.0  ;;  %3767 = vmatprep.subr.bf16.mxu0 %v8303_v0 }
 0x5be   : > { %v3016_v20 = vpack.c.bf16 %v2954_v12, %v2952_v11  ;;  %v8301_v11 = vld [vmem:[%s10696_s11 + $0xb0] ss:$8 sps:$4 sm:$0xff]  }
 0x5bf   : > { %v2803_v4 = vpop.f32.mrb[100].mxu0  ;;  %v3017_v10 = vpack.c.bf16 %v2955_v18, %v2953_v14  ;;  %v8306_v18 = vld [vmem:[%s10696_s11 + $0xc4] ss:$8 sps:$4 sm:$0xff]  }
 0x5c0   : > { %v2804_v16 = vadd.f32 %v2803_v4, %v9703_v56  ;;  %v2805_v23 = vpop.f32.mrb[101].mxu0  ;;  %3768 = vmatpush1.bf16.msra.mxu0 %v8301_v11 }
 0x5c1   : > { %v2806_v40 = vadd.f32 %v2805_v23, %v9706_v59  ;;  %v2807_v44 = vpop.f32.mrb[102].mxu0  ;;  %3284 = vmatprep.mubr.bf16.mxu1 %v3017_v10  ;;  %v8304_v23 = vld [vmem:[%s10696_s11 + $0xc0] ss:$8 sps:$4 sm:$0xff]   ;;  %3769 = vmatprep.subr.bf16.mxu0 %v8306_v18 }
 0x5c2   : > { %v2808_v55 = vadd.f32 %v2807_v44, %v9703_v56  ;;  %v2809_v29 = vpop.f32.mrb[103].mxu0  ;;  %3285 = vmatmul.mubr.bf16.vlgmr.msra.gmra.mrb[64].mxu1 %v3016_v20  ;;  %v2956_v47 = vmax.f32 %v2804_v16, 0.0  ;;  %v8309_v44 = vld [vmem:[%s10696_s11 + $0xd4] ss:$8 sps:$4 sm:$0xff]  }
 0x5c3   : > { %v2810_v36 = vadd.f32 %v2809_v29, %v9706_v59  ;;  %v2957_v30 = vmax.f32 %v2806_v40, 0.0 }
 0x5c4   : > { %v2958_v24 = vmax.f32 %v2808_v55, 0.0  ;;  %3770 = vmatpush1.bf16.msra.mxu0 %v8304_v23 }
 0x5c5   : > { %v2959_v25 = vmax.f32 %v2810_v36, 0.0  ;;  %3771 = vmatprep.subr.bf16.mxu0 %v8309_v44 }
 0x5c6   : > { %v3018_v26 = vpack.c.bf16 %v2958_v24, %v2956_v47  ;;  %v8307_v47 = vld [vmem:[%s10696_s11 + $0xd0] ss:$8 sps:$4 sm:$0xff]  }
 0x5c7   : > { %v2813_v32 = vpop.f32.mrb[104].mxu0  ;;  %v3019_v33 = vpack.c.bf16 %v2959_v25, %v2957_v30  ;;  %v8312_v25 = vld [vmem:[%s10696_s11 + $0xe4] ss:$8 sps:$4 sm:$0xff]  }
 0x5c8   : > { %v2814_v37 = vadd.f32 %v2813_v32, %v9703_v56  ;;  %v2815_v38 = vpop.f32.mrb[105].mxu0  ;;  %3772 = vmatpush1.bf16.msra.mxu0 %v8307_v47 }
 0x5c9   : > { %v2816_v39 = vadd.f32 %v2815_v38, %v9706_v59  ;;  %v2817_v43 = vpop.f32.mrb[106].mxu0  ;;  %3294 = vmatprep.mubr.bf16.mxu1 %v3019_v33  ;;  %v8310_v38 = vld [vmem:[%s10696_s11 + $0xe0] ss:$8 sps:$4 sm:$0xff]   ;;  %3773 = vmatprep.subr.bf16.mxu0 %v8312_v25 }
 0x5ca   : > { %v2818_v45 = vadd.f32 %v2817_v43, %v9703_v56  ;;  %v2819_v13 = vpop.f32.mrb[107].mxu0  ;;  %3295 = vmatmul.mubr.bf16.gmra.mrb[68].mxu1 %v3018_v26  ;;  %v2960_v9 = vmax.f32 %v2814_v37, 0.0 }
 0x5cb   : > { %v2820_v52 = vadd.f32 %v2819_v13, %v9706_v59  ;;  %v2961_v58 = vmax.f32 %v2816_v39, 0.0 }
 0x5cc   : > { %v2962_v19 = vmax.f32 %v2818_v45, 0.0  ;;  %3774 = vmatpush1.bf16.msra.mxu0 %v8310_v38 }
 0x5cd   : > { %v2963_v42 = vmax.f32 %v2820_v52, 0.0 }
 0x5ce   : > { %v3020_v22 = vpack.c.bf16 %v2962_v19, %v2960_v9 }
 0x5cf   : > { %v2823_v27 = vpop.f32.mrb[108].mxu0  ;;  %v3021_v46 = vpack.c.bf16 %v2963_v42, %v2961_v58 }
 0x5d0   : > { %v2824_v54 = vadd.f32 %v2823_v27, %v9703_v56  ;;  %v2825_v49 = vpop.f32.mrb[109].mxu0 }
 0x5d1   : > { %v2826_v53 = vadd.f32 %v2825_v49, %v9706_v59  ;;  %v2827_v57 = vpop.f32.mrb[110].mxu0  ;;  %3304 = vmatprep.mubr.bf16.mxu1 %v3021_v46 }
 0x5d2   : > { %v2828_v60 = vadd.f32 %v2827_v57, %v9703_v56  ;;  %v2829_v61 = vpop.f32.mrb[111].mxu0  ;;  %3305 = vmatmul.mubr.bf16.gmra.mrb[72].mxu1 %v3020_v22  ;;  %v2964_v1 = vmax.f32 %v2824_v54, 0.0 }
 0x5d3   : > { %v2830_v63 = vadd.f32 %v2829_v61, %v9706_v59  ;;  %v2965_v3 = vmax.f32 %v2826_v53, 0.0 }
 0x5d4   : > { %v2966_v2 = vmax.f32 %v2828_v60, 0.0 }
 0x5d5   : > { %v2967_v5 = vmax.f32 %v2830_v63, 0.0 }
 0x5d6   : > { %v3022_v7 = vpack.c.bf16 %v2966_v2, %v2964_v1 }
 0x5d7   : > { %v2833_v12 = vpop.f32.mrb[112].mxu0  ;;  %v3023_v14 = vpack.c.bf16 %v2967_v5, %v2965_v3 }
 0x5d8   : > { %v2834_v20 = vadd.f32 %v2833_v12, %v9703_v56  ;;  %v2835_v21 = vpop.f32.mrb[113].mxu0 }
 0x5d9   : > { %v2836_v4 = vadd.f32 %v2835_v21, %v9706_v59  ;;  %v2837_v10 = vpop.f32.mrb[114].mxu0  ;;  %3314 = vmatprep.mubr.bf16.mxu1 %v3023_v14 }
 0x5da   : > { %v2838_v15 = vadd.f32 %v2837_v10, %v9703_v56  ;;  %v2839_v16 = vpop.f32.mrb[115].mxu0  ;;  %3315 = vmatmul.mubr.bf16.gmra.mrb[76].mxu1 %v3022_v7  ;;  %v2968_v55 = vmax.f32 %v2834_v20, 0.0 }
 0x5db   : > { %v2840_v40 = vadd.f32 %v2839_v16, %v9706_v59  ;;  %v2969_v35 = vmax.f32 %v2836_v4, 0.0 }
 0x5dc   : > { %v2970_v29 = vmax.f32 %v2838_v15, 0.0 }
 0x5dd   : > { %v2971_v36 = vmax.f32 %v2840_v40, 0.0 }
 0x5de   : > { %v3024_v41 = vpack.c.bf16 %v2970_v29, %v2968_v55 }
 0x5df   : > { %v2843_v24 = vpop.f32.mrb[116].mxu0  ;;  %v3025_v30 = vpack.c.bf16 %v2971_v36, %v2969_v35 }
 0x5e0   : > { %v2844_v26 = vadd.f32 %v2843_v24, %v9703_v56  ;;  %v2845_v28 = vpop.f32.mrb[117].mxu0 }
 0x5e1   : > { %v2846_v32 = vadd.f32 %v2845_v28, %v9706_v59  ;;  %v2847_v33 = vpop.f32.mrb[118].mxu0  ;;  %3324 = vmatprep.mubr.bf16.mxu1 %v3025_v30 }
 0x5e2   : > { %v2848_v34 = vadd.f32 %v2847_v33, %v9703_v56  ;;  %v2849_v37 = vpop.f32.mrb[119].mxu0  ;;  %3325 = vmatmul.mubr.bf16.gmra.mrb[80].mxu1 %v3024_v41  ;;  %v2972_v43 = vmax.f32 %v2844_v26, 0.0 }
 0x5e3   : > { %v2850_v39 = vadd.f32 %v2849_v37, %v9706_v59  ;;  %v2973_v13 = vmax.f32 %v2846_v32, 0.0 }
 0x5e4   : > { %v2974_v45 = vmax.f32 %v2848_v34, 0.0 }
 0x5e5   : > { %v2975_v17 = vmax.f32 %v2850_v39, 0.0 }
 0x5e6   : > { %v3026_v52 = vpack.c.bf16 %v2974_v45, %v2972_v43 }
 0x5e7   : > { %v2853_v6 = vpop.f32.mrb[120].mxu0  ;;  %v3027_v9 = vpack.c.bf16 %v2975_v17, %v2973_v13 }
 0x5e8   : > { %v2854_v19 = vadd.f32 %v2853_v6, %v9703_v56  ;;  %v2855_v58 = vpop.f32.mrb[121].mxu0 }
 0x5e9   : > { %v2856_v42 = vadd.f32 %v2855_v58, %v9706_v59  ;;  %v2857_v22 = vpop.f32.mrb[122].mxu0  ;;  %3334 = vmatprep.mubr.bf16.mxu1 %v3027_v9 }
 0x5ea   : > { %v2858_v51 = vadd.f32 %v2857_v22, %v9703_v56  ;;  %v2859_v27 = vpop.f32.mrb[123].mxu0  ;;  %3335 = vmatmul.mubr.bf16.gmra.mrb[84].mxu1 %v3026_v52  ;;  %v2976_v8 = vmax.f32 %v2854_v19, 0.0 }
 0x5eb   : > { %v2860_v46 = vadd.f32 %v2859_v27, %v9706_v59  ;;  %v2977_v49 = vmax.f32 %v2856_v42, 0.0 }
 0x5ec   : > { %v2978_v54 = vmax.f32 %v2858_v51, 0.0 }
 0x5ed   : > { %v2979_v53 = vmax.f32 %v2860_v46, 0.0 }
 0x5ee   : > { %v3028_v57 = vpack.c.bf16 %v2978_v54, %v2976_v8 }
 0x5ef   : > { %v2863_v60 = vpop.f32.mrb[124].mxu0  ;;  %v3029_v61 = vpack.c.bf16 %v2979_v53, %v2977_v49 }
 0x5f0   : > { %v2864_v62 = vadd.f32 %v2863_v60, %v9703_v56  ;;  %v2865_v63 = vpop.f32.mrb[125].mxu0 }
 0x5f1   : > { %v2866_v0 = vadd.f32 %v2865_v63, %v9706_v59  ;;  %v2867_v1 = vpop.f32.mrb[126].mxu0  ;;  %3344 = vmatprep.mubr.bf16.mxu1 %v3029_v61 }
 0x5f2   : > { %v2868_v2 = vadd.f32 %v2867_v1, %v9703_v56  ;;  %v2869_v3 = vpop.f32.mrb[127].mxu0  ;;  %3345 = vmatmul.mubr.bf16.gmra.mrb[88].mxu1 %v3028_v57  ;;  %v2980_v7 = vmax.f32 %v2864_v62, 0.0 }
 0x5f3   : > { %v2870_v5 = vadd.f32 %v2869_v3, %v9706_v59  ;;  %v2981_v12 = vmax.f32 %v2866_v0, 0.0 }
 0x5f4   : > { %v2982_v11 = vmax.f32 %v2868_v2, 0.0 }
 0x5f5   : > { %v2983_v14 = vmax.f32 %v2870_v5, 0.0 }
 0x5f6   : > { %v3030_v18 = vpack.c.bf16 %v2982_v11, %v2980_v7 }
 0x5f7   : > { %v2873_v20 = vpop.f32.mrb[128].mxu0  ;;  %v3031_v21 = vpack.c.bf16 %v2983_v14, %v2981_v12 }
 0x5f8   : > { %v2874_v4 = vadd.f32 %v2873_v20, %v9703_v56  ;;  %v2875_v10 = vpop.f32.mrb[129].mxu0 }
 0x5f9   : > { %v2876_v15 = vadd.f32 %v2875_v10, %v9706_v59  ;;  %v2877_v16 = vpop.f32.mrb[130].mxu0  ;;  %3354 = vmatprep.mubr.bf16.mxu1 %v3031_v21 }
 0x5fa   : > { %v2878_v23 = vadd.f32 %v2877_v16, %v9703_v56  ;;  %v2879_v40 = vpop.f32.mrb[131].mxu0  ;;  %3355 = vmatmul.mubr.bf16.gmra.mrb[92].mxu1 %v3030_v18  ;;  %v2984_v55 = vmax.f32 %v2874_v4, 0.0  ;;  %v8315_v16 = vld [vmem:[%s10696_s11 + $0xf4] ss:$8 sps:$4 sm:$0xff]  }
 0x5fb   : > { %v2880_v44 = vadd.f32 %v2879_v40, %v9706_v59  ;;  %v2985_v35 = vmax.f32 %v2876_v15, 0.0  ;;  %v8313_v40 = vld [vmem:[%s10696_s11 + $0xf0] ss:$8 sps:$4 sm:$0xff]   ;;  %3775 = vmatprep.subr.bf16.mxu0 %v8315_v16 }
 0x5fc   : > { %v2986_v29 = vmax.f32 %v2878_v23, 0.0  ;;  %3776 = vmatpush1.bf16.msra.mxu0 %v8313_v40  ;;  %v8325_v16 = vld [vmem:[%s10698_s2 + $0x30] ss:$8 sps:$4 sm:$0xff]  }
 0x5fd   : > { %v2987_v36 = vmax.f32 %v2880_v44, 0.0 }
 0x5fe   : > { %v3032_v41 = vpack.c.bf16 %v2986_v29, %v2984_v55 }
 0x5ff   : > { %v2883_v47 = vpop.f32.mrb[132].mxu0  ;;  %v3033_v24 = vpack.c.bf16 %v2987_v36, %v2985_v35 }
 0x600   : > { %v2884_v30 = vadd.f32 %v2883_v47, %v9703_v56  ;;  %v2885_v25 = vpop.f32.mrb[133].mxu0 }
 0x601   : > { %v2886_v26 = vadd.f32 %v2885_v25, %v9706_v59  ;;  %v2887_v28 = vpop.f32.mrb[134].mxu0  ;;  %3364 = vmatprep.mubr.bf16.mxu1 %v3033_v24 }
 0x602   : > { %v2888_v32 = vadd.f32 %v2887_v28, %v9703_v56  ;;  %v2889_v33 = vpop.f32.mrb[135].mxu0  ;;  %3365 = vmatmul.mubr.bf16.gmra.mrb[96].mxu1 %v3032_v41  ;;  %v2988_v37 = vmax.f32 %v2884_v30, 0.0 }
 0x603   : > { %v2890_v34 = vadd.f32 %v2889_v33, %v9706_v59  ;;  %v2989_v39 = vmax.f32 %v2886_v26, 0.0 }
 0x604   : > { %v2990_v38 = vmax.f32 %v2888_v32, 0.0 }
 0x605   : > { %v2991_v43 = vmax.f32 %v2890_v34, 0.0 }
 0x606   : > { %v3034_v45 = vpack.c.bf16 %v2990_v38, %v2988_v37 }
 0x607   : > { %v3035_v13 = vpack.c.bf16 %v2991_v43, %v2989_v39  ;;  %v2893_v17 = vpop.f32.mrb[136].mxu0 }
 0x608   : > { %v2894_v52 = vadd.f32 %v2893_v17, %v9703_v56  ;;  %v2895_v6 = vpop.f32.mrb[137].mxu0 }
 0x609   : > { %v2896_v9 = vadd.f32 %v2895_v6, %v9706_v59  ;;  %v2897_v19 = vpop.f32.mrb[138].mxu0  ;;  %3374 = vmatprep.mubr.bf16.mxu1 %v3035_v13 }
 0x60a   : > { %v2898_v58 = vadd.f32 %v2897_v19, %v9703_v56  ;;  %v2899_v42 = vpop.f32.mrb[139].mxu0  ;;  %3375 = vmatmul.mubr.bf16.gmra.mrb[100].mxu1 %v3034_v45  ;;  %v2992_v51 = vmax.f32 %v2894_v52, 0.0 }
 0x60b   : > { %v2900_v22 = vadd.f32 %v2899_v42, %v9706_v59  ;;  %v2993_v46 = vmax.f32 %v2896_v9, 0.0 }
 0x60c   : > { %v2994_v27 = vmax.f32 %v2898_v58, 0.0 }
 0x60d   : > { %v2995_v8 = vmax.f32 %v2900_v22, 0.0 }
 0x60e   : > { %v3036_v54 = vpack.c.bf16 %v2994_v27, %v2992_v51 }
 0x60f   : > { %v3037_v49 = vpack.c.bf16 %v2995_v8, %v2993_v46  ;;  %v2903_v53 = vpop.f32.mrb[140].mxu0 }
 0x610   : > { %v2904_v57 = vadd.f32 %v2903_v53, %v9703_v56  ;;  %v2905_v60 = vpop.f32.mrb[141].mxu0 }
 0x611   : > { %v2906_v61 = vadd.f32 %v2905_v60, %v9706_v59  ;;  %v2907_v62 = vpop.f32.mrb[142].mxu0  ;;  %3384 = vmatprep.mubr.bf16.mxu1 %v3037_v49 }
 0x612   : > { %v2908_v63 = vadd.f32 %v2907_v62, %v9703_v56  ;;  %v2909_v0 = vpop.f32.mrb[143].mxu0  ;;  %3385 = vmatmul.mubr.bf16.gmra.mrb[104].mxu1 %v3036_v54  ;;  %v2996_v2 = vmax.f32 %v2904_v57, 0.0 }
 0x613   : > { %v2910_v1 = vadd.f32 %v2909_v0, %v9706_v59  ;;  %v2997_v5 = vmax.f32 %v2906_v61, 0.0 }
 0x614   : > { %v2998_v3 = vmax.f32 %v2908_v63, 0.0 }
 0x615   : > { %v2999_v7 = vmax.f32 %v2910_v1, 0.0 }
 0x616   : > { %v3038_v11 = vpack.c.bf16 %v2998_v3, %v2996_v2 }
 0x617   : > { %v3039_v12 = vpack.c.bf16 %v2999_v7, %v2997_v5  ;;  %v2913_v14 = vpop.f32.mrb[144].mxu0 }
 0x618   : > { %v2914_v18 = vadd.f32 %v2913_v14, %v9703_v56  ;;  %v2915_v20 = vpop.f32.mrb[145].mxu0  ;;  %v8319_v14 = vld [vmem:[%s10698_s2 + $0x10] ss:$8 sps:$4 sm:$0xff]  }
 0x619   : > { %v2916_v21 = vadd.f32 %v2915_v20, %v9706_v59  ;;  %v2917_v4 = vpop.f32.mrb[146].mxu0  ;;  %3394 = vmatprep.mubr.bf16.mxu1 %v3039_v12  ;;  %v8316_v12 = vld [vmem:[%s10698_s2] ss:$8 sps:$4 sm:$0xff]  }
 0x61a   : > { %v2918_v10 = vadd.f32 %v2917_v4, %v9703_v56  ;;  %v2919_v15 = vpop.f32.mrb[147].mxu0  ;;  %3395 = vmatmul.mubr.bf16.gmra.mrb[108].mxu1 %v3038_v11  ;;  %v3000_v44 = vmax.f32 %v2914_v18, 0.0  ;;  %v8321_v18 = vld [vmem:[%s10698_s2 + $0x14] ss:$8 sps:$4 sm:$0xff]   ;;  %v8322_v20 = vld [vmem:[%s10698_s2 + $0x20] ss:$8 sps:$4 sm:$0xff]  }
 0x61b   : > { %v2920_v23 = vadd.f32 %v2919_v15, %v9706_v59  ;;  %v3001_v29 = vmax.f32 %v2916_v21, 0.0  ;;  %v8324_v21 = vld [vmem:[%s10698_s2 + $0x24] ss:$8 sps:$4 sm:$0xff]  }
 0x61c   : > { %v3002_v55 = vmax.f32 %v2918_v10, 0.0 }
 0x61d   : > { %v3003_v35 = vmax.f32 %v2920_v23, 0.0  ;;  %v8327_v23 = vld [vmem:[%s10698_s2 + $0x34] ss:$8 sps:$4 sm:$0xff]  }
 0x61e   : > { %v3040_v36 = vpack.c.bf16 %v3002_v55, %v3000_v44 }
 0x61f   : > { %v3041_v41 = vpack.c.bf16 %v3003_v35, %v3001_v29  ;;  %v2923_v47 = vpop.f32.mrb[148].mxu0 }
 0x620   : > { %v2924_v24 = vadd.f32 %v2923_v47, %v9703_v56  ;;  %v2925_v30 = vpop.f32.mrb[149].mxu0  ;;  %v8330_v47 = vld [vmem:[%s10698_s2 + $0x44] ss:$8 sps:$4 sm:$0xff]  }
 0x621   : > { %v2926_v25 = vadd.f32 %v2925_v30, %v9706_v59  ;;  %v2927_v26 = vpop.f32.mrb[150].mxu0  ;;  %3404 = vmatprep.mubr.bf16.mxu1 %v3041_v41  ;;  %v8328_v41 = vld [vmem:[%s10698_s2 + $0x40] ss:$8 sps:$4 sm:$0xff]   ;;  %v8333_v30 = vld [vmem:[%s10698_s2 + $0x54] ss:$8 sps:$4 sm:$0xff]  }
 0x622   : > { %v2928_v28 = vadd.f32 %v2927_v26, %v9703_v56  ;;  %v2929_v32 = vpop.f32.mrb[151].mxu0  ;;  %3405 = vmatmul.mubr.bf16.gmra.mrb[112].mxu1 %v3040_v36  ;;  %v3004_v34 = vmax.f32 %v2924_v24, 0.0 }
 0x623   : > { %v2930_v33 = vadd.f32 %v2929_v32, %v9706_v59  ;;  %v3005_v38 = vmax.f32 %v2926_v25, 0.0 }
 0x624   : > { %v3006_v37 = vmax.f32 %v2928_v28, 0.0 }
 0x625   : > { %v3007_v39 = vmax.f32 %v2930_v33, 0.0 }
 0x626   : > { %v3042_v43 = vpack.c.bf16 %v3006_v37, %v3004_v34  ;;  %v8331_v34 = vld [vmem:[%s10698_s2 + $0x50] ss:$8 sps:$4 sm:$0xff]  }
 0x627   : > { %v3043_v45 = vpack.c.bf16 %v3007_v39, %v3005_v38  ;;  %v2933_v13 = vpop.f32.mrb[152].mxu0  ;;  %v8336_v39 = vld [vmem:[%s10698_s2 + $0x64] ss:$8 sps:$4 sm:$0xff]  }
 0x628   : > { %v2934_v17 = vadd.f32 %v2933_v13, %v9703_v56  ;;  %v2935_v52 = vpop.f32.mrb[153].mxu0 }
 0x629   : > { %v2936_v6 = vadd.f32 %v2935_v52, %v9706_v59  ;;  %v2937_v9 = vpop.f32.mrb[154].mxu0  ;;  %3414 = vmatprep.mubr.bf16.mxu1 %v3043_v45 }
 0x62a   : > { %v2938_v19 = vadd.f32 %v2937_v9, %v9703_v56  ;;  %v2939_v58 = vpop.f32.mrb[155].mxu0  ;;  %3415 = vmatmul.mubr.bf16.gmra.mrb[116].mxu1 %v3042_v43  ;;  %v3008_v22 = vmax.f32 %v2934_v17, 0.0  ;;  %v8334_v9 = vld [vmem:[%s10698_s2 + $0x60] ss:$8 sps:$4 sm:$0xff]  }
 0x62b   : > { %v2940_v42 = vadd.f32 %v2939_v58, %v9706_v59  ;;  %v3009_v27 = vmax.f32 %v2936_v6, 0.0  ;;  %v8339_v58 = vld [vmem:[%s10698_s2 + $0x74] ss:$8 sps:$4 sm:$0xff]  }
 0x62c   : > { %v3010_v51 = vmax.f32 %v2938_v19, 0.0 }
 0x62d   : > { %v3011_v46 = vmax.f32 %v2940_v42, 0.0 }
 0x62e   : > { %v3044_v8 = vpack.c.bf16 %v3010_v51, %v3008_v22 }
 0x62f   : > { %v3045_v54 = vpack.c.bf16 %v3011_v46, %v3009_v27  ;;  %v2943_v49 = vpop.f32.mrb[156].mxu0 }
 0x630   : > { %v2944_v53 = vadd.f32 %v2943_v49, %v9703_v56  ;;  %v2945_v57 = vpop.f32.mrb[157].mxu0 }
 0x631   : > { %v2946_v60 = vadd.f32 %v2945_v57, %v9706_v59  ;;  %v2947_v61 = vpop.f32.mrb[158].mxu0  ;;  %3424 = vmatprep.mubr.bf16.mxu1 %v3045_v54 }
 0x632   : > { %v2948_v62 = vadd.f32 %v2947_v61, %v9703_v56  ;;  %v2949_v63 = vpop.f32.mrb[159].mxu0  ;;  %3425 = vmatmul.mubr.bf16.gmra.mrb[120].mxu1 %v3044_v8  ;;  %v3012_v1 = vmax.f32 %v2944_v53, 0.0  ;;  %v8318_v56 = vld [vmem:[%s10698_s2 + $0x4] ss:$8 sps:$4 sm:$0xff]   ;;  %v8337_v8 = vld [vmem:[%s10698_s2 + $0x70] ss:$8 sps:$4 sm:$0xff]  }
 0x633   : > { %v2950_v0 = vadd.f32 %v2949_v63, %v9706_v59  ;;  %v3013_v3 = vmax.f32 %v2946_v60, 0.0  ;;  %4238 = vmatprep.subr.bf16.mxu1 %v8318_v56  ;;  %v3080_v59 = vld [vmem:[%s10699_s22] sm:$0x3]  ;;  %v8342_v53 = vld [vmem:[%s10698_s2 + $0x84] ss:$8 sps:$4 sm:$0xff]   ;;  %s10409_s22 = scalar_lea.vmem %s9027_s14, %s7215_s18 }
 0x634   : > { %v3014_v2 = vmax.f32 %v2948_v62, 0.0  ;;  %4239 = vmatpush1.bf16.msra.mxu1 %v8316_v12  ;;  %v9806_v4 = vrot.slane %v3080_v59, %v9695_v31  ;;  %v9809_v10 = vrot.slane %v3080_v59, %v9698_v50 }
 0x635   : > { %v3015_v5 = vmax.f32 %v2950_v0, 0.0  ;;  %4240 = vmatprep.subr.bf16.mxu1 %v8321_v18 }
 0x636   : > { %v3046_v7 = vpack.c.bf16 %v3014_v2, %v3012_v1  ;;  %v8340_v1 = vld [vmem:[%s10698_s2 + $0x80] ss:$8 sps:$4 sm:$0xff]  }
 0x637   : > { %v3047_v11 = vpack.c.bf16 %v3015_v5, %v3013_v3  ;;  %v8345_v3 = vld [vmem:[%s10698_s2 + $0x94] ss:$8 sps:$4 sm:$0xff]  }
 0x638   : > { %4241 = vmatpush1.bf16.msra.mxu1 %v8319_v14  ;;  %v8343_v14 = vld [vmem:[%s10698_s2 + $0x90] ss:$8 sps:$4 sm:$0xff]  }
 0x639   : > { %3434 = vmatprep.mubr.bf16.mxu1 %v3047_v11  ;;  %4242 = vmatprep.subr.bf16.mxu1 %v8324_v21 }
 0x63a   : > { %3435 = vmatmul.mubr.bf16.gmra.mrb[124].mxu1 %v3046_v7 }
 0x63c   : > { %4243 = vmatpush1.bf16.msra.mxu1 %v8322_v20  ;;  %v8348_v20 = vld [vmem:[%s10698_s2 + $0xa4] ss:$8 sps:$4 sm:$0xff]  }
 0x63d   : > { %4244 = vmatprep.subr.bf16.mxu1 %v8327_v23 }
 0x640   : > { %4245 = vmatpush1.bf16.msra.mxu1 %v8325_v16 }
 0x641   : > { %4246 = vmatprep.subr.bf16.mxu1 %v8330_v47 }
 0x644   : > { %4247 = vmatpush1.bf16.msra.mxu1 %v8328_v41 }
 0x645   : > { %4248 = vmatprep.subr.bf16.mxu1 %v8333_v30 }
 0x648   : > { %4249 = vmatpush1.bf16.msra.mxu1 %v8331_v34 }
 0x649   : > { %4250 = vmatprep.subr.bf16.mxu1 %v8336_v39 }
 0x64c   : > { %4251 = vmatpush1.bf16.msra.mxu1 %v8334_v9 }
 0x64d   : > { %4252 = vmatprep.subr.bf16.mxu1 %v8339_v58 }
 0x650   : > { %4253 = vmatpush1.bf16.msra.mxu1 %v8337_v8 }
 0x651   : > { %4254 = vmatprep.subr.bf16.mxu1 %v8342_v53 }
 0x654   : > { %4255 = vmatpush1.bf16.msra.mxu1 %v8340_v1 }
 0x655   : > { %4256 = vmatprep.subr.bf16.mxu1 %v8345_v3 }
 0x658   : > { %4257 = vmatpush1.bf16.msra.mxu1 %v8343_v14 }
 0x659   : > { %4258 = vmatprep.subr.bf16.mxu1 %v8348_v20 }
 0x695   : > { %v3286_v15 = vpop.f32.mrb[64].mxu1 }
 0x696   : > { %v3287_v40 = vadd.f32 %v3286_v15, %v9806_v4  ;;  %v3288_v44 = vpop.f32.mrb[65].mxu1 }
 0x697   : > { %v3289_v55 = vadd.f32 %v3288_v44, %v9809_v10  ;;  %v3290_v29 = vpop.f32.mrb[66].mxu1 }
 0x698   : > { %v3291_v35 = vadd.f32 %v3290_v29, %v9806_v4  ;;  %v3292_v36 = vpop.f32.mrb[67].mxu1  ;;  %v3445_v25 = vmax.f32 %v3287_v40, 0.0 }
 0x699   : > { %v3293_v24 = vadd.f32 %v3292_v36, %v9809_v10  ;;  %v3446_v28 = vmax.f32 %v3289_v55, 0.0  ;;  %v8346_v55 = vld [vmem:[%s10698_s2 + $0xa0] ss:$8 sps:$4 sm:$0xff]  }
 0x69a   : > { %v3447_v26 = vmax.f32 %v3291_v35, 0.0  ;;  %v8351_v35 = vld [vmem:[%s10698_s2 + $0xb4] ss:$8 sps:$4 sm:$0xff]   ;;  %4259 = vmatpush1.bf16.msra.mxu1 %v8346_v55 }
 0x69b   : > { %v3448_v32 = vmax.f32 %v3293_v24, 0.0  ;;  %4260 = vmatprep.subr.bf16.mxu1 %v8351_v35 }
 0x69c   : > { %v3509_v33 = vpack.c.bf16 %v3447_v26, %v3445_v25  ;;  %v8349_v25 = vld [vmem:[%s10698_s2 + $0xb0] ss:$8 sps:$4 sm:$0xff]  }
 0x69d   : > { %v3296_v37 = vpop.f32.mrb[68].mxu1  ;;  %v3510_v38 = vpack.c.bf16 %v3448_v32, %v3446_v28  ;;  %v8354_v32 = vld [vmem:[%s10698_s2 + $0xc4] ss:$8 sps:$4 sm:$0xff]  }
 0x69e   : > { %v3297_v43 = vadd.f32 %v3296_v37, %v9806_v4  ;;  %v3298_v45 = vpop.f32.mrb[69].mxu1  ;;  %4261 = vmatpush1.bf16.msra.mxu1 %v8349_v25 }
 0x69f   : > { %v3299_v13 = vadd.f32 %v3298_v45, %v9809_v10  ;;  %v3300_v17 = vpop.f32.mrb[70].mxu1  ;;  %3777 = vmatprep.mubr.bf16.mxu0 %v3510_v38  ;;  %v8352_v45 = vld [vmem:[%s10698_s2 + $0xc0] ss:$8 sps:$4 sm:$0xff]   ;;  %4262 = vmatprep.subr.bf16.mxu1 %v8354_v32 }
 0x6a0   : > { %v3301_v52 = vadd.f32 %v3300_v17, %v9806_v4  ;;  %v3302_v6 = vpop.f32.mrb[71].mxu1  ;;  %3778 = vmatmul.mubr.bf16.vlgmr.msra.gmra.mrb[160].mxu0 %v3509_v33  ;;  %v3449_v42 = vmax.f32 %v3297_v43, 0.0  ;;  %v8357_v17 = vld [vmem:[%s10698_s2 + $0xd4] ss:$8 sps:$4 sm:$0xff]  }
 0x6a1   : > { %v3303_v19 = vadd.f32 %v3302_v6, %v9809_v10  ;;  %v3450_v51 = vmax.f32 %v3299_v13, 0.0 }
 0x6a2   : > { %v3451_v22 = vmax.f32 %v3301_v52, 0.0  ;;  %4263 = vmatpush1.bf16.msra.mxu1 %v8352_v45 }
 0x6a3   : > { %v3452_v27 = vmax.f32 %v3303_v19, 0.0  ;;  %4264 = vmatprep.subr.bf16.mxu1 %v8357_v17 }
 0x6a4   : > { %v3511_v46 = vpack.c.bf16 %v3451_v22, %v3449_v42  ;;  %v8355_v42 = vld [vmem:[%s10698_s2 + $0xd0] ss:$8 sps:$4 sm:$0xff]  }
 0x6a5   : > { %v3306_v54 = vpop.f32.mrb[72].mxu1  ;;  %v3512_v49 = vpack.c.bf16 %v3452_v27, %v3450_v51  ;;  %v8360_v27 = vld [vmem:[%s10698_s2 + $0xe4] ss:$8 sps:$4 sm:$0xff]  }
 0x6a6   : > { %v3307_v57 = vadd.f32 %v3306_v54, %v9806_v4  ;;  %v3308_v60 = vpop.f32.mrb[73].mxu1  ;;  %4265 = vmatpush1.bf16.msra.mxu1 %v8355_v42 }
 0x6a7   : > { %v3309_v61 = vadd.f32 %v3308_v60, %v9809_v10  ;;  %v3310_v62 = vpop.f32.mrb[74].mxu1  ;;  %3787 = vmatprep.mubr.bf16.mxu0 %v3512_v49  ;;  %v8358_v60 = vld [vmem:[%s10698_s2 + $0xe0] ss:$8 sps:$4 sm:$0xff]   ;;  %4266 = vmatprep.subr.bf16.mxu1 %v8360_v27 }
 0x6a8   : > { %v3311_v63 = vadd.f32 %v3310_v62, %v9806_v4  ;;  %v3312_v0 = vpop.f32.mrb[75].mxu1  ;;  %3788 = vmatmul.mubr.bf16.gmra.mrb[164].mxu0 %v3511_v46  ;;  %v3453_v5 = vmax.f32 %v3307_v57, 0.0 }
 0x6a9   : > { %v3313_v2 = vadd.f32 %v3312_v0, %v9809_v10  ;;  %v3454_v11 = vmax.f32 %v3309_v61, 0.0 }
 0x6aa   : > { %v3455_v7 = vmax.f32 %v3311_v63, 0.0  ;;  %4267 = vmatpush1.bf16.msra.mxu1 %v8358_v60 }
 0x6ab   : > { %v3456_v12 = vmax.f32 %v3313_v2, 0.0 }
 0x6ac   : > { %v3513_v56 = vpack.c.bf16 %v3455_v7, %v3453_v5 }
 0x6ad   : > { %v3316_v18 = vpop.f32.mrb[76].mxu1  ;;  %v3514_v59 = vpack.c.bf16 %v3456_v12, %v3454_v11 }
 0x6ae   : > { %v3317_v21 = vadd.f32 %v3316_v18, %v9806_v4  ;;  %v3318_v15 = vpop.f32.mrb[77].mxu1 }
 0x6af   : > { %v3319_v16 = vadd.f32 %v3318_v15, %v9809_v10  ;;  %v3320_v23 = vpop.f32.mrb[78].mxu1  ;;  %3797 = vmatprep.mubr.bf16.mxu0 %v3514_v59 }
 0x6b0   : > { %v3321_v40 = vadd.f32 %v3320_v23, %v9806_v4  ;;  %v3322_v44 = vpop.f32.mrb[79].mxu1  ;;  %3798 = vmatmul.mubr.bf16.gmra.mrb[168].mxu0 %v3513_v56  ;;  %v3457_v36 = vmax.f32 %v3317_v21, 0.0 }
 0x6b1   : > { %v3323_v29 = vadd.f32 %v3322_v44, %v9809_v10  ;;  %v3458_v47 = vmax.f32 %v3319_v16, 0.0 }
 0x6b2   : > { %v3459_v41 = vmax.f32 %v3321_v40, 0.0 }
 0x6b3   : > { %v3460_v24 = vmax.f32 %v3323_v29, 0.0 }
 0x6b4   : > { %v3515_v30 = vpack.c.bf16 %v3459_v41, %v3457_v36 }
 0x6b5   : > { %v3326_v26 = vpop.f32.mrb[80].mxu1  ;;  %v3516_v28 = vpack.c.bf16 %v3460_v24, %v3458_v47 }
 0x6b6   : > { %v3327_v33 = vadd.f32 %v3326_v26, %v9806_v4  ;;  %v3328_v34 = vpop.f32.mrb[81].mxu1 }
 0x6b7   : > { %v3329_v37 = vadd.f32 %v3328_v34, %v9809_v10  ;;  %v3330_v38 = vpop.f32.mrb[82].mxu1  ;;  %3807 = vmatprep.mubr.bf16.mxu0 %v3516_v28 }
 0x6b8   : > { %v3331_v39 = vadd.f32 %v3330_v38, %v9806_v4  ;;  %v3332_v43 = vpop.f32.mrb[83].mxu1  ;;  %3808 = vmatmul.mubr.bf16.gmra.mrb[172].mxu0 %v3515_v30  ;;  %v3461_v52 = vmax.f32 %v3327_v33, 0.0 }
 0x6b9   : > { %v3333_v13 = vadd.f32 %v3332_v43, %v9809_v10  ;;  %v3462_v9 = vmax.f32 %v3329_v37, 0.0 }
 0x6ba   : > { %v3463_v6 = vmax.f32 %v3331_v39, 0.0 }
 0x6bb   : > { %v3464_v19 = vmax.f32 %v3333_v13, 0.0 }
 0x6bc   : > { %v3517_v58 = vpack.c.bf16 %v3463_v6, %v3461_v52 }
 0x6bd   : > { %v3336_v22 = vpop.f32.mrb[84].mxu1  ;;  %v3518_v51 = vpack.c.bf16 %v3464_v19, %v3462_v9 }
 0x6be   : > { %v3337_v46 = vadd.f32 %v3336_v22, %v9806_v4  ;;  %v3338_v8 = vpop.f32.mrb[85].mxu1 }
 0x6bf   : > { %v3339_v54 = vadd.f32 %v3338_v8, %v9809_v10  ;;  %v3340_v49 = vpop.f32.mrb[86].mxu1  ;;  %3817 = vmatprep.mubr.bf16.mxu0 %v3518_v51 }
 0x6c0   : > { %v3341_v53 = vadd.f32 %v3340_v49, %v9806_v4  ;;  %v3342_v57 = vpop.f32.mrb[87].mxu1  ;;  %3818 = vmatmul.mubr.bf16.gmra.mrb[176].mxu0 %v3517_v58  ;;  %v3465_v62 = vmax.f32 %v3337_v46, 0.0 }
 0x6c1   : > { %v3343_v61 = vadd.f32 %v3342_v57, %v9809_v10  ;;  %v3466_v0 = vmax.f32 %v3339_v54, 0.0 }
 0x6c2   : > { %v3467_v63 = vmax.f32 %v3341_v53, 0.0 }
 0x6c3   : > { %v3468_v1 = vmax.f32 %v3343_v61, 0.0 }
 0x6c4   : > { %v3519_v2 = vpack.c.bf16 %v3467_v63, %v3465_v62 }
 0x6c5   : > { %v3346_v3 = vpop.f32.mrb[88].mxu1  ;;  %v3520_v5 = vpack.c.bf16 %v3468_v1, %v3466_v0 }
 0x6c6   : > { %v3347_v7 = vadd.f32 %v3346_v3, %v9806_v4  ;;  %v3348_v11 = vpop.f32.mrb[89].mxu1 }
 0x6c7   : > { %v3349_v12 = vadd.f32 %v3348_v11, %v9809_v10  ;;  %v3350_v56 = vpop.f32.mrb[90].mxu1  ;;  %3827 = vmatprep.mubr.bf16.mxu0 %v3520_v5 }
 0x6c8   : > { %v3351_v14 = vadd.f32 %v3350_v56, %v9806_v4  ;;  %v3352_v18 = vpop.f32.mrb[91].mxu1  ;;  %3828 = vmatmul.mubr.bf16.gmra.mrb[180].mxu0 %v3519_v2  ;;  %v3469_v20 = vmax.f32 %v3347_v7, 0.0 }
 0x6c9   : > { %v3353_v59 = vadd.f32 %v3352_v18, %v9809_v10  ;;  %v3470_v15 = vmax.f32 %v3349_v12, 0.0 }
 0x6ca   : > { %v3471_v21 = vmax.f32 %v3351_v14, 0.0 }
 0x6cb   : > { %v3472_v16 = vmax.f32 %v3353_v59, 0.0 }
 0x6cc   : > { %v3521_v23 = vpack.c.bf16 %v3471_v21, %v3469_v20 }
 0x6cd   : > { %v3356_v40 = vpop.f32.mrb[92].mxu1  ;;  %v3522_v44 = vpack.c.bf16 %v3472_v16, %v3470_v15 }
 0x6ce   : > { %v3357_v55 = vadd.f32 %v3356_v40, %v9806_v4  ;;  %v3358_v29 = vpop.f32.mrb[93].mxu1 }
 0x6cf   : > { %v3359_v35 = vadd.f32 %v3358_v29, %v9809_v10  ;;  %v3360_v36 = vpop.f32.mrb[94].mxu1  ;;  %3837 = vmatprep.mubr.bf16.mxu0 %v3522_v44 }
 0x6d0   : > { %v3361_v41 = vadd.f32 %v3360_v36, %v9806_v4  ;;  %v3362_v47 = vpop.f32.mrb[95].mxu1  ;;  %3838 = vmatmul.mubr.bf16.gmra.mrb[184].mxu0 %v3521_v23  ;;  %v3473_v30 = vmax.f32 %v3357_v55, 0.0 }
 0x6d1   : > { %v3363_v24 = vadd.f32 %v3362_v47, %v9809_v10  ;;  %v3474_v26 = vmax.f32 %v3359_v35, 0.0 }
 0x6d2   : > { %v3475_v25 = vmax.f32 %v3361_v41, 0.0 }
 0x6d3   : > { %v3476_v28 = vmax.f32 %v3363_v24, 0.0 }
 0x6d4   : > { %v3523_v32 = vpack.c.bf16 %v3475_v25, %v3473_v30 }
 0x6d5   : > { %v3524_v33 = vpack.c.bf16 %v3476_v28, %v3474_v26  ;;  %v3366_v34 = vpop.f32.mrb[96].mxu1 }
 0x6d6   : > { %v3367_v37 = vadd.f32 %v3366_v34, %v9806_v4  ;;  %v3368_v38 = vpop.f32.mrb[97].mxu1 }
 0x6d7   : > { %v3369_v39 = vadd.f32 %v3368_v38, %v9809_v10  ;;  %v3370_v43 = vpop.f32.mrb[98].mxu1  ;;  %3847 = vmatprep.mubr.bf16.mxu0 %v3524_v33 }
 0x6d8   : > { %v3371_v45 = vadd.f32 %v3370_v43, %v9806_v4  ;;  %v3372_v13 = vpop.f32.mrb[99].mxu1  ;;  %3848 = vmatmul.mubr.bf16.gmra.mrb[188].mxu0 %v3523_v32  ;;  %v3477_v52 = vmax.f32 %v3367_v37, 0.0  ;;  %v8363_v43 = vld [vmem:[%s10698_s2 + $0xf4] ss:$8 sps:$4 sm:$0xff]  }
 0x6d9   : > { %v3373_v17 = vadd.f32 %v3372_v13, %v9809_v10  ;;  %v3478_v9 = vmax.f32 %v3369_v39, 0.0  ;;  %v8361_v13 = vld [vmem:[%s10698_s2 + $0xf0] ss:$8 sps:$4 sm:$0xff]   ;;  %4268 = vmatprep.subr.bf16.mxu1 %v8363_v43 }
 0x6da   : > { %v3479_v6 = vmax.f32 %v3371_v45, 0.0  ;;  %4269 = vmatpush1.bf16.msra.mxu1 %v8361_v13  ;;  %v8373_v43 = vld [vmem:[%s10700_s23 + $0x30] ss:$8 sps:$4 sm:$0xff]  }
 0x6db   : > { %v3480_v19 = vmax.f32 %v3373_v17, 0.0 }
 0x6dc   : > { %v3525_v58 = vpack.c.bf16 %v3479_v6, %v3477_v52 }
 0x6dd   : > { %v3526_v42 = vpack.c.bf16 %v3480_v19, %v3478_v9  ;;  %v3376_v22 = vpop.f32.mrb[100].mxu1 }
 0x6de   : > { %v3377_v51 = vadd.f32 %v3376_v22, %v9806_v4  ;;  %v3378_v27 = vpop.f32.mrb[101].mxu1 }
 0x6df   : > { %v3379_v46 = vadd.f32 %v3378_v27, %v9809_v10  ;;  %v3380_v8 = vpop.f32.mrb[102].mxu1  ;;  %3857 = vmatprep.mubr.bf16.mxu0 %v3526_v42 }
 0x6e0   : > { %v3381_v54 = vadd.f32 %v3380_v8, %v9806_v4  ;;  %v3382_v49 = vpop.f32.mrb[103].mxu1  ;;  %3858 = vmatmul.mubr.bf16.gmra.mrb[192].mxu0 %v3525_v58  ;;  %v3481_v57 = vmax.f32 %v3377_v51, 0.0 }
 0x6e1   : > { %v3383_v53 = vadd.f32 %v3382_v49, %v9809_v10  ;;  %v3482_v61 = vmax.f32 %v3379_v46, 0.0 }
 0x6e2   : > { %v3483_v60 = vmax.f32 %v3381_v54, 0.0 }
 0x6e3   : > { %v3484_v62 = vmax.f32 %v3383_v53, 0.0 }
 0x6e4   : > { %v3527_v63 = vpack.c.bf16 %v3483_v60, %v3481_v57 }
 0x6e5   : > { %v3528_v0 = vpack.c.bf16 %v3484_v62, %v3482_v61  ;;  %v3386_v1 = vpop.f32.mrb[104].mxu1 }
 0x6e6   : > { %v3387_v2 = vadd.f32 %v3386_v1, %v9806_v4  ;;  %v3388_v3 = vpop.f32.mrb[105].mxu1 }
 0x6e7   : > { %v3389_v5 = vadd.f32 %v3388_v3, %v9809_v10  ;;  %v3390_v7 = vpop.f32.mrb[106].mxu1  ;;  %3867 = vmatprep.mubr.bf16.mxu0 %v3528_v0 }
 0x6e8   : > { %v3391_v11 = vadd.f32 %v3390_v7, %v9806_v4  ;;  %v3392_v12 = vpop.f32.mrb[107].mxu1  ;;  %3868 = vmatmul.mubr.bf16.gmra.mrb[196].mxu0 %v3527_v63  ;;  %v3485_v14 = vmax.f32 %v3387_v2, 0.0 }
 0x6e9   : > { %v3393_v56 = vadd.f32 %v3392_v12, %v9809_v10  ;;  %v3486_v59 = vmax.f32 %v3389_v5, 0.0 }
 0x6ea   : > { %v3487_v18 = vmax.f32 %v3391_v11, 0.0 }
 0x6eb   : > { %v3488_v20 = vmax.f32 %v3393_v56, 0.0 }
 0x6ec   : > { %v3529_v21 = vpack.c.bf16 %v3487_v18, %v3485_v14 }
 0x6ed   : > { %v3530_v15 = vpack.c.bf16 %v3488_v20, %v3486_v59  ;;  %v3396_v16 = vpop.f32.mrb[108].mxu1 }
 0x6ee   : > { %v3397_v23 = vadd.f32 %v3396_v16, %v9806_v4  ;;  %v3398_v40 = vpop.f32.mrb[109].mxu1 }
 0x6ef   : > { %v3399_v44 = vadd.f32 %v3398_v40, %v9809_v10  ;;  %v3400_v55 = vpop.f32.mrb[110].mxu1  ;;  %3877 = vmatprep.mubr.bf16.mxu0 %v3530_v15 }
 0x6f0   : > { %v3401_v29 = vadd.f32 %v3400_v55, %v9806_v4  ;;  %v3402_v35 = vpop.f32.mrb[111].mxu1  ;;  %3878 = vmatmul.mubr.bf16.gmra.mrb[200].mxu0 %v3529_v21  ;;  %v3489_v41 = vmax.f32 %v3397_v23, 0.0 }
 0x6f1   : > { %v3403_v36 = vadd.f32 %v3402_v35, %v9809_v10  ;;  %v3490_v24 = vmax.f32 %v3399_v44, 0.0 }
 0x6f2   : > { %v3491_v47 = vmax.f32 %v3401_v29, 0.0 }
 0x6f3   : > { %v3492_v30 = vmax.f32 %v3403_v36, 0.0 }
 0x6f4   : > { %v3531_v25 = vpack.c.bf16 %v3491_v47, %v3489_v41 }
 0x6f5   : > { %v3532_v26 = vpack.c.bf16 %v3492_v30, %v3490_v24  ;;  %v3406_v28 = vpop.f32.mrb[112].mxu1 }
 0x6f6   : > { %v3407_v32 = vadd.f32 %v3406_v28, %v9806_v4  ;;  %v3408_v33 = vpop.f32.mrb[113].mxu1  ;;  %v8367_v28 = vld [vmem:[%s10700_s23 + $0x10] ss:$8 sps:$4 sm:$0xff]  }
 0x6f7   : > { %v3409_v34 = vadd.f32 %v3408_v33, %v9809_v10  ;;  %v3410_v37 = vpop.f32.mrb[114].mxu1  ;;  %3887 = vmatprep.mubr.bf16.mxu0 %v3532_v26  ;;  %v8364_v26 = vld [vmem:[%s10700_s23] ss:$8 sps:$4 sm:$0xff]  }
 0x6f8   : > { %v3411_v38 = vadd.f32 %v3410_v37, %v9806_v4  ;;  %v3412_v39 = vpop.f32.mrb[115].mxu1  ;;  %3888 = vmatmul.mubr.bf16.gmra.mrb[204].mxu0 %v3531_v25  ;;  %v3493_v17 = vmax.f32 %v3407_v32, 0.0  ;;  %v8369_v32 = vld [vmem:[%s10700_s23 + $0x14] ss:$8 sps:$4 sm:$0xff]   ;;  %v8370_v33 = vld [vmem:[%s10700_s23 + $0x20] ss:$8 sps:$4 sm:$0xff]  }
 0x6f9   : > { %v3413_v45 = vadd.f32 %v3412_v39, %v9809_v10  ;;  %v3494_v6 = vmax.f32 %v3409_v34, 0.0  ;;  %v8372_v34 = vld [vmem:[%s10700_s23 + $0x24] ss:$8 sps:$4 sm:$0xff]  }
 0x6fa   : > { %v3495_v52 = vmax.f32 %v3411_v38, 0.0 }
 0x6fb   : > { %v3496_v9 = vmax.f32 %v3413_v45, 0.0  ;;  %v8375_v45 = vld [vmem:[%s10700_s23 + $0x34] ss:$8 sps:$4 sm:$0xff]  }
 0x6fc   : > { %v3533_v19 = vpack.c.bf16 %v3495_v52, %v3493_v17 }
 0x6fd   : > { %v3534_v58 = vpack.c.bf16 %v3496_v9, %v3494_v6  ;;  %v3416_v42 = vpop.f32.mrb[116].mxu1 }
 0x6fe   : > { %v3417_v22 = vadd.f32 %v3416_v42, %v9806_v4  ;;  %v3418_v51 = vpop.f32.mrb[117].mxu1  ;;  %v8378_v42 = vld [vmem:[%s10700_s23 + $0x44] ss:$8 sps:$4 sm:$0xff]  }
 0x6ff   : > { %v3419_v27 = vadd.f32 %v3418_v51, %v9809_v10  ;;  %v3420_v46 = vpop.f32.mrb[118].mxu1  ;;  %3897 = vmatprep.mubr.bf16.mxu0 %v3534_v58  ;;  %v8376_v58 = vld [vmem:[%s10700_s23 + $0x40] ss:$8 sps:$4 sm:$0xff]   ;;  %v8381_v51 = vld [vmem:[%s10700_s23 + $0x54] ss:$8 sps:$4 sm:$0xff]  }
 0x700   : > { %v3421_v8 = vadd.f32 %v3420_v46, %v9806_v4  ;;  %v3422_v54 = vpop.f32.mrb[119].mxu1  ;;  %3898 = vmatmul.mubr.bf16.gmra.mrb[208].mxu0 %v3533_v19  ;;  %v3497_v53 = vmax.f32 %v3417_v22, 0.0 }
 0x701   : > { %v3423_v49 = vadd.f32 %v3422_v54, %v9809_v10  ;;  %v3498_v60 = vmax.f32 %v3419_v27, 0.0 }
 0x702   : > { %v3499_v57 = vmax.f32 %v3421_v8, 0.0 }
 0x703   : > { %v3500_v61 = vmax.f32 %v3423_v49, 0.0 }
 0x704   : > { %v3535_v62 = vpack.c.bf16 %v3499_v57, %v3497_v53  ;;  %v8379_v53 = vld [vmem:[%s10700_s23 + $0x50] ss:$8 sps:$4 sm:$0xff]  }
 0x705   : > { %v3536_v63 = vpack.c.bf16 %v3500_v61, %v3498_v60  ;;  %v3426_v0 = vpop.f32.mrb[120].mxu1  ;;  %v8384_v61 = vld [vmem:[%s10700_s23 + $0x64] ss:$8 sps:$4 sm:$0xff]  }
 0x706   : > { %v3427_v1 = vadd.f32 %v3426_v0, %v9806_v4  ;;  %v3428_v2 = vpop.f32.mrb[121].mxu1 }
 0x707   : > { %v3429_v3 = vadd.f32 %v3428_v2, %v9809_v10  ;;  %v3430_v5 = vpop.f32.mrb[122].mxu1  ;;  %3907 = vmatprep.mubr.bf16.mxu0 %v3536_v63 }
 0x708   : > { %v3431_v7 = vadd.f32 %v3430_v5, %v9806_v4  ;;  %v3432_v11 = vpop.f32.mrb[123].mxu1  ;;  %3908 = vmatmul.mubr.bf16.gmra.mrb[212].mxu0 %v3535_v62  ;;  %v3501_v56 = vmax.f32 %v3427_v1, 0.0  ;;  %v8382_v5 = vld [vmem:[%s10700_s23 + $0x60] ss:$8 sps:$4 sm:$0xff]  }
 0x709   : > { %v3433_v12 = vadd.f32 %v3432_v11, %v9809_v10  ;;  %v3502_v18 = vmax.f32 %v3429_v3, 0.0  ;;  %v8387_v11 = vld [vmem:[%s10700_s23 + $0x74] ss:$8 sps:$4 sm:$0xff]  }
 0x70a   : > { %v3503_v14 = vmax.f32 %v3431_v7, 0.0 }
 0x70b   : > { %v3504_v59 = vmax.f32 %v3433_v12, 0.0 }
 0x70c   : > { %v3537_v20 = vpack.c.bf16 %v3503_v14, %v3501_v56 }
 0x70d   : > { %v3538_v21 = vpack.c.bf16 %v3504_v59, %v3502_v18  ;;  %v3436_v15 = vpop.f32.mrb[124].mxu1 }
 0x70e   : > { %v3437_v16 = vadd.f32 %v3436_v15, %v9806_v4  ;;  %v3438_v23 = vpop.f32.mrb[125].mxu1 }
 0x70f   : > { %v3439_v40 = vadd.f32 %v3438_v23, %v9809_v10  ;;  %v3440_v44 = vpop.f32.mrb[126].mxu1  ;;  %3917 = vmatprep.mubr.bf16.mxu0 %v3538_v21 }
 0x710   : > { %v3441_v55 = vadd.f32 %v3440_v44, %v9806_v4  ;;  %v3442_v29 = vpop.f32.mrb[127].mxu1  ;;  %3918 = vmatmul.mubr.bf16.gmra.mrb[216].mxu0 %v3537_v20  ;;  %v3505_v36 = vmax.f32 %v3437_v16, 0.0  ;;  %v8366_v4 = vld [vmem:[%s10700_s23 + $0x4] ss:$8 sps:$4 sm:$0xff]   ;;  %v8385_v20 = vld [vmem:[%s10700_s23 + $0x70] ss:$8 sps:$4 sm:$0xff]  }
 0x711   : > { %v3443_v35 = vadd.f32 %v3442_v29, %v9809_v10  ;;  %v3506_v47 = vmax.f32 %v3439_v40, 0.0  ;;  %4731 = vmatprep.subr.bf16.mxu0 %v8366_v4  ;;  %v3573_v10 = vld [vmem:[%s10701_s10] sm:$0x3]  ;;  %v8390_v16 = vld [vmem:[%s10700_s23 + $0x84] ss:$8 sps:$4 sm:$0xff]  }
 0x712   : > { %v3507_v41 = vmax.f32 %v3441_v55, 0.0  ;;  %4732 = vmatpush1.bf16.msra.mxu0 %v8364_v26  ;;  %v9909_v37 = vrot.slane %v3573_v10, %v9695_v31  ;;  %v9912_v38 = vrot.slane %v3573_v10, %v9698_v50 }
 0x713   : > { %v3508_v24 = vmax.f32 %v3443_v35, 0.0  ;;  %4733 = vmatprep.subr.bf16.mxu0 %v8369_v32 }
 0x714   : > { %v3539_v30 = vpack.c.bf16 %v3507_v41, %v3505_v36  ;;  %v8388_v36 = vld [vmem:[%s10700_s23 + $0x80] ss:$8 sps:$4 sm:$0xff]  }
 0x715   : > { %v3540_v25 = vpack.c.bf16 %v3508_v24, %v3506_v47  ;;  %v8393_v47 = vld [vmem:[%s10700_s23 + $0x94] ss:$8 sps:$4 sm:$0xff]  }
 0x716   : > { %4734 = vmatpush1.bf16.msra.mxu0 %v8367_v28  ;;  %v8391_v28 = vld [vmem:[%s10700_s23 + $0x90] ss:$8 sps:$4 sm:$0xff]  }
 0x717   : > { %3927 = vmatprep.mubr.bf16.mxu0 %v3540_v25  ;;  %4735 = vmatprep.subr.bf16.mxu0 %v8372_v34 }
 0x718   : > { %3928 = vmatmul.mubr.bf16.gmra.mrb[220].mxu0 %v3539_v30 }
 0x71a   : > { %4736 = vmatpush1.bf16.msra.mxu0 %v8370_v33  ;;  %v8396_v33 = vld [vmem:[%s10700_s23 + $0xa4] ss:$8 sps:$4 sm:$0xff]  }
 0x71b   : > { %4737 = vmatprep.subr.bf16.mxu0 %v8375_v45 }
 0x71e   : > { %4738 = vmatpush1.bf16.msra.mxu0 %v8373_v43 }
 0x71f   : > { %4739 = vmatprep.subr.bf16.mxu0 %v8378_v42 }
 0x722   : > { %4740 = vmatpush1.bf16.msra.mxu0 %v8376_v58 }
 0x723   : > { %4741 = vmatprep.subr.bf16.mxu0 %v8381_v51 }
 0x726   : > { %4742 = vmatpush1.bf16.msra.mxu0 %v8379_v53 }
 0x727   : > { %4743 = vmatprep.subr.bf16.mxu0 %v8384_v61 }
 0x72a   : > { %4744 = vmatpush1.bf16.msra.mxu0 %v8382_v5 }
 0x72b   : > { %4745 = vmatprep.subr.bf16.mxu0 %v8387_v11 }
 0x72e   : > { %4746 = vmatpush1.bf16.msra.mxu0 %v8385_v20 }
 0x72f   : > { %4747 = vmatprep.subr.bf16.mxu0 %v8390_v16 }
 0x732   : > { %4748 = vmatpush1.bf16.msra.mxu0 %v8388_v36 }
 0x733   : > { %4749 = vmatprep.subr.bf16.mxu0 %v8393_v47 }
 0x736   : > { %4750 = vmatpush1.bf16.msra.mxu0 %v8391_v28 }
 0x737   : > { %4751 = vmatprep.subr.bf16.mxu0 %v8396_v33 }
 0x773   : > { %v3779_v39 = vpop.f32.mrb[160].mxu0 }
 0x774   : > { %v3780_v13 = vadd.f32 %v3779_v39, %v9909_v37  ;;  %v3781_v17 = vpop.f32.mrb[161].mxu0 }
 0x775   : > { %v3782_v52 = vadd.f32 %v3781_v17, %v9912_v38  ;;  %v3783_v6 = vpop.f32.mrb[162].mxu0 }
 0x776   : > { %v3784_v9 = vadd.f32 %v3783_v6, %v9909_v37  ;;  %v3785_v19 = vpop.f32.mrb[163].mxu0  ;;  %v3938_v27 = vmax.f32 %v3780_v13, 0.0 }
 0x777   : > { %v3786_v22 = vadd.f32 %v3785_v19, %v9912_v38  ;;  %v3939_v8 = vmax.f32 %v3782_v52, 0.0  ;;  %v8394_v52 = vld [vmem:[%s10700_s23 + $0xa0] ss:$8 sps:$4 sm:$0xff]  }
 0x778   : > { %v3940_v46 = vmax.f32 %v3784_v9, 0.0  ;;  %v8399_v9 = vld [vmem:[%s10700_s23 + $0xb4] ss:$8 sps:$4 sm:$0xff]   ;;  %4752 = vmatpush1.bf16.msra.mxu0 %v8394_v52 }
 0x779   : > { %v3941_v54 = vmax.f32 %v3786_v22, 0.0  ;;  %4753 = vmatprep.subr.bf16.mxu0 %v8399_v9 }
 0x77a   : > { %v4002_v49 = vpack.c.bf16 %v3940_v46, %v3938_v27  ;;  %v8397_v27 = vld [vmem:[%s10700_s23 + $0xb0] ss:$8 sps:$4 sm:$0xff]  }
 0x77b   : > { %v4003_v57 = vpack.c.bf16 %v3941_v54, %v3939_v8  ;;  %v3789_v60 = vpop.f32.mrb[164].mxu0  ;;  %v8402_v54 = vld [vmem:[%s10700_s23 + $0xc4] ss:$8 sps:$4 sm:$0xff]  }
 0x77c   : > { %v3790_v62 = vadd.f32 %v3789_v60, %v9909_v37  ;;  %v3791_v63 = vpop.f32.mrb[165].mxu0  ;;  %4754 = vmatpush1.bf16.msra.mxu0 %v8397_v27 }
 0x77d   : > { %v3792_v0 = vadd.f32 %v3791_v63, %v9912_v38  ;;  %v3793_v1 = vpop.f32.mrb[166].mxu0  ;;  %4270 = vmatprep.mubr.bf16.mxu1 %v4003_v57  ;;  %v8400_v63 = vld [vmem:[%s10700_s23 + $0xc0] ss:$8 sps:$4 sm:$0xff]   ;;  %4755 = vmatprep.subr.bf16.mxu0 %v8402_v54 }
 0x77e   : > { %v3794_v2 = vadd.f32 %v3793_v1, %v9909_v37  ;;  %v3795_v3 = vpop.f32.mrb[167].mxu0  ;;  %4271 = vmatmul.mubr.bf16.vlgmr.msra.gmra.mrb[128].mxu1 %v4002_v49  ;;  %v3942_v12 = vmax.f32 %v3790_v62, 0.0  ;;  %v8405_v1 = vld [vmem:[%s10700_s23 + $0xd4] ss:$8 sps:$4 sm:$0xff]  }
 0x77f   : > { %v3796_v7 = vadd.f32 %v3795_v3, %v9912_v38  ;;  %v3943_v14 = vmax.f32 %v3792_v0, 0.0 }
 0x780   : > { %v3944_v56 = vmax.f32 %v3794_v2, 0.0  ;;  %4756 = vmatpush1.bf16.msra.mxu0 %v8400_v63 }
 0x781   : > { %v3945_v18 = vmax.f32 %v3796_v7, 0.0  ;;  %4757 = vmatprep.subr.bf16.mxu0 %v8405_v1 }
 0x782   : > { %v4004_v59 = vpack.c.bf16 %v3944_v56, %v3942_v12  ;;  %v8403_v12 = vld [vmem:[%s10700_s23 + $0xd0] ss:$8 sps:$4 sm:$0xff]  }
 0x783   : > { %v4005_v21 = vpack.c.bf16 %v3945_v18, %v3943_v14  ;;  %v3799_v15 = vpop.f32.mrb[168].mxu0  ;;  %v8408_v18 = vld [vmem:[%s10700_s23 + $0xe4] ss:$8 sps:$4 sm:$0xff]  }
 0x784   : > { %v3800_v23 = vadd.f32 %v3799_v15, %v9909_v37  ;;  %v3801_v40 = vpop.f32.mrb[169].mxu0  ;;  %4758 = vmatpush1.bf16.msra.mxu0 %v8403_v12 }
 0x785   : > { %v3802_v44 = vadd.f32 %v3801_v40, %v9912_v38  ;;  %v3803_v55 = vpop.f32.mrb[170].mxu0  ;;  %4280 = vmatprep.mubr.bf16.mxu1 %v4005_v21  ;;  %v8406_v40 = vld [vmem:[%s10700_s23 + $0xe0] ss:$8 sps:$4 sm:$0xff]   ;;  %4759 = vmatprep.subr.bf16.mxu0 %v8408_v18 }
 0x786   : > { %v3804_v29 = vadd.f32 %v3803_v55, %v9909_v37  ;;  %v3805_v35 = vpop.f32.mrb[171].mxu0  ;;  %4281 = vmatmul.mubr.bf16.gmra.mrb[132].mxu1 %v4004_v59  ;;  %v3946_v24 = vmax.f32 %v3800_v23, 0.0 }
 0x787   : > { %v3806_v41 = vadd.f32 %v3805_v35, %v9912_v38  ;;  %v3947_v25 = vmax.f32 %v3802_v44, 0.0 }
 0x788   : > { %v3948_v30 = vmax.f32 %v3804_v29, 0.0  ;;  %4760 = vmatpush1.bf16.msra.mxu0 %v8406_v40 }
 0x789   : > { %v3949_v26 = vmax.f32 %v3806_v41, 0.0 }
 0x78a   : > { %v4006_v4 = vpack.c.bf16 %v3948_v30, %v3946_v24 }
 0x78b   : > { %v4007_v32 = vpack.c.bf16 %v3949_v26, %v3947_v25  ;;  %v3809_v10 = vpop.f32.mrb[172].mxu0 }
 0x78c   : > { %v3810_v34 = vadd.f32 %v3809_v10, %v9909_v37  ;;  %v3811_v39 = vpop.f32.mrb[173].mxu0 }
 0x78d   : > { %v3812_v43 = vadd.f32 %v3811_v39, %v9912_v38  ;;  %v3813_v45 = vpop.f32.mrb[174].mxu0  ;;  %4290 = vmatprep.mubr.bf16.mxu1 %v4007_v32 }
 0x78e   : > { %v3814_v13 = vadd.f32 %v3813_v45, %v9909_v37  ;;  %v3815_v17 = vpop.f32.mrb[175].mxu0  ;;  %4291 = vmatmul.mubr.bf16.gmra.mrb[136].mxu1 %v4006_v4  ;;  %v3950_v19 = vmax.f32 %v3810_v34, 0.0 }
 0x78f   : > { %v3816_v6 = vadd.f32 %v3815_v17, %v9912_v38  ;;  %v3951_v42 = vmax.f32 %v3812_v43, 0.0 }
 0x790   : > { %v3952_v58 = vmax.f32 %v3814_v13, 0.0 }
 0x791   : > { %v3953_v22 = vmax.f32 %v3816_v6, 0.0 }
 0x792   : > { %v4008_v51 = vpack.c.bf16 %v3952_v58, %v3950_v19 }
 0x793   : > { %v4009_v46 = vpack.c.bf16 %v3953_v22, %v3951_v42  ;;  %v3819_v8 = vpop.f32.mrb[176].mxu0 }
 0x794   : > { %v3820_v49 = vadd.f32 %v3819_v8, %v9909_v37  ;;  %v3821_v53 = vpop.f32.mrb[177].mxu0 }
 0x795   : > { %v3822_v57 = vadd.f32 %v3821_v53, %v9912_v38  ;;  %v3823_v60 = vpop.f32.mrb[178].mxu0  ;;  %4300 = vmatprep.mubr.bf16.mxu1 %v4009_v46 }
 0x796   : > { %v3824_v61 = vadd.f32 %v3823_v60, %v9909_v37  ;;  %v3825_v62 = vpop.f32.mrb[179].mxu0  ;;  %4301 = vmatmul.mubr.bf16.gmra.mrb[140].mxu1 %v4008_v51  ;;  %v3954_v2 = vmax.f32 %v3820_v49, 0.0 }
 0x797   : > { %v3826_v0 = vadd.f32 %v3825_v62, %v9912_v38  ;;  %v3955_v5 = vmax.f32 %v3822_v57, 0.0 }
 0x798   : > { %v3956_v3 = vmax.f32 %v3824_v61, 0.0 }
 0x799   : > { %v3957_v7 = vmax.f32 %v3826_v0, 0.0 }
 0x79a   : > { %v4010_v11 = vpack.c.bf16 %v3956_v3, %v3954_v2 }
 0x79b   : > { %v4011_v56 = vpack.c.bf16 %v3957_v7, %v3955_v5  ;;  %v3829_v14 = vpop.f32.mrb[180].mxu0 }
 0x79c   : > { %v3830_v59 = vadd.f32 %v3829_v14, %v9909_v37  ;;  %v3831_v20 = vpop.f32.mrb[181].mxu0 }
 0x79d   : > { %v3832_v21 = vadd.f32 %v3831_v20, %v9912_v38  ;;  %v3833_v15 = vpop.f32.mrb[182].mxu0  ;;  %4310 = vmatprep.mubr.bf16.mxu1 %v4011_v56 }
 0x79e   : > { %v3834_v16 = vadd.f32 %v3833_v15, %v9909_v37  ;;  %v3835_v23 = vpop.f32.mrb[183].mxu0  ;;  %4311 = vmatmul.mubr.bf16.gmra.mrb[144].mxu1 %v4010_v11  ;;  %v3958_v55 = vmax.f32 %v3830_v59, 0.0 }
 0x79f   : > { %v3836_v44 = vadd.f32 %v3835_v23, %v9912_v38  ;;  %v3959_v35 = vmax.f32 %v3832_v21, 0.0 }
 0x7a0   : > { %v3960_v29 = vmax.f32 %v3834_v16, 0.0 }
 0x7a1   : > { %v3961_v36 = vmax.f32 %v3836_v44, 0.0 }
 0x7a2   : > { %v4012_v41 = vpack.c.bf16 %v3960_v29, %v3958_v55 }
 0x7a3   : > { %v4013_v47 = vpack.c.bf16 %v3961_v36, %v3959_v35  ;;  %v3839_v24 = vpop.f32.mrb[184].mxu0 }
 0x7a4   : > { %v3840_v30 = vadd.f32 %v3839_v24, %v9909_v37  ;;  %v3841_v25 = vpop.f32.mrb[185].mxu0 }
 0x7a5   : > { %v3842_v26 = vadd.f32 %v3841_v25, %v9912_v38  ;;  %v3843_v4 = vpop.f32.mrb[186].mxu0  ;;  %4320 = vmatprep.mubr.bf16.mxu1 %v4013_v47 }
 0x7a6   : > { %v3844_v28 = vadd.f32 %v3843_v4, %v9909_v37  ;;  %v3845_v32 = vpop.f32.mrb[187].mxu0  ;;  %4321 = vmatmul.mubr.bf16.gmra.mrb[148].mxu1 %v4012_v41  ;;  %v3962_v33 = vmax.f32 %v3840_v30, 0.0 }
 0x7a7   : > { %v3846_v10 = vadd.f32 %v3845_v32, %v9912_v38  ;;  %v3963_v39 = vmax.f32 %v3842_v26, 0.0 }
 0x7a8   : > { %v3964_v34 = vmax.f32 %v3844_v28, 0.0 }
 0x7a9   : > { %v3965_v43 = vmax.f32 %v3846_v10, 0.0 }
 0x7aa   : > { %v4014_v45 = vpack.c.bf16 %v3964_v34, %v3962_v33 }
 0x7ab   : > { %v4015_v13 = vpack.c.bf16 %v3965_v43, %v3963_v39  ;;  %v3849_v17 = vpop.f32.mrb[188].mxu0 }
 0x7ac   : > { %v3850_v52 = vadd.f32 %v3849_v17, %v9909_v37  ;;  %v3851_v6 = vpop.f32.mrb[189].mxu0 }
 0x7ad   : > { %v3852_v9 = vadd.f32 %v3851_v6, %v9912_v38  ;;  %v3853_v19 = vpop.f32.mrb[190].mxu0  ;;  %4330 = vmatprep.mubr.bf16.mxu1 %v4015_v13 }
 0x7ae   : > { %v3854_v58 = vadd.f32 %v3853_v19, %v9909_v37  ;;  %v3855_v42 = vpop.f32.mrb[191].mxu0  ;;  %4331 = vmatmul.mubr.bf16.gmra.mrb[152].mxu1 %v4014_v45  ;;  %v3966_v51 = vmax.f32 %v3850_v52, 0.0 }
 0x7af   : > { %v3856_v22 = vadd.f32 %v3855_v42, %v9912_v38  ;;  %v3967_v46 = vmax.f32 %v3852_v9, 0.0 }
 0x7b0   : > { %v3968_v27 = vmax.f32 %v3854_v58, 0.0 }
 0x7b1   : > { %v3969_v8 = vmax.f32 %v3856_v22, 0.0 }
 0x7b2   : > { %v4016_v54 = vpack.c.bf16 %v3968_v27, %v3966_v51 }
 0x7b3   : > { %v4017_v49 = vpack.c.bf16 %v3969_v8, %v3967_v46  ;;  %v3859_v53 = vpop.f32.mrb[192].mxu0 }
 0x7b4   : > { %v3860_v57 = vadd.f32 %v3859_v53, %v9909_v37  ;;  %v3861_v60 = vpop.f32.mrb[193].mxu0 }
 0x7b5   : > { %v3862_v61 = vadd.f32 %v3861_v60, %v9912_v38  ;;  %v3863_v62 = vpop.f32.mrb[194].mxu0  ;;  %4340 = vmatprep.mubr.bf16.mxu1 %v4017_v49 }
 0x7b6   : > { %v3864_v63 = vadd.f32 %v3863_v62, %v9909_v37  ;;  %v3865_v0 = vpop.f32.mrb[195].mxu0  ;;  %4341 = vmatmul.mubr.bf16.gmra.mrb[156].mxu1 %v4016_v54  ;;  %v3970_v2 = vmax.f32 %v3860_v57, 0.0  ;;  %v8411_v62 = vld [vmem:[%s10700_s23 + $0xf4] ss:$8 sps:$4 sm:$0xff]  }
 0x7b7   : > { %v3866_v1 = vadd.f32 %v3865_v0, %v9912_v38  ;;  %v3971_v5 = vmax.f32 %v3862_v61, 0.0  ;;  %v8409_v0 = vld [vmem:[%s10700_s23 + $0xf0] ss:$8 sps:$4 sm:$0xff]   ;;  %4761 = vmatprep.subr.bf16.mxu0 %v8411_v62 }
 0x7b8   : > { %v3972_v3 = vmax.f32 %v3864_v63, 0.0  ;;  %4762 = vmatpush1.bf16.msra.mxu0 %v8409_v0  ;;  %v8421_v62 = vld [vmem:[#allocation2 + $0x30] ss:$8 sps:$4 sm:$0xff]  }
 0x7b9   : > { %v3973_v7 = vmax.f32 %v3866_v1, 0.0 }
 0x7ba   : > { %v4018_v11 = vpack.c.bf16 %v3972_v3, %v3970_v2 }
 0x7bb   : > { %v4019_v12 = vpack.c.bf16 %v3973_v7, %v3971_v5  ;;  %v3869_v56 = vpop.f32.mrb[196].mxu0 }
 0x7bc   : > { %v3870_v14 = vadd.f32 %v3869_v56, %v9909_v37  ;;  %v3871_v18 = vpop.f32.mrb[197].mxu0 }
 0x7bd   : > { %v3872_v59 = vadd.f32 %v3871_v18, %v9912_v38  ;;  %v3873_v20 = vpop.f32.mrb[198].mxu0  ;;  %4350 = vmatprep.mubr.bf16.mxu1 %v4019_v12 }
 0x7be   : > { %v3874_v21 = vadd.f32 %v3873_v20, %v9909_v37  ;;  %v3875_v15 = vpop.f32.mrb[199].mxu0  ;;  %4351 = vmatmul.mubr.bf16.gmra.mrb[160].mxu1 %v4018_v11  ;;  %v3974_v23 = vmax.f32 %v3870_v14, 0.0 }
 0x7bf   : > { %v3876_v16 = vadd.f32 %v3875_v15, %v9912_v38  ;;  %v3975_v44 = vmax.f32 %v3872_v59, 0.0 }
 0x7c0   : > { %v3976_v40 = vmax.f32 %v3874_v21, 0.0 }
 0x7c1   : > { %v3977_v55 = vmax.f32 %v3876_v16, 0.0 }
 0x7c2   : > { %v4020_v29 = vpack.c.bf16 %v3976_v40, %v3974_v23 }
 0x7c3   : > { %v4021_v35 = vpack.c.bf16 %v3977_v55, %v3975_v44  ;;  %v3879_v36 = vpop.f32.mrb[200].mxu0 }
 0x7c4   : > { %v3880_v41 = vadd.f32 %v3879_v36, %v9909_v37  ;;  %v3881_v47 = vpop.f32.mrb[201].mxu0 }
 0x7c5   : > { %v3882_v24 = vadd.f32 %v3881_v47, %v9912_v38  ;;  %v3883_v30 = vpop.f32.mrb[202].mxu0  ;;  %4360 = vmatprep.mubr.bf16.mxu1 %v4021_v35 }
 0x7c6   : > { %v3884_v25 = vadd.f32 %v3883_v30, %v9909_v37  ;;  %v3885_v26 = vpop.f32.mrb[203].mxu0  ;;  %4361 = vmatmul.mubr.bf16.gmra.mrb[164].mxu1 %v4020_v29  ;;  %v3978_v28 = vmax.f32 %v3880_v41, 0.0 }
 0x7c7   : > { %v3886_v4 = vadd.f32 %v3885_v26, %v9912_v38  ;;  %v3979_v10 = vmax.f32 %v3882_v24, 0.0 }
 0x7c8   : > { %v3980_v32 = vmax.f32 %v3884_v25, 0.0 }
 0x7c9   : > { %v3981_v33 = vmax.f32 %v3886_v4, 0.0 }
 0x7ca   : > { %v4022_v34 = vpack.c.bf16 %v3980_v32, %v3978_v28 }
 0x7cb   : > { %v4023_v39 = vpack.c.bf16 %v3981_v33, %v3979_v10  ;;  %v3889_v43 = vpop.f32.mrb[204].mxu0 }
 0x7cc   : > { %v3890_v45 = vadd.f32 %v3889_v43, %v9909_v37  ;;  %v3891_v13 = vpop.f32.mrb[205].mxu0 }
 0x7cd   : > { %v3892_v17 = vadd.f32 %v3891_v13, %v9912_v38  ;;  %v3893_v52 = vpop.f32.mrb[206].mxu0  ;;  %4370 = vmatprep.mubr.bf16.mxu1 %v4023_v39 }
 0x7ce   : > { %v3894_v6 = vadd.f32 %v3893_v52, %v9909_v37  ;;  %v3895_v9 = vpop.f32.mrb[207].mxu0  ;;  %4371 = vmatmul.mubr.bf16.gmra.mrb[168].mxu1 %v4022_v34  ;;  %v3982_v58 = vmax.f32 %v3890_v45, 0.0 }
 0x7cf   : > { %v3896_v19 = vadd.f32 %v3895_v9, %v9912_v38  ;;  %v3983_v22 = vmax.f32 %v3892_v17, 0.0 }
 0x7d0   : > { %v3984_v42 = vmax.f32 %v3894_v6, 0.0 }
 0x7d1   : > { %v3985_v51 = vmax.f32 %v3896_v19, 0.0 }
 0x7d2   : > { %v4024_v27 = vpack.c.bf16 %v3984_v42, %v3982_v58 }
 0x7d3   : > { %v4025_v46 = vpack.c.bf16 %v3985_v51, %v3983_v22  ;;  %v3899_v8 = vpop.f32.mrb[208].mxu0 }
 0x7d4   : > { %v3900_v54 = vadd.f32 %v3899_v8, %v9909_v37  ;;  %v3901_v49 = vpop.f32.mrb[209].mxu0  ;;  %v8414_v8 = vld [vmem:[#allocation2 + $0x4] ss:$8 sps:$4 sm:$0xff]  }
 0x7d5   : > { %v3902_v53 = vadd.f32 %v3901_v49, %v9912_v38  ;;  %v3903_v57 = vpop.f32.mrb[210].mxu0  ;;  %4380 = vmatprep.mubr.bf16.mxu1 %v4025_v46  ;;  %v8412_v46 = vld [vmem:[#allocation2] ss:$8 sps:$4 sm:$0xff]   ;;  %5224 = vmatprep.subr.bf16.mxu1 %v8414_v8  ;;  %v8417_v49 = vld [vmem:[#allocation2 + $0x14] ss:$8 sps:$4 sm:$0xff]  }
 0x7d6   : > { %v3904_v60 = vadd.f32 %v3903_v57, %v9909_v37  ;;  %v3905_v61 = vpop.f32.mrb[211].mxu0  ;;  %4381 = vmatmul.mubr.bf16.gmra.mrb[172].mxu1 %v4024_v27  ;;  %v3986_v1 = vmax.f32 %v3900_v54, 0.0  ;;  %v8415_v54 = vld [vmem:[#allocation2 + $0x10] ss:$8 sps:$4 sm:$0xff]  }
 0x7d7   : > { %v3906_v63 = vadd.f32 %v3905_v61, %v9912_v38  ;;  %v3987_v3 = vmax.f32 %v3902_v53, 0.0  ;;  %5225 = vmatpush1.bf16.msra.mxu1 %v8412_v46  ;;  %v8418_v53 = vld [vmem:[#allocation2 + $0x20] ss:$8 sps:$4 sm:$0xff]  }
 0x7d8   : > { %v3988_v2 = vmax.f32 %v3904_v60, 0.0  ;;  %5226 = vmatprep.subr.bf16.mxu1 %v8417_v49 }
 0x7d9   : > { %v3989_v5 = vmax.f32 %v3906_v63, 0.0  ;;  %v8423_v63 = vld [vmem:[#allocation2 + $0x34] ss:$8 sps:$4 sm:$0xff]  }
 0x7da   : > { %v4026_v7 = vpack.c.bf16 %v3988_v2, %v3986_v1 }
 0x7db   : > { %v4027_v11 = vpack.c.bf16 %v3989_v5, %v3987_v3  ;;  %v3909_v12 = vpop.f32.mrb[212].mxu0  ;;  %5227 = vmatpush1.bf16.msra.mxu1 %v8415_v54  ;;  %v8439_v54 = vld [vmem:[#allocation2 + $0x90] ss:$8 sps:$4 sm:$0xff]  }
 0x7dc   : > { %v3910_v56 = vadd.f32 %v3909_v12, %v9909_v37  ;;  %v3911_v14 = vpop.f32.mrb[213].mxu0  ;;  %v8426_v12 = vld [vmem:[#allocation2 + $0x44] ss:$8 sps:$4 sm:$0xff]  }
 0x7dd   : > { %v3912_v18 = vadd.f32 %v3911_v14, %v9912_v38  ;;  %v3913_v59 = vpop.f32.mrb[214].mxu0  ;;  %4390 = vmatprep.mubr.bf16.mxu1 %v4027_v11  ;;  %v8424_v11 = vld [vmem:[#allocation2 + $0x40] ss:$8 sps:$4 sm:$0xff]   ;;  %v8429_v14 = vld [vmem:[#allocation2 + $0x54] ss:$8 sps:$4 sm:$0xff]  }
 0x7de   : > { %v3914_v20 = vadd.f32 %v3913_v59, %v9909_v37  ;;  %v3915_v21 = vpop.f32.mrb[215].mxu0  ;;  %4391 = vmatmul.mubr.bf16.gmra.mrb[176].mxu1 %v4026_v7  ;;  %v3990_v16 = vmax.f32 %v3910_v56, 0.0 }
 0x7df   : > { %v3916_v15 = vadd.f32 %v3915_v21, %v9912_v38  ;;  %v3991_v40 = vmax.f32 %v3912_v18, 0.0 }
 0x7e0   : > { %v3992_v23 = vmax.f32 %v3914_v20, 0.0 }
 0x7e1   : > { %v3993_v44 = vmax.f32 %v3916_v15, 0.0 }
 0x7e2   : > { %v4028_v55 = vpack.c.bf16 %v3992_v23, %v3990_v16  ;;  %v8427_v16 = vld [vmem:[#allocation2 + $0x50] ss:$8 sps:$4 sm:$0xff]  }
 0x7e3   : > { %v4029_v29 = vpack.c.bf16 %v3993_v44, %v3991_v40  ;;  %v3919_v35 = vpop.f32.mrb[216].mxu0  ;;  %v8432_v44 = vld [vmem:[#allocation2 + $0x64] ss:$8 sps:$4 sm:$0xff]  }
 0x7e4   : > { %v3920_v36 = vadd.f32 %v3919_v35, %v9909_v37  ;;  %v3921_v41 = vpop.f32.mrb[217].mxu0 }
 0x7e5   : > { %v3922_v47 = vadd.f32 %v3921_v41, %v9912_v38  ;;  %v3923_v24 = vpop.f32.mrb[218].mxu0  ;;  %4400 = vmatprep.mubr.bf16.mxu1 %v4029_v29 }
 0x7e6   : > { %v3924_v30 = vadd.f32 %v3923_v24, %v9909_v37  ;;  %v3925_v25 = vpop.f32.mrb[219].mxu0  ;;  %4401 = vmatmul.mubr.bf16.gmra.mrb[180].mxu1 %v4028_v55  ;;  %v3994_v4 = vmax.f32 %v3920_v36, 0.0  ;;  %v8430_v24 = vld [vmem:[#allocation2 + $0x60] ss:$8 sps:$4 sm:$0xff]  }
 0x7e7   : > { %v3926_v26 = vadd.f32 %v3925_v25, %v9912_v38  ;;  %v3995_v32 = vmax.f32 %v3922_v47, 0.0  ;;  %v8435_v25 = vld [vmem:[#allocation2 + $0x74] ss:$8 sps:$4 sm:$0xff]  }
 0x7e8   : > { %v3996_v28 = vmax.f32 %v3924_v30, 0.0 }
 0x7e9   : > { %v3997_v10 = vmax.f32 %v3926_v26, 0.0 }
 0x7ea   : > { %v4030_v33 = vpack.c.bf16 %v3996_v28, %v3994_v4 }
 0x7eb   : > { %v4031_v34 = vpack.c.bf16 %v3997_v10, %v3995_v32  ;;  %v3929_v39 = vpop.f32.mrb[220].mxu0 }
 0x7ec   : > { %v3930_v43 = vadd.f32 %v3929_v39, %v9909_v37  ;;  %v3931_v45 = vpop.f32.mrb[221].mxu0 }
 0x7ed   : > { %v3932_v13 = vadd.f32 %v3931_v45, %v9912_v38  ;;  %v3933_v17 = vpop.f32.mrb[222].mxu0  ;;  %4410 = vmatprep.mubr.bf16.mxu1 %v4031_v34 }
 0x7ee   : > { %v3934_v52 = vadd.f32 %v3933_v17, %v9909_v37  ;;  %v3935_v6 = vpop.f32.mrb[223].mxu0  ;;  %4411 = vmatmul.mubr.bf16.gmra.mrb[184].mxu1 %v4030_v33  ;;  %v3998_v19 = vmax.f32 %v3930_v43, 0.0  ;;  %v4066_v37 = vld [vmem:[%s10702_s1] sm:$0x3]  ;;  %v8433_v33 = vld [vmem:[#allocation2 + $0x70] ss:$8 sps:$4 sm:$0xff]  }
 0x7ef   : > { %v3936_v9 = vadd.f32 %v3935_v6, %v9912_v38  ;;  %v3999_v42 = vmax.f32 %v3932_v13, 0.0  ;;  %v8420_v38 = vld [vmem:[#allocation2 + $0x24] ss:$8 sps:$4 sm:$0xff]   ;;  %v10006_v57 = vrot.slane %v4066_v37, %v9695_v31  ;;  %v10009_v60 = vrot.slane %v4066_v37, %v9698_v50 }
 0x7f0   : > { %v4000_v58 = vmax.f32 %v3934_v52, 0.0  ;;  %5228 = vmatprep.subr.bf16.mxu1 %v8420_v38  ;;  %v8438_v43 = vld [vmem:[#allocation2 + $0x84] ss:$8 sps:$4 sm:$0xff]  }
 0x7f1   : > { %v4001_v22 = vmax.f32 %v3936_v9, 0.0  ;;  %5229 = vmatpush1.bf16.msra.mxu1 %v8418_v53  ;;  %v8444_v53 = vld [vmem:[#allocation2 + $0xa4] ss:$8 sps:$4 sm:$0xff]  }
 0x7f2   : > { %v4032_v51 = vpack.c.bf16 %v4000_v58, %v3998_v19  ;;  %5230 = vmatprep.subr.bf16.mxu1 %v8423_v63  ;;  %v8436_v19 = vld [vmem:[#allocation2 + $0x80] ss:$8 sps:$4 sm:$0xff]  }
 0x7f3   : > { %v4033_v27 = vpack.c.bf16 %v4001_v22, %v3999_v42  ;;  %v8441_v42 = vld [vmem:[#allocation2 + $0x94] ss:$8 sps:$4 sm:$0xff]  }
 0x7f5   : > { %4420 = vmatprep.mubr.bf16.mxu1 %v4033_v27  ;;  %5231 = vmatpush1.bf16.msra.mxu1 %v8421_v62 }
 0x7f6   : > { %4421 = vmatmul.mubr.bf16.gmra.mrb[188].mxu1 %v4032_v51  ;;  %5232 = vmatprep.subr.bf16.mxu1 %v8426_v12 }
 0x7f9   : > { %5233 = vmatpush1.bf16.msra.mxu1 %v8424_v11 }
 0x7fa   : > { %5234 = vmatprep.subr.bf16.mxu1 %v8429_v14 }
 0x7fd   : > { %5235 = vmatpush1.bf16.msra.mxu1 %v8427_v16 }
 0x7fe   : > { %5236 = vmatprep.subr.bf16.mxu1 %v8432_v44 }
 0x801   : > { %5237 = vmatpush1.bf16.msra.mxu1 %v8430_v24 }
 0x802   : > { %5238 = vmatprep.subr.bf16.mxu1 %v8435_v25 }
 0x805   : > { %5239 = vmatpush1.bf16.msra.mxu1 %v8433_v33 }
 0x806   : > { %5240 = vmatprep.subr.bf16.mxu1 %v8438_v43 }
 0x809   : > { %5241 = vmatpush1.bf16.msra.mxu1 %v8436_v19 }
 0x80a   : > { %5242 = vmatprep.subr.bf16.mxu1 %v8441_v42 }
 0x80d   : > { %5243 = vmatpush1.bf16.msra.mxu1 %v8439_v54 }
 0x80e   : > { %5244 = vmatprep.subr.bf16.mxu1 %v8444_v53 }
 0x851   : > { %v4272_v61 = vpop.f32.mrb[128].mxu1 }
 0x852   : > { %v4273_v0 = vadd.f32 %v4272_v61, %v10006_v57  ;;  %v4274_v1 = vpop.f32.mrb[129].mxu1 }
 0x853   : > { %v4275_v2 = vadd.f32 %v4274_v1, %v10009_v60  ;;  %v4276_v3 = vpop.f32.mrb[130].mxu1 }
 0x854   : > { %v4277_v5 = vadd.f32 %v4276_v3, %v10006_v57  ;;  %v4278_v7 = vpop.f32.mrb[131].mxu1  ;;  %v4431_v18 = vmax.f32 %v4273_v0, 0.0 }
 0x855   : > { %v4279_v56 = vadd.f32 %v4278_v7, %v10009_v60  ;;  %v4432_v20 = vmax.f32 %v4275_v2, 0.0  ;;  %v8442_v2 = vld [vmem:[#allocation2 + $0xa0] ss:$8 sps:$4 sm:$0xff]  }
 0x856   : > { %v4433_v59 = vmax.f32 %v4277_v5, 0.0  ;;  %v8447_v5 = vld [vmem:[#allocation2 + $0xb4] ss:$8 sps:$4 sm:$0xff]   ;;  %5245 = vmatpush1.bf16.msra.mxu1 %v8442_v2 }
 0x857   : > { %v4434_v21 = vmax.f32 %v4279_v56, 0.0  ;;  %5246 = vmatprep.subr.bf16.mxu1 %v8447_v5 }
 0x858   : > { %v4495_v15 = vpack.c.bf16 %v4433_v59, %v4431_v18  ;;  %v8445_v18 = vld [vmem:[#allocation2 + $0xb0] ss:$8 sps:$4 sm:$0xff]  }
 0x859   : > { %v4496_v23 = vpack.c.bf16 %v4434_v21, %v4432_v20  ;;  %v4282_v40 = vpop.f32.mrb[132].mxu1  ;;  %v8450_v21 = vld [vmem:[#allocation2 + $0xc4] ss:$8 sps:$4 sm:$0xff]  }
 0x85a   : > { %v4283_v55 = vadd.f32 %v4282_v40, %v10006_v57  ;;  %v4284_v29 = vpop.f32.mrb[133].mxu1  ;;  %5247 = vmatpush1.bf16.msra.mxu1 %v8445_v18 }
 0x85b   : > { %v4285_v35 = vadd.f32 %v4284_v29, %v10009_v60  ;;  %v4286_v36 = vpop.f32.mrb[134].mxu1  ;;  %4763 = vmatprep.mubr.bf16.mxu0 %v4496_v23  ;;  %v8448_v29 = vld [vmem:[#allocation2 + $0xc0] ss:$8 sps:$4 sm:$0xff]   ;;  %5248 = vmatprep.subr.bf16.mxu1 %v8450_v21 }
 0x85c   : > { %v4287_v41 = vadd.f32 %v4286_v36, %v10006_v57  ;;  %v4288_v47 = vpop.f32.mrb[135].mxu1  ;;  %4764 = vmatmul.mubr.bf16.vlgmr.msra.gmra.mrb[224].mxu0 %v4495_v15  ;;  %v4435_v26 = vmax.f32 %v4283_v55, 0.0  ;;  %v8453_v36 = vld [vmem:[#allocation2 + $0xd4] ss:$8 sps:$4 sm:$0xff]  }
 0x85d   : > { %v4289_v30 = vadd.f32 %v4288_v47, %v10009_v60  ;;  %v4436_v28 = vmax.f32 %v4285_v35, 0.0 }
 0x85e   : > { %v4437_v4 = vmax.f32 %v4287_v41, 0.0  ;;  %5249 = vmatpush1.bf16.msra.mxu1 %v8448_v29 }
 0x85f   : > { %v4438_v32 = vmax.f32 %v4289_v30, 0.0  ;;  %5250 = vmatprep.subr.bf16.mxu1 %v8453_v36 }
 0x860   : > { %v4497_v10 = vpack.c.bf16 %v4437_v4, %v4435_v26  ;;  %v8451_v26 = vld [vmem:[#allocation2 + $0xd0] ss:$8 sps:$4 sm:$0xff]  }
 0x861   : > { %v4498_v34 = vpack.c.bf16 %v4438_v32, %v4436_v28  ;;  %v4292_v39 = vpop.f32.mrb[136].mxu1  ;;  %v8456_v32 = vld [vmem:[#allocation2 + $0xe4] ss:$8 sps:$4 sm:$0xff]  }
 0x862   : > { %v4293_v45 = vadd.f32 %v4292_v39, %v10006_v57  ;;  %v4294_v13 = vpop.f32.mrb[137].mxu1  ;;  %5251 = vmatpush1.bf16.msra.mxu1 %v8451_v26 }
 0x863   : > { %v4295_v17 = vadd.f32 %v4294_v13, %v10009_v60  ;;  %v4296_v52 = vpop.f32.mrb[138].mxu1  ;;  %4773 = vmatprep.mubr.bf16.mxu0 %v4498_v34  ;;  %v8454_v13 = vld [vmem:[#allocation2 + $0xe0] ss:$8 sps:$4 sm:$0xff]   ;;  %5252 = vmatprep.subr.bf16.mxu1 %v8456_v32 }
 0x864   : > { %v4297_v6 = vadd.f32 %v4296_v52, %v10006_v57  ;;  %v4298_v9 = vpop.f32.mrb[139].mxu1  ;;  %4774 = vmatmul.mubr.bf16.gmra.mrb[228].mxu0 %v4497_v10  ;;  %v4439_v22 = vmax.f32 %v4293_v45, 0.0 }
 0x865   : > { %v4299_v58 = vadd.f32 %v4298_v9, %v10009_v60  ;;  %v4440_v27 = vmax.f32 %v4295_v17, 0.0 }
 0x866   : > { %v4441_v51 = vmax.f32 %v4297_v6, 0.0  ;;  %5253 = vmatpush1.bf16.msra.mxu1 %v8454_v13 }
 0x867   : > { %v4442_v46 = vmax.f32 %v4299_v58, 0.0 }
 0x868   : > { %v4499_v8 = vpack.c.bf16 %v4441_v51, %v4439_v22 }
 0x869   : > { %v4500_v49 = vpack.c.bf16 %v4442_v46, %v4440_v27  ;;  %v4302_v37 = vpop.f32.mrb[140].mxu1 }
 0x86a   : > { %v4303_v38 = vadd.f32 %v4302_v37, %v10006_v57  ;;  %v4304_v61 = vpop.f32.mrb[141].mxu1 }
 0x86b   : > { %v4305_v62 = vadd.f32 %v4304_v61, %v10009_v60  ;;  %v4306_v63 = vpop.f32.mrb[142].mxu1  ;;  %4783 = vmatprep.mubr.bf16.mxu0 %v4500_v49 }
 0x86c   : > { %v4307_v0 = vadd.f32 %v4306_v63, %v10006_v57  ;;  %v4308_v1 = vpop.f32.mrb[143].mxu1  ;;  %4784 = vmatmul.mubr.bf16.gmra.mrb[232].mxu0 %v4499_v8  ;;  %v4443_v7 = vmax.f32 %v4303_v38, 0.0 }
 0x86d   : > { %v4309_v3 = vadd.f32 %v4308_v1, %v10009_v60  ;;  %v4444_v12 = vmax.f32 %v4305_v62, 0.0 }
 0x86e   : > { %v4445_v11 = vmax.f32 %v4307_v0, 0.0 }
 0x86f   : > { %v4446_v56 = vmax.f32 %v4309_v3, 0.0 }
 0x870   : > { %v4501_v14 = vpack.c.bf16 %v4445_v11, %v4443_v7 }
 0x871   : > { %v4502_v59 = vpack.c.bf16 %v4446_v56, %v4444_v12  ;;  %v4312_v20 = vpop.f32.mrb[144].mxu1 }
 0x872   : > { %v4313_v15 = vadd.f32 %v4312_v20, %v10006_v57  ;;  %v4314_v16 = vpop.f32.mrb[145].mxu1 }
 0x873   : > { %v4315_v23 = vadd.f32 %v4314_v16, %v10009_v60  ;;  %v4316_v40 = vpop.f32.mrb[146].mxu1  ;;  %4793 = vmatprep.mubr.bf16.mxu0 %v4502_v59 }
 0x874   : > { %v4317_v44 = vadd.f32 %v4316_v40, %v10006_v57  ;;  %v4318_v55 = vpop.f32.mrb[147].mxu1  ;;  %4794 = vmatmul.mubr.bf16.gmra.mrb[236].mxu0 %v4501_v14  ;;  %v4447_v41 = vmax.f32 %v4313_v15, 0.0 }
 0x875   : > { %v4319_v35 = vadd.f32 %v4318_v55, %v10009_v60  ;;  %v4448_v24 = vmax.f32 %v4315_v23, 0.0 }
 0x876   : > { %v4449_v47 = vmax.f32 %v4317_v44, 0.0 }
 0x877   : > { %v4450_v30 = vmax.f32 %v4319_v35, 0.0 }
 0x878   : > { %v4503_v25 = vpack.c.bf16 %v4449_v47, %v4447_v41 }
 0x879   : > { %v4504_v4 = vpack.c.bf16 %v4450_v30, %v4448_v24  ;;  %v4322_v28 = vpop.f32.mrb[148].mxu1 }
 0x87a   : > { %v4323_v10 = vadd.f32 %v4322_v28, %v10006_v57  ;;  %v4324_v33 = vpop.f32.mrb[149].mxu1 }
 0x87b   : > { %v4325_v34 = vadd.f32 %v4324_v33, %v10009_v60  ;;  %v4326_v39 = vpop.f32.mrb[150].mxu1  ;;  %4803 = vmatprep.mubr.bf16.mxu0 %v4504_v4 }
 0x87c   : > { %v4327_v43 = vadd.f32 %v4326_v39, %v10006_v57  ;;  %v4328_v45 = vpop.f32.mrb[151].mxu1  ;;  %4804 = vmatmul.mubr.bf16.gmra.mrb[240].mxu0 %v4503_v25  ;;  %v4451_v52 = vmax.f32 %v4323_v10, 0.0 }
 0x87d   : > { %v4329_v17 = vadd.f32 %v4328_v45, %v10009_v60  ;;  %v4452_v9 = vmax.f32 %v4325_v34, 0.0 }
 0x87e   : > { %v4453_v6 = vmax.f32 %v4327_v43, 0.0 }
 0x87f   : > { %v4454_v19 = vmax.f32 %v4329_v17, 0.0 }
 0x880   : > { %v4505_v58 = vpack.c.bf16 %v4453_v6, %v4451_v52 }
 0x881   : > { %v4506_v42 = vpack.c.bf16 %v4454_v19, %v4452_v9  ;;  %v4332_v22 = vpop.f32.mrb[152].mxu1 }
 0x882   : > { %v4333_v51 = vadd.f32 %v4332_v22, %v10006_v57  ;;  %v4334_v27 = vpop.f32.mrb[153].mxu1 }
 0x883   : > { %v4335_v46 = vadd.f32 %v4334_v27, %v10009_v60  ;;  %v4336_v8 = vpop.f32.mrb[154].mxu1  ;;  %4813 = vmatprep.mubr.bf16.mxu0 %v4506_v42 }
 0x884   : > { %v4337_v54 = vadd.f32 %v4336_v8, %v10006_v57  ;;  %v4338_v49 = vpop.f32.mrb[155].mxu1  ;;  %4814 = vmatmul.mubr.bf16.gmra.mrb[244].mxu0 %v4505_v58  ;;  %v4455_v53 = vmax.f32 %v4333_v51, 0.0 }
 0x885   : > { %v4339_v37 = vadd.f32 %v4338_v49, %v10009_v60  ;;  %v4456_v61 = vmax.f32 %v4335_v46, 0.0 }
 0x886   : > { %v4457_v38 = vmax.f32 %v4337_v54, 0.0 }
 0x887   : > { %v4458_v62 = vmax.f32 %v4339_v37, 0.0 }
 0x888   : > { %v4507_v63 = vpack.c.bf16 %v4457_v38, %v4455_v53 }
 0x889   : > { %v4508_v0 = vpack.c.bf16 %v4458_v62, %v4456_v61  ;;  %v4342_v1 = vpop.f32.mrb[156].mxu1 }
 0x88a   : > { %v4343_v2 = vadd.f32 %v4342_v1, %v10006_v57  ;;  %v4344_v3 = vpop.f32.mrb[157].mxu1 }
 0x88b   : > { %v4345_v5 = vadd.f32 %v4344_v3, %v10009_v60  ;;  %v4346_v7 = vpop.f32.mrb[158].mxu1  ;;  %4823 = vmatprep.mubr.bf16.mxu0 %v4508_v0 }
 0x88c   : > { %v4347_v11 = vadd.f32 %v4346_v7, %v10006_v57  ;;  %v4348_v12 = vpop.f32.mrb[159].mxu1  ;;  %4824 = vmatmul.mubr.bf16.gmra.mrb[248].mxu0 %v4507_v63  ;;  %v4459_v14 = vmax.f32 %v4343_v2, 0.0 }
 0x88d   : > { %v4349_v56 = vadd.f32 %v4348_v12, %v10009_v60  ;;  %v4460_v59 = vmax.f32 %v4345_v5, 0.0 }
 0x88e   : > { %v4461_v18 = vmax.f32 %v4347_v11, 0.0 }
 0x88f   : > { %v4462_v20 = vmax.f32 %v4349_v56, 0.0 }
 0x890   : > { %v4509_v21 = vpack.c.bf16 %v4461_v18, %v4459_v14 }
 0x891   : > { %v4510_v15 = vpack.c.bf16 %v4462_v20, %v4460_v59  ;;  %v4352_v16 = vpop.f32.mrb[160].mxu1 }
 0x892   : > { %v4353_v23 = vadd.f32 %v4352_v16, %v10006_v57  ;;  %v4354_v40 = vpop.f32.mrb[161].mxu1 }
 0x893   : > { %v4355_v44 = vadd.f32 %v4354_v40, %v10009_v60  ;;  %v4356_v55 = vpop.f32.mrb[162].mxu1  ;;  %4833 = vmatprep.mubr.bf16.mxu0 %v4510_v15 }
 0x894   : > { %v4357_v29 = vadd.f32 %v4356_v55, %v10006_v57  ;;  %v4358_v35 = vpop.f32.mrb[163].mxu1  ;;  %4834 = vmatmul.mubr.bf16.gmra.mrb[252].mxu0 %v4509_v21  ;;  %v4463_v41 = vmax.f32 %v4353_v23, 0.0  ;;  %v8459_v55 = vld [vmem:[#allocation2 + $0xf4] ss:$8 sps:$4 sm:$0xff]  }
 0x895   : > { %v4359_v36 = vadd.f32 %v4358_v35, %v10009_v60  ;;  %v4464_v24 = vmax.f32 %v4355_v44, 0.0  ;;  %v8457_v35 = vld [vmem:[#allocation2 + $0xf0] ss:$8 sps:$4 sm:$0xff]   ;;  %5254 = vmatprep.subr.bf16.mxu1 %v8459_v55 }
 0x896   : > { %v4465_v47 = vmax.f32 %v4357_v29, 0.0  ;;  %5255 = vmatpush1.bf16.msra.mxu1 %v8457_v35  ;;  %v8469_v55 = vld [vmem:[#allocation4 + $0x30] ss:$8 sps:$4 sm:$0xff]  }
 0x897   : > { %v4466_v30 = vmax.f32 %v4359_v36, 0.0 }
 0x898   : > { %v4511_v25 = vpack.c.bf16 %v4465_v47, %v4463_v41 }
 0x899   : > { %v4512_v26 = vpack.c.bf16 %v4466_v30, %v4464_v24  ;;  %v4362_v4 = vpop.f32.mrb[164].mxu1 }
 0x89a   : > { %v4363_v28 = vadd.f32 %v4362_v4, %v10006_v57  ;;  %v4364_v32 = vpop.f32.mrb[165].mxu1 }
 0x89b   : > { %v4365_v10 = vadd.f32 %v4364_v32, %v10009_v60  ;;  %v4366_v33 = vpop.f32.mrb[166].mxu1  ;;  %4843 = vmatprep.mubr.bf16.mxu0 %v4512_v26 }
 0x89c   : > { %v4367_v34 = vadd.f32 %v4366_v33, %v10006_v57  ;;  %v4368_v39 = vpop.f32.mrb[167].mxu1  ;;  %4844 = vmatmul.mubr.bf16.gmra.mrb[0].mxu0 %v4511_v25  ;;  %v4467_v45 = vmax.f32 %v4363_v28, 0.0 }
 0x89d   : > { %v4369_v43 = vadd.f32 %v4368_v39, %v10009_v60  ;;  %v4468_v17 = vmax.f32 %v4365_v10, 0.0 }
 0x89e   : > { %v4469_v13 = vmax.f32 %v4367_v34, 0.0 }
 0x89f   : > { %v4470_v52 = vmax.f32 %v4369_v43, 0.0 }
 0x8a0   : > { %v4513_v6 = vpack.c.bf16 %v4469_v13, %v4467_v45 }
 0x8a1   : > { %v4514_v9 = vpack.c.bf16 %v4470_v52, %v4468_v17  ;;  %v4372_v19 = vpop.f32.mrb[168].mxu1 }
 0x8a2   : > { %v4373_v58 = vadd.f32 %v4372_v19, %v10006_v57  ;;  %v4374_v42 = vpop.f32.mrb[169].mxu1 }
 0x8a3   : > { %v4375_v22 = vadd.f32 %v4374_v42, %v10009_v60  ;;  %v4376_v51 = vpop.f32.mrb[170].mxu1  ;;  %4853 = vmatprep.mubr.bf16.mxu0 %v4514_v9 }
 0x8a4   : > { %v4377_v27 = vadd.f32 %v4376_v51, %v10006_v57  ;;  %v4378_v46 = vpop.f32.mrb[171].mxu1  ;;  %4854 = vmatmul.mubr.bf16.gmra.mrb[4].mxu0 %v4513_v6  ;;  %v4471_v54 = vmax.f32 %v4373_v58, 0.0 }
 0x8a5   : > { %v4379_v8 = vadd.f32 %v4378_v46, %v10009_v60  ;;  %v4472_v37 = vmax.f32 %v4375_v22, 0.0 }
 0x8a6   : > { %v4473_v49 = vmax.f32 %v4377_v27, 0.0 }
 0x8a7   : > { %v4474_v53 = vmax.f32 %v4379_v8, 0.0 }
 0x8a8   : > { %v4515_v38 = vpack.c.bf16 %v4473_v49, %v4471_v54 }
 0x8a9   : > { %v4516_v61 = vpack.c.bf16 %v4474_v53, %v4472_v37  ;;  %v4382_v62 = vpop.f32.mrb[172].mxu1 }
 0x8aa   : > { %v4383_v63 = vadd.f32 %v4382_v62, %v10006_v57  ;;  %v4384_v0 = vpop.f32.mrb[173].mxu1 }
 0x8ab   : > { %v4385_v1 = vadd.f32 %v4384_v0, %v10009_v60  ;;  %v4386_v2 = vpop.f32.mrb[174].mxu1  ;;  %4863 = vmatprep.mubr.bf16.mxu0 %v4516_v61 }
 0x8ac   : > { %v4387_v3 = vadd.f32 %v4386_v2, %v10006_v57  ;;  %v4388_v5 = vpop.f32.mrb[175].mxu1  ;;  %4864 = vmatmul.mubr.bf16.gmra.mrb[8].mxu0 %v4515_v38  ;;  %v4475_v11 = vmax.f32 %v4383_v63, 0.0 }
 0x8ad   : > { %v4389_v7 = vadd.f32 %v4388_v5, %v10009_v60  ;;  %v4476_v56 = vmax.f32 %v4385_v1, 0.0 }
 0x8ae   : > { %v4477_v12 = vmax.f32 %v4387_v3, 0.0 }
 0x8af   : > { %v4478_v14 = vmax.f32 %v4389_v7, 0.0 }
 0x8b0   : > { %v4517_v18 = vpack.c.bf16 %v4477_v12, %v4475_v11 }
 0x8b1   : > { %v4518_v59 = vpack.c.bf16 %v4478_v14, %v4476_v56  ;;  %v4392_v20 = vpop.f32.mrb[176].mxu1 }
 0x8b2   : > { %v4393_v21 = vadd.f32 %v4392_v20, %v10006_v57  ;;  %v4394_v15 = vpop.f32.mrb[177].mxu1  ;;  %v8462_v20 = vld [vmem:[#allocation4 + $0x4] ss:$8 sps:$4 sm:$0xff]  }
 0x8b3   : > { %v4395_v16 = vadd.f32 %v4394_v15, %v10009_v60  ;;  %v4396_v23 = vpop.f32.mrb[178].mxu1  ;;  %4873 = vmatprep.mubr.bf16.mxu0 %v4518_v59  ;;  %v8460_v59 = vld [vmem:[#allocation4] ss:$8 sps:$4 sm:$0xff]   ;;  %5717 = vmatprep.subr.bf16.mxu0 %v8462_v20  ;;  %v8465_v15 = vld [vmem:[#allocation4 + $0x14] ss:$8 sps:$4 sm:$0xff]  }
 0x8b4   : > { %v4397_v40 = vadd.f32 %v4396_v23, %v10006_v57  ;;  %v4398_v44 = vpop.f32.mrb[179].mxu1  ;;  %4874 = vmatmul.mubr.bf16.gmra.mrb[12].mxu0 %v4517_v18  ;;  %v4479_v36 = vmax.f32 %v4393_v21, 0.0  ;;  %v8463_v21 = vld [vmem:[#allocation4 + $0x10] ss:$8 sps:$4 sm:$0xff]  }
 0x8b5   : > { %v4399_v29 = vadd.f32 %v4398_v44, %v10009_v60  ;;  %v4480_v47 = vmax.f32 %v4395_v16, 0.0  ;;  %5718 = vmatpush1.bf16.msra.mxu0 %v8460_v59  ;;  %v8466_v16 = vld [vmem:[#allocation4 + $0x20] ss:$8 sps:$4 sm:$0xff]  }
 0x8b6   : > { %v4481_v41 = vmax.f32 %v4397_v40, 0.0  ;;  %5719 = vmatprep.subr.bf16.mxu0 %v8465_v15 }
 0x8b7   : > { %v4482_v24 = vmax.f32 %v4399_v29, 0.0  ;;  %v8471_v29 = vld [vmem:[#allocation4 + $0x34] ss:$8 sps:$4 sm:$0xff]  }
 0x8b8   : > { %v4519_v30 = vpack.c.bf16 %v4481_v41, %v4479_v36 }
 0x8b9   : > { %v4520_v25 = vpack.c.bf16 %v4482_v24, %v4480_v47  ;;  %v4402_v26 = vpop.f32.mrb[180].mxu1  ;;  %5720 = vmatpush1.bf16.msra.mxu0 %v8463_v21  ;;  %v8487_v21 = vld [vmem:[#allocation4 + $0x90] ss:$8 sps:$4 sm:$0xff]  }
 0x8ba   : > { %v4403_v4 = vadd.f32 %v4402_v26, %v10006_v57  ;;  %v4404_v28 = vpop.f32.mrb[181].mxu1  ;;  %v8474_v26 = vld [vmem:[#allocation4 + $0x44] ss:$8 sps:$4 sm:$0xff]  }
 0x8bb   : > { %v4405_v32 = vadd.f32 %v4404_v28, %v10009_v60  ;;  %v4406_v10 = vpop.f32.mrb[182].mxu1  ;;  %4883 = vmatprep.mubr.bf16.mxu0 %v4520_v25  ;;  %v8472_v25 = vld [vmem:[#allocation4 + $0x40] ss:$8 sps:$4 sm:$0xff]   ;;  %v8477_v28 = vld [vmem:[#allocation4 + $0x54] ss:$8 sps:$4 sm:$0xff]  }
 0x8bc   : > { %v4407_v33 = vadd.f32 %v4406_v10, %v10006_v57  ;;  %v4408_v34 = vpop.f32.mrb[183].mxu1  ;;  %4884 = vmatmul.mubr.bf16.gmra.mrb[16].mxu0 %v4519_v30  ;;  %v4483_v43 = vmax.f32 %v4403_v4, 0.0 }
 0x8bd   : > { %v4409_v39 = vadd.f32 %v4408_v34, %v10009_v60  ;;  %v4484_v13 = vmax.f32 %v4405_v32, 0.0 }
 0x8be   : > { %v4485_v45 = vmax.f32 %v4407_v33, 0.0 }
 0x8bf   : > { %v4486_v17 = vmax.f32 %v4409_v39, 0.0 }
 0x8c0   : > { %v4521_v52 = vpack.c.bf16 %v4485_v45, %v4483_v43  ;;  %v8475_v43 = vld [vmem:[#allocation4 + $0x50] ss:$8 sps:$4 sm:$0xff]  }
 0x8c1   : > { %v4522_v6 = vpack.c.bf16 %v4486_v17, %v4484_v13  ;;  %v4412_v9 = vpop.f32.mrb[184].mxu1  ;;  %v8480_v17 = vld [vmem:[#allocation4 + $0x64] ss:$8 sps:$4 sm:$0xff]  }
 0x8c2   : > { %v4413_v19 = vadd.f32 %v4412_v9, %v10006_v57  ;;  %v4414_v58 = vpop.f32.mrb[185].mxu1 }
 0x8c3   : > { %v4415_v42 = vadd.f32 %v4414_v58, %v10009_v60  ;;  %v4416_v22 = vpop.f32.mrb[186].mxu1  ;;  %4893 = vmatprep.mubr.bf16.mxu0 %v4522_v6 }
 0x8c4   : > { %v4417_v51 = vadd.f32 %v4416_v22, %v10006_v57  ;;  %v4418_v27 = vpop.f32.mrb[187].mxu1  ;;  %4894 = vmatmul.mubr.bf16.gmra.mrb[20].mxu0 %v4521_v52  ;;  %v4487_v8 = vmax.f32 %v4413_v19, 0.0  ;;  %v8478_v22 = vld [vmem:[#allocation4 + $0x60] ss:$8 sps:$4 sm:$0xff]  }
 0x8c5   : > { %v4419_v46 = vadd.f32 %v4418_v27, %v10009_v60  ;;  %v4488_v49 = vmax.f32 %v4415_v42, 0.0  ;;  %v8483_v27 = vld [vmem:[#allocation4 + $0x74] ss:$8 sps:$4 sm:$0xff]  }
 0x8c6   : > { %v4489_v54 = vmax.f32 %v4417_v51, 0.0 }
 0x8c7   : > { %v4490_v37 = vmax.f32 %v4419_v46, 0.0 }
 0x8c8   : > { %v4523_v53 = vpack.c.bf16 %v4489_v54, %v4487_v8 }
 0x8c9   : > { %v4524_v38 = vpack.c.bf16 %v4490_v37, %v4488_v49  ;;  %v4422_v61 = vpop.f32.mrb[188].mxu1 }
 0x8ca   : > { %v4423_v62 = vadd.f32 %v4422_v61, %v10006_v57  ;;  %v4424_v63 = vpop.f32.mrb[189].mxu1 }
 0x8cb   : > { %v4425_v0 = vadd.f32 %v4424_v63, %v10009_v60  ;;  %v4426_v1 = vpop.f32.mrb[190].mxu1  ;;  %4903 = vmatprep.mubr.bf16.mxu0 %v4524_v38 }
 0x8cc   : > { %v4427_v2 = vadd.f32 %v4426_v1, %v10006_v57  ;;  %v4428_v3 = vpop.f32.mrb[191].mxu1  ;;  %4904 = vmatmul.mubr.bf16.gmra.mrb[24].mxu0 %v4523_v53  ;;  %v4491_v7 = vmax.f32 %v4423_v62, 0.0  ;;  %v4559_v57 = vld [vmem:[%s10703_s16] sm:$0x3]  ;;  %v8481_v53 = vld [vmem:[#allocation4 + $0x70] ss:$8 sps:$4 sm:$0xff]  }
 0x8cd   : > { %v4429_v5 = vadd.f32 %v4428_v3, %v10009_v60  ;;  %v4492_v12 = vmax.f32 %v4425_v0, 0.0  ;;  %v8468_v60 = vld [vmem:[#allocation4 + $0x24] ss:$8 sps:$4 sm:$0xff]   ;;  %v10077_v23 = vrot.slane %v4559_v57, %v9695_v31  ;;  %v10080_v40 = vrot.slane %v4559_v57, %v9698_v50 }
 0x8ce   : > { %v4493_v11 = vmax.f32 %v4427_v2, 0.0  ;;  %5721 = vmatprep.subr.bf16.mxu0 %v8468_v60  ;;  %v8486_v62 = vld [vmem:[#allocation4 + $0x84] ss:$8 sps:$4 sm:$0xff]  }
 0x8cf   : > { %v4494_v56 = vmax.f32 %v4429_v5, 0.0  ;;  %5722 = vmatpush1.bf16.msra.mxu0 %v8466_v16  ;;  %v8492_v16 = vld [vmem:[#allocation4 + $0xa4] ss:$8 sps:$4 sm:$0xff]  }
 0x8d0   : > { %v4525_v14 = vpack.c.bf16 %v4493_v11, %v4491_v7  ;;  %5723 = vmatprep.subr.bf16.mxu0 %v8471_v29  ;;  %v8484_v7 = vld [vmem:[#allocation4 + $0x80] ss:$8 sps:$4 sm:$0xff]  }
 0x8d1   : > { %v4526_v18 = vpack.c.bf16 %v4494_v56, %v4492_v12  ;;  %v8489_v12 = vld [vmem:[#allocation4 + $0x94] ss:$8 sps:$4 sm:$0xff]  }
 0x8d3   : > { %4913 = vmatprep.mubr.bf16.mxu0 %v4526_v18  ;;  %5724 = vmatpush1.bf16.msra.mxu0 %v8469_v55 }
 0x8d4   : > { %4914 = vmatmul.mubr.bf16.gmra.mrb[28].mxu0 %v4525_v14  ;;  %5725 = vmatprep.subr.bf16.mxu0 %v8474_v26 }
 0x8d7   : > { %5726 = vmatpush1.bf16.msra.mxu0 %v8472_v25 }
 0x8d8   : > { %5727 = vmatprep.subr.bf16.mxu0 %v8477_v28 }
 0x8db   : > { %5728 = vmatpush1.bf16.msra.mxu0 %v8475_v43 }
 0x8dc   : > { %5729 = vmatprep.subr.bf16.mxu0 %v8480_v17 }
 0x8df   : > { %5730 = vmatpush1.bf16.msra.mxu0 %v8478_v22 }
 0x8e0   : > { %5731 = vmatprep.subr.bf16.mxu0 %v8483_v27 }
 0x8e3   : > { %5732 = vmatpush1.bf16.msra.mxu0 %v8481_v53 }
 0x8e4   : > { %5733 = vmatprep.subr.bf16.mxu0 %v8486_v62 }
 0x8e7   : > { %5734 = vmatpush1.bf16.msra.mxu0 %v8484_v7 }
 0x8e8   : > { %5735 = vmatprep.subr.bf16.mxu0 %v8489_v12 }
 0x8eb   : > { %5736 = vmatpush1.bf16.msra.mxu0 %v8487_v21 }
 0x8ec   : > { %5737 = vmatprep.subr.bf16.mxu0 %v8492_v16 }
 0x92f   : > { %v4765_v44 = vpop.f32.mrb[224].mxu0 }
 0x930   : > { %v4766_v35 = vadd.f32 %v4765_v44, %v10077_v23  ;;  %v4767_v36 = vpop.f32.mrb[225].mxu0 }
 0x931   : > { %v4768_v41 = vadd.f32 %v4767_v36, %v10080_v40  ;;  %v4769_v47 = vpop.f32.mrb[226].mxu0 }
 0x932   : > { %v4770_v24 = vadd.f32 %v4769_v47, %v10077_v23  ;;  %v4771_v30 = vpop.f32.mrb[227].mxu0  ;;  %v4924_v32 = vmax.f32 %v4766_v35, 0.0 }
 0x933   : > { %v4772_v4 = vadd.f32 %v4771_v30, %v10080_v40  ;;  %v4925_v33 = vmax.f32 %v4768_v41, 0.0  ;;  %v8490_v41 = vld [vmem:[#allocation4 + $0xa0] ss:$8 sps:$4 sm:$0xff]  }
 0x934   : > { %v4926_v10 = vmax.f32 %v4770_v24, 0.0  ;;  %v8495_v24 = vld [vmem:[#allocation4 + $0xb4] ss:$8 sps:$4 sm:$0xff]   ;;  %5738 = vmatpush1.bf16.msra.mxu0 %v8490_v41 }
 0x935   : > { %v4927_v34 = vmax.f32 %v4772_v4, 0.0  ;;  %5739 = vmatprep.subr.bf16.mxu0 %v8495_v24 }
 0x936   : > { %v4988_v39 = vpack.c.bf16 %v4926_v10, %v4924_v32  ;;  %v8493_v32 = vld [vmem:[#allocation4 + $0xb0] ss:$8 sps:$4 sm:$0xff]  }
 0x937   : > { %v4989_v45 = vpack.c.bf16 %v4927_v34, %v4925_v33  ;;  %v4775_v13 = vpop.f32.mrb[228].mxu0  ;;  %v8498_v34 = vld [vmem:[#allocation4 + $0xc4] ss:$8 sps:$4 sm:$0xff]  }
 0x938   : > { %v4776_v52 = vadd.f32 %v4775_v13, %v10077_v23  ;;  %v4777_v6 = vpop.f32.mrb[229].mxu0  ;;  %5740 = vmatpush1.bf16.msra.mxu0 %v8493_v32 }
 0x939   : > { %v4778_v9 = vadd.f32 %v4777_v6, %v10080_v40  ;;  %v4779_v19 = vpop.f32.mrb[230].mxu0  ;;  %5256 = vmatprep.mubr.bf16.mxu1 %v4989_v45  ;;  %v8496_v6 = vld [vmem:[#allocation4 + $0xc0] ss:$8 sps:$4 sm:$0xff]   ;;  %5741 = vmatprep.subr.bf16.mxu0 %v8498_v34 }
 0x93a   : > { %v4780_v58 = vadd.f32 %v4779_v19, %v10077_v23  ;;  %v4781_v42 = vpop.f32.mrb[231].mxu0  ;;  %5257 = vmatmul.mubr.bf16.vlgmr.msra.gmra.mrb[192].mxu1 %v4988_v39  ;;  %v4928_v46 = vmax.f32 %v4776_v52, 0.0  ;;  %v8501_v19 = vld [vmem:[#allocation4 + $0xd4] ss:$8 sps:$4 sm:$0xff]  }
 0x93b   : > { %v4782_v51 = vadd.f32 %v4781_v42, %v10080_v40  ;;  %v4929_v54 = vmax.f32 %v4778_v9, 0.0 }
 0x93c   : > { %v4930_v8 = vmax.f32 %v4780_v58, 0.0  ;;  %5742 = vmatpush1.bf16.msra.mxu0 %v8496_v6 }
 0x93d   : > { %v4931_v49 = vmax.f32 %v4782_v51, 0.0  ;;  %5743 = vmatprep.subr.bf16.mxu0 %v8501_v19 }
 0x93e   : > { %v4990_v37 = vpack.c.bf16 %v4930_v8, %v4928_v46  ;;  %v8499_v46 = vld [vmem:[#allocation4 + $0xd0] ss:$8 sps:$4 sm:$0xff]  }
 0x93f   : > { %v4991_v38 = vpack.c.bf16 %v4931_v49, %v4929_v54  ;;  %v4785_v61 = vpop.f32.mrb[232].mxu0  ;;  %v8504_v49 = vld [vmem:[#allocation4 + $0xe4] ss:$8 sps:$4 sm:$0xff]  }
 0x940   : > { %v4786_v63 = vadd.f32 %v4785_v61, %v10077_v23  ;;  %v4787_v0 = vpop.f32.mrb[233].mxu0  ;;  %5744 = vmatpush1.bf16.msra.mxu0 %v8499_v46 }
 0x941   : > { %v4788_v1 = vadd.f32 %v4787_v0, %v10080_v40  ;;  %v4789_v2 = vpop.f32.mrb[234].mxu0  ;;  %5266 = vmatprep.mubr.bf16.mxu1 %v4991_v38  ;;  %v8502_v0 = vld [vmem:[#allocation4 + $0xe0] ss:$8 sps:$4 sm:$0xff]   ;;  %5745 = vmatprep.subr.bf16.mxu0 %v8504_v49 }
 0x942   : > { %v4790_v3 = vadd.f32 %v4789_v2, %v10077_v23  ;;  %v4791_v5 = vpop.f32.mrb[235].mxu0  ;;  %5267 = vmatmul.mubr.bf16.gmra.mrb[196].mxu1 %v4990_v37  ;;  %v4932_v56 = vmax.f32 %v4786_v63, 0.0 }
 0x943   : > { %v4792_v11 = vadd.f32 %v4791_v5, %v10080_v40  ;;  %v4933_v18 = vmax.f32 %v4788_v1, 0.0 }
 0x944   : > { %v4934_v14 = vmax.f32 %v4790_v3, 0.0  ;;  %5746 = vmatpush1.bf16.msra.mxu0 %v8502_v0 }
 0x945   : > { %v4935_v59 = vmax.f32 %v4792_v11, 0.0 }
 0x946   : > { %v4992_v20 = vpack.c.bf16 %v4934_v14, %v4932_v56 }
 0x947   : > { %v4993_v15 = vpack.c.bf16 %v4935_v59, %v4933_v18  ;;  %v4795_v57 = vpop.f32.mrb[236].mxu0 }
 0x948   : > { %v4796_v60 = vadd.f32 %v4795_v57, %v10077_v23  ;;  %v4797_v44 = vpop.f32.mrb[237].mxu0 }
 0x949   : > { %v4798_v55 = vadd.f32 %v4797_v44, %v10080_v40  ;;  %v4799_v29 = vpop.f32.mrb[238].mxu0  ;;  %5276 = vmatprep.mubr.bf16.mxu1 %v4993_v15 }
 0x94a   : > { %v4800_v35 = vadd.f32 %v4799_v29, %v10077_v23  ;;  %v4801_v36 = vpop.f32.mrb[239].mxu0  ;;  %5277 = vmatmul.mubr.bf16.gmra.mrb[200].mxu1 %v4992_v20  ;;  %v4936_v30 = vmax.f32 %v4796_v60, 0.0 }
 0x94b   : > { %v4802_v47 = vadd.f32 %v4801_v36, %v10080_v40  ;;  %v4937_v26 = vmax.f32 %v4798_v55, 0.0 }
 0x94c   : > { %v4938_v25 = vmax.f32 %v4800_v35, 0.0 }
 0x94d   : > { %v4939_v4 = vmax.f32 %v4802_v47, 0.0 }
 0x94e   : > { %v4994_v28 = vpack.c.bf16 %v4938_v25, %v4936_v30 }
 0x94f   : > { %v4995_v10 = vpack.c.bf16 %v4939_v4, %v4937_v26  ;;  %v4805_v33 = vpop.f32.mrb[240].mxu0 }
 0x950   : > { %v4806_v39 = vadd.f32 %v4805_v33, %v10077_v23  ;;  %v4807_v43 = vpop.f32.mrb[241].mxu0 }
 0x951   : > { %v4808_v45 = vadd.f32 %v4807_v43, %v10080_v40  ;;  %v4809_v13 = vpop.f32.mrb[242].mxu0  ;;  %5286 = vmatprep.mubr.bf16.mxu1 %v4995_v10 }
 0x952   : > { %v4810_v17 = vadd.f32 %v4809_v13, %v10077_v23  ;;  %v4811_v52 = vpop.f32.mrb[243].mxu0  ;;  %5287 = vmatmul.mubr.bf16.gmra.mrb[204].mxu1 %v4994_v28  ;;  %v4940_v58 = vmax.f32 %v4806_v39, 0.0 }
 0x953   : > { %v4812_v9 = vadd.f32 %v4811_v52, %v10080_v40  ;;  %v4941_v22 = vmax.f32 %v4808_v45, 0.0 }
 0x954   : > { %v4942_v42 = vmax.f32 %v4810_v17, 0.0 }
 0x955   : > { %v4943_v51 = vmax.f32 %v4812_v9, 0.0 }
 0x956   : > { %v4996_v27 = vpack.c.bf16 %v4942_v42, %v4940_v58 }
 0x957   : > { %v4997_v8 = vpack.c.bf16 %v4943_v51, %v4941_v22  ;;  %v4815_v54 = vpop.f32.mrb[244].mxu0 }
 0x958   : > { %v4816_v37 = vadd.f32 %v4815_v54, %v10077_v23  ;;  %v4817_v53 = vpop.f32.mrb[245].mxu0 }
 0x959   : > { %v4818_v38 = vadd.f32 %v4817_v53, %v10080_v40  ;;  %v4819_v61 = vpop.f32.mrb[246].mxu0  ;;  %5296 = vmatprep.mubr.bf16.mxu1 %v4997_v8 }
 0x95a   : > { %v4820_v62 = vadd.f32 %v4819_v61, %v10077_v23  ;;  %v4821_v63 = vpop.f32.mrb[247].mxu0  ;;  %5297 = vmatmul.mubr.bf16.gmra.mrb[208].mxu1 %v4996_v27  ;;  %v4944_v2 = vmax.f32 %v4816_v37, 0.0 }
 0x95b   : > { %v4822_v1 = vadd.f32 %v4821_v63, %v10080_v40  ;;  %v4945_v5 = vmax.f32 %v4818_v38, 0.0 }
 0x95c   : > { %v4946_v3 = vmax.f32 %v4820_v62, 0.0 }
 0x95d   : > { %v4947_v7 = vmax.f32 %v4822_v1, 0.0 }
 0x95e   : > { %v4998_v11 = vpack.c.bf16 %v4946_v3, %v4944_v2 }
 0x95f   : > { %v4999_v12 = vpack.c.bf16 %v4947_v7, %v4945_v5  ;;  %v4825_v56 = vpop.f32.mrb[248].mxu0 }
 0x960   : > { %v4826_v14 = vadd.f32 %v4825_v56, %v10077_v23  ;;  %v4827_v18 = vpop.f32.mrb[249].mxu0 }
 0x961   : > { %v4828_v59 = vadd.f32 %v4827_v18, %v10080_v40  ;;  %v4829_v20 = vpop.f32.mrb[250].mxu0  ;;  %5306 = vmatprep.mubr.bf16.mxu1 %v4999_v12 }
 0x962   : > { %v4830_v21 = vadd.f32 %v4829_v20, %v10077_v23  ;;  %v4831_v15 = vpop.f32.mrb[251].mxu0  ;;  %5307 = vmatmul.mubr.bf16.gmra.mrb[212].mxu1 %v4998_v11  ;;  %v4948_v16 = vmax.f32 %v4826_v14, 0.0 }
 0x963   : > { %v4832_v57 = vadd.f32 %v4831_v15, %v10080_v40  ;;  %v4949_v44 = vmax.f32 %v4828_v59, 0.0 }
 0x964   : > { %v4950_v60 = vmax.f32 %v4830_v21, 0.0 }
 0x965   : > { %v4951_v55 = vmax.f32 %v4832_v57, 0.0 }
 0x966   : > { %v5000_v29 = vpack.c.bf16 %v4950_v60, %v4948_v16 }
 0x967   : > { %v5001_v35 = vpack.c.bf16 %v4951_v55, %v4949_v44  ;;  %v4835_v36 = vpop.f32.mrb[252].mxu0 }
 0x968   : > { %v4836_v41 = vadd.f32 %v4835_v36, %v10077_v23  ;;  %v4837_v47 = vpop.f32.mrb[253].mxu0 }
 0x969   : > { %v4838_v24 = vadd.f32 %v4837_v47, %v10080_v40  ;;  %v4839_v30 = vpop.f32.mrb[254].mxu0  ;;  %5316 = vmatprep.mubr.bf16.mxu1 %v5001_v35 }
 0x96a   : > { %v4840_v25 = vadd.f32 %v4839_v30, %v10077_v23  ;;  %v4841_v26 = vpop.f32.mrb[255].mxu0  ;;  %5317 = vmatmul.mubr.bf16.gmra.mrb[216].mxu1 %v5000_v29  ;;  %v4952_v28 = vmax.f32 %v4836_v41, 0.0 }
 0x96b   : > { %v4842_v4 = vadd.f32 %v4841_v26, %v10080_v40  ;;  %v4953_v10 = vmax.f32 %v4838_v24, 0.0 }
 0x96c   : > { %v4954_v32 = vmax.f32 %v4840_v25, 0.0 }
 0x96d   : > { %v4955_v33 = vmax.f32 %v4842_v4, 0.0 }
 0x96e   : > { %v5002_v34 = vpack.c.bf16 %v4954_v32, %v4952_v28 }
 0x96f   : > { %v5003_v39 = vpack.c.bf16 %v4955_v33, %v4953_v10  ;;  %v4845_v43 = vpop.f32.mrb[0].mxu0 }
 0x970   : > { %v4846_v45 = vadd.f32 %v4845_v43, %v10077_v23  ;;  %v4847_v13 = vpop.f32.mrb[1].mxu0 }
 0x971   : > { %v4848_v17 = vadd.f32 %v4847_v13, %v10080_v40  ;;  %v4849_v52 = vpop.f32.mrb[2].mxu0  ;;  %5326 = vmatprep.mubr.bf16.mxu1 %v5003_v39 }
 0x972   : > { %v4850_v6 = vadd.f32 %v4849_v52, %v10077_v23  ;;  %v4851_v9 = vpop.f32.mrb[3].mxu0  ;;  %5327 = vmatmul.mubr.bf16.gmra.mrb[220].mxu1 %v5002_v34  ;;  %v4956_v58 = vmax.f32 %v4846_v45, 0.0  ;;  %v8507_v52 = vld [vmem:[#allocation4 + $0xf4] ss:$8 sps:$4 sm:$0xff]  }
 0x973   : > { %v4852_v19 = vadd.f32 %v4851_v9, %v10080_v40  ;;  %v4957_v22 = vmax.f32 %v4848_v17, 0.0  ;;  %v8505_v9 = vld [vmem:[#allocation4 + $0xf0] ss:$8 sps:$4 sm:$0xff]   ;;  %5747 = vmatprep.subr.bf16.mxu0 %v8507_v52 }
 0x974   : > { %v4958_v42 = vmax.f32 %v4850_v6, 0.0  ;;  %5748 = vmatpush1.bf16.msra.mxu0 %v8505_v9  ;;  %v8517_v52 = vld [vmem:[#allocation6 + $0x30] ss:$8 sps:$4 sm:$0xff]  }
 0x975   : > { %v4959_v51 = vmax.f32 %v4852_v19, 0.0 }
 0x976   : > { %v5004_v27 = vpack.c.bf16 %v4958_v42, %v4956_v58 }
 0x977   : > { %v5005_v46 = vpack.c.bf16 %v4959_v51, %v4957_v22  ;;  %v4855_v8 = vpop.f32.mrb[4].mxu0 }
 0x978   : > { %v4856_v54 = vadd.f32 %v4855_v8, %v10077_v23  ;;  %v4857_v49 = vpop.f32.mrb[5].mxu0 }
 0x979   : > { %v4858_v37 = vadd.f32 %v4857_v49, %v10080_v40  ;;  %v4859_v53 = vpop.f32.mrb[6].mxu0  ;;  %5336 = vmatprep.mubr.bf16.mxu1 %v5005_v46 }
 0x97a   : > { %v4860_v38 = vadd.f32 %v4859_v53, %v10077_v23  ;;  %v4861_v61 = vpop.f32.mrb[7].mxu0  ;;  %5337 = vmatmul.mubr.bf16.gmra.mrb[224].mxu1 %v5004_v27  ;;  %v4960_v63 = vmax.f32 %v4856_v54, 0.0 }
 0x97b   : > { %v4862_v62 = vadd.f32 %v4861_v61, %v10080_v40  ;;  %v4961_v1 = vmax.f32 %v4858_v37, 0.0 }
 0x97c   : > { %v4962_v0 = vmax.f32 %v4860_v38, 0.0 }
 0x97d   : > { %v4963_v2 = vmax.f32 %v4862_v62, 0.0 }
 0x97e   : > { %v5006_v3 = vpack.c.bf16 %v4962_v0, %v4960_v63 }
 0x97f   : > { %v5007_v5 = vpack.c.bf16 %v4963_v2, %v4961_v1  ;;  %v4865_v7 = vpop.f32.mrb[8].mxu0 }
 0x980   : > { %v4866_v11 = vadd.f32 %v4865_v7, %v10077_v23  ;;  %v4867_v12 = vpop.f32.mrb[9].mxu0 }
 0x981   : > { %v4868_v56 = vadd.f32 %v4867_v12, %v10080_v40  ;;  %v4869_v14 = vpop.f32.mrb[10].mxu0  ;;  %5346 = vmatprep.mubr.bf16.mxu1 %v5007_v5 }
 0x982   : > { %v4870_v18 = vadd.f32 %v4869_v14, %v10077_v23  ;;  %v4871_v59 = vpop.f32.mrb[11].mxu0  ;;  %5347 = vmatmul.mubr.bf16.gmra.mrb[228].mxu1 %v5006_v3  ;;  %v4964_v21 = vmax.f32 %v4866_v11, 0.0 }
 0x983   : > { %v4872_v20 = vadd.f32 %v4871_v59, %v10080_v40  ;;  %v4965_v57 = vmax.f32 %v4868_v56, 0.0 }
 0x984   : > { %v4966_v15 = vmax.f32 %v4870_v18, 0.0 }
 0x985   : > { %v4967_v16 = vmax.f32 %v4872_v20, 0.0 }
 0x986   : > { %v5008_v60 = vpack.c.bf16 %v4966_v15, %v4964_v21 }
 0x987   : > { %v5009_v44 = vpack.c.bf16 %v4967_v16, %v4965_v57  ;;  %v4875_v55 = vpop.f32.mrb[12].mxu0 }
 0x988   : > { %v4876_v29 = vadd.f32 %v4875_v55, %v10077_v23  ;;  %v4877_v35 = vpop.f32.mrb[13].mxu0 }
 0x989   : > { %v4878_v36 = vadd.f32 %v4877_v35, %v10080_v40  ;;  %v4879_v41 = vpop.f32.mrb[14].mxu0  ;;  %5356 = vmatprep.mubr.bf16.mxu1 %v5009_v44 }
 0x98a   : > { %v4880_v47 = vadd.f32 %v4879_v41, %v10077_v23  ;;  %v4881_v24 = vpop.f32.mrb[15].mxu0  ;;  %5357 = vmatmul.mubr.bf16.gmra.mrb[232].mxu1 %v5008_v60  ;;  %v4968_v25 = vmax.f32 %v4876_v29, 0.0 }
 0x98b   : > { %v4882_v30 = vadd.f32 %v4881_v24, %v10080_v40  ;;  %v4969_v4 = vmax.f32 %v4878_v36, 0.0 }
 0x98c   : > { %v4970_v26 = vmax.f32 %v4880_v47, 0.0 }
 0x98d   : > { %v4971_v28 = vmax.f32 %v4882_v30, 0.0 }
 0x98e   : > { %v5010_v32 = vpack.c.bf16 %v4970_v26, %v4968_v25 }
 0x98f   : > { %v5011_v10 = vpack.c.bf16 %v4971_v28, %v4969_v4  ;;  %v4885_v33 = vpop.f32.mrb[16].mxu0 }
 0x990   : > { %v4886_v34 = vadd.f32 %v4885_v33, %v10077_v23  ;;  %v4887_v39 = vpop.f32.mrb[17].mxu0  ;;  %v8510_v33 = vld [vmem:[#allocation6 + $0x4] ss:$8 sps:$4 sm:$0xff]  }
 0x991   : > { %v4888_v43 = vadd.f32 %v4887_v39, %v10080_v40  ;;  %v4889_v45 = vpop.f32.mrb[18].mxu0  ;;  %5366 = vmatprep.mubr.bf16.mxu1 %v5011_v10  ;;  %v8508_v10 = vld [vmem:[#allocation6] ss:$8 sps:$4 sm:$0xff]   ;;  %6210 = vmatprep.subr.bf16.mxu1 %v8510_v33  ;;  %v8513_v39 = vld [vmem:[#allocation6 + $0x14] ss:$8 sps:$4 sm:$0xff]  }
 0x992   : > { %v4890_v13 = vadd.f32 %v4889_v45, %v10077_v23  ;;  %v4891_v17 = vpop.f32.mrb[19].mxu0  ;;  %5367 = vmatmul.mubr.bf16.gmra.mrb[236].mxu1 %v5010_v32  ;;  %v4972_v19 = vmax.f32 %v4886_v34, 0.0  ;;  %v8511_v34 = vld [vmem:[#allocation6 + $0x10] ss:$8 sps:$4 sm:$0xff]  }
 0x993   : > { %v4892_v6 = vadd.f32 %v4891_v17, %v10080_v40  ;;  %v4973_v42 = vmax.f32 %v4888_v43, 0.0  ;;  %6211 = vmatpush1.bf16.msra.mxu1 %v8508_v10  ;;  %v8514_v43 = vld [vmem:[#allocation6 + $0x20] ss:$8 sps:$4 sm:$0xff]  }
 0x994   : > { %v4974_v58 = vmax.f32 %v4890_v13, 0.0  ;;  %6212 = vmatprep.subr.bf16.mxu1 %v8513_v39 }
 0x995   : > { %v4975_v22 = vmax.f32 %v4892_v6, 0.0  ;;  %v8519_v6 = vld [vmem:[#allocation6 + $0x34] ss:$8 sps:$4 sm:$0xff]  }
 0x996   : > { %v5012_v51 = vpack.c.bf16 %v4974_v58, %v4972_v19 }
 0x997   : > { %v5013_v27 = vpack.c.bf16 %v4975_v22, %v4973_v42  ;;  %v4895_v46 = vpop.f32.mrb[20].mxu0  ;;  %6213 = vmatpush1.bf16.msra.mxu1 %v8511_v34  ;;  %v8535_v34 = vld [vmem:[#allocation6 + $0x90] ss:$8 sps:$4 sm:$0xff]  }
 0x998   : > { %v4896_v8 = vadd.f32 %v4895_v46, %v10077_v23  ;;  %v4897_v54 = vpop.f32.mrb[21].mxu0  ;;  %v8522_v46 = vld [vmem:[#allocation6 + $0x44] ss:$8 sps:$4 sm:$0xff]  }
 0x999   : > { %v4898_v49 = vadd.f32 %v4897_v54, %v10080_v40  ;;  %v4899_v37 = vpop.f32.mrb[22].mxu0  ;;  %5376 = vmatprep.mubr.bf16.mxu1 %v5013_v27  ;;  %v8520_v27 = vld [vmem:[#allocation6 + $0x40] ss:$8 sps:$4 sm:$0xff]   ;;  %v8525_v54 = vld [vmem:[#allocation6 + $0x54] ss:$8 sps:$4 sm:$0xff]  }
 0x99a   : > { %v4900_v53 = vadd.f32 %v4899_v37, %v10077_v23  ;;  %v4901_v38 = vpop.f32.mrb[23].mxu0  ;;  %5377 = vmatmul.mubr.bf16.gmra.mrb[240].mxu1 %v5012_v51  ;;  %v4976_v62 = vmax.f32 %v4896_v8, 0.0 }
 0x99b   : > { %v4902_v61 = vadd.f32 %v4901_v38, %v10080_v40  ;;  %v4977_v0 = vmax.f32 %v4898_v49, 0.0 }
 0x99c   : > { %v4978_v63 = vmax.f32 %v4900_v53, 0.0 }
 0x99d   : > { %v4979_v1 = vmax.f32 %v4902_v61, 0.0 }
 0x99e   : > { %v5014_v2 = vpack.c.bf16 %v4978_v63, %v4976_v62  ;;  %v8523_v62 = vld [vmem:[#allocation6 + $0x50] ss:$8 sps:$4 sm:$0xff]  }
 0x99f   : > { %v5015_v3 = vpack.c.bf16 %v4979_v1, %v4977_v0  ;;  %v4905_v5 = vpop.f32.mrb[24].mxu0  ;;  %v8528_v1 = vld [vmem:[#allocation6 + $0x64] ss:$8 sps:$4 sm:$0xff]  }
 0x9a0   : > { %v4906_v7 = vadd.f32 %v4905_v5, %v10077_v23  ;;  %v4907_v11 = vpop.f32.mrb[25].mxu0 }
 0x9a1   : > { %v4908_v12 = vadd.f32 %v4907_v11, %v10080_v40  ;;  %v4909_v56 = vpop.f32.mrb[26].mxu0  ;;  %5386 = vmatprep.mubr.bf16.mxu1 %v5015_v3 }
 0x9a2   : > { %v4910_v14 = vadd.f32 %v4909_v56, %v10077_v23  ;;  %v4911_v18 = vpop.f32.mrb[27].mxu0  ;;  %5387 = vmatmul.mubr.bf16.gmra.mrb[244].mxu1 %v5014_v2  ;;  %v4980_v20 = vmax.f32 %v4906_v7, 0.0  ;;  %v8526_v56 = vld [vmem:[#allocation6 + $0x60] ss:$8 sps:$4 sm:$0xff]  }
 0x9a3   : > { %v4912_v59 = vadd.f32 %v4911_v18, %v10080_v40  ;;  %v4981_v15 = vmax.f32 %v4908_v12, 0.0  ;;  %v8531_v18 = vld [vmem:[#allocation6 + $0x74] ss:$8 sps:$4 sm:$0xff]  }
 0x9a4   : > { %v4982_v21 = vmax.f32 %v4910_v14, 0.0 }
 0x9a5   : > { %v4983_v57 = vmax.f32 %v4912_v59, 0.0 }
 0x9a6   : > { %v5016_v16 = vpack.c.bf16 %v4982_v21, %v4980_v20 }
 0x9a7   : > { %v5017_v60 = vpack.c.bf16 %v4983_v57, %v4981_v15  ;;  %v4915_v44 = vpop.f32.mrb[28].mxu0 }
 0x9a8   : > { %v4916_v55 = vadd.f32 %v4915_v44, %v10077_v23  ;;  %v4917_v29 = vpop.f32.mrb[29].mxu0 }
 0x9a9   : > { %v4918_v35 = vadd.f32 %v4917_v29, %v10080_v40  ;;  %v4919_v36 = vpop.f32.mrb[30].mxu0  ;;  %5396 = vmatprep.mubr.bf16.mxu1 %v5017_v60 }
 0x9aa   : > { %v4920_v41 = vadd.f32 %v4919_v36, %v10077_v23  ;;  %v4921_v47 = vpop.f32.mrb[31].mxu0  ;;  %5397 = vmatmul.mubr.bf16.gmra.mrb[248].mxu1 %v5016_v16  ;;  %v4984_v30 = vmax.f32 %v4916_v55, 0.0  ;;  %v5052_v23 = vld [vmem:[%s10704_s0] sm:$0x3]  ;;  %v8529_v16 = vld [vmem:[#allocation6 + $0x70] ss:$8 sps:$4 sm:$0xff]  }
 0x9ab   : > { %v4922_v24 = vadd.f32 %v4921_v47, %v10080_v40  ;;  %v4985_v26 = vmax.f32 %v4918_v35, 0.0  ;;  %v8516_v40 = vld [vmem:[#allocation6 + $0x24] ss:$8 sps:$4 sm:$0xff]   ;;  %v10148_v45 = vrot.slane %v5052_v23, %v9695_v31  ;;  %v10151_v13 = vrot.slane %v5052_v23, %v9698_v50 }
 0x9ac   : > { %v4986_v25 = vmax.f32 %v4920_v41, 0.0  ;;  %6214 = vmatprep.subr.bf16.mxu1 %v8516_v40  ;;  %v8534_v55 = vld [vmem:[#allocation6 + $0x84] ss:$8 sps:$4 sm:$0xff]  }
 0x9ad   : > { %v4987_v4 = vmax.f32 %v4922_v24, 0.0  ;;  %6215 = vmatpush1.bf16.msra.mxu1 %v8514_v43  ;;  %v8540_v43 = vld [vmem:[#allocation6 + $0xa4] ss:$8 sps:$4 sm:$0xff]  }
 0x9ae   : > { %v5018_v28 = vpack.c.bf16 %v4986_v25, %v4984_v30  ;;  %6216 = vmatprep.subr.bf16.mxu1 %v8519_v6  ;;  %v8532_v30 = vld [vmem:[#allocation6 + $0x80] ss:$8 sps:$4 sm:$0xff]  }
 0x9af   : > { %v5019_v32 = vpack.c.bf16 %v4987_v4, %v4985_v26  ;;  %v8537_v26 = vld [vmem:[#allocation6 + $0x94] ss:$8 sps:$4 sm:$0xff]  }
 0x9b1   : > { %5406 = vmatprep.mubr.bf16.mxu1 %v5019_v32  ;;  %6217 = vmatpush1.bf16.msra.mxu1 %v8517_v52 }
 0x9b2   : > { %5407 = vmatmul.mubr.bf16.gmra.mrb[252].mxu1 %v5018_v28  ;;  %6218 = vmatprep.subr.bf16.mxu1 %v8522_v46 }
 0x9b5   : > { %6219 = vmatpush1.bf16.msra.mxu1 %v8520_v27 }
 0x9b6   : > { %6220 = vmatprep.subr.bf16.mxu1 %v8525_v54 }
 0x9b9   : > { %6221 = vmatpush1.bf16.msra.mxu1 %v8523_v62 }
 0x9ba   : > { %6222 = vmatprep.subr.bf16.mxu1 %v8528_v1 }
 0x9bd   : > { %6223 = vmatpush1.bf16.msra.mxu1 %v8526_v56 }
 0x9be   : > { %6224 = vmatprep.subr.bf16.mxu1 %v8531_v18 }
 0x9c1   : > { %6225 = vmatpush1.bf16.msra.mxu1 %v8529_v16 }
 0x9c2   : > { %6226 = vmatprep.subr.bf16.mxu1 %v8534_v55 }
 0x9c5   : > { %6227 = vmatpush1.bf16.msra.mxu1 %v8532_v30 }
 0x9c6   : > { %6228 = vmatprep.subr.bf16.mxu1 %v8537_v26 }
 0x9c9   : > { %6229 = vmatpush1.bf16.msra.mxu1 %v8535_v34 }
 0x9ca   : > { %6230 = vmatprep.subr.bf16.mxu1 %v8540_v43 }
 0xa0d   : > { %v5258_v17 = vpop.f32.mrb[192].mxu1 }
 0xa0e   : > { %v5259_v9 = vadd.f32 %v5258_v17, %v10148_v45  ;;  %v5260_v19 = vpop.f32.mrb[193].mxu1 }
 0xa0f   : > { %v5261_v58 = vadd.f32 %v5260_v19, %v10151_v13  ;;  %v5262_v42 = vpop.f32.mrb[194].mxu1 }
 0xa10   : > { %v5263_v22 = vadd.f32 %v5262_v42, %v10148_v45  ;;  %v5264_v51 = vpop.f32.mrb[195].mxu1  ;;  %v5417_v49 = vmax.f32 %v5259_v9, 0.0 }
 0xa11   : > { %v5265_v8 = vadd.f32 %v5264_v51, %v10151_v13  ;;  %v5418_v53 = vmax.f32 %v5261_v58, 0.0  ;;  %v8538_v58 = vld [vmem:[#allocation6 + $0xa0] ss:$8 sps:$4 sm:$0xff]  }
 0xa12   : > { %v5419_v37 = vmax.f32 %v5263_v22, 0.0  ;;  %v8543_v22 = vld [vmem:[#allocation6 + $0xb4] ss:$8 sps:$4 sm:$0xff]   ;;  %6231 = vmatpush1.bf16.msra.mxu1 %v8538_v58 }
 0xa13   : > { %v5420_v38 = vmax.f32 %v5265_v8, 0.0  ;;  %6232 = vmatprep.subr.bf16.mxu1 %v8543_v22 }
 0xa14   : > { %v5481_v61 = vpack.c.bf16 %v5419_v37, %v5417_v49  ;;  %v8541_v49 = vld [vmem:[#allocation6 + $0xb0] ss:$8 sps:$4 sm:$0xff]  }
 0xa15   : > { %v5482_v63 = vpack.c.bf16 %v5420_v38, %v5418_v53  ;;  %v5268_v0 = vpop.f32.mrb[196].mxu1  ;;  %v8546_v38 = vld [vmem:[#allocation6 + $0xc4] ss:$8 sps:$4 sm:$0xff]  }
 0xa16   : > { %v5269_v2 = vadd.f32 %v5268_v0, %v10148_v45  ;;  %v5270_v3 = vpop.f32.mrb[197].mxu1  ;;  %6233 = vmatpush1.bf16.msra.mxu1 %v8541_v49 }
 0xa17   : > { %v5271_v5 = vadd.f32 %v5270_v3, %v10151_v13  ;;  %v5272_v7 = vpop.f32.mrb[198].mxu1  ;;  %5749 = vmatprep.mubr.bf16.mxu0 %v5482_v63  ;;  %v8544_v3 = vld [vmem:[#allocation6 + $0xc0] ss:$8 sps:$4 sm:$0xff]   ;;  %6234 = vmatprep.subr.bf16.mxu1 %v8546_v38 }
 0xa18   : > { %v5273_v11 = vadd.f32 %v5272_v7, %v10148_v45  ;;  %v5274_v12 = vpop.f32.mrb[199].mxu1  ;;  %5750 = vmatmul.mubr.bf16.vlgmr.msra.gmra.mrb[32].mxu0 %v5481_v61  ;;  %v5421_v59 = vmax.f32 %v5269_v2, 0.0  ;;  %v8549_v7 = vld [vmem:[#allocation6 + $0xd4] ss:$8 sps:$4 sm:$0xff]  }
 0xa19   : > { %v5275_v14 = vadd.f32 %v5274_v12, %v10151_v13  ;;  %v5422_v21 = vmax.f32 %v5271_v5, 0.0 }
 0xa1a   : > { %v5423_v20 = vmax.f32 %v5273_v11, 0.0  ;;  %6235 = vmatpush1.bf16.msra.mxu1 %v8544_v3 }
 0xa1b   : > { %v5424_v15 = vmax.f32 %v5275_v14, 0.0  ;;  %6236 = vmatprep.subr.bf16.mxu1 %v8549_v7 }
 0xa1c   : > { %v5483_v57 = vpack.c.bf16 %v5423_v20, %v5421_v59  ;;  %v8547_v59 = vld [vmem:[#allocation6 + $0xd0] ss:$8 sps:$4 sm:$0xff]  }
 0xa1d   : > { %v5484_v60 = vpack.c.bf16 %v5424_v15, %v5422_v21  ;;  %v5278_v44 = vpop.f32.mrb[200].mxu1  ;;  %v8552_v15 = vld [vmem:[#allocation6 + $0xe4] ss:$8 sps:$4 sm:$0xff]  }
 0xa1e   : > { %v5279_v29 = vadd.f32 %v5278_v44, %v10148_v45  ;;  %v5280_v35 = vpop.f32.mrb[201].mxu1  ;;  %6237 = vmatpush1.bf16.msra.mxu1 %v8547_v59 }
 0xa1f   : > { %v5281_v36 = vadd.f32 %v5280_v35, %v10151_v13  ;;  %v5282_v41 = vpop.f32.mrb[202].mxu1  ;;  %5759 = vmatprep.mubr.bf16.mxu0 %v5484_v60  ;;  %v8550_v35 = vld [vmem:[#allocation6 + $0xe0] ss:$8 sps:$4 sm:$0xff]   ;;  %6238 = vmatprep.subr.bf16.mxu1 %v8552_v15 }
 0xa20   : > { %v5283_v47 = vadd.f32 %v5282_v41, %v10148_v45  ;;  %v5284_v24 = vpop.f32.mrb[203].mxu1  ;;  %5760 = vmatmul.mubr.bf16.gmra.mrb[36].mxu0 %v5483_v57  ;;  %v5425_v4 = vmax.f32 %v5279_v29, 0.0 }
 0xa21   : > { %v5285_v25 = vadd.f32 %v5284_v24, %v10151_v13  ;;  %v5426_v32 = vmax.f32 %v5281_v36, 0.0 }
 0xa22   : > { %v5427_v28 = vmax.f32 %v5283_v47, 0.0  ;;  %6239 = vmatpush1.bf16.msra.mxu1 %v8550_v35 }
 0xa23   : > { %v5428_v10 = vmax.f32 %v5285_v25, 0.0 }
 0xa24   : > { %v5485_v33 = vpack.c.bf16 %v5427_v28, %v5425_v4 }
 0xa25   : > { %v5486_v39 = vpack.c.bf16 %v5428_v10, %v5426_v32  ;;  %v5288_v23 = vpop.f32.mrb[204].mxu1 }
 0xa26   : > { %v5289_v40 = vadd.f32 %v5288_v23, %v10148_v45  ;;  %v5290_v17 = vpop.f32.mrb[205].mxu1 }
 0xa27   : > { %v5291_v52 = vadd.f32 %v5290_v17, %v10151_v13  ;;  %v5292_v6 = vpop.f32.mrb[206].mxu1  ;;  %5769 = vmatprep.mubr.bf16.mxu0 %v5486_v39 }
 0xa28   : > { %v5293_v9 = vadd.f32 %v5292_v6, %v10148_v45  ;;  %v5294_v19 = vpop.f32.mrb[207].mxu1  ;;  %5770 = vmatmul.mubr.bf16.gmra.mrb[40].mxu0 %v5485_v33  ;;  %v5429_v51 = vmax.f32 %v5289_v40, 0.0 }
 0xa29   : > { %v5295_v42 = vadd.f32 %v5294_v19, %v10151_v13  ;;  %v5430_v46 = vmax.f32 %v5291_v52, 0.0 }
 0xa2a   : > { %v5431_v27 = vmax.f32 %v5293_v9, 0.0 }
 0xa2b   : > { %v5432_v8 = vmax.f32 %v5295_v42, 0.0 }
 0xa2c   : > { %v5487_v54 = vpack.c.bf16 %v5431_v27, %v5429_v51 }
 0xa2d   : > { %v5488_v37 = vpack.c.bf16 %v5432_v8, %v5430_v46  ;;  %v5298_v53 = vpop.f32.mrb[208].mxu1 }
 0xa2e   : > { %v5299_v61 = vadd.f32 %v5298_v53, %v10148_v45  ;;  %v5300_v62 = vpop.f32.mrb[209].mxu1 }
 0xa2f   : > { %v5301_v63 = vadd.f32 %v5300_v62, %v10151_v13  ;;  %v5302_v0 = vpop.f32.mrb[210].mxu1  ;;  %5779 = vmatprep.mubr.bf16.mxu0 %v5488_v37 }
 0xa30   : > { %v5303_v1 = vadd.f32 %v5302_v0, %v10148_v45  ;;  %v5304_v2 = vpop.f32.mrb[211].mxu1  ;;  %5780 = vmatmul.mubr.bf16.gmra.mrb[44].mxu0 %v5487_v54  ;;  %v5433_v11 = vmax.f32 %v5299_v61, 0.0 }
 0xa31   : > { %v5305_v5 = vadd.f32 %v5304_v2, %v10151_v13  ;;  %v5434_v56 = vmax.f32 %v5301_v63, 0.0 }
 0xa32   : > { %v5435_v12 = vmax.f32 %v5303_v1, 0.0 }
 0xa33   : > { %v5436_v14 = vmax.f32 %v5305_v5, 0.0 }
 0xa34   : > { %v5489_v18 = vpack.c.bf16 %v5435_v12, %v5433_v11 }
 0xa35   : > { %v5490_v20 = vpack.c.bf16 %v5436_v14, %v5434_v56  ;;  %v5308_v21 = vpop.f32.mrb[212].mxu1 }
 0xa36   : > { %v5309_v57 = vadd.f32 %v5308_v21, %v10148_v45  ;;  %v5310_v16 = vpop.f32.mrb[213].mxu1 }
 0xa37   : > { %v5311_v60 = vadd.f32 %v5310_v16, %v10151_v13  ;;  %v5312_v44 = vpop.f32.mrb[214].mxu1  ;;  %5789 = vmatprep.mubr.bf16.mxu0 %v5490_v20 }
 0xa38   : > { %v5313_v55 = vadd.f32 %v5312_v44, %v10148_v45  ;;  %v5314_v29 = vpop.f32.mrb[215].mxu1  ;;  %5790 = vmatmul.mubr.bf16.gmra.mrb[48].mxu0 %v5489_v18  ;;  %v5437_v41 = vmax.f32 %v5309_v57, 0.0 }
 0xa39   : > { %v5315_v36 = vadd.f32 %v5314_v29, %v10151_v13  ;;  %v5438_v24 = vmax.f32 %v5311_v60, 0.0 }
 0xa3a   : > { %v5439_v47 = vmax.f32 %v5313_v55, 0.0 }
 0xa3b   : > { %v5440_v30 = vmax.f32 %v5315_v36, 0.0 }
 0xa3c   : > { %v5491_v25 = vpack.c.bf16 %v5439_v47, %v5437_v41 }
 0xa3d   : > { %v5492_v26 = vpack.c.bf16 %v5440_v30, %v5438_v24  ;;  %v5318_v4 = vpop.f32.mrb[216].mxu1 }
 0xa3e   : > { %v5319_v28 = vadd.f32 %v5318_v4, %v10148_v45  ;;  %v5320_v32 = vpop.f32.mrb[217].mxu1 }
 0xa3f   : > { %v5321_v10 = vadd.f32 %v5320_v32, %v10151_v13  ;;  %v5322_v33 = vpop.f32.mrb[218].mxu1  ;;  %5799 = vmatprep.mubr.bf16.mxu0 %v5492_v26 }
 0xa40   : > { %v5323_v34 = vadd.f32 %v5322_v33, %v10148_v45  ;;  %v5324_v39 = vpop.f32.mrb[219].mxu1  ;;  %5800 = vmatmul.mubr.bf16.gmra.mrb[52].mxu0 %v5491_v25  ;;  %v5441_v43 = vmax.f32 %v5319_v28, 0.0 }
 0xa41   : > { %v5325_v23 = vadd.f32 %v5324_v39, %v10151_v13  ;;  %v5442_v17 = vmax.f32 %v5321_v10, 0.0 }
 0xa42   : > { %v5443_v40 = vmax.f32 %v5323_v34, 0.0 }
 0xa43   : > { %v5444_v52 = vmax.f32 %v5325_v23, 0.0 }
 0xa44   : > { %v5493_v6 = vpack.c.bf16 %v5443_v40, %v5441_v43 }
 0xa45   : > { %v5494_v9 = vpack.c.bf16 %v5444_v52, %v5442_v17  ;;  %v5328_v19 = vpop.f32.mrb[220].mxu1 }
 0xa46   : > { %v5329_v58 = vadd.f32 %v5328_v19, %v10148_v45  ;;  %v5330_v42 = vpop.f32.mrb[221].mxu1 }
 0xa47   : > { %v5331_v22 = vadd.f32 %v5330_v42, %v10151_v13  ;;  %v5332_v51 = vpop.f32.mrb[222].mxu1  ;;  %5809 = vmatprep.mubr.bf16.mxu0 %v5494_v9 }
 0xa48   : > { %v5333_v27 = vadd.f32 %v5332_v51, %v10148_v45  ;;  %v5334_v46 = vpop.f32.mrb[223].mxu1  ;;  %5810 = vmatmul.mubr.bf16.gmra.mrb[56].mxu0 %v5493_v6  ;;  %v5445_v54 = vmax.f32 %v5329_v58, 0.0 }
 0xa49   : > { %v5335_v8 = vadd.f32 %v5334_v46, %v10151_v13  ;;  %v5446_v37 = vmax.f32 %v5331_v22, 0.0 }
 0xa4a   : > { %v5447_v49 = vmax.f32 %v5333_v27, 0.0 }
 0xa4b   : > { %v5448_v53 = vmax.f32 %v5335_v8, 0.0 }
 0xa4c   : > { %v5495_v38 = vpack.c.bf16 %v5447_v49, %v5445_v54 }
 0xa4d   : > { %v5496_v61 = vpack.c.bf16 %v5448_v53, %v5446_v37  ;;  %v5338_v62 = vpop.f32.mrb[224].mxu1 }
 0xa4e   : > { %v5339_v63 = vadd.f32 %v5338_v62, %v10148_v45  ;;  %v5340_v0 = vpop.f32.mrb[225].mxu1 }
 0xa4f   : > { %v5341_v1 = vadd.f32 %v5340_v0, %v10151_v13  ;;  %v5342_v2 = vpop.f32.mrb[226].mxu1  ;;  %5819 = vmatprep.mubr.bf16.mxu0 %v5496_v61 }
 0xa50   : > { %v5343_v3 = vadd.f32 %v5342_v2, %v10148_v45  ;;  %v5344_v5 = vpop.f32.mrb[227].mxu1  ;;  %5820 = vmatmul.mubr.bf16.gmra.mrb[60].mxu0 %v5495_v38  ;;  %v5449_v11 = vmax.f32 %v5339_v63, 0.0  ;;  %v8555_v2 = vld [vmem:[#allocation6 + $0xf4] ss:$8 sps:$4 sm:$0xff]  }
 0xa51   : > { %v5345_v7 = vadd.f32 %v5344_v5, %v10151_v13  ;;  %v5450_v56 = vmax.f32 %v5341_v1, 0.0  ;;  %v8553_v5 = vld [vmem:[#allocation6 + $0xf0] ss:$8 sps:$4 sm:$0xff]   ;;  %6240 = vmatprep.subr.bf16.mxu1 %v8555_v2  ;;  %v8556_v2 = vld [vmem:[%s9017_s24 + $0x40] sm:$0xff]  }
 0xa52   : > { %v5451_v12 = vmax.f32 %v5343_v3, 0.0  ;;  %6241 = vmatpush1.bf16.msra.mxu1 %v8553_v5  ;;  %v8558_v5 = vld [vmem:[%s9017_s24 + $0x48] sm:$0xff]   ;;  %7741 = vmatprep.subr.bf16.mxu0 %v8556_v2 }
 0xa53   : > { %v5452_v14 = vmax.f32 %v5345_v7, 0.0  ;;  %8081 = vmatprep.subr.bf16.mxu1 %v8556_v2 }
 0xa54   : > { %v5497_v18 = vpack.c.bf16 %v5451_v12, %v5449_v11 }
 0xa55   : > { %v5498_v59 = vpack.c.bf16 %v5452_v14, %v5450_v56  ;;  %v5348_v20 = vpop.f32.mrb[228].mxu1 }
 0xa56   : > { %v5349_v21 = vadd.f32 %v5348_v20, %v10148_v45  ;;  %v5350_v15 = vpop.f32.mrb[229].mxu1 }
 0xa57   : > { %v5351_v57 = vadd.f32 %v5350_v15, %v10151_v13  ;;  %v5352_v16 = vpop.f32.mrb[230].mxu1  ;;  %5829 = vmatprep.mubr.bf16.mxu0 %v5498_v59 }
 0xa58   : > { %v5353_v60 = vadd.f32 %v5352_v16, %v10148_v45  ;;  %v5354_v44 = vpop.f32.mrb[231].mxu1  ;;  %5830 = vmatmul.mubr.bf16.gmra.mrb[64].mxu0 %v5497_v18  ;;  %v5453_v29 = vmax.f32 %v5349_v21, 0.0 }
 0xa59   : > { %v5355_v55 = vadd.f32 %v5354_v44, %v10151_v13  ;;  %v5454_v36 = vmax.f32 %v5351_v57, 0.0 }
 0xa5a   : > { %v5455_v35 = vmax.f32 %v5353_v60, 0.0 }
 0xa5b   : > { %v5456_v41 = vmax.f32 %v5355_v55, 0.0 }
 0xa5c   : > { %v5499_v47 = vpack.c.bf16 %v5455_v35, %v5453_v29 }
 0xa5d   : > { %v5500_v24 = vpack.c.bf16 %v5456_v41, %v5454_v36  ;;  %v5358_v30 = vpop.f32.mrb[232].mxu1 }
 0xa5e   : > { %v5359_v25 = vadd.f32 %v5358_v30, %v10148_v45  ;;  %v5360_v26 = vpop.f32.mrb[233].mxu1 }
 0xa5f   : > { %v5361_v4 = vadd.f32 %v5360_v26, %v10151_v13  ;;  %v5362_v28 = vpop.f32.mrb[234].mxu1  ;;  %5839 = vmatprep.mubr.bf16.mxu0 %v5500_v24 }
 0xa60   : > { %v5363_v32 = vadd.f32 %v5362_v28, %v10148_v45  ;;  %v5364_v10 = vpop.f32.mrb[235].mxu1  ;;  %5840 = vmatmul.mubr.bf16.gmra.mrb[68].mxu0 %v5499_v47  ;;  %v5457_v34 = vmax.f32 %v5359_v25, 0.0 }
 0xa61   : > { %v5365_v33 = vadd.f32 %v5364_v10, %v10151_v13  ;;  %v5458_v23 = vmax.f32 %v5361_v4, 0.0 }
 0xa62   : > { %v5459_v39 = vmax.f32 %v5363_v32, 0.0 }
 0xa63   : > { %v5460_v43 = vmax.f32 %v5365_v33, 0.0 }
 0xa64   : > { %v5501_v40 = vpack.c.bf16 %v5459_v39, %v5457_v34 }
 0xa65   : > { %v5502_v17 = vpack.c.bf16 %v5460_v43, %v5458_v23  ;;  %v5368_v52 = vpop.f32.mrb[236].mxu1 }
 0xa66   : > { %v5369_v6 = vadd.f32 %v5368_v52, %v10148_v45  ;;  %v5370_v9 = vpop.f32.mrb[237].mxu1 }
 0xa67   : > { %v5371_v19 = vadd.f32 %v5370_v9, %v10151_v13  ;;  %v5372_v58 = vpop.f32.mrb[238].mxu1  ;;  %5849 = vmatprep.mubr.bf16.mxu0 %v5502_v17 }
 0xa68   : > { %v5373_v42 = vadd.f32 %v5372_v58, %v10148_v45  ;;  %v5374_v22 = vpop.f32.mrb[239].mxu1  ;;  %5850 = vmatmul.mubr.bf16.gmra.mrb[72].mxu0 %v5501_v40  ;;  %v5461_v27 = vmax.f32 %v5369_v6, 0.0 }
 0xa69   : > { %v5375_v51 = vadd.f32 %v5374_v22, %v10151_v13  ;;  %v5462_v8 = vmax.f32 %v5371_v19, 0.0 }
 0xa6a   : > { %v5463_v46 = vmax.f32 %v5373_v42, 0.0 }
 0xa6b   : > { %v5464_v54 = vmax.f32 %v5375_v51, 0.0 }
 0xa6c   : > { %v5503_v49 = vpack.c.bf16 %v5463_v46, %v5461_v27 }
 0xa6d   : > { %v5504_v37 = vpack.c.bf16 %v5464_v54, %v5462_v8  ;;  %v5378_v53 = vpop.f32.mrb[240].mxu1 }
 0xa6e   : > { %v5379_v38 = vadd.f32 %v5378_v53, %v10148_v45  ;;  %v5380_v61 = vpop.f32.mrb[241].mxu1 }
 0xa6f   : > { %v5381_v62 = vadd.f32 %v5380_v61, %v10151_v13  ;;  %v5382_v63 = vpop.f32.mrb[242].mxu1  ;;  %5859 = vmatprep.mubr.bf16.mxu0 %v5504_v37  ;;  %v5545_v37 = vld [vmem:[%s10705_s26] sm:$0x3] }
 0xa70   : > { %v5383_v0 = vadd.f32 %v5382_v63, %v10148_v45  ;;  %v5384_v1 = vpop.f32.mrb[243].mxu1  ;;  %5860 = vmatmul.mubr.bf16.gmra.mrb[76].mxu0 %v5503_v49  ;;  %v5465_v7 = vmax.f32 %v5379_v38, 0.0  ;;  %v10219_v53 = vrot.slane %v5545_v37, %v9695_v31 }
 0xa71   : > { %v5385_v3 = vadd.f32 %v5384_v1, %v10151_v13  ;;  %v5466_v12 = vmax.f32 %v5381_v62, 0.0 }
 0xa72   : > { %v5467_v11 = vmax.f32 %v5383_v0, 0.0 }
 0xa73   : > { %v5468_v56 = vmax.f32 %v5385_v3, 0.0  ;;  %v8557_v3 = vld [vmem:[%s9017_s24] sm:$0xff]  }
 0xa74   : > { %v5505_v14 = vpack.c.bf16 %v5467_v11, %v5465_v7  ;;  %7742 = vmatpush3.bf16.msra.mxu0 %v8557_v3 }
 0xa75   : > { %v5506_v18 = vpack.c.bf16 %v5468_v56, %v5466_v12  ;;  %v5388_v59 = vpop.f32.mrb[244].mxu1  ;;  %7743 = vmatprep.subr.bf16.mxu0 %v8558_v5 }
 0xa76   : > { %v5389_v20 = vadd.f32 %v5388_v59, %v10148_v45  ;;  %v5390_v21 = vpop.f32.mrb[245].mxu1 }
 0xa77   : > { %v5391_v15 = vadd.f32 %v5390_v21, %v10151_v13  ;;  %v5392_v57 = vpop.f32.mrb[246].mxu1  ;;  %5869 = vmatprep.mubr.bf16.mxu0 %v5506_v18  ;;  %v8559_v18 = vld [vmem:[%s9017_s24 + $0x8] sm:$0xff]  }
 0xa78   : > { %v5393_v16 = vadd.f32 %v5392_v57, %v10148_v45  ;;  %v5394_v60 = vpop.f32.mrb[247].mxu1  ;;  %5870 = vmatmul.mubr.bf16.gmra.mrb[80].mxu0 %v5505_v14  ;;  %v5469_v55 = vmax.f32 %v5389_v20, 0.0  ;;  %v8560_v20 = vld [vmem:[%s9017_s24 + $0x50] sm:$0xff]  }
 0xa79   : > { %v5395_v44 = vadd.f32 %v5394_v60, %v10151_v13  ;;  %v5470_v35 = vmax.f32 %v5391_v15, 0.0  ;;  %7744 = vmatpush3.bf16.msra.mxu0 %v8559_v18 }
 0xa7a   : > { %v5471_v29 = vmax.f32 %v5393_v16, 0.0  ;;  %7745 = vmatprep.subr.bf16.mxu0 %v8560_v20 }
 0xa7b   : > { %v5472_v36 = vmax.f32 %v5395_v44, 0.0 }
 0xa7c   : > { %v5507_v41 = vpack.c.bf16 %v5471_v29, %v5469_v55  ;;  %v8561_v55 = vld [vmem:[%s9017_s24 + $0x10] sm:$0xff]  }
 0xa7d   : > { %v5508_v47 = vpack.c.bf16 %v5472_v36, %v5470_v35  ;;  %v5398_v24 = vpop.f32.mrb[248].mxu1  ;;  %v8562_v36 = vld [vmem:[%s9017_s24 + $0x58] sm:$0xff]   ;;  %7746 = vmatpush3.bf16.msra.mxu0 %v8561_v55 }
 0xa7e   : > { %v5399_v30 = vadd.f32 %v5398_v24, %v10148_v45  ;;  %v5400_v25 = vpop.f32.mrb[249].mxu1  ;;  %7747 = vmatprep.subr.bf16.mxu0 %v8562_v36 }
 0xa7f   : > { %v5401_v26 = vadd.f32 %v5400_v25, %v10151_v13  ;;  %v5402_v4 = vpop.f32.mrb[250].mxu1  ;;  %5879 = vmatprep.mubr.bf16.mxu0 %v5508_v47 }
 0xa80   : > { %v5403_v28 = vadd.f32 %v5402_v4, %v10148_v45  ;;  %v5404_v32 = vpop.f32.mrb[251].mxu1  ;;  %5880 = vmatmul.mubr.bf16.gmra.mrb[84].mxu0 %v5507_v41  ;;  %v5473_v33 = vmax.f32 %v5399_v30, 0.0 }
 0xa81   : > { %v5405_v10 = vadd.f32 %v5404_v32, %v10151_v13  ;;  %v5474_v39 = vmax.f32 %v5401_v26, 0.0  ;;  %v8563_v26 = vld [vmem:[%s9017_s24 + $0x18] sm:$0xff]  }
 0xa82   : > { %v5475_v34 = vmax.f32 %v5403_v28, 0.0  ;;  %v8564_v28 = vld [vmem:[%s9017_s24 + $0x60] sm:$0xff]   ;;  %7748 = vmatpush3.bf16.msra.mxu0 %v8563_v26 }
 0xa83   : > { %v5476_v23 = vmax.f32 %v5405_v10, 0.0  ;;  %7749 = vmatprep.subr.bf16.mxu0 %v8564_v28 }
 0xa84   : > { %v5509_v43 = vpack.c.bf16 %v5475_v34, %v5473_v33 }
 0xa85   : > { %v5510_v40 = vpack.c.bf16 %v5476_v23, %v5474_v39  ;;  %v5408_v17 = vpop.f32.mrb[252].mxu1 }
 0xa86   : > { %v5409_v52 = vadd.f32 %v5408_v17, %v10148_v45  ;;  %v5410_v6 = vpop.f32.mrb[253].mxu1 }
 0xa87   : > { %v5411_v9 = vadd.f32 %v5410_v6, %v10151_v13  ;;  %v5412_v19 = vpop.f32.mrb[254].mxu1  ;;  %5889 = vmatprep.mubr.bf16.mxu0 %v5510_v40 }
 0xa88   : > { %v5413_v58 = vadd.f32 %v5412_v19, %v10148_v45  ;;  %v5414_v42 = vpop.f32.mrb[255].mxu1  ;;  %5890 = vmatmul.mubr.bf16.gmra.mrb[88].mxu0 %v5509_v43  ;;  %v5477_v51 = vmax.f32 %v5409_v52, 0.0  ;;  %v10222_v45 = vrot.slane %v5545_v37, %v9698_v50  ;;  %v8565_v43 = vld [vmem:[%s9017_s24 + $0x20] sm:$0xff]   ;;  %v8566_v52 = vld [vmem:[%s9017_s24 + $0x68] sm:$0xff]  }
 0xa89   : > { %v5415_v22 = vadd.f32 %v5414_v42, %v10151_v13  ;;  %v5478_v46 = vmax.f32 %v5411_v9, 0.0  ;;  %7750 = vmatpush3.bf16.msra.mxu0 %v8565_v43 }
 0xa8a   : > { %v5479_v27 = vmax.f32 %v5413_v58, 0.0  ;;  %7751 = vmatprep.subr.bf16.mxu0 %v8566_v52 }
 0xa8b   : > { %v5480_v8 = vmax.f32 %v5415_v22, 0.0 }
 0xa8c   : > { %v5511_v54 = vpack.c.bf16 %v5479_v27, %v5477_v51 }
 0xa8d   : > { %v5512_v49 = vpack.c.bf16 %v5480_v8, %v5478_v46 }
 0xa8f   : > { %5899 = vmatprep.mubr.bf16.mxu0 %v5512_v49 }
 0xa90   : > { %5900 = vmatmul.mubr.bf16.gmra.mrb[92].mxu0 %v5511_v54 }
 0xaeb   : > { %v5751_v38 = vpop.f32.mrb[32].mxu0 }
 0xaec   : > { %v5752_v13 = vadd.f32 %v5751_v38, %v10219_v53  ;;  %v5753_v61 = vpop.f32.mrb[33].mxu0 }
 0xaed   : > { %v5754_v62 = vadd.f32 %v5753_v61, %v10222_v45  ;;  %v5755_v63 = vpop.f32.mrb[34].mxu0 }
 0xaee   : > { %v5756_v0 = vadd.f32 %v5755_v63, %v10219_v53  ;;  %v5757_v1 = vpop.f32.mrb[35].mxu0  ;;  %v5910_v11 = vmax.f32 %v5752_v13, 0.0 }
 0xaef   : > { %v5758_v7 = vadd.f32 %v5757_v1, %v10222_v45  ;;  %v5911_v56 = vmax.f32 %v5754_v62, 0.0 }
 0xaf0   : > { %v5912_v12 = vmax.f32 %v5756_v0, 0.0 }
 0xaf1   : > { %v5913_v14 = vmax.f32 %v5758_v7, 0.0 }
 0xaf2   : > { %v5974_v59 = vpack.c.bf16 %v5912_v12, %v5910_v11 }
 0xaf3   : > { %v5975_v21 = vpack.c.bf16 %v5913_v14, %v5911_v56  ;;  %v5761_v15 = vpop.f32.mrb[36].mxu0 }
 0xaf4   : > { %v5762_v57 = vadd.f32 %v5761_v15, %v10219_v53  ;;  %v5763_v16 = vpop.f32.mrb[37].mxu0 }
 0xaf5   : > { %v5764_v60 = vadd.f32 %v5763_v16, %v10222_v45  ;;  %v5765_v44 = vpop.f32.mrb[38].mxu0  ;;  %6242 = vmatprep.mubr.bf16.mxu1 %v5975_v21 }
 0xaf6   : > { %v5766_v29 = vadd.f32 %v5765_v44, %v10219_v53  ;;  %v5767_v35 = vpop.f32.mrb[39].mxu0  ;;  %6243 = vmatmul.mubr.bf16.vlgmr.msra.gmra.mrb[0].mxu1 %v5974_v59  ;;  %v5914_v47 = vmax.f32 %v5762_v57, 0.0 }
 0xaf7   : > { %v5768_v41 = vadd.f32 %v5767_v35, %v10222_v45  ;;  %8089 = vmatpush3.bf16.msra.mxu1 %v8557_v3  ;;  %v5915_v30 = vmax.f32 %v5764_v60, 0.0 }
 0xaf8   : > { %v5916_v24 = vmax.f32 %v5766_v29, 0.0  ;;  %8082 = vmatprep.subr.bf16.mxu1 %v8558_v5 }
 0xaf9   : > { %v5917_v25 = vmax.f32 %v5768_v41, 0.0 }
 0xafa   : > { %v5976_v4 = vpack.c.bf16 %v5916_v24, %v5914_v47 }
 0xafb   : > { %v5977_v32 = vpack.c.bf16 %v5917_v25, %v5915_v30  ;;  %v5771_v10 = vpop.f32.mrb[40].mxu0  ;;  %8090 = vmatpush3.bf16.msra.mxu1 %v8559_v18 }
 0xafc   : > { %v5772_v33 = vadd.f32 %v5771_v10, %v10219_v53  ;;  %v5773_v34 = vpop.f32.mrb[41].mxu0  ;;  %8083 = vmatprep.subr.bf16.mxu1 %v8560_v20 }
 0xafd   : > { %v5774_v39 = vadd.f32 %v5773_v34, %v10222_v45  ;;  %v5775_v23 = vpop.f32.mrb[42].mxu0  ;;  %6252 = vmatprep.mubr.bf16.mxu1 %v5977_v32 }
 0xafe   : > { %v5776_v40 = vadd.f32 %v5775_v23, %v10219_v53  ;;  %v5777_v17 = vpop.f32.mrb[43].mxu0  ;;  %6253 = vmatmul.mubr.bf16.gmra.mrb[4].mxu1 %v5976_v4  ;;  %v5918_v9 = vmax.f32 %v5772_v33, 0.0 }
 0xaff   : > { %v5778_v6 = vadd.f32 %v5777_v17, %v10222_v45  ;;  %8091 = vmatpush3.bf16.msra.mxu1 %v8561_v55  ;;  %v5919_v58 = vmax.f32 %v5774_v39, 0.0 }
 0xb00   : > { %v5920_v19 = vmax.f32 %v5776_v40, 0.0  ;;  %8084 = vmatprep.subr.bf16.mxu1 %v8562_v36 }
 0xb01   : > { %v5921_v42 = vmax.f32 %v5778_v6, 0.0 }
 0xb02   : > { %v5978_v22 = vpack.c.bf16 %v5920_v19, %v5918_v9 }
 0xb03   : > { %v5979_v51 = vpack.c.bf16 %v5921_v42, %v5919_v58  ;;  %v5781_v27 = vpop.f32.mrb[44].mxu0  ;;  %8092 = vmatpush3.bf16.msra.mxu1 %v8563_v26 }
 0xb04   : > { %v5782_v46 = vadd.f32 %v5781_v27, %v10219_v53  ;;  %v5783_v8 = vpop.f32.mrb[45].mxu0  ;;  %8085 = vmatprep.subr.bf16.mxu1 %v8564_v28 }
 0xb05   : > { %v5784_v54 = vadd.f32 %v5783_v8, %v10222_v45  ;;  %v5785_v49 = vpop.f32.mrb[46].mxu0  ;;  %6262 = vmatprep.mubr.bf16.mxu1 %v5979_v51 }
 0xb06   : > { %v5786_v37 = vadd.f32 %v5785_v49, %v10219_v53  ;;  %v5787_v38 = vpop.f32.mrb[47].mxu0  ;;  %6263 = vmatmul.mubr.bf16.gmra.mrb[8].mxu1 %v5978_v22  ;;  %v5922_v61 = vmax.f32 %v5782_v46, 0.0 }
 0xb07   : > { %v5788_v13 = vadd.f32 %v5787_v38, %v10222_v45  ;;  %8093 = vmatpush3.bf16.msra.mxu1 %v8565_v43  ;;  %v5923_v63 = vmax.f32 %v5784_v54, 0.0 }
 0xb08   : > { %v5924_v62 = vmax.f32 %v5786_v37, 0.0  ;;  %8086 = vmatprep.subr.bf16.mxu1 %v8566_v52 }
 0xb09   : > { %v5925_v0 = vmax.f32 %v5788_v13, 0.0 }
 0xb0a   : > { %v5980_v1 = vpack.c.bf16 %v5924_v62, %v5922_v61 }
 0xb0b   : > { %v5981_v2 = vpack.c.bf16 %v5925_v0, %v5923_v63  ;;  %v5791_v3 = vpop.f32.mrb[48].mxu0 }
 0xb0c   : > { %v5792_v5 = vadd.f32 %v5791_v3, %v10219_v53  ;;  %v5793_v7 = vpop.f32.mrb[49].mxu0 }
 0xb0d   : > { %v5794_v11 = vadd.f32 %v5793_v7, %v10222_v45  ;;  %v5795_v12 = vpop.f32.mrb[50].mxu0  ;;  %6272 = vmatprep.mubr.bf16.mxu1 %v5981_v2 }
 0xb0e   : > { %v5796_v56 = vadd.f32 %v5795_v12, %v10219_v53  ;;  %v5797_v14 = vpop.f32.mrb[51].mxu0  ;;  %6273 = vmatmul.mubr.bf16.gmra.mrb[12].mxu1 %v5980_v1  ;;  %v5926_v59 = vmax.f32 %v5792_v5, 0.0 }
 0xb0f   : > { %v5798_v18 = vadd.f32 %v5797_v14, %v10222_v45  ;;  %v5927_v21 = vmax.f32 %v5794_v11, 0.0 }
 0xb10   : > { %v5928_v20 = vmax.f32 %v5796_v56, 0.0 }
 0xb11   : > { %v5929_v15 = vmax.f32 %v5798_v18, 0.0 }
 0xb12   : > { %v5982_v57 = vpack.c.bf16 %v5928_v20, %v5926_v59 }
 0xb13   : > { %v5983_v16 = vpack.c.bf16 %v5929_v15, %v5927_v21  ;;  %v5801_v60 = vpop.f32.mrb[52].mxu0 }
 0xb14   : > { %v5802_v44 = vadd.f32 %v5801_v60, %v10219_v53  ;;  %v5803_v55 = vpop.f32.mrb[53].mxu0 }
 0xb15   : > { %v5804_v29 = vadd.f32 %v5803_v55, %v10222_v45  ;;  %v5805_v35 = vpop.f32.mrb[54].mxu0  ;;  %6282 = vmatprep.mubr.bf16.mxu1 %v5983_v16 }
 0xb16   : > { %v5806_v36 = vadd.f32 %v5805_v35, %v10219_v53  ;;  %v5807_v41 = vpop.f32.mrb[55].mxu0  ;;  %6283 = vmatmul.mubr.bf16.gmra.mrb[16].mxu1 %v5982_v57  ;;  %v5930_v24 = vmax.f32 %v5802_v44, 0.0 }
 0xb17   : > { %v5808_v47 = vadd.f32 %v5807_v41, %v10222_v45  ;;  %v5931_v25 = vmax.f32 %v5804_v29, 0.0 }
 0xb18   : > { %v5932_v30 = vmax.f32 %v5806_v36, 0.0 }
 0xb19   : > { %v5933_v26 = vmax.f32 %v5808_v47, 0.0 }
 0xb1a   : > { %v5984_v4 = vpack.c.bf16 %v5932_v30, %v5930_v24 }
 0xb1b   : > { %v5985_v28 = vpack.c.bf16 %v5933_v26, %v5931_v25  ;;  %v5811_v32 = vpop.f32.mrb[56].mxu0 }
 0xb1c   : > { %v5812_v10 = vadd.f32 %v5811_v32, %v10219_v53  ;;  %v5813_v33 = vpop.f32.mrb[57].mxu0 }
 0xb1d   : > { %v5814_v34 = vadd.f32 %v5813_v33, %v10222_v45  ;;  %v5815_v39 = vpop.f32.mrb[58].mxu0  ;;  %6292 = vmatprep.mubr.bf16.mxu1 %v5985_v28 }
 0xb1e   : > { %v5816_v23 = vadd.f32 %v5815_v39, %v10219_v53  ;;  %v5817_v43 = vpop.f32.mrb[59].mxu0  ;;  %6293 = vmatmul.mubr.bf16.gmra.mrb[20].mxu1 %v5984_v4  ;;  %v5934_v17 = vmax.f32 %v5812_v10, 0.0 }
 0xb1f   : > { %v5818_v40 = vadd.f32 %v5817_v43, %v10222_v45  ;;  %v5935_v6 = vmax.f32 %v5814_v34, 0.0 }
 0xb20   : > { %v5936_v52 = vmax.f32 %v5816_v23, 0.0 }
 0xb21   : > { %v5937_v9 = vmax.f32 %v5818_v40, 0.0 }
 0xb22   : > { %v5986_v19 = vpack.c.bf16 %v5936_v52, %v5934_v17 }
 0xb23   : > { %v5987_v58 = vpack.c.bf16 %v5937_v9, %v5935_v6  ;;  %v5821_v42 = vpop.f32.mrb[60].mxu0 }
 0xb24   : > { %v5822_v22 = vadd.f32 %v5821_v42, %v10219_v53  ;;  %v5823_v51 = vpop.f32.mrb[61].mxu0 }
 0xb25   : > { %v5824_v27 = vadd.f32 %v5823_v51, %v10222_v45  ;;  %v5825_v46 = vpop.f32.mrb[62].mxu0  ;;  %6302 = vmatprep.mubr.bf16.mxu1 %v5987_v58 }
 0xb26   : > { %v5826_v8 = vadd.f32 %v5825_v46, %v10219_v53  ;;  %v5827_v54 = vpop.f32.mrb[63].mxu0  ;;  %6303 = vmatmul.mubr.bf16.gmra.mrb[24].mxu1 %v5986_v19  ;;  %v5938_v37 = vmax.f32 %v5822_v22, 0.0 }
 0xb27   : > { %v5828_v49 = vadd.f32 %v5827_v54, %v10222_v45  ;;  %v5939_v13 = vmax.f32 %v5824_v27, 0.0 }
 0xb28   : > { %v5940_v38 = vmax.f32 %v5826_v8, 0.0  ;;  %v8567_v8 = vld [vmem:[%s9017_s24 + $0x28] sm:$0xff]  }
 0xb29   : > { %v5941_v61 = vmax.f32 %v5828_v49, 0.0  ;;  %7752 = vmatpush3.bf16.msra.mxu0 %v8567_v8  ;;  %8094 = vmatpush3.bf16.msra.mxu1 %v8567_v8 }
 0xb2a   : > { %v5988_v62 = vpack.c.bf16 %v5940_v38, %v5938_v37 }
 0xb2b   : > { %v5989_v63 = vpack.c.bf16 %v5941_v61, %v5939_v13  ;;  %v5831_v0 = vpop.f32.mrb[64].mxu0  ;;  %v8568_v61 = vld [vmem:[%s9017_s24 + $0x70] sm:$0xff]  }
 0xb2c   : > { %v5832_v1 = vadd.f32 %v5831_v0, %v10219_v53  ;;  %v5833_v2 = vpop.f32.mrb[65].mxu0  ;;  %v8569_v0 = vld [vmem:[%s9017_s24 + $0x30] sm:$0xff]   ;;  %7753 = vmatprep.subr.bf16.mxu0 %v8568_v61  ;;  %8087 = vmatprep.subr.bf16.mxu1 %v8568_v61 }
 0xb2d   : > { %v5834_v3 = vadd.f32 %v5833_v2, %v10222_v45  ;;  %v5835_v5 = vpop.f32.mrb[66].mxu0  ;;  %6312 = vmatprep.mubr.bf16.mxu1 %v5989_v63  ;;  %7754 = vmatpush3.bf16.msra.mxu0 %v8569_v0 }
 0xb2e   : > { %v5836_v7 = vadd.f32 %v5835_v5, %v10219_v53  ;;  %v5837_v11 = vpop.f32.mrb[67].mxu0  ;;  %6313 = vmatmul.mubr.bf16.gmra.mrb[28].mxu1 %v5988_v62  ;;  %v5942_v56 = vmax.f32 %v5832_v1, 0.0 }
 0xb2f   : > { %v5838_v12 = vadd.f32 %v5837_v11, %v10222_v45  ;;  %v5943_v18 = vmax.f32 %v5834_v3, 0.0  ;;  %8095 = vmatpush3.bf16.msra.mxu1 %v8569_v0 }
 0xb30   : > { %v5944_v14 = vmax.f32 %v5836_v7, 0.0 }
 0xb31   : > { %v5945_v59 = vmax.f32 %v5838_v12, 0.0  ;;  %v8570_v12 = vld [vmem:[%s9017_s24 + $0x78] sm:$0xff]  }
 0xb32   : > { %v5990_v20 = vpack.c.bf16 %v5944_v14, %v5942_v56  ;;  %v8571_v14 = vld [vmem:[%s9017_s24 + $0x38] sm:$0xff]   ;;  %7755 = vmatprep.subr.bf16.mxu0 %v8570_v12  ;;  %8088 = vmatprep.subr.bf16.mxu1 %v8570_v12 }
 0xb33   : > { %v5991_v21 = vpack.c.bf16 %v5945_v59, %v5943_v18  ;;  %v5841_v15 = vpop.f32.mrb[68].mxu0  ;;  %7756 = vmatpush3.bf16.msra.mxu0 %v8571_v14  ;;  %8096 = vmatpush3.bf16.msra.mxu1 %v8571_v14 }
 0xb34   : > { %v5842_v57 = vadd.f32 %v5841_v15, %v10219_v53  ;;  %v5843_v16 = vpop.f32.mrb[69].mxu0 }
 0xb35   : > { %v5844_v60 = vadd.f32 %v5843_v16, %v10222_v45  ;;  %v5845_v44 = vpop.f32.mrb[70].mxu0  ;;  %6322 = vmatprep.mubr.bf16.mxu1 %v5991_v21 }
 0xb36   : > { %v5846_v55 = vadd.f32 %v5845_v44, %v10219_v53  ;;  %v5847_v29 = vpop.f32.mrb[71].mxu0  ;;  %6323 = vmatmul.mubr.bf16.gmra.mrb[32].mxu1 %v5990_v20  ;;  %v5946_v36 = vmax.f32 %v5842_v57, 0.0 }
 0xb37   : > { %v5848_v35 = vadd.f32 %v5847_v29, %v10222_v45  ;;  %v5947_v47 = vmax.f32 %v5844_v60, 0.0 }
 0xb38   : > { %v5948_v41 = vmax.f32 %v5846_v55, 0.0 }
 0xb39   : > { %v5949_v24 = vmax.f32 %v5848_v35, 0.0 }
 0xb3a   : > { %v5992_v30 = vpack.c.bf16 %v5948_v41, %v5946_v36 }
 0xb3b   : > { %v5993_v25 = vpack.c.bf16 %v5949_v24, %v5947_v47  ;;  %v5851_v26 = vpop.f32.mrb[72].mxu0 }
 0xb3c   : > { %v5852_v4 = vadd.f32 %v5851_v26, %v10219_v53  ;;  %v5853_v28 = vpop.f32.mrb[73].mxu0 }
 0xb3d   : > { %v5854_v32 = vadd.f32 %v5853_v28, %v10222_v45  ;;  %v5855_v10 = vpop.f32.mrb[74].mxu0  ;;  %6332 = vmatprep.mubr.bf16.mxu1 %v5993_v25 }
 0xb3e   : > { %v5856_v33 = vadd.f32 %v5855_v10, %v10219_v53  ;;  %v5857_v34 = vpop.f32.mrb[75].mxu0  ;;  %6333 = vmatmul.mubr.bf16.gmra.mrb[36].mxu1 %v5992_v30  ;;  %v5950_v23 = vmax.f32 %v5852_v4, 0.0 }
 0xb3f   : > { %v5858_v39 = vadd.f32 %v5857_v34, %v10222_v45  ;;  %v5951_v40 = vmax.f32 %v5854_v32, 0.0 }
 0xb40   : > { %v5952_v43 = vmax.f32 %v5856_v33, 0.0 }
 0xb41   : > { %v5953_v17 = vmax.f32 %v5858_v39, 0.0 }
 0xb42   : > { %v5994_v52 = vpack.c.bf16 %v5952_v43, %v5950_v23 }
 0xb43   : > { %v5995_v6 = vpack.c.bf16 %v5953_v17, %v5951_v40  ;;  %v5861_v9 = vpop.f32.mrb[76].mxu0 }
 0xb44   : > { %v5862_v19 = vadd.f32 %v5861_v9, %v10219_v53  ;;  %v5863_v58 = vpop.f32.mrb[77].mxu0 }
 0xb45   : > { %v5864_v42 = vadd.f32 %v5863_v58, %v10222_v45  ;;  %v5865_v22 = vpop.f32.mrb[78].mxu0  ;;  %6342 = vmatprep.mubr.bf16.mxu1 %v5995_v6 }
 0xb46   : > { %v5866_v51 = vadd.f32 %v5865_v22, %v10219_v53  ;;  %v5867_v27 = vpop.f32.mrb[79].mxu0  ;;  %6343 = vmatmul.mubr.bf16.gmra.mrb[40].mxu1 %v5994_v52  ;;  %v5954_v54 = vmax.f32 %v5862_v19, 0.0 }
 0xb47   : > { %v5868_v46 = vadd.f32 %v5867_v27, %v10222_v45  ;;  %v5955_v37 = vmax.f32 %v5864_v42, 0.0 }
 0xb48   : > { %v5956_v49 = vmax.f32 %v5866_v51, 0.0 }
 0xb49   : > { %v5957_v38 = vmax.f32 %v5868_v46, 0.0 }
 0xb4a   : > { %v5996_v13 = vpack.c.bf16 %v5956_v49, %v5954_v54 }
 0xb4b   : > { %v5997_v62 = vpack.c.bf16 %v5957_v38, %v5955_v37  ;;  %v5871_v63 = vpop.f32.mrb[80].mxu0 }
 0xb4c   : > { %v5872_v1 = vadd.f32 %v5871_v63, %v10219_v53  ;;  %v5873_v2 = vpop.f32.mrb[81].mxu0  ;;  %v6038_v63 = vld [vmem:[%s9012_s20] sm:$0x3] }
 0xb4d   : > { %v5874_v3 = vadd.f32 %v5873_v2, %v10222_v45  ;;  %v5875_v5 = vpop.f32.mrb[82].mxu0  ;;  %6352 = vmatprep.mubr.bf16.mxu1 %v5997_v62  ;;  %v10306_v0 = vrot.slane %v6038_v63, %v9695_v31 }
 0xb4e   : > { %v5876_v7 = vadd.f32 %v5875_v5, %v10219_v53  ;;  %v5877_v11 = vpop.f32.mrb[83].mxu0  ;;  %6353 = vmatmul.mubr.bf16.gmra.mrb[44].mxu1 %v5996_v13  ;;  %v5958_v18 = vmax.f32 %v5872_v1, 0.0  ;;  %v10309_v1 = vrot.slane %v6038_v63, %v9698_v50 }
 0xb4f   : > { %v5878_v56 = vadd.f32 %v5877_v11, %v10222_v45  ;;  %v5959_v20 = vmax.f32 %v5874_v3, 0.0 }
 0xb50   : > { %v5960_v59 = vmax.f32 %v5876_v7, 0.0 }
 0xb51   : > { %v5961_v21 = vmax.f32 %v5878_v56, 0.0 }
 0xb52   : > { %v5998_v15 = vpack.c.bf16 %v5960_v59, %v5958_v18 }
 0xb53   : > { %v5999_v57 = vpack.c.bf16 %v5961_v21, %v5959_v20  ;;  %v5881_v16 = vpop.f32.mrb[84].mxu0 }
 0xb54   : > { %v5882_v60 = vadd.f32 %v5881_v16, %v10219_v53  ;;  %v5883_v44 = vpop.f32.mrb[85].mxu0 }
 0xb55   : > { %v5884_v55 = vadd.f32 %v5883_v44, %v10222_v45  ;;  %v5885_v29 = vpop.f32.mrb[86].mxu0  ;;  %6362 = vmatprep.mubr.bf16.mxu1 %v5999_v57 }
 0xb56   : > { %v5886_v35 = vadd.f32 %v5885_v29, %v10219_v53  ;;  %v5887_v36 = vpop.f32.mrb[87].mxu0  ;;  %6363 = vmatmul.mubr.bf16.gmra.mrb[48].mxu1 %v5998_v15  ;;  %v5962_v47 = vmax.f32 %v5882_v60, 0.0 }
 0xb57   : > { %v5888_v41 = vadd.f32 %v5887_v36, %v10222_v45  ;;  %v5963_v30 = vmax.f32 %v5884_v55, 0.0 }
 0xb58   : > { %v5964_v24 = vmax.f32 %v5886_v35, 0.0 }
 0xb59   : > { %v5965_v25 = vmax.f32 %v5888_v41, 0.0 }
 0xb5a   : > { %v6000_v26 = vpack.c.bf16 %v5964_v24, %v5962_v47 }
 0xb5b   : > { %v6001_v4 = vpack.c.bf16 %v5965_v25, %v5963_v30  ;;  %v5891_v28 = vpop.f32.mrb[88].mxu0 }
 0xb5c   : > { %v5892_v32 = vadd.f32 %v5891_v28, %v10219_v53  ;;  %v5893_v10 = vpop.f32.mrb[89].mxu0 }
 0xb5d   : > { %v5894_v33 = vadd.f32 %v5893_v10, %v10222_v45  ;;  %v5895_v34 = vpop.f32.mrb[90].mxu0  ;;  %6372 = vmatprep.mubr.bf16.mxu1 %v6001_v4 }
 0xb5e   : > { %v5896_v39 = vadd.f32 %v5895_v34, %v10219_v53  ;;  %v5897_v23 = vpop.f32.mrb[91].mxu0  ;;  %6373 = vmatmul.mubr.bf16.gmra.mrb[52].mxu1 %v6000_v26  ;;  %v5966_v40 = vmax.f32 %v5892_v32, 0.0 }
 0xb5f   : > { %v5898_v43 = vadd.f32 %v5897_v23, %v10222_v45  ;;  %v5967_v52 = vmax.f32 %v5894_v33, 0.0 }
 0xb60   : > { %v5968_v17 = vmax.f32 %v5896_v39, 0.0 }
 0xb61   : > { %v5969_v6 = vmax.f32 %v5898_v43, 0.0 }
 0xb62   : > { %v6002_v9 = vpack.c.bf16 %v5968_v17, %v5966_v40 }
 0xb63   : > { %v6003_v19 = vpack.c.bf16 %v5969_v6, %v5967_v52  ;;  %v5901_v58 = vpop.f32.mrb[92].mxu0 }
 0xb64   : > { %v5902_v42 = vadd.f32 %v5901_v58, %v10219_v53  ;;  %v5903_v22 = vpop.f32.mrb[93].mxu0 }
 0xb65   : > { %v5904_v51 = vadd.f32 %v5903_v22, %v10222_v45  ;;  %v5905_v27 = vpop.f32.mrb[94].mxu0  ;;  %6382 = vmatprep.mubr.bf16.mxu1 %v6003_v19 }
 0xb66   : > { %v5906_v46 = vadd.f32 %v5905_v27, %v10219_v53  ;;  %v5907_v8 = vpop.f32.mrb[95].mxu0  ;;  %6383 = vmatmul.mubr.bf16.gmra.mrb[56].mxu1 %v6002_v9  ;;  %v5970_v49 = vmax.f32 %v5902_v42, 0.0 }
 0xb67   : > { %v5908_v54 = vadd.f32 %v5907_v8, %v10222_v45  ;;  %v5971_v38 = vmax.f32 %v5904_v51, 0.0 }
 0xb68   : > { %v5972_v37 = vmax.f32 %v5906_v46, 0.0 }
 0xb69   : > { %v5973_v13 = vmax.f32 %v5908_v54, 0.0 }
 0xb6a   : > { %v6004_v61 = vpack.c.bf16 %v5972_v37, %v5970_v49 }
 0xb6b   : > { %v6005_v62 = vpack.c.bf16 %v5973_v13, %v5971_v38 }
 0xb6d   : > { %6392 = vmatprep.mubr.bf16.mxu1 %v6005_v62 }
 0xb6e   : > { %6393 = vmatmul.mubr.bf16.gmra.mrb[60].mxu1 %v6004_v61 }
 0xbc9   : > { %v6244_v53 = vpop.f32.mrb[0].mxu1 }
 0xbca   : > { %v6245_v2 = vadd.f32 %v6244_v53, %v10306_v0  ;;  %v6246_v3 = vpop.f32.mrb[1].mxu1 }
 0xbcb   : > { %v6247_v45 = vadd.f32 %v6246_v3, %v10309_v1  ;;  %v6248_v5 = vpop.f32.mrb[2].mxu1 }
 0xbcc   : > { %v6249_v7 = vadd.f32 %v6248_v5, %v10306_v0  ;;  %v6250_v11 = vpop.f32.mrb[3].mxu1  ;;  %v6403_v56 = vmax.f32 %v6245_v2, 0.0 }
 0xbcd   : > { %v6251_v12 = vadd.f32 %v6250_v11, %v10309_v1  ;;  %v6404_v18 = vmax.f32 %v6247_v45, 0.0 }
 0xbce   : > { %v6405_v14 = vmax.f32 %v6249_v7, 0.0 }
 0xbcf   : > { %v6406_v31 = vmax.f32 %v6251_v12, 0.0 }
 0xbd0   : > { %v6467_v59 = vpack.c.bf16 %v6405_v14, %v6403_v56 }
 0xbd1   : > { %v6468_v20 = vpack.c.bf16 %v6406_v31, %v6404_v18  ;;  %v6254_v50 = vpop.f32.mrb[4].mxu1 }
 0xbd2   : > { %v6255_v21 = vadd.f32 %v6254_v50, %v10306_v0  ;;  %v6256_v15 = vpop.f32.mrb[5].mxu1 }
 0xbd3   : > { %v6257_v57 = vadd.f32 %v6256_v15, %v10309_v1  ;;  %v6258_v16 = vpop.f32.mrb[6].mxu1  ;;  %6666 = vmatprep.mubr.bf16.mxu0 %v6468_v20 }
 0xbd4   : > { %v6259_v60 = vadd.f32 %v6258_v16, %v10306_v0  ;;  %v6260_v44 = vpop.f32.mrb[7].mxu1  ;;  %6667 = vmatmul.mubr.bf16.vlgmr.msra.gmra.mrb[96].mxu0 %v6467_v59  ;;  %v6407_v29 = vmax.f32 %v6255_v21, 0.0 }
 0xbd5   : > { %v6261_v55 = vadd.f32 %v6260_v44, %v10309_v1  ;;  %v6408_v36 = vmax.f32 %v6257_v57, 0.0 }
 0xbd6   : > { %v6409_v35 = vmax.f32 %v6259_v60, 0.0 }
 0xbd7   : > { %v6410_v41 = vmax.f32 %v6261_v55, 0.0 }
 0xbd8   : > { %v6469_v47 = vpack.c.bf16 %v6409_v35, %v6407_v29 }
 0xbd9   : > { %v6470_v24 = vpack.c.bf16 %v6410_v41, %v6408_v36  ;;  %v6264_v30 = vpop.f32.mrb[8].mxu1 }
 0xbda   : > { %v6265_v25 = vadd.f32 %v6264_v30, %v10306_v0  ;;  %v6266_v26 = vpop.f32.mrb[9].mxu1 }
 0xbdb   : > { %v6267_v4 = vadd.f32 %v6266_v26, %v10309_v1  ;;  %v6268_v28 = vpop.f32.mrb[10].mxu1  ;;  %6674 = vmatprep.mubr.bf16.mxu0 %v6470_v24 }
 0xbdc   : > { %v6269_v32 = vadd.f32 %v6268_v28, %v10306_v0  ;;  %v6270_v10 = vpop.f32.mrb[11].mxu1  ;;  %6675 = vmatmul.mubr.bf16.gmra.mrb[100].mxu0 %v6469_v47  ;;  %v6411_v34 = vmax.f32 %v6265_v25, 0.0 }
 0xbdd   : > { %v6271_v33 = vadd.f32 %v6270_v10, %v10309_v1  ;;  %v6412_v23 = vmax.f32 %v6267_v4, 0.0 }
 0xbde   : > { %v6413_v39 = vmax.f32 %v6269_v32, 0.0 }
 0xbdf   : > { %v6414_v43 = vmax.f32 %v6271_v33, 0.0 }
 0xbe0   : > { %v6471_v40 = vpack.c.bf16 %v6413_v39, %v6411_v34 }
 0xbe1   : > { %v6472_v17 = vpack.c.bf16 %v6414_v43, %v6412_v23  ;;  %v6274_v52 = vpop.f32.mrb[12].mxu1 }
 0xbe2   : > { %v6275_v6 = vadd.f32 %v6274_v52, %v10306_v0  ;;  %v6276_v9 = vpop.f32.mrb[13].mxu1 }
 0xbe3   : > { %v6277_v19 = vadd.f32 %v6276_v9, %v10309_v1  ;;  %v6278_v58 = vpop.f32.mrb[14].mxu1  ;;  %6682 = vmatprep.mubr.bf16.mxu0 %v6472_v17 }
 0xbe4   : > { %v6279_v42 = vadd.f32 %v6278_v58, %v10306_v0  ;;  %v6280_v22 = vpop.f32.mrb[15].mxu1  ;;  %6683 = vmatmul.mubr.bf16.gmra.mrb[104].mxu0 %v6471_v40  ;;  %v6415_v27 = vmax.f32 %v6275_v6, 0.0 }
 0xbe5   : > { %v6281_v51 = vadd.f32 %v6280_v22, %v10309_v1  ;;  %v6416_v8 = vmax.f32 %v6277_v19, 0.0 }
 0xbe6   : > { %v6417_v46 = vmax.f32 %v6279_v42, 0.0 }
 0xbe7   : > { %v6418_v54 = vmax.f32 %v6281_v51, 0.0 }
 0xbe8   : > { %v6473_v49 = vpack.c.bf16 %v6417_v46, %v6415_v27 }
 0xbe9   : > { %v6474_v37 = vpack.c.bf16 %v6418_v54, %v6416_v8  ;;  %v6284_v38 = vpop.f32.mrb[16].mxu1 }
 0xbea   : > { %v6285_v13 = vadd.f32 %v6284_v38, %v10306_v0  ;;  %v6286_v61 = vpop.f32.mrb[17].mxu1 }
 0xbeb   : > { %v6287_v62 = vadd.f32 %v6286_v61, %v10309_v1  ;;  %v6288_v63 = vpop.f32.mrb[18].mxu1  ;;  %6690 = vmatprep.mubr.bf16.mxu0 %v6474_v37 }
 0xbec   : > { %v6289_v53 = vadd.f32 %v6288_v63, %v10306_v0  ;;  %v6290_v2 = vpop.f32.mrb[19].mxu1  ;;  %6691 = vmatmul.mubr.bf16.gmra.mrb[108].mxu0 %v6473_v49  ;;  %v6419_v45 = vmax.f32 %v6285_v13, 0.0 }
 0xbed   : > { %v6291_v3 = vadd.f32 %v6290_v2, %v10309_v1  ;;  %v6420_v7 = vmax.f32 %v6287_v62, 0.0 }
 0xbee   : > { %v6421_v5 = vmax.f32 %v6289_v53, 0.0 }
 0xbef   : > { %v6422_v11 = vmax.f32 %v6291_v3, 0.0 }
 0xbf0   : > { %v6475_v12 = vpack.c.bf16 %v6421_v5, %v6419_v45 }
 0xbf1   : > { %v6476_v56 = vpack.c.bf16 %v6422_v11, %v6420_v7  ;;  %v6294_v14 = vpop.f32.mrb[20].mxu1 }
 0xbf2   : > { %v6295_v18 = vadd.f32 %v6294_v14, %v10306_v0  ;;  %v6296_v31 = vpop.f32.mrb[21].mxu1 }
 0xbf3   : > { %v6297_v59 = vadd.f32 %v6296_v31, %v10309_v1  ;;  %v6298_v20 = vpop.f32.mrb[22].mxu1  ;;  %6698 = vmatprep.mubr.bf16.mxu0 %v6476_v56 }
 0xbf4   : > { %v6299_v50 = vadd.f32 %v6298_v20, %v10306_v0  ;;  %v6300_v21 = vpop.f32.mrb[23].mxu1  ;;  %6699 = vmatmul.mubr.bf16.gmra.mrb[112].mxu0 %v6475_v12  ;;  %v6423_v57 = vmax.f32 %v6295_v18, 0.0 }
 0xbf5   : > { %v6301_v15 = vadd.f32 %v6300_v21, %v10309_v1  ;;  %v6424_v60 = vmax.f32 %v6297_v59, 0.0 }
 0xbf6   : > { %v6425_v16 = vmax.f32 %v6299_v50, 0.0 }
 0xbf7   : > { %v6426_v44 = vmax.f32 %v6301_v15, 0.0 }
 0xbf8   : > { %v6477_v55 = vpack.c.bf16 %v6425_v16, %v6423_v57 }
 0xbf9   : > { %v6478_v29 = vpack.c.bf16 %v6426_v44, %v6424_v60  ;;  %v6304_v35 = vpop.f32.mrb[24].mxu1 }
 0xbfa   : > { %v6305_v36 = vadd.f32 %v6304_v35, %v10306_v0  ;;  %v6306_v41 = vpop.f32.mrb[25].mxu1 }
 0xbfb   : > { %v6307_v47 = vadd.f32 %v6306_v41, %v10309_v1  ;;  %v6308_v24 = vpop.f32.mrb[26].mxu1  ;;  %6706 = vmatprep.mubr.bf16.mxu0 %v6478_v29 }
 0xbfc   : > { %v6309_v30 = vadd.f32 %v6308_v24, %v10306_v0  ;;  %v6310_v25 = vpop.f32.mrb[27].mxu1  ;;  %6707 = vmatmul.mubr.bf16.gmra.mrb[116].mxu0 %v6477_v55  ;;  %v6427_v4 = vmax.f32 %v6305_v36, 0.0 }
 0xbfd   : > { %v6311_v26 = vadd.f32 %v6310_v25, %v10309_v1  ;;  %v6428_v32 = vmax.f32 %v6307_v47, 0.0 }
 0xbfe   : > { %v6429_v28 = vmax.f32 %v6309_v30, 0.0 }
 0xbff   : > { %v6430_v10 = vmax.f32 %v6311_v26, 0.0 }
 0xc00   : > { %v6479_v33 = vpack.c.bf16 %v6429_v28, %v6427_v4 }
 0xc01   : > { %v6480_v34 = vpack.c.bf16 %v6430_v10, %v6428_v32  ;;  %v6314_v39 = vpop.f32.mrb[28].mxu1 }
 0xc02   : > { %v6315_v23 = vadd.f32 %v6314_v39, %v10306_v0  ;;  %v6316_v43 = vpop.f32.mrb[29].mxu1 }
 0xc03   : > { %v6317_v40 = vadd.f32 %v6316_v43, %v10309_v1  ;;  %v6318_v17 = vpop.f32.mrb[30].mxu1  ;;  %6714 = vmatprep.mubr.bf16.mxu0 %v6480_v34 }
 0xc04   : > { %v6319_v52 = vadd.f32 %v6318_v17, %v10306_v0  ;;  %v6320_v6 = vpop.f32.mrb[31].mxu1  ;;  %6715 = vmatmul.mubr.bf16.gmra.mrb[120].mxu0 %v6479_v33  ;;  %v6431_v19 = vmax.f32 %v6315_v23, 0.0 }
 0xc05   : > { %v6321_v9 = vadd.f32 %v6320_v6, %v10309_v1  ;;  %v6432_v42 = vmax.f32 %v6317_v40, 0.0 }
 0xc06   : > { %v6433_v58 = vmax.f32 %v6319_v52, 0.0 }
 0xc07   : > { %v6434_v22 = vmax.f32 %v6321_v9, 0.0 }
 0xc08   : > { %v6481_v51 = vpack.c.bf16 %v6433_v58, %v6431_v19 }
 0xc09   : > { %v6482_v27 = vpack.c.bf16 %v6434_v22, %v6432_v42  ;;  %v6324_v46 = vpop.f32.mrb[32].mxu1 }
 0xc0a   : > { %v6325_v8 = vadd.f32 %v6324_v46, %v10306_v0  ;;  %v6326_v54 = vpop.f32.mrb[33].mxu1 }
 0xc0b   : > { %v6327_v49 = vadd.f32 %v6326_v54, %v10309_v1  ;;  %v6328_v37 = vpop.f32.mrb[34].mxu1  ;;  %6722 = vmatprep.mubr.bf16.mxu0 %v6482_v27 }
 0xc0c   : > { %v6329_v38 = vadd.f32 %v6328_v37, %v10306_v0  ;;  %v6330_v13 = vpop.f32.mrb[35].mxu1  ;;  %6723 = vmatmul.mubr.bf16.gmra.mrb[124].mxu0 %v6481_v51  ;;  %v6435_v62 = vmax.f32 %v6325_v8, 0.0 }
 0xc0d   : > { %v6331_v61 = vadd.f32 %v6330_v13, %v10309_v1  ;;  %v6436_v53 = vmax.f32 %v6327_v49, 0.0 }
 0xc0e   : > { %v6437_v63 = vmax.f32 %v6329_v38, 0.0 }
 0xc0f   : > { %v6438_v2 = vmax.f32 %v6331_v61, 0.0 }
 0xc10   : > { %v6483_v3 = vpack.c.bf16 %v6437_v63, %v6435_v62 }
 0xc11   : > { %v6484_v45 = vpack.c.bf16 %v6438_v2, %v6436_v53  ;;  %v6334_v5 = vpop.f32.mrb[36].mxu1 }
 0xc12   : > { %v6335_v7 = vadd.f32 %v6334_v5, %v10306_v0  ;;  %v6336_v11 = vpop.f32.mrb[37].mxu1 }
 0xc13   : > { %v6337_v12 = vadd.f32 %v6336_v11, %v10309_v1  ;;  %v6338_v56 = vpop.f32.mrb[38].mxu1  ;;  %6730 = vmatprep.mubr.bf16.mxu0 %v6484_v45 }
 0xc14   : > { %v6339_v14 = vadd.f32 %v6338_v56, %v10306_v0  ;;  %v6340_v18 = vpop.f32.mrb[39].mxu1  ;;  %6731 = vmatmul.mubr.bf16.gmra.mrb[128].mxu0 %v6483_v3  ;;  %v6439_v59 = vmax.f32 %v6335_v7, 0.0 }
 0xc15   : > { %v6341_v31 = vadd.f32 %v6340_v18, %v10309_v1  ;;  %v6440_v50 = vmax.f32 %v6337_v12, 0.0 }
 0xc16   : > { %v6441_v20 = vmax.f32 %v6339_v14, 0.0 }
 0xc17   : > { %v6442_v21 = vmax.f32 %v6341_v31, 0.0 }
 0xc18   : > { %v6485_v15 = vpack.c.bf16 %v6441_v20, %v6439_v59 }
 0xc19   : > { %v6486_v57 = vpack.c.bf16 %v6442_v21, %v6440_v50  ;;  %v6344_v16 = vpop.f32.mrb[40].mxu1 }
 0xc1a   : > { %v6345_v60 = vadd.f32 %v6344_v16, %v10306_v0  ;;  %v6346_v44 = vpop.f32.mrb[41].mxu1 }
 0xc1b   : > { %v6347_v55 = vadd.f32 %v6346_v44, %v10309_v1  ;;  %v6348_v29 = vpop.f32.mrb[42].mxu1  ;;  %6738 = vmatprep.mubr.bf16.mxu1 %v6486_v57 }
 0xc1c   : > { %v6349_v35 = vadd.f32 %v6348_v29, %v10306_v0  ;;  %v6350_v36 = vpop.f32.mrb[43].mxu1  ;;  %6739 = vmatmul.mubr.bf16.vlgmr.msra.gmra.mrb[64].mxu1 %v6485_v15  ;;  %v6443_v47 = vmax.f32 %v6345_v60, 0.0 }
 0xc1d   : > { %v6351_v41 = vadd.f32 %v6350_v36, %v10309_v1  ;;  %v6444_v30 = vmax.f32 %v6347_v55, 0.0 }
 0xc1e   : > { %v6445_v24 = vmax.f32 %v6349_v35, 0.0 }
 0xc1f   : > { %v6446_v25 = vmax.f32 %v6351_v41, 0.0 }
 0xc20   : > { %v6487_v26 = vpack.c.bf16 %v6445_v24, %v6443_v47 }
 0xc21   : > { %v6488_v4 = vpack.c.bf16 %v6446_v25, %v6444_v30  ;;  %v6354_v28 = vpop.f32.mrb[44].mxu1 }
 0xc22   : > { %v6355_v32 = vadd.f32 %v6354_v28, %v10306_v0  ;;  %v6356_v10 = vpop.f32.mrb[45].mxu1 }
 0xc23   : > { %v6357_v33 = vadd.f32 %v6356_v10, %v10309_v1  ;;  %v6358_v34 = vpop.f32.mrb[46].mxu1  ;;  %6746 = vmatprep.mubr.bf16.mxu1 %v6488_v4 }
 0xc24   : > { %v6359_v39 = vadd.f32 %v6358_v34, %v10306_v0  ;;  %v6360_v23 = vpop.f32.mrb[47].mxu1  ;;  %6747 = vmatmul.mubr.bf16.gmra.mrb[68].mxu1 %v6487_v26  ;;  %v6447_v40 = vmax.f32 %v6355_v32, 0.0 }
 0xc25   : > { %v6361_v43 = vadd.f32 %v6360_v23, %v10309_v1  ;;  %v6448_v52 = vmax.f32 %v6357_v33, 0.0 }
 0xc26   : > { %v6449_v17 = vmax.f32 %v6359_v39, 0.0 }
 0xc27   : > { %v6450_v6 = vmax.f32 %v6361_v43, 0.0 }
 0xc28   : > { %v6489_v9 = vpack.c.bf16 %v6449_v17, %v6447_v40 }
 0xc29   : > { %v6490_v19 = vpack.c.bf16 %v6450_v6, %v6448_v52  ;;  %v6364_v58 = vpop.f32.mrb[48].mxu1  ;;  %v10376_v52 = vld [vmem:[%s9022_s4] ss:$0 sm:$0xff] }
 0xc2a   : > { %v6365_v42 = vadd.f32 %v6364_v58, %v10306_v0  ;;  %v6366_v22 = vpop.f32.mrb[49].mxu1 }
 0xc2b   : > { %v6367_v51 = vadd.f32 %v6366_v22, %v10309_v1  ;;  %v6368_v27 = vpop.f32.mrb[50].mxu1  ;;  %6754 = vmatprep.mubr.bf16.mxu1 %v6490_v19 }
 0xc2c   : > { %v6369_v46 = vadd.f32 %v6368_v27, %v10306_v0  ;;  %v6370_v8 = vpop.f32.mrb[51].mxu1  ;;  %6755 = vmatmul.mubr.bf16.gmra.mrb[72].mxu1 %v6489_v9  ;;  %v6451_v49 = vmax.f32 %v6365_v42, 0.0 }
 0xc2d   : > { %v6371_v54 = vadd.f32 %v6370_v8, %v10309_v1  ;;  %v6452_v38 = vmax.f32 %v6367_v51, 0.0 }
 0xc2e   : > { %v6453_v37 = vmax.f32 %v6369_v46, 0.0 }
 0xc2f   : > { %v6454_v13 = vmax.f32 %v6371_v54, 0.0 }
 0xc30   : > { %v6491_v61 = vpack.c.bf16 %v6453_v37, %v6451_v49 }
 0xc31   : > { %v6492_v62 = vpack.c.bf16 %v6454_v13, %v6452_v38  ;;  %v6374_v63 = vpop.f32.mrb[52].mxu1 }
 0xc32   : > { %v6375_v53 = vadd.f32 %v6374_v63, %v10306_v0  ;;  %v6376_v2 = vpop.f32.mrb[53].mxu1 }
 0xc33   : > { %v6377_v3 = vadd.f32 %v6376_v2, %v10309_v1  ;;  %v6378_v45 = vpop.f32.mrb[54].mxu1  ;;  %6762 = vmatprep.mubr.bf16.mxu1 %v6492_v62 }
 0xc34   : > { %v6379_v5 = vadd.f32 %v6378_v45, %v10306_v0  ;;  %v6380_v7 = vpop.f32.mrb[55].mxu1  ;;  %6763 = vmatmul.mubr.bf16.gmra.mrb[76].mxu1 %v6491_v61  ;;  %v6455_v12 = vmax.f32 %v6375_v53, 0.0 }
 0xc35   : > { %v6381_v11 = vadd.f32 %v6380_v7, %v10309_v1  ;;  %v6456_v14 = vmax.f32 %v6377_v3, 0.0 }
 0xc36   : > { %v6457_v56 = vmax.f32 %v6379_v5, 0.0 }
 0xc37   : > { %v6458_v18 = vmax.f32 %v6381_v11, 0.0 }
 0xc38   : > { %v6493_v31 = vpack.c.bf16 %v6457_v56, %v6455_v12 }
 0xc39   : > { %v6494_v59 = vpack.c.bf16 %v6458_v18, %v6456_v14  ;;  %v6384_v20 = vpop.f32.mrb[56].mxu1 }
 0xc3a   : > { %v6385_v50 = vadd.f32 %v6384_v20, %v10306_v0  ;;  %v6386_v21 = vpop.f32.mrb[57].mxu1 }
 0xc3b   : > { %v6387_v15 = vadd.f32 %v6386_v21, %v10309_v1  ;;  %v6388_v57 = vpop.f32.mrb[58].mxu1  ;;  %6770 = vmatprep.mubr.bf16.mxu1 %v6494_v59 }
 0xc3c   : > { %v6389_v16 = vadd.f32 %v6388_v57, %v10306_v0  ;;  %v6390_v60 = vpop.f32.mrb[59].mxu1  ;;  %6771 = vmatmul.mubr.bf16.gmra.mrb[80].mxu1 %v6493_v31  ;;  %v6459_v55 = vmax.f32 %v6385_v50, 0.0  ;;  %v10400_v50 = vand.u32 127, %v2682_v48 }
 0xc3d   : > { %v6391_v44 = vadd.f32 %v6390_v60, %v10309_v1  ;;  %v6460_v35 = vmax.f32 %v6387_v15, 0.0 }
 0xc3e   : > { %v6461_v29 = vmax.f32 %v6389_v16, 0.0  ;;  %vm6797_vm5 = vcmp.eq.s32.totalorder %v10400_v50, 0 }
 0xc3f   : > { %v6462_v36 = vmax.f32 %v6391_v44, 0.0 }
 0xc40   : > { %v6495_v41 = vpack.c.bf16 %v6461_v29, %v6459_v55 }
 0xc41   : > { %v6496_v47 = vpack.c.bf16 %v6462_v36, %v6460_v35  ;;  %v6394_v24 = vpop.f32.mrb[60].mxu1 }
 0xc42   : > { %v6395_v30 = vadd.f32 %v6394_v24, %v10306_v0  ;;  %v6396_v25 = vpop.f32.mrb[61].mxu1 }
 0xc43   : > { %v6397_v26 = vadd.f32 %v6396_v25, %v10309_v1  ;;  %v6398_v4 = vpop.f32.mrb[62].mxu1  ;;  %6778 = vmatprep.mubr.bf16.mxu1 %v6496_v47 }
 0xc44   : > { %v6399_v28 = vadd.f32 %v6398_v4, %v10306_v0  ;;  %v6400_v32 = vpop.f32.mrb[63].mxu1  ;;  %6779 = vmatmul.mubr.bf16.gmra.mrb[84].mxu1 %v6495_v41  ;;  %v6463_v33 = vmax.f32 %v6395_v30, 0.0 }
 0xc45   : > { %v6401_v10 = vadd.f32 %v6400_v32, %v10309_v1  ;;  %v6464_v39 = vmax.f32 %v6397_v26, 0.0 }
 0xc46   : > { %v6465_v34 = vmax.f32 %v6399_v28, 0.0 }
 0xc47   : > { %v6466_v23 = vmax.f32 %v6401_v10, 0.0 }
 0xc48   : > { %v6497_v43 = vpack.c.bf16 %v6465_v34, %v6463_v33 }
 0xc49   : > { %v6498_v40 = vpack.c.bf16 %v6466_v23, %v6464_v39 }
 0xc4b   : > { %6786 = vmatprep.mubr.bf16.mxu1 %v6498_v40 }
 0xc4c   : > { %6787 = vmatmul.mubr.bf16.gmra.mrb[88].mxu1 %v6497_v43 }
 0xca7   : > { %v7757_v17 = vpop.f32.mrb[96].mxu0 }
 0xca8   : > { %v7758_v6 = vpop.f32.mrb[97].mxu0 }
 0xca9   : > { %v7759_v9 = vadd.f32 %v7758_v6, %v7757_v17  ;;  %v7760_v19 = vpop.f32.mrb[98].mxu0 }
 0xcaa   : > { %v7761_v58 = vpop.f32.mrb[99].mxu0 }
 0xcab   : > { %v6669_v0 = vadd.f32 %v7759_v9, %v10376_v52  ;;  %v7762_v42 = vadd.f32 %v7761_v58, %v7760_v19 }
 0xcad   : > { %v7593_v22 = vmul.f32 -1.442695, %v6669_v0  ;;  %v10380_v1 = vadd.f32 %v7762_v42, %v10376_v52  ;;  %v6798_v48 = vmax.f32 %v6669_v0, 0.0 }
 0xcaf   : > { %8572 = vpow2.f32 %v7593_v22  ;;  %v7594_v51 = vmul.f32 -1.442695, %v10380_v1  ;;  %v7763_v27 = vpop.f32.mrb[100].mxu0  ;;  %v6799_v25 = vmax.f32 %v10380_v1, 0.0 }
 0xcb0   : > { %v7764_v46 = vpop.f32.mrb[101].mxu0 }
 0xcb1   : > { %8574 = vpow2.f32 %v7594_v51  ;;  %v7765_v8 = vadd.f32 %v7764_v46, %v7763_v27  ;;  %v7766_v54 = vpop.f32.mrb[102].mxu0 }
 0xcb2   : > { %v7767_v49 = vpop.f32.mrb[103].mxu0 }
 0xcb3   : > { %v10384_v37 = vadd.f32 %v7765_v8, %v10376_v52  ;;  %v7768_v38 = vadd.f32 %v7767_v49, %v7766_v54 }
 0xcb5   : > { %v7595_v13 = vmul.f32 -1.442695, %v10384_v37  ;;  %v10388_v61 = vadd.f32 %v7768_v38, %v10376_v52  ;;  %v6800_v19 = vmax.f32 %v10384_v37, 0.0 }
 0xcb7   : > { %8576 = vpow2.f32 %v7595_v13  ;;  %v7596_v62 = vmul.f32 -1.442695, %v10388_v61  ;;  %v7769_v63 = vpop.f32.mrb[104].mxu0  ;;  %v6801_v1 = vmax.f32 %v10388_v61, 0.0 }
 0xcb8   : > { %v7770_v53 = vpop.f32.mrb[105].mxu0 }
 0xcb9   : > { %v8573_v2 = vpop.eup %8572  ;;  %8578 = vpow2.f32 %v7596_v62  ;;  %v7771_v3 = vadd.f32 %v7770_v53, %v7769_v63  ;;  %v7772_v45 = vpop.f32.mrb[106].mxu0 }
 0xcba   : > { %v6926_v5 = vadd.f32 1.0, %v8573_v2  ;;  %v7773_v7 = vpop.f32.mrb[107].mxu0 }
 0xcbb   : > { %v8575_v11 = vpop.eup %8574  ;;  %v10392_v12 = vadd.f32 %v7771_v3, %v10376_v52  ;;  %v7774_v56 = vadd.f32 %v7773_v7, %v7772_v45 }
 0xcbc   : > { %8580 = vrcp.f32 %v6926_v5  ;;  %v6927_v14 = vadd.f32 1.0, %v8575_v11 }
 0xcbd   : > { %v7597_v18 = vmul.f32 -1.442695, %v10392_v12  ;;  %v10396_v31 = vadd.f32 %v7774_v56, %v10376_v52  ;;  %v6802_v3 = vmax.f32 %v10392_v12, 0.0 }
 0xcbe   : > { %8582 = vrcp.f32 %v6927_v14 }
 0xcbf   : > { %8584 = vpow2.f32 %v7597_v18  ;;  %v7598_v59 = vmul.f32 -1.442695, %v10396_v31  ;;  %v7775_v20 = vpop.f32.mrb[108].mxu0  ;;  %v6803_v56 = vmax.f32 %v10396_v31, 0.0 }
 0xcc0   : > { %v7776_v21 = vpop.f32.mrb[109].mxu0 }
 0xcc1   : > { %v8577_v15 = vpop.eup %8576  ;;  %8586 = vpow2.f32 %v7598_v59  ;;  %v7777_v57 = vadd.f32 %v7776_v21, %v7775_v20  ;;  %v7778_v16 = vpop.f32.mrb[110].mxu0 }
 0xcc2   : > { %v6928_v60 = vadd.f32 1.0, %v8577_v15  ;;  %v7779_v44 = vpop.f32.mrb[111].mxu0 }
 0xcc3   : > { %v8579_v55 = vpop.eup %8578  ;;  %v10403_v29 = vadd.f32 %v7777_v57, %v10376_v52  ;;  %v7780_v35 = vadd.f32 %v7779_v44, %v7778_v16 }
 0xcc4   : > { %8588 = vrcp.f32 %v6928_v60  ;;  %v6929_v36 = vadd.f32 1.0, %v8579_v55 }
 0xcc5   : > { %v7599_v41 = vmul.f32 -1.442695, %v10403_v29  ;;  %v10413_v47 = vadd.f32 %v7780_v35, %v10376_v52 }
 0xcc6   : > { %v8581_v24 = vpop.eup %8580  ;;  %8590 = vrcp.f32 %v6929_v36  ;;  %v6804_v36 = vmax.f32 %v10403_v29, 0.0 }
 0xcc7   : > { %v7022_v30 = vsel %vm6797_vm5, %v6798_v48, %v8581_v24  ;;  %8592 = vpow2.f32 %v7599_v41  ;;  %v7600_v26 = vmul.f32 -1.442695, %v10413_v47  ;;  %v7781_v4 = vpop.f32.mrb[112].mxu0 }
 0xcc8   : > { %v8583_v28 = vpop.eup %8582  ;;  %7054 = vst.msk [vmem:[%s10409_s22] sm:$0xff] %vm1035_vm1, %v7022_v30  ;;  %v7782_v32 = vpop.f32.mrb[113].mxu0 }
 0xcc9   : > { %v8585_v10 = vpop.eup %8584  ;;  %v7023_v33 = vsel %vm6797_vm5, %v6799_v25, %v8583_v28  ;;  %8594 = vpow2.f32 %v7600_v26  ;;  %v7783_v34 = vadd.f32 %v7782_v32, %v7781_v4  ;;  %v7784_v39 = vpop.f32.mrb[114].mxu0  ;;  %v6805_v25 = vmax.f32 %v10413_v47, 0.0 }
 0xcca   : > { %7055 = vst.msk [vmem:[%s10409_s22 + $0x8] sm:$0xff] %vm1035_vm1, %v7023_v33  ;;  %v6930_v23 = vadd.f32 1.0, %v8585_v10  ;;  %v7785_v43 = vpop.f32.mrb[115].mxu0 }
 0xccb   : > { %v8587_v40 = vpop.eup %8586  ;;  %v10426_v17 = vadd.f32 %v7783_v34, %v10376_v52  ;;  %v7786_v6 = vadd.f32 %v7785_v43, %v7784_v39 }
 0xccc   : > { %8596 = vrcp.f32 %v6930_v23  ;;  %v6931_v9 = vadd.f32 1.0, %v8587_v40 }
 0xccd   : > { %v7601_v58 = vmul.f32 -1.442695, %v10426_v17  ;;  %v10431_v0 = vadd.f32 %v7786_v6, %v10376_v52 }
 0xcce   : > { %v8589_v42 = vpop.eup %8588  ;;  %8598 = vrcp.f32 %v6931_v9  ;;  %v6806_v9 = vmax.f32 %v10426_v17, 0.0 }
 0xccf   : > { %v7024_v22 = vsel %vm6797_vm5, %v6800_v19, %v8589_v42  ;;  %8600 = vpow2.f32 %v7601_v58  ;;  %v7602_v51 = vmul.f32 -1.442695, %v10431_v0  ;;  %v7787_v27 = vpop.f32.mrb[116].mxu0 }
 0xcd0   : > { %v8591_v46 = vpop.eup %8590  ;;  %7056 = vst.msk [vmem:[%s10409_s22 + $0x10] sm:$0xff] %vm1035_vm1, %v7024_v22  ;;  %v7788_v8 = vpop.f32.mrb[117].mxu0 }
 0xcd1   : > { %v8593_v54 = vpop.eup %8592  ;;  %v7025_v49 = vsel %vm6797_vm5, %v6801_v1, %v8591_v46  ;;  %8602 = vpow2.f32 %v7602_v51  ;;  %v7789_v37 = vadd.f32 %v7788_v8, %v7787_v27  ;;  %v7790_v38 = vpop.f32.mrb[118].mxu0  ;;  %v6807_v1 = vmax.f32 %v10431_v0, 0.0 }
 0xcd2   : > { %7057 = vst.msk [vmem:[%s10409_s22 + $0x18] sm:$0xff] %vm1035_vm1, %v7025_v49  ;;  %v6932_v13 = vadd.f32 1.0, %v8593_v54  ;;  %v7791_v62 = vpop.f32.mrb[119].mxu0 }
 0xcd3   : > { %v8595_v61 = vpop.eup %8594  ;;  %v10444_v63 = vadd.f32 %v7789_v37, %v10376_v52  ;;  %v7792_v53 = vadd.f32 %v7791_v62, %v7790_v38 }
 0xcd4   : > { %8604 = vrcp.f32 %v6932_v13  ;;  %v6933_v2 = vadd.f32 1.0, %v8595_v61 }
 0xcd5   : > { %v7603_v45 = vmul.f32 -1.442695, %v10444_v63  ;;  %v10449_v5 = vadd.f32 %v7792_v53, %v10376_v52 }
 0xcd6   : > { %v8597_v7 = vpop.eup %8596  ;;  %8606 = vrcp.f32 %v6933_v2  ;;  %v6808_v2 = vmax.f32 %v10444_v63, 0.0 }
 0xcd7   : > { %v7026_v11 = vsel %vm6797_vm5, %v6802_v3, %v8597_v7  ;;  %8608 = vpow2.f32 %v7603_v45  ;;  %v7604_v14 = vmul.f32 -1.442695, %v10449_v5  ;;  %v7793_v18 = vpop.f32.mrb[120].mxu0 }
 0xcd8   : > { %v8599_v59 = vpop.eup %8598  ;;  %7058 = vst.msk [vmem:[%s10409_s22 + $0x20] sm:$0xff] %vm1035_vm1, %v7026_v11  ;;  %v7794_v12 = vpop.f32.mrb[121].mxu0 }
 0xcd9   : > { %v8601_v20 = vpop.eup %8600  ;;  %v7027_v21 = vsel %vm6797_vm5, %v6803_v56, %v8599_v59  ;;  %8610 = vpow2.f32 %v7604_v14  ;;  %v7795_v15 = vadd.f32 %v7794_v12, %v7793_v18  ;;  %v7796_v57 = vpop.f32.mrb[122].mxu0  ;;  %v6809_v56 = vmax.f32 %v10449_v5, 0.0 }
 0xcda   : > { %7059 = vst.msk [vmem:[%s10409_s22 + $0x28] sm:$0xff] %vm1035_vm1, %v7027_v21  ;;  %v6934_v16 = vadd.f32 1.0, %v8601_v20  ;;  %v7797_v60 = vpop.f32.mrb[123].mxu0 }
 0xcdb   : > { %v8603_v31 = vpop.eup %8602  ;;  %v10462_v44 = vadd.f32 %v7795_v15, %v10376_v52  ;;  %v7798_v55 = vadd.f32 %v7797_v60, %v7796_v57 }
 0xcdc   : > { %8612 = vrcp.f32 %v6934_v16  ;;  %v6935_v35 = vadd.f32 1.0, %v8603_v31 }
 0xcdd   : > { %v7605_v48 = vmul.f32 -1.442695, %v10462_v44  ;;  %v10467_v41 = vadd.f32 %v7798_v55, %v10376_v52 }
 0xcde   : > { %v8605_v24 = vpop.eup %8604  ;;  %8614 = vrcp.f32 %v6935_v35  ;;  %v6810_v35 = vmax.f32 %v10462_v44, 0.0 }
 0xcdf   : > { %v7028_v30 = vsel %vm6797_vm5, %v6804_v36, %v8605_v24  ;;  %8616 = vpow2.f32 %v7605_v48  ;;  %v7606_v26 = vmul.f32 -1.442695, %v10467_v41  ;;  %v7799_v4 = vpop.f32.mrb[124].mxu0 }
 0xce0   : > { %v8607_v28 = vpop.eup %8606  ;;  %7060 = vst.msk [vmem:[%s10409_s22 + $0x30] sm:$0xff] %vm1035_vm1, %v7028_v30  ;;  %v7800_v29 = vpop.f32.mrb[125].mxu0 }
 0xce1   : > { %v8609_v32 = vpop.eup %8608  ;;  %v7029_v10 = vsel %vm6797_vm5, %v6805_v25, %v8607_v28  ;;  %8618 = vpow2.f32 %v7606_v26  ;;  %v7801_v33 = vadd.f32 %v7800_v29, %v7799_v4  ;;  %v7802_v34 = vpop.f32.mrb[126].mxu0  ;;  %v6811_v25 = vmax.f32 %v10467_v41, 0.0 }
 0xce2   : > { %7061 = vst.msk [vmem:[%s10409_s22 + $0x38] sm:$0xff] %vm1035_vm1, %v7029_v10  ;;  %v6936_v39 = vadd.f32 1.0, %v8609_v32  ;;  %v7803_v23 = vpop.f32.mrb[127].mxu0 }
 0xce3   : > { %v8611_v47 = vpop.eup %8610  ;;  %v10480_v43 = vadd.f32 %v7801_v33, %v10376_v52  ;;  %v7804_v40 = vadd.f32 %v7803_v23, %v7802_v34 }
 0xce4   : > { %8620 = vrcp.f32 %v6936_v39  ;;  %v6937_v6 = vadd.f32 1.0, %v8611_v47 }
 0xce5   : > { %v7607_v19 = vmul.f32 -1.442695, %v10480_v43  ;;  %v10485_v58 = vadd.f32 %v7804_v40, %v10376_v52 }
 0xce6   : > { %v8613_v42 = vpop.eup %8612  ;;  %8622 = vrcp.f32 %v6937_v6  ;;  %v6812_v6 = vmax.f32 %v10480_v43, 0.0 }
 0xce7   : > { %v7030_v22 = vsel %vm6797_vm5, %v6806_v9, %v8613_v42  ;;  %8624 = vpow2.f32 %v7607_v19  ;;  %v7608_v51 = vmul.f32 -1.442695, %v10485_v58  ;;  %v7805_v27 = vpop.f32.mrb[128].mxu0 }
 0xce8   : > { %v8615_v46 = vpop.eup %8614  ;;  %7062 = vst.msk [vmem:[%s10409_s22 + $0x40] sm:$0xff] %vm1035_vm1, %v7030_v22  ;;  %v7806_v17 = vpop.f32.mrb[129].mxu0 }
 0xce9   : > { %v8617_v8 = vpop.eup %8616  ;;  %v7031_v54 = vsel %vm6797_vm5, %v6807_v1, %v8615_v46  ;;  %8626 = vpow2.f32 %v7608_v51  ;;  %v7807_v49 = vadd.f32 %v7806_v17, %v7805_v27  ;;  %v7808_v37 = vpop.f32.mrb[130].mxu0  ;;  %v6813_v1 = vmax.f32 %v10485_v58, 0.0 }
 0xcea   : > { %7063 = vst.msk [vmem:[%s10409_s22 + $0x48] sm:$0xff] %vm1035_vm1, %v7031_v54  ;;  %v6938_v38 = vadd.f32 1.0, %v8617_v8  ;;  %v7809_v13 = vpop.f32.mrb[131].mxu0 }
 0xceb   : > { %v8619_v0 = vpop.eup %8618  ;;  %v10498_v62 = vadd.f32 %v7807_v49, %v10376_v52  ;;  %v7810_v61 = vadd.f32 %v7809_v13, %v7808_v37 }
 0xcec   : > { %8628 = vrcp.f32 %v6938_v38  ;;  %v6939_v53 = vadd.f32 1.0, %v8619_v0 }
 0xced   : > { %v7609_v3 = vmul.f32 -1.442695, %v10498_v62  ;;  %v10503_v45 = vadd.f32 %v7810_v61, %v10376_v52 }
 0xcee   : > { %v8621_v7 = vpop.eup %8620  ;;  %8630 = vrcp.f32 %v6939_v53  ;;  %v6814_v53 = vmax.f32 %v10498_v62, 0.0 }
 0xcef   : > { %v7032_v11 = vsel %vm6797_vm5, %v6808_v2, %v8621_v7  ;;  %8632 = vpow2.f32 %v7609_v3  ;;  %v7610_v14 = vmul.f32 -1.442695, %v10503_v45  ;;  %v7811_v18 = vpop.f32.mrb[64].mxu1 }
 0xcf0   : > { %v8623_v59 = vpop.eup %8622  ;;  %7064 = vst.msk [vmem:[%s10409_s22 + $0x50] sm:$0xff] %vm1035_vm1, %v7032_v11  ;;  %v7812_v63 = vpop.f32.mrb[65].mxu1 }
 0xcf1   : > { %v8625_v12 = vpop.eup %8624  ;;  %v7033_v20 = vsel %vm6797_vm5, %v6809_v56, %v8623_v59  ;;  %8634 = vpow2.f32 %v7610_v14  ;;  %v7813_v21 = vadd.f32 %v7812_v63, %v7811_v18  ;;  %v7814_v15 = vpop.f32.mrb[66].mxu1  ;;  %v6815_v56 = vmax.f32 %v10503_v45, 0.0 }
 0xcf2   : > { %7065 = vst.msk [vmem:[%s10409_s22 + $0x58] sm:$0xff] %vm1035_vm1, %v7033_v20  ;;  %v6940_v57 = vadd.f32 1.0, %v8625_v12  ;;  %v7815_v16 = vpop.f32.mrb[67].mxu1 }
 0xcf3   : > { %v8627_v5 = vpop.eup %8626  ;;  %v10516_v60 = vadd.f32 %v7813_v21, %v10376_v52  ;;  %v7816_v31 = vadd.f32 %v7815_v16, %v7814_v15 }
 0xcf4   : > { %8636 = vrcp.f32 %v6940_v57  ;;  %v6941_v55 = vadd.f32 1.0, %v8627_v5 }
 0xcf5   : > { %v7611_v36 = vmul.f32 -1.442695, %v10516_v60  ;;  %v10521_v48 = vadd.f32 %v7816_v31, %v10376_v52 }
 0xcf6   : > { %v8629_v24 = vpop.eup %8628  ;;  %8638 = vrcp.f32 %v6941_v55  ;;  %v6816_v55 = vmax.f32 %v10516_v60, 0.0 }
 0xcf7   : > { %v7034_v30 = vsel %vm6797_vm5, %v6810_v35, %v8629_v24  ;;  %8640 = vpow2.f32 %v7611_v36  ;;  %v7612_v26 = vmul.f32 -1.442695, %v10521_v48  ;;  %v7817_v4 = vpop.f32.mrb[68].mxu1 }
 0xcf8   : > { %v8631_v28 = vpop.eup %8630  ;;  %7066 = vst.msk [vmem:[%s10409_s22 + $0x60] sm:$0xff] %vm1035_vm1, %v7034_v30  ;;  %v7818_v44 = vpop.f32.mrb[69].mxu1 }
 0xcf9   : > { %v8633_v29 = vpop.eup %8632  ;;  %v7035_v32 = vsel %vm6797_vm5, %v6811_v25, %v8631_v28  ;;  %8642 = vpow2.f32 %v7612_v26  ;;  %v7819_v10 = vadd.f32 %v7818_v44, %v7817_v4  ;;  %v7820_v33 = vpop.f32.mrb[70].mxu1  ;;  %v6817_v25 = vmax.f32 %v10521_v48, 0.0 }
 0xcfa   : > { %7067 = vst.msk [vmem:[%s10409_s22 + $0x68] sm:$0xff] %vm1035_vm1, %v7035_v32  ;;  %v6942_v34 = vadd.f32 1.0, %v8633_v29  ;;  %v7821_v39 = vpop.f32.mrb[71].mxu1 }
 0xcfb   : > { %v8635_v41 = vpop.eup %8634  ;;  %v10534_v23 = vadd.f32 %v7819_v10, %v10376_v52  ;;  %v7822_v47 = vadd.f32 %v7821_v39, %v7820_v33 }
 0xcfc   : > { %8644 = vrcp.f32 %v6942_v34  ;;  %v6943_v40 = vadd.f32 1.0, %v8635_v41 }
 0xcfd   : > { %v7613_v9 = vmul.f32 -1.442695, %v10534_v23  ;;  %v10539_v19 = vadd.f32 %v7822_v47, %v10376_v52 }
 0xcfe   : > { %v8637_v42 = vpop.eup %8636  ;;  %8646 = vrcp.f32 %v6943_v40  ;;  %v6818_v40 = vmax.f32 %v10534_v23, 0.0 }
 0xcff   : > { %v7036_v22 = vsel %vm6797_vm5, %v6812_v6, %v8637_v42  ;;  %8648 = vpow2.f32 %v7613_v9  ;;  %v7614_v51 = vmul.f32 -1.442695, %v10539_v19  ;;  %v7823_v27 = vpop.f32.mrb[72].mxu1 }
 0xd00   : > { %v8639_v46 = vpop.eup %8638  ;;  %7068 = vst.msk [vmem:[%s10409_s22 + $0x70] sm:$0xff] %vm1035_vm1, %v7036_v22  ;;  %v7824_v43 = vpop.f32.mrb[73].mxu1 }
 0xd01   : > { %v8641_v17 = vpop.eup %8640  ;;  %v7037_v8 = vsel %vm6797_vm5, %v6813_v1, %v8639_v46  ;;  %8650 = vpow2.f32 %v7614_v51  ;;  %v7825_v54 = vadd.f32 %v7824_v43, %v7823_v27  ;;  %v7826_v49 = vpop.f32.mrb[74].mxu1  ;;  %v6819_v1 = vmax.f32 %v10539_v19, 0.0 }
 0xd02   : > { %7069 = vst.msk [vmem:[%s10409_s22 + $0x78] sm:$0xff] %vm1035_vm1, %v7037_v8  ;;  %v6944_v37 = vadd.f32 1.0, %v8641_v17  ;;  %v7827_v38 = vpop.f32.mrb[75].mxu1 }
 0xd03   : > { %v8643_v58 = vpop.eup %8642  ;;  %v10552_v13 = vadd.f32 %v7825_v54, %v10376_v52  ;;  %v7828_v0 = vadd.f32 %v7827_v38, %v7826_v49 }
 0xd04   : > { %8652 = vrcp.f32 %v6944_v37  ;;  %v6945_v61 = vadd.f32 1.0, %v8643_v58 }
 0xd05   : > { %v7615_v2 = vmul.f32 -1.442695, %v10552_v13  ;;  %v10557_v3 = vadd.f32 %v7828_v0, %v10376_v52 }
 0xd06   : > { %v8645_v7 = vpop.eup %8644  ;;  %8654 = vrcp.f32 %v6945_v61  ;;  %v6820_v61 = vmax.f32 %v10552_v13, 0.0 }
 0xd07   : > { %v7038_v11 = vsel %vm6797_vm5, %v6814_v53, %v8645_v7  ;;  %8656 = vpow2.f32 %v7615_v2  ;;  %v7616_v14 = vmul.f32 -1.442695, %v10557_v3  ;;  %v7829_v18 = vpop.f32.mrb[76].mxu1 }
 0xd08   : > { %v8647_v59 = vpop.eup %8646  ;;  %7070 = vst.msk [vmem:[%s10409_s22 + $0x80] sm:$0xff] %vm1035_vm1, %v7038_v11  ;;  %v7830_v62 = vpop.f32.mrb[77].mxu1 }
 0xd09   : > { %v8649_v63 = vpop.eup %8648  ;;  %v7039_v12 = vsel %vm6797_vm5, %v6815_v56, %v8647_v59  ;;  %8658 = vpow2.f32 %v7616_v14  ;;  %v7831_v20 = vadd.f32 %v7830_v62, %v7829_v18  ;;  %v7832_v21 = vpop.f32.mrb[78].mxu1  ;;  %v6821_v56 = vmax.f32 %v10557_v3, 0.0 }
 0xd0a   : > { %7071 = vst.msk [vmem:[%s10409_s22 + $0x88] sm:$0xff] %vm1035_vm1, %v7039_v12  ;;  %v6946_v15 = vadd.f32 1.0, %v8649_v63  ;;  %v7833_v57 = vpop.f32.mrb[79].mxu1 }
 0xd0b   : > { %v8651_v45 = vpop.eup %8650  ;;  %v10570_v16 = vadd.f32 %v7831_v20, %v10376_v52  ;;  %v7834_v5 = vadd.f32 %v7833_v57, %v7832_v21 }
 0xd0c   : > { %8660 = vrcp.f32 %v6946_v15  ;;  %v6947_v31 = vadd.f32 1.0, %v8651_v45 }
 0xd0d   : > { %v7617_v35 = vmul.f32 -1.442695, %v10570_v16  ;;  %v10575_v36 = vadd.f32 %v7834_v5, %v10376_v52 }
 0xd0e   : > { %v8653_v24 = vpop.eup %8652  ;;  %8662 = vrcp.f32 %v6947_v31  ;;  %v6822_v31 = vmax.f32 %v10570_v16, 0.0 }
 0xd0f   : > { %v7040_v30 = vsel %vm6797_vm5, %v6816_v55, %v8653_v24  ;;  %8664 = vpow2.f32 %v7617_v35  ;;  %v7618_v26 = vmul.f32 -1.442695, %v10575_v36  ;;  %v7835_v4 = vpop.f32.mrb[80].mxu1 }
 0xd10   : > { %v8655_v28 = vpop.eup %8654  ;;  %7072 = vst.msk [vmem:[%s10409_s22 + $0x90] sm:$0xff] %vm1035_vm1, %v7040_v30  ;;  %v7836_v60 = vpop.f32.mrb[81].mxu1 }
 0xd11   : > { %v8657_v44 = vpop.eup %8656  ;;  %v7041_v29 = vsel %vm6797_vm5, %v6817_v25, %v8655_v28  ;;  %8666 = vpow2.f32 %v7618_v26  ;;  %v7837_v32 = vadd.f32 %v7836_v60, %v7835_v4  ;;  %v7838_v10 = vpop.f32.mrb[82].mxu1  ;;  %v6823_v25 = vmax.f32 %v10575_v36, 0.0 }
 0xd12   : > { %7073 = vst.msk [vmem:[%s10409_s22 + $0x98] sm:$0xff] %vm1035_vm1, %v7041_v29  ;;  %v6948_v33 = vadd.f32 1.0, %v8657_v44  ;;  %v7839_v34 = vpop.f32.mrb[83].mxu1 }
 0xd13   : > { %v8659_v48 = vpop.eup %8658  ;;  %v10588_v39 = vadd.f32 %v7837_v32, %v10376_v52  ;;  %v7840_v41 = vadd.f32 %v7839_v34, %v7838_v10 }
 0xd14   : > { %8668 = vrcp.f32 %v6948_v33  ;;  %v6949_v47 = vadd.f32 1.0, %v8659_v48 }
 0xd15   : > { %v7619_v6 = vmul.f32 -1.442695, %v10588_v39  ;;  %v10593_v9 = vadd.f32 %v7840_v41, %v10376_v52  ;;  %v6824_v36 = vmax.f32 %v10588_v39, 0.0 }
 0xd16   : > { %v8661_v42 = vpop.eup %8660  ;;  %8670 = vrcp.f32 %v6949_v47 }
 0xd17   : > { %v7042_v22 = vsel %vm6797_vm5, %v6818_v40, %v8661_v42  ;;  %8672 = vpow2.f32 %v7619_v6  ;;  %v7620_v51 = vmul.f32 -1.442695, %v10593_v9  ;;  %v7841_v27 = vpop.f32.mrb[84].mxu1  ;;  %v6825_v10 = vmax.f32 %v10593_v9, 0.0 }
 0xd18   : > { %v8663_v46 = vpop.eup %8662  ;;  %7074 = vst.msk [vmem:[%s10409_s22 + $0xa0] sm:$0xff] %vm1035_vm1, %v7042_v22  ;;  %v7842_v23 = vpop.f32.mrb[85].mxu1 }
 0xd19   : > { %v8665_v43 = vpop.eup %8664  ;;  %v7043_v17 = vsel %vm6797_vm5, %v6819_v1, %v8663_v46  ;;  %8674 = vpow2.f32 %v7620_v51  ;;  %v7843_v8 = vadd.f32 %v7842_v23, %v7841_v27  ;;  %v7844_v54 = vpop.f32.mrb[86].mxu1 }
 0xd1a   : > { %7075 = vst.msk [vmem:[%s10409_s22 + $0xa8] sm:$0xff] %vm1035_vm1, %v7043_v17  ;;  %v6950_v49 = vadd.f32 1.0, %v8665_v43  ;;  %v7845_v37 = vpop.f32.mrb[87].mxu1 }
 0xd1b   : > { %v8667_v19 = vpop.eup %8666  ;;  %v10606_v38 = vadd.f32 %v7843_v8, %v10376_v52  ;;  %v7846_v58 = vadd.f32 %v7845_v37, %v7844_v54 }
 0xd1c   : > { %8676 = vrcp.f32 %v6950_v49  ;;  %v6951_v0 = vadd.f32 1.0, %v8667_v19 }
 0xd1d   : > { %v7621_v53 = vmul.f32 -1.442695, %v10606_v38  ;;  %v10611_v2 = vadd.f32 %v7846_v58, %v10376_v52  ;;  %v6826_v40 = vmax.f32 %v10606_v38, 0.0 }
 0xd1e   : > { %v8669_v7 = vpop.eup %8668  ;;  %8678 = vrcp.f32 %v6951_v0 }
 0xd1f   : > { %v7044_v11 = vsel %vm6797_vm5, %v6820_v61, %v8669_v7  ;;  %8680 = vpow2.f32 %v7621_v53  ;;  %v7622_v14 = vmul.f32 -1.442695, %v10611_v2  ;;  %v7847_v18 = vpop.f32.mrb[88].mxu1  ;;  %v6827_v42 = vmax.f32 %v10611_v2, 0.0 }
 0xd20   : > { %v8671_v59 = vpop.eup %8670  ;;  %7076 = vst.msk [vmem:[%s10409_s22 + $0xb0] sm:$0xff] %vm1035_vm1, %v7044_v11  ;;  %v7848_v13 = vpop.f32.mrb[89].mxu1 }
 0xd21   : > { %v8673_v62 = vpop.eup %8672  ;;  %v7045_v63 = vsel %vm6797_vm5, %v6821_v56, %v8671_v59  ;;  %8682 = vpow2.f32 %v7622_v14  ;;  %v7849_v12 = vadd.f32 %v7848_v13, %v7847_v18  ;;  %v7850_v20 = vpop.f32.mrb[90].mxu1 }
 0xd22   : > { %7077 = vst.msk [vmem:[%s10409_s22 + $0xb8] sm:$0xff] %vm1035_vm1, %v7045_v63  ;;  %v6952_v21 = vadd.f32 1.0, %v8673_v62  ;;  %v7851_v15 = vpop.f32.mrb[91].mxu1 }
 0xd23   : > { %v8675_v3 = vpop.eup %8674  ;;  %v6789_v57 = vadd.f32 %v7849_v12, %v10376_v52  ;;  %v7852_v45 = vadd.f32 %v7851_v15, %v7850_v20 }
 0xd24   : > { %8684 = vrcp.f32 %v6952_v21  ;;  %v6953_v5 = vadd.f32 1.0, %v8675_v3 }
 0xd25   : > { %v7623_v55 = vmul.f32 -1.442695, %v6789_v57  ;;  %v6792_v35 = vadd.f32 %v7852_v45, %v10376_v52  ;;  %v6828_v51 = vmax.f32 %v6789_v57, 0.0 }
 0xd26   : > { %v8677_v24 = vpop.eup %8676  ;;  %8686 = vrcp.f32 %v6953_v5 }
 0xd27   : > { %v7046_v30 = vsel %vm6797_vm5, %v6822_v31, %v8677_v24  ;;  %8688 = vpow2.f32 %v7623_v55  ;;  %v7624_v26 = vmul.f32 -1.442695, %v6792_v35  ;;  %v6829_v23 = vmax.f32 %v6792_v35, 0.0 }
 0xd28   : > { %v8679_v4 = vpop.eup %8678  ;;  %7078 = vst.msk [vmem:[%s10409_s22 + $0xc0] sm:$0xff] %vm1035_vm1, %v7046_v30 }
 0xd29   : > { %v8681_v28 = vpop.eup %8680  ;;  %v7047_v16 = vsel %vm6797_vm5, %v6823_v25, %v8679_v4  ;;  %8690 = vpow2.f32 %v7624_v26 }
 0xd2a   : > { %7079 = vst.msk [vmem:[%s10409_s22 + $0xc8] sm:$0xff] %vm1035_vm1, %v7047_v16  ;;  %v6954_v52 = vadd.f32 1.0, %v8681_v28 }
 0xd2b   : > { %v8683_v60 = vpop.eup %8682 }
 0xd2c   : > { %8692 = vrcp.f32 %v6954_v52  ;;  %v6955_v44 = vadd.f32 1.0, %v8683_v60 }
 0xd2e   : > { %v8685_v29 = vpop.eup %8684  ;;  %8694 = vrcp.f32 %v6955_v44 }
 0xd2f   : > { %v7048_v32 = vsel %vm6797_vm5, %v6824_v36, %v8685_v29 }
 0xd30   : > { %v8687_v33 = vpop.eup %8686  ;;  %7080 = vst.msk [vmem:[%s10409_s22 + $0xd0] sm:$0xff] %vm1035_vm1, %v7048_v32 }
 0xd31   : > { %v8689_v34 = vpop.eup %8688  ;;  %v7049_v48 = vsel %vm6797_vm5, %v6825_v10, %v8687_v33 }
 0xd32   : > { %7081 = vst.msk [vmem:[%s10409_s22 + $0xd8] sm:$0xff] %vm1035_vm1, %v7049_v48  ;;  %v6956_v41 = vadd.f32 1.0, %v8689_v34 }
 0xd33   : > { %v8691_v39 = vpop.eup %8690 }
 0xd34   : > { %8696 = vrcp.f32 %v6956_v41  ;;  %v6957_v47 = vadd.f32 1.0, %v8691_v39 }
 0xd36   : > { %v8693_v6 = vpop.eup %8692  ;;  %8698 = vrcp.f32 %v6957_v47 }
 0xd37   : > { %v7050_v9 = vsel %vm6797_vm5, %v6826_v40, %v8693_v6 }
 0xd38   : > { %v8695_v22 = vpop.eup %8694  ;;  %7082 = vst.msk [vmem:[%s10409_s22 + $0xe0] sm:$0xff] %vm1035_vm1, %v7050_v9 }
 0xd39   : > { %v7051_v1 = vsel %vm6797_vm5, %v6827_v42, %v8695_v22 }
 0xd3a   : > { %7083 = vst.msk [vmem:[%s10409_s22 + $0xe8] sm:$0xff] %vm1035_vm1, %v7051_v1 }
 0xd3e   : > { %v8697_v27 = vpop.eup %8696 }
 0xd3f   : > { %v7052_v46 = vsel %vm6797_vm5, %v6828_v51, %v8697_v27 }
 0xd40   : > { %v8699_v43 = vpop.eup %8698  ;;  %7084 = vst.msk [vmem:[%s10409_s22 + $0xf0] sm:$0xff] %vm1035_vm1, %v7052_v46 }
 0xd41   : > { %v7053_v17 = vsel %vm6797_vm5, %v6829_v23, %v8699_v43 }
 0xd42   : > { %7085 = vst.msk [vmem:[%s10409_s22 + $0xf8] sm:$0xff] %vm1035_vm1, %v7053_v17 }
 0xd43 PF: > { %s73_s15 = sadd.s32 1, %s8830_s15  }
 0xd44   : > { %p70_p8 = scmp.ge.s32.totalorder %s73_s15, 6  }
 0xd46   :  { %72 = sbr.rel (!%p70_p8) target bundleno = 47 (0x2f), region = 213 }
 0xd4d   :  { %7108 = vsyncpa [#allocation3], 1 }
 0xd4e   :  { %7110 = vsyncpa [#allocation3 + $0x1], 1 }
 0xd4f   :  { %7111 = vsyncpa [#allocation5], 1 }

</bundles_post_ra>
